<compile_context>
chip_gen: v6e
topology: v6e:2x2x1
jax: 0.10.0
libtpu: 0.0.40
codegen_flags: <defaults>
</compile_context>

<pallas_src>
import functools

import jax
import jax.numpy as jnp
from jax.experimental import pallas as pl
from jax.experimental.pallas import tpu as pltpu

BN_EPS = 1e-5


# ----------------------------- Pallas kernels ------------------------------ #
def _mm_fused_kernel(a_ref, w_ref, scale_ref, shift_ref, o_ref, acc_ref, *, relu):
    """acc += a_tile @ w_tile; on last K-step apply folded BN scale/shift (+ReLU)."""
    k = pl.program_id(1)

    @pl.when(k == 0)
    def _():
        acc_ref[...] = jnp.zeros_like(acc_ref)

    acc_ref[...] += jnp.dot(a_ref[...], w_ref[...],
                            preferred_element_type=jnp.float32)

    @pl.when(k == pl.num_programs(1) - 1)
    def _():
        y = acc_ref[...] * scale_ref[...] + shift_ref[...]
        if relu:
            y = jnp.maximum(y, 0.0)
        o_ref[...] = y.astype(o_ref.dtype)


def matmul_fused(a, w, scale, shift, *, relu, tk, tn, out_dtype=jnp.float32):
    """y = maybe_relu((a @ w) * scale + shift).

    a: (M, K) bf16, w: (K, N) bf16, scale/shift: (1, N) f32.
    Grid is (N // tn, K // tk): N axis "parallel" (megacore split on v7x),
    K axis "arbitrary" with an f32 VMEM accumulator.  tk / tn are chosen per
    layer so K % tk == 0 and N % tn == 0 (no run-time padding copies).
    """
    M, K = a.shape
    K2, N = w.shape
    assert K == K2 and K % tk == 0 and N % tn == 0
    kernel = functools.partial(_mm_fused_kernel, relu=relu)
    return pl.pallas_call(
        kernel,
        out_shape=jax.ShapeDtypeStruct((M, N), out_dtype),
        grid_spec=pltpu.PrefetchScalarGridSpec(
            num_scalar_prefetch=0,
            grid=(N // tn, K // tk),
            in_specs=[
                pl.BlockSpec((M, tk), lambda j, k: (0, k)),   # activations
                pl.BlockSpec((tk, tn), lambda j, k: (k, j)),  # streamed weight tile
                pl.BlockSpec((1, tn), lambda j, k: (0, j)),   # folded BN scale
                pl.BlockSpec((1, tn), lambda j, k: (0, j)),   # folded BN shift+bias
            ],
            out_specs=pl.BlockSpec((M, tn), lambda j, k: (0, j)),
            scratch_shapes=[pltpu.VMEM((M, tn), jnp.float32)],
        ),
        compiler_params=pltpu.CompilerParams(
            dimension_semantics=("parallel", "arbitrary")),
    )(a, w, scale, shift)


def _fc_tail_kernel(h_ref, w2_ref, s2_ref, t2_ref, w3_ref, s3_ref, t3_ref,
                    w4_ref, t4_ref, o_ref):
    """fc2 -> BN -> ReLU -> fc3 -> BN -> ReLU -> fc4, all weights VMEM-resident."""
    y = jnp.dot(h_ref[...], w2_ref[...], preferred_element_type=jnp.float32)
    y = jnp.maximum(y * s2_ref[...] + t2_ref[...], 0.0)
    y = jnp.dot(y.astype(jnp.bfloat16), w3_ref[...],
                preferred_element_type=jnp.float32)
    y = jnp.maximum(y * s3_ref[...] + t3_ref[...], 0.0)
    y = jnp.dot(y.astype(jnp.bfloat16), w4_ref[...],
                preferred_element_type=jnp.float32)
    o_ref[...] = (y + t4_ref[...]).astype(o_ref.dtype)


def fc_tail_fused(h, w2, s2, t2, w3, s3, t3, w4, t4):
    """Single pallas_call for the small FC tail (everything fits in VMEM)."""
    B = h.shape[0]
    return pl.pallas_call(
        _fc_tail_kernel,
        out_shape=jax.ShapeDtypeStruct((B, w4.shape[1]), jnp.float32),
    )(h, w2, s2, t2, w3, s3, t3, w4, t4)


# ------------------------------- JAX glue ----------------------------------- #
def im2col_replicate(x, k=3):
    """x: (B, C, L) -> (B*L, C*k) patches with replicate padding (pad=1)."""
    B, C, L = x.shape
    xp = jnp.pad(x, ((0, 0), (0, 0), (1, 1)), mode="edge")
    cols = jnp.stack([xp[:, :, t:t + L] for t in range(k)], axis=-1)  # (B,C,L,k)
    return cols.transpose(0, 2, 1, 3).reshape(B * L, C * k)


def fold_bn(bias, gamma, beta, mean, var):
    """Fold conv/linear bias + eval-mode BatchNorm into (scale, shift)."""
    scale = gamma / jnp.sqrt(var + BN_EPS)
    shift = beta - mean * scale + bias * scale
    return scale, shift


def init_params(key):
    """Deterministic synthetic parameters, pre-packed for the kernels (bf16 weights)."""
    params = {}

    def nrm(k, shape, s=0.05):
        return jax.random.normal(k, shape, jnp.float32) * s

    keys = jax.random.split(key, 64)
    ki = 0

    def bn_stats(cout):
        nonlocal ki
        gamma = 1.0 + nrm(keys[ki], (cout,)); ki += 1
        beta = nrm(keys[ki], (cout,)); ki += 1
        mean = nrm(keys[ki], (cout,)); ki += 1
        var = 1.0 + jnp.abs(nrm(keys[ki], (cout,))); ki += 1
        return gamma, beta, mean, var

    # --- CNN stack -------------------------------------------------------- #
    convs = []
    for (cin, cout) in [(39, 256), (256, 512), (512, 1024)]:
        W = nrm(keys[ki], (cout, cin, 3)); ki += 1            # torch Conv1d weight
        b = nrm(keys[ki], (cout,)); ki += 1
        gamma, beta, mean, var = bn_stats(cout)
        Wm = W.reshape(cout, cin * 3).T.astype(jnp.bfloat16)  # (cin*3, cout) bf16
        scale, shift = fold_bn(b, gamma, beta, mean, var)
        convs.append((Wm, scale.reshape(1, cout), shift.reshape(1, cout)))
    params["convs"] = convs

    # --- FC1 (big streamed layer) ------------------------------------------ #
    fin, fout = 1024 * 11, 1024
    W = nrm(keys[ki], (fout, fin)); ki += 1                   # torch Linear weight
    b = nrm(keys[ki], (fout,)); ki += 1
    gamma, beta, mean, var = bn_stats(fout)
    scale, shift = fold_bn(b, gamma, beta, mean, var)
    params["fc1"] = (W.T.astype(jnp.bfloat16),
                     scale.reshape(1, fout), shift.reshape(1, fout))

    # --- FC tail: fc2, fc3 (BN+ReLU) and fc4 padded to 128 output lanes ---- #
    tail = []
    for (fin, fout) in [(1024, 512), (512, 128)]:
        W = nrm(keys[ki], (fout, fin)); ki += 1
        b = nrm(keys[ki], (fout,)); ki += 1
        gamma, beta, mean, var = bn_stats(fout)
        scale, shift = fold_bn(b, gamma, beta, mean, var)
        tail.append((W.T.astype(jnp.bfloat16),
                     scale.reshape(1, fout), shift.reshape(1, fout)))
    W = nrm(keys[ki], (39, 128)); ki += 1                     # Linear(128, 39)
    b = nrm(keys[ki], (39,)); ki += 1
    W4 = jnp.pad(W.T, ((0, 0), (0, 128 - 39))).astype(jnp.bfloat16)  # (128, 128)
    t4 = jnp.pad(b, (0, 128 - 39)).reshape(1, 128)
    tail.append((W4, t4))
    params["fc_tail"] = tail
    return params


# Per-layer (tk, tn): tk == K (single reduction step, no padding) except FC1,
# where K = 11264 streams in 4 tiles of 2816 (~2.75 MiB bf16 each, fits default
# scoped VMEM on all chips); tn splits N in two "parallel" blocks for v7x megacore.
_CONV_TILES = [(117, 256), (768, 256), (1536, 512)]
_FC1_TILES = (2816, 512)


def classifier_forward(x, params):
    """x: (B, 39, L=11) f32 -> logits (B, 39) f32.  Eval-mode forward pass."""
    B, _, L = x.shape
    h = x
    # CNN stack: Conv1d(replicate pad) -> BN -> (Dropout=id) -> ReLU, as im2col matmul.
    for (Wm, scale, shift), (tk, tn) in zip(params["convs"], _CONV_TILES):
        A = im2col_replicate(h).astype(jnp.bfloat16)               # (B*L, C_in*3)
        y = matmul_fused(A, Wm, scale, shift, relu=True, tk=tk, tn=tn,
                         out_dtype=jnp.bfloat16)                   # (B*L, C_out)
        cout = Wm.shape[1]
        h = y.reshape(B, L, cout).transpose(0, 2, 1)               # (B, C_out, L)
    # flatten exactly like torch x.view(B, -1) on (B, 1024, 11): channel-major.
    h = h.reshape(B, 1024 * L)                                     # (B, 11264) bf16

    W1, s1, t1 = params["fc1"]
    tk, tn = _FC1_TILES
    h = matmul_fused(h, W1, s1, t1, relu=True, tk=tk, tn=tn,
                     out_dtype=jnp.bfloat16)                       # (B, 1024) bf16

    (W2, s2, t2), (W3, s3, t3), (W4, t4) = params["fc_tail"]
    logits = fc_tail_fused(h, W2, s2, t2, W3, s3, t3, W4, t4)      # (B, 128) f32
    return logits[:, :39]


if __name__ == "__main__":
    key = jax.random.PRNGKey(0)
    kx, kp = jax.random.split(key)
    # Input consistent with the module: (batch=2, channels=39, length=11).
    x = jax.random.normal(kx, (2, 39, 11), jnp.float32)
    params = init_params(kp)

    fwd = jax.jit(classifier_forward)
    out = jax.block_until_ready(fwd(x, params))
    assert out.shape == (2, 39) and out.dtype == jnp.float32
    # TODO(synk): training-mode Dropout / batch-statistics BatchNorm are not
    # implemented; eval-mode semantics (identity dropout, folded BN) are used.
    print("KERNEL_OK")
</pallas_src>

<mosaic_0001>
module attributes {stable_mosaic.version = 11 : i64} {
  func.func @_mm_fused_kernel(%arg0: i32, %arg1: i32, %arg2: memref<22x117xbf16, #tpu.memory_space<vmem>>, %arg3: memref<117x256xbf16, #tpu.memory_space<vmem>>, %arg4: memref<1x256xf32, #tpu.memory_space<vmem>>, %arg5: memref<1x256xf32, #tpu.memory_space<vmem>>, %arg6: memref<22x256xbf16, #tpu.memory_space<vmem>>, %arg7: memref<22x256xf32, #tpu.memory_space<vmem>>) attributes {dimension_semantics = [#tpu.dimension_semantics<parallel>, #tpu.dimension_semantics<arbitrary>], iteration_bounds = array<i64: 1, 1>, scalar_prefetch = 0 : i64, scratch_operands = 1 : i64, tpu.core_type = #tpu.core_type<tc>, window_params = [{transform_indices = @transform_0, window_bounds = array<i64: 22, 117>}, {transform_indices = @transform_1, window_bounds = array<i64: 117, 256>}, {transform_indices = @transform_2, window_bounds = array<i64: 1, 256>}, {transform_indices = @transform_3, window_bounds = array<i64: 1, 256>}, {transform_indices = @transform_4, window_bounds = array<i64: 22, 256>}]} {
    %c0_i32 = arith.constant 0 : i32
    %0 = arith.cmpi eq, %arg1, %c0_i32 : i32
    %1 = arith.extui %0 : i1 to i32
    %c0_i32_0 = arith.constant 0 : i32
    %2 = arith.cmpi ne, %1, %c0_i32_0 : i32
    scf.if %2 {
      %cst_10 = arith.constant 0.000000e+00 : f32
      %12 = vector.broadcast %cst_10 : f32 to vector<22x256xf32>
      %c0_11 = arith.constant 0 : index
      %c0_12 = arith.constant 0 : index
      %13 = vector.load %arg7[%c0_11, %c0_12] : memref<22x256xf32, #tpu.memory_space<vmem>>, vector<22x256xf32>
      tpu.vector_store %arg7[%c0_11, %c0_12], %12 {strides = array<i32>} : memref<22x256xf32, #tpu.memory_space<vmem>>, vector<22x256xf32>,
    } else {
    }
    %c0 = arith.constant 0 : index
    %c0_1 = arith.constant 0 : index
    %3 = vector.load %arg7[%c0, %c0_1] : memref<22x256xf32, #tpu.memory_space<vmem>>, vector<22x256xf32>
    %c0_2 = arith.constant 0 : index
    %c0_3 = arith.constant 0 : index
    %4 = vector.load %arg2[%c0_2, %c0_3] : memref<22x117xbf16, #tpu.memory_space<vmem>>, vector<22x117xbf16>
    %c0_4 = arith.constant 0 : index
    %c0_5 = arith.constant 0 : index
    %5 = vector.load %arg3[%c0_4, %c0_5] : memref<117x256xbf16, #tpu.memory_space<vmem>>, vector<117x256xbf16>
    %cst = arith.constant dense<0.000000e+00> : vector<22x256xf32>
    %6 = tpu.matmul %4, %5, %cst {dimension_numbers = #tpu.dot_dimension_numbers<[1], [0], [0], [1], [0, 0, 1, 1], [], []>} : vector<22x117xbf16>, vector<117x256xbf16>, vector<22x256xf32> -> vector<22x256xf32>
    %7 = arith.addf %3, %6 : vector<22x256xf32>
    %c0_6 = arith.constant 0 : index
    %c0_7 = arith.constant 0 : index
    %8 = vector.load %arg7[%c0_6, %c0_7] : memref<22x256xf32, #tpu.memory_space<vmem>>, vector<22x256xf32>
    tpu.vector_store %arg7[%c0_6, %c0_7], %7 {strides = array<i32>} : memref<22x256xf32, #tpu.memory_space<vmem>>, vector<22x256xf32>,
    %c0_i32_8 = arith.constant 0 : i32
    %9 = arith.cmpi eq, %arg1, %c0_i32_8 : i32
    %10 = arith.extui %9 : i1 to i32
    %c0_i32_9 = arith.constant 0 : i32
    %11 = arith.cmpi ne, %10, %c0_i32_9 : i32
    scf.if %11 {
      %c0_10 = arith.constant 0 : index
      %c0_11 = arith.constant 0 : index
      %12 = vector.load %arg7[%c0_10, %c0_11] : memref<22x256xf32, #tpu.memory_space<vmem>>, vector<22x256xf32>
      %c0_12 = arith.constant 0 : index
      %c0_13 = arith.constant 0 : index
      %13 = vector.load %arg4[%c0_12, %c0_13] : memref<1x256xf32, #tpu.memory_space<vmem>>, vector<1x256xf32>
      %14 = vector.broadcast %13 : vector<1x256xf32> to vector<22x256xf32>
      %15 = arith.mulf %12, %14 : vector<22x256xf32>
      %c0_14 = arith.constant 0 : index
      %c0_15 = arith.constant 0 : index
      %16 = vector.load %arg5[%c0_14, %c0_15] : memref<1x256xf32, #tpu.memory_space<vmem>>, vector<1x256xf32>
      %17 = vector.broadcast %16 : vector<1x256xf32> to vector<22x256xf32>
      %18 = arith.addf %15, %17 : vector<22x256xf32>
      %cst_16 = arith.constant 0.000000e+00 : f32
      %19 = vector.broadcast %cst_16 : f32 to vector<22x256xf32>
      %20 = arith.maximumf %18, %19 : vector<22x256xf32>
      %21 = arith.truncf %20 : vector<22x256xf32> to vector<22x256xbf16>
      %c0_17 = arith.constant 0 : index
      %c0_18 = arith.constant 0 : index
      %22 = vector.load %arg6[%c0_17, %c0_18] : memref<22x256xbf16, #tpu.memory_space<vmem>>, vector<22x256xbf16>
      tpu.vector_store %arg6[%c0_17, %c0_18], %21 {strides = array<i32>} : memref<22x256xbf16, #tpu.memory_space<vmem>>, vector<22x256xbf16>,
    } else {
    }
    return
  }
  func.func @transform_0(%arg0: i32, %arg1: i32) -> (i32, i32) {
    %c0_i32 = arith.constant 0 : i32
    %c0_i32_0 = arith.constant 0 : i32
    return %c0_i32, %arg1 : i32, i32
  }
  func.func @transform_1(%arg0: i32, %arg1: i32) -> (i32, i32) {
    %c0_i32 = arith.constant 0 : i32
    return %arg1, %arg0 : i32, i32
  }
  func.func @transform_2(%arg0: i32, %arg1: i32) -> (i32, i32) {
    %c0_i32 = arith.constant 0 : i32
    %c0_i32_0 = arith.constant 0 : i32
    return %c0_i32, %arg0 : i32, i32
  }
  func.func @transform_3(%arg0: i32, %arg1: i32) -> (i32, i32) {
    %c0_i32 = arith.constant 0 : i32
    %c0_i32_0 = arith.constant 0 : i32
    return %c0_i32, %arg0 : i32, i32
  }
  func.func @transform_4(%arg0: i32, %arg1: i32) -> (i32, i32) {
    %c0_i32 = arith.constant 0 : i32
    %c0_i32_0 = arith.constant 0 : i32
    return %c0_i32, %arg0 : i32, i32
  }
}

module attributes {stable_mosaic.version = 11 : i64} {
  func.func @_mm_fused_kernel(%arg0: i32, %arg1: i32, %arg2: memref<22x768xbf16, #tpu.memory_space<vmem>>, %arg3: memref<768x256xbf16, #tpu.memory_space<vmem>>, %arg4: memref<1x256xf32, #tpu.memory_space<vmem>>, %arg5: memref<1x256xf32, #tpu.memory_space<vmem>>, %arg6: memref<22x256xbf16, #tpu.memory_space<vmem>>, %arg7: memref<22x256xf32, #tpu.memory_space<vmem>>) attributes {dimension_semantics = [#tpu.dimension_semantics<parallel>, #tpu.dimension_semantics<arbitrary>], iteration_bounds = array<i64: 2, 1>, scalar_prefetch = 0 : i64, scratch_operands = 1 : i64, tpu.core_type = #tpu.core_type<tc>, window_params = [{transform_indices = @transform_0, window_bounds = array<i64: 22, 768>}, {transform_indices = @transform_1, window_bounds = array<i64: 768, 256>}, {transform_indices = @transform_2, window_bounds = array<i64: 1, 256>}, {transform_indices = @transform_3, window_bounds = array<i64: 1, 256>}, {transform_indices = @transform_4, window_bounds = array<i64: 22, 256>}]} {
    %c0_i32 = arith.constant 0 : i32
    %0 = arith.cmpi eq, %arg1, %c0_i32 : i32
    %1 = arith.extui %0 : i1 to i32
    %c0_i32_0 = arith.constant 0 : i32
    %2 = arith.cmpi ne, %1, %c0_i32_0 : i32
    scf.if %2 {
      %cst_10 = arith.constant 0.000000e+00 : f32
      %12 = vector.broadcast %cst_10 : f32 to vector<22x256xf32>
      %c0_11 = arith.constant 0 : index
      %c0_12 = arith.constant 0 : index
      %13 = vector.load %arg7[%c0_11, %c0_12] : memref<22x256xf32, #tpu.memory_space<vmem>>, vector<22x256xf32>
      tpu.vector_store %arg7[%c0_11, %c0_12], %12 {strides = array<i32>} : memref<22x256xf32, #tpu.memory_space<vmem>>, vector<22x256xf32>,
    } else {
    }
    %c0 = arith.constant 0 : index
    %c0_1 = arith.constant 0 : index
    %3 = vector.load %arg7[%c0, %c0_1] : memref<22x256xf32, #tpu.memory_space<vmem>>, vector<22x256xf32>
    %c0_2 = arith.constant 0 : index
    %c0_3 = arith.constant 0 : index
    %4 = vector.load %arg2[%c0_2, %c0_3] : memref<22x768xbf16, #tpu.memory_space<vmem>>, vector<22x768xbf16>
    %c0_4 = arith.constant 0 : index
    %c0_5 = arith.constant 0 : index
    %5 = vector.load %arg3[%c0_4, %c0_5] : memref<768x256xbf16, #tpu.memory_space<vmem>>, vector<768x256xbf16>
    %cst = arith.constant dense<0.000000e+00> : vector<22x256xf32>
    %6 = tpu.matmul %4, %5, %cst {dimension_numbers = #tpu.dot_dimension_numbers<[1], [0], [0], [1], [0, 0, 1, 1], [], []>} : vector<22x768xbf16>, vector<768x256xbf16>, vector<22x256xf32> -> vector<22x256xf32>
    %7 = arith.addf %3, %6 : vector<22x256xf32>
    %c0_6 = arith.constant 0 : index
    %c0_7 = arith.constant 0 : index
    %8 = vector.load %arg7[%c0_6, %c0_7] : memref<22x256xf32, #tpu.memory_space<vmem>>, vector<22x256xf32>
    tpu.vector_store %arg7[%c0_6, %c0_7], %7 {strides = array<i32>} : memref<22x256xf32, #tpu.memory_space<vmem>>, vector<22x256xf32>,
    %c0_i32_8 = arith.constant 0 : i32
    %9 = arith.cmpi eq, %arg1, %c0_i32_8 : i32
    %10 = arith.extui %9 : i1 to i32
    %c0_i32_9 = arith.constant 0 : i32
    %11 = arith.cmpi ne, %10, %c0_i32_9 : i32
    scf.if %11 {
      %c0_10 = arith.constant 0 : index
      %c0_11 = arith.constant 0 : index
      %12 = vector.load %arg7[%c0_10, %c0_11] : memref<22x256xf32, #tpu.memory_space<vmem>>, vector<22x256xf32>
      %c0_12 = arith.constant 0 : index
      %c0_13 = arith.constant 0 : index
      %13 = vector.load %arg4[%c0_12, %c0_13] : memref<1x256xf32, #tpu.memory_space<vmem>>, vector<1x256xf32>
      %14 = vector.broadcast %13 : vector<1x256xf32> to vector<22x256xf32>
      %15 = arith.mulf %12, %14 : vector<22x256xf32>
      %c0_14 = arith.constant 0 : index
      %c0_15 = arith.constant 0 : index
      %16 = vector.load %arg5[%c0_14, %c0_15] : memref<1x256xf32, #tpu.memory_space<vmem>>, vector<1x256xf32>
      %17 = vector.broadcast %16 : vector<1x256xf32> to vector<22x256xf32>
      %18 = arith.addf %15, %17 : vector<22x256xf32>
      %cst_16 = arith.constant 0.000000e+00 : f32
      %19 = vector.broadcast %cst_16 : f32 to vector<22x256xf32>
      %20 = arith.maximumf %18, %19 : vector<22x256xf32>
      %21 = arith.truncf %20 : vector<22x256xf32> to vector<22x256xbf16>
      %c0_17 = arith.constant 0 : index
      %c0_18 = arith.constant 0 : index
      %22 = vector.load %arg6[%c0_17, %c0_18] : memref<22x256xbf16, #tpu.memory_space<vmem>>, vector<22x256xbf16>
      tpu.vector_store %arg6[%c0_17, %c0_18], %21 {strides = array<i32>} : memref<22x256xbf16, #tpu.memory_space<vmem>>, vector<22x256xbf16>,
    } else {
    }
    return
  }
  func.func @transform_0(%arg0: i32, %arg1: i32) -> (i32, i32) {
    %c0_i32 = arith.constant 0 : i32
    %c0_i32_0 = arith.constant 0 : i32
    return %c0_i32, %arg1 : i32, i32
  }
  func.func @transform_1(%arg0: i32, %arg1: i32) -> (i32, i32) {
    %c0_i32 = arith.constant 0 : i32
    return %arg1, %arg0 : i32, i32
  }
  func.func @transform_2(%arg0: i32, %arg1: i32) -> (i32, i32) {
    %c0_i32 = arith.constant 0 : i32
    %c0_i32_0 = arith.constant 0 : i32
    return %c0_i32, %arg0 : i32, i32
  }
  func.func @transform_3(%arg0: i32, %arg1: i32) -> (i32, i32) {
    %c0_i32 = arith.constant 0 : i32
    %c0_i32_0 = arith.constant 0 : i32
    return %c0_i32, %arg0 : i32, i32
  }
  func.func @transform_4(%arg0: i32, %arg1: i32) -> (i32, i32) {
    %c0_i32 = arith.constant 0 : i32
    %c0_i32_0 = arith.constant 0 : i32
    return %c0_i32, %arg0 : i32, i32
  }
}

module attributes {stable_mosaic.version = 11 : i64} {
  func.func @_mm_fused_kernel(%arg0: i32, %arg1: i32, %arg2: memref<22x1536xbf16, #tpu.memory_space<vmem>>, %arg3: memref<1536x512xbf16, #tpu.memory_space<vmem>>, %arg4: memref<1x512xf32, #tpu.memory_space<vmem>>, %arg5: memref<1x512xf32, #tpu.memory_space<vmem>>, %arg6: memref<22x512xbf16, #tpu.memory_space<vmem>>, %arg7: memref<22x512xf32, #tpu.memory_space<vmem>>) attributes {dimension_semantics = [#tpu.dimension_semantics<parallel>, #tpu.dimension_semantics<arbitrary>], iteration_bounds = array<i64: 2, 1>, scalar_prefetch = 0 : i64, scratch_operands = 1 : i64, tpu.core_type = #tpu.core_type<tc>, window_params = [{transform_indices = @transform_0, window_bounds = array<i64: 22, 1536>}, {transform_indices = @transform_1, window_bounds = array<i64: 1536, 512>}, {transform_indices = @transform_2, window_bounds = array<i64: 1, 512>}, {transform_indices = @transform_3, window_bounds = array<i64: 1, 512>}, {transform_indices = @transform_4, window_bounds = array<i64: 22, 512>}]} {
    %c0_i32 = arith.constant 0 : i32
    %0 = arith.cmpi eq, %arg1, %c0_i32 : i32
    %1 = arith.extui %0 : i1 to i32
    %c0_i32_0 = arith.constant 0 : i32
    %2 = arith.cmpi ne, %1, %c0_i32_0 : i32
    scf.if %2 {
      %cst_10 = arith.constant 0.000000e+00 : f32
      %12 = vector.broadcast %cst_10 : f32 to vector<22x512xf32>
      %c0_11 = arith.constant 0 : index
      %c0_12 = arith.constant 0 : index
      %13 = vector.load %arg7[%c0_11, %c0_12] : memref<22x512xf32, #tpu.memory_space<vmem>>, vector<22x512xf32>
      tpu.vector_store %arg7[%c0_11, %c0_12], %12 {strides = array<i32>} : memref<22x512xf32, #tpu.memory_space<vmem>>, vector<22x512xf32>,
    } else {
    }
    %c0 = arith.constant 0 : index
    %c0_1 = arith.constant 0 : index
    %3 = vector.load %arg7[%c0, %c0_1] : memref<22x512xf32, #tpu.memory_space<vmem>>, vector<22x512xf32>
    %c0_2 = arith.constant 0 : index
    %c0_3 = arith.constant 0 : index
    %4 = vector.load %arg2[%c0_2, %c0_3] : memref<22x1536xbf16, #tpu.memory_space<vmem>>, vector<22x1536xbf16>
    %c0_4 = arith.constant 0 : index
    %c0_5 = arith.constant 0 : index
    %5 = vector.load %arg3[%c0_4, %c0_5] : memref<1536x512xbf16, #tpu.memory_space<vmem>>, vector<1536x512xbf16>
    %cst = arith.constant dense<0.000000e+00> : vector<22x512xf32>
    %6 = tpu.matmul %4, %5, %cst {dimension_numbers = #tpu.dot_dimension_numbers<[1], [0], [0], [1], [0, 0, 1, 1], [], []>} : vector<22x1536xbf16>, vector<1536x512xbf16>, vector<22x512xf32> -> vector<22x512xf32>
    %7 = arith.addf %3, %6 : vector<22x512xf32>
    %c0_6 = arith.constant 0 : index
    %c0_7 = arith.constant 0 : index
    %8 = vector.load %arg7[%c0_6, %c0_7] : memref<22x512xf32, #tpu.memory_space<vmem>>, vector<22x512xf32>
    tpu.vector_store %arg7[%c0_6, %c0_7], %7 {strides = array<i32>} : memref<22x512xf32, #tpu.memory_space<vmem>>, vector<22x512xf32>,
    %c0_i32_8 = arith.constant 0 : i32
    %9 = arith.cmpi eq, %arg1, %c0_i32_8 : i32
    %10 = arith.extui %9 : i1 to i32
    %c0_i32_9 = arith.constant 0 : i32
    %11 = arith.cmpi ne, %10, %c0_i32_9 : i32
    scf.if %11 {
      %c0_10 = arith.constant 0 : index
      %c0_11 = arith.constant 0 : index
      %12 = vector.load %arg7[%c0_10, %c0_11] : memref<22x512xf32, #tpu.memory_space<vmem>>, vector<22x512xf32>
      %c0_12 = arith.constant 0 : index
      %c0_13 = arith.constant 0 : index
      %13 = vector.load %arg4[%c0_12, %c0_13] : memref<1x512xf32, #tpu.memory_space<vmem>>, vector<1x512xf32>
      %14 = vector.broadcast %13 : vector<1x512xf32> to vector<22x512xf32>
      %15 = arith.mulf %12, %14 : vector<22x512xf32>
      %c0_14 = arith.constant 0 : index
      %c0_15 = arith.constant 0 : index
      %16 = vector.load %arg5[%c0_14, %c0_15] : memref<1x512xf32, #tpu.memory_space<vmem>>, vector<1x512xf32>
      %17 = vector.broadcast %16 : vector<1x512xf32> to vector<22x512xf32>
      %18 = arith.addf %15, %17 : vector<22x512xf32>
      %cst_16 = arith.constant 0.000000e+00 : f32
      %19 = vector.broadcast %cst_16 : f32 to vector<22x512xf32>
      %20 = arith.maximumf %18, %19 : vector<22x512xf32>
      %21 = arith.truncf %20 : vector<22x512xf32> to vector<22x512xbf16>
      %c0_17 = arith.constant 0 : index
      %c0_18 = arith.constant 0 : index
      %22 = vector.load %arg6[%c0_17, %c0_18] : memref<22x512xbf16, #tpu.memory_space<vmem>>, vector<22x512xbf16>
      tpu.vector_store %arg6[%c0_17, %c0_18], %21 {strides = array<i32>} : memref<22x512xbf16, #tpu.memory_space<vmem>>, vector<22x512xbf16>,
    } else {
    }
    return
  }
  func.func @transform_0(%arg0: i32, %arg1: i32) -> (i32, i32) {
    %c0_i32 = arith.constant 0 : i32
    %c0_i32_0 = arith.constant 0 : i32
    return %c0_i32, %arg1 : i32, i32
  }
  func.func @transform_1(%arg0: i32, %arg1: i32) -> (i32, i32) {
    %c0_i32 = arith.constant 0 : i32
    return %arg1, %arg0 : i32, i32
  }
  func.func @transform_2(%arg0: i32, %arg1: i32) -> (i32, i32) {
    %c0_i32 = arith.constant 0 : i32
    %c0_i32_0 = arith.constant 0 : i32
    return %c0_i32, %arg0 : i32, i32
  }
  func.func @transform_3(%arg0: i32, %arg1: i32) -> (i32, i32) {
    %c0_i32 = arith.constant 0 : i32
    %c0_i32_0 = arith.constant 0 : i32
    return %c0_i32, %arg0 : i32, i32
  }
  func.func @transform_4(%arg0: i32, %arg1: i32) -> (i32, i32) {
    %c0_i32 = arith.constant 0 : i32
    %c0_i32_0 = arith.constant 0 : i32
    return %c0_i32, %arg0 : i32, i32
  }
}

module attributes {stable_mosaic.version = 11 : i64} {
  func.func @_mm_fused_kernel(%arg0: i32, %arg1: i32, %arg2: memref<2x2816xbf16, #tpu.memory_space<vmem>>, %arg3: memref<2816x512xbf16, #tpu.memory_space<vmem>>, %arg4: memref<1x512xf32, #tpu.memory_space<vmem>>, %arg5: memref<1x512xf32, #tpu.memory_space<vmem>>, %arg6: memref<2x512xbf16, #tpu.memory_space<vmem>>, %arg7: memref<2x512xf32, #tpu.memory_space<vmem>>) attributes {dimension_semantics = [#tpu.dimension_semantics<parallel>, #tpu.dimension_semantics<arbitrary>], iteration_bounds = array<i64: 2, 4>, scalar_prefetch = 0 : i64, scratch_operands = 1 : i64, tpu.core_type = #tpu.core_type<tc>, window_params = [{transform_indices = @transform_0, window_bounds = array<i64: 2, 2816>}, {transform_indices = @transform_1, window_bounds = array<i64: 2816, 512>}, {transform_indices = @transform_2, window_bounds = array<i64: 1, 512>}, {transform_indices = @transform_3, window_bounds = array<i64: 1, 512>}, {transform_indices = @transform_4, window_bounds = array<i64: 2, 512>}]} {
    %c0_i32 = arith.constant 0 : i32
    %0 = arith.cmpi eq, %arg1, %c0_i32 : i32
    %1 = arith.extui %0 : i1 to i32
    %c0_i32_0 = arith.constant 0 : i32
    %2 = arith.cmpi ne, %1, %c0_i32_0 : i32
    scf.if %2 {
      %cst_9 = arith.constant 0.000000e+00 : f32
      %12 = vector.broadcast %cst_9 : f32 to vector<2x512xf32>
      %c0_10 = arith.constant 0 : index
      %c0_11 = arith.constant 0 : index
      %13 = vector.load %arg7[%c0_10, %c0_11] : memref<2x512xf32, #tpu.memory_space<vmem>>, vector<2x512xf32>
      tpu.vector_store %arg7[%c0_10, %c0_11], %12 {strides = array<i32>} : memref<2x512xf32, #tpu.memory_space<vmem>>, vector<2x512xf32>,
    } else {
    }
    %c0 = arith.constant 0 : index
    %c0_1 = arith.constant 0 : index
    %3 = vector.load %arg7[%c0, %c0_1] : memref<2x512xf32, #tpu.memory_space<vmem>>, vector<2x512xf32>
    %c0_2 = arith.constant 0 : index
    %c0_3 = arith.constant 0 : index
    %4 = vector.load %arg2[%c0_2, %c0_3] : memref<2x2816xbf16, #tpu.memory_space<vmem>>, vector<2x2816xbf16>
    %c0_4 = arith.constant 0 : index
    %c0_5 = arith.constant 0 : index
    %5 = vector.load %arg3[%c0_4, %c0_5] : memref<2816x512xbf16, #tpu.memory_space<vmem>>, vector<2816x512xbf16>
    %cst = arith.constant dense<0.000000e+00> : vector<2x512xf32>
    %6 = tpu.matmul %4, %5, %cst {dimension_numbers = #tpu.dot_dimension_numbers<[1], [0], [0], [1], [0, 0, 1, 1], [], []>} : vector<2x2816xbf16>, vector<2816x512xbf16>, vector<2x512xf32> -> vector<2x512xf32>
    %7 = arith.addf %3, %6 : vector<2x512xf32>
    %c0_6 = arith.constant 0 : index
    %c0_7 = arith.constant 0 : index
    %8 = vector.load %arg7[%c0_6, %c0_7] : memref<2x512xf32, #tpu.memory_space<vmem>>, vector<2x512xf32>
    tpu.vector_store %arg7[%c0_6, %c0_7], %7 {strides = array<i32>} : memref<2x512xf32, #tpu.memory_space<vmem>>, vector<2x512xf32>,
    %c3_i32 = arith.constant 3 : i32
    %9 = arith.cmpi eq, %arg1, %c3_i32 : i32
    %10 = arith.extui %9 : i1 to i32
    %c0_i32_8 = arith.constant 0 : i32
    %11 = arith.cmpi ne, %10, %c0_i32_8 : i32
    scf.if %11 {
      %c0_9 = arith.constant 0 : index
      %c0_10 = arith.constant 0 : index
      %12 = vector.load %arg7[%c0_9, %c0_10] : memref<2x512xf32, #tpu.memory_space<vmem>>, vector<2x512xf32>
      %c0_11 = arith.constant 0 : index
      %c0_12 = arith.constant 0 : index
      %13 = vector.load %arg4[%c0_11, %c0_12] : memref<1x512xf32, #tpu.memory_space<vmem>>, vector<1x512xf32>
      %14 = vector.broadcast %13 : vector<1x512xf32> to vector<2x512xf32>
      %15 = arith.mulf %12, %14 : vector<2x512xf32>
      %c0_13 = arith.constant 0 : index
      %c0_14 = arith.constant 0 : index
      %16 = vector.load %arg5[%c0_13, %c0_14] : memref<1x512xf32, #tpu.memory_space<vmem>>, vector<1x512xf32>
      %17 = vector.broadcast %16 : vector<1x512xf32> to vector<2x512xf32>
      %18 = arith.addf %15, %17 : vector<2x512xf32>
      %cst_15 = arith.constant 0.000000e+00 : f32
      %19 = vector.broadcast %cst_15 : f32 to vector<2x512xf32>
      %20 = arith.maximumf %18, %19 : vector<2x512xf32>
      %21 = arith.truncf %20 : vector<2x512xf32> to vector<2x512xbf16>
      %c0_16 = arith.constant 0 : index
      %c0_17 = arith.constant 0 : index
      %22 = vector.load %arg6[%c0_16, %c0_17] : memref<2x512xbf16, #tpu.memory_space<vmem>>, vector<2x512xbf16>
      tpu.vector_store %arg6[%c0_16, %c0_17], %21 {strides = array<i32>} : memref<2x512xbf16, #tpu.memory_space<vmem>>, vector<2x512xbf16>,
    } else {
    }
    return
  }
  func.func @transform_0(%arg0: i32, %arg1: i32) -> (i32, i32) {
    %c0_i32 = arith.constant 0 : i32
    %c0_i32_0 = arith.constant 0 : i32
    return %c0_i32, %arg1 : i32, i32
  }
  func.func @transform_1(%arg0: i32, %arg1: i32) -> (i32, i32) {
    %c0_i32 = arith.constant 0 : i32
    return %arg1, %arg0 : i32, i32
  }
  func.func @transform_2(%arg0: i32, %arg1: i32) -> (i32, i32) {
    %c0_i32 = arith.constant 0 : i32
    %c0_i32_0 = arith.constant 0 : i32
    return %c0_i32, %arg0 : i32, i32
  }
  func.func @transform_3(%arg0: i32, %arg1: i32) -> (i32, i32) {
    %c0_i32 = arith.constant 0 : i32
    %c0_i32_0 = arith.constant 0 : i32
    return %c0_i32, %arg0 : i32, i32
  }
  func.func @transform_4(%arg0: i32, %arg1: i32) -> (i32, i32) {
    %c0_i32 = arith.constant 0 : i32
    %c0_i32_0 = arith.constant 0 : i32
    return %c0_i32, %arg0 : i32, i32
  }
}

module attributes {stable_mosaic.version = 11 : i64} {
  func.func @_fc_tail_kernel(%arg0: memref<2x1024xbf16, #tpu.memory_space<vmem>>, %arg1: memref<1024x512xbf16, #tpu.memory_space<vmem>>, %arg2: memref<1x512xf32, #tpu.memory_space<vmem>>, %arg3: memref<1x512xf32, #tpu.memory_space<vmem>>, %arg4: memref<512x128xbf16, #tpu.memory_space<vmem>>, %arg5: memref<1x128xf32, #tpu.memory_space<vmem>>, %arg6: memref<1x128xf32, #tpu.memory_space<vmem>>, %arg7: memref<128x128xbf16, #tpu.memory_space<vmem>>, %arg8: memref<1x128xf32, #tpu.memory_space<vmem>>, %arg9: memref<2x128xf32, #tpu.memory_space<vmem>>) attributes {dimension_semantics = [], scalar_prefetch = 0 : i64, scratch_operands = 0 : i64, tpu.core_type = #tpu.core_type<tc>} {
    %c0 = arith.constant 0 : index
    %c0_0 = arith.constant 0 : index
    %0 = vector.load %arg0[%c0, %c0_0] : memref<2x1024xbf16, #tpu.memory_space<vmem>>, vector<2x1024xbf16>
    %c0_1 = arith.constant 0 : index
    %c0_2 = arith.constant 0 : index
    %1 = vector.load %arg1[%c0_1, %c0_2] : memref<1024x512xbf16, #tpu.memory_space<vmem>>, vector<1024x512xbf16>
    %cst = arith.constant dense<0.000000e+00> : vector<2x512xf32>
    %2 = tpu.matmul %0, %1, %cst {dimension_numbers = #tpu.dot_dimension_numbers<[1], [0], [0], [1], [0, 0, 1, 1], [], []>} : vector<2x1024xbf16>, vector<1024x512xbf16>, vector<2x512xf32> -> vector<2x512xf32>
    %c0_3 = arith.constant 0 : index
    %c0_4 = arith.constant 0 : index
    %3 = vector.load %arg2[%c0_3, %c0_4] : memref<1x512xf32, #tpu.memory_space<vmem>>, vector<1x512xf32>
    %4 = vector.broadcast %3 : vector<1x512xf32> to vector<2x512xf32>
    %5 = arith.mulf %2, %4 : vector<2x512xf32>
    %c0_5 = arith.constant 0 : index
    %c0_6 = arith.constant 0 : index
    %6 = vector.load %arg3[%c0_5, %c0_6] : memref<1x512xf32, #tpu.memory_space<vmem>>, vector<1x512xf32>
    %7 = vector.broadcast %6 : vector<1x512xf32> to vector<2x512xf32>
    %8 = arith.addf %5, %7 : vector<2x512xf32>
    %cst_7 = arith.constant 0.000000e+00 : f32
    %9 = vector.broadcast %cst_7 : f32 to vector<2x512xf32>
    %10 = arith.maximumf %8, %9 : vector<2x512xf32>
    %11 = arith.truncf %10 : vector<2x512xf32> to vector<2x512xbf16>
    %c0_8 = arith.constant 0 : index
    %c0_9 = arith.constant 0 : index
    %12 = vector.load %arg4[%c0_8, %c0_9] : memref<512x128xbf16, #tpu.memory_space<vmem>>, vector<512x128xbf16>
    %cst_10 = arith.constant dense<0.000000e+00> : vector<2x128xf32>
    %13 = tpu.matmul %11, %12, %cst_10 {dimension_numbers = #tpu.dot_dimension_numbers<[1], [0], [0], [1], [0, 0, 1, 1], [], []>} : vector<2x512xbf16>, vector<512x128xbf16>, vector<2x128xf32> -> vector<2x128xf32>
    %c0_11 = arith.constant 0 : index
    %c0_12 = arith.constant 0 : index
    %14 = vector.load %arg5[%c0_11, %c0_12] : memref<1x128xf32, #tpu.memory_space<vmem>>, vector<1x128xf32>
    %15 = vector.broadcast %14 : vector<1x128xf32> to vector<2x128xf32>
    %16 = arith.mulf %13, %15 : vector<2x128xf32>
    %c0_13 = arith.constant 0 : index
    %c0_14 = arith.constant 0 : index
    %17 = vector.load %arg6[%c0_13, %c0_14] : memref<1x128xf32, #tpu.memory_space<vmem>>, vector<1x128xf32>
    %18 = vector.broadcast %17 : vector<1x128xf32> to vector<2x128xf32>
    %19 = arith.addf %16, %18 : vector<2x128xf32>
    %cst_15 = arith.constant 0.000000e+00 : f32
    %20 = vector.broadcast %cst_15 : f32 to vector<2x128xf32>
    %21 = arith.maximumf %19, %20 : vector<2x128xf32>
    %22 = arith.truncf %21 : vector<2x128xf32> to vector<2x128xbf16>
    %c0_16 = arith.constant 0 : index
    %c0_17 = arith.constant 0 : index
    %23 = vector.load %arg7[%c0_16, %c0_17] : memref<128x128xbf16, #tpu.memory_space<vmem>>, vector<128x128xbf16>
    %cst_18 = arith.constant dense<0.000000e+00> : vector<2x128xf32>
    %24 = tpu.matmul %22, %23, %cst_18 {dimension_numbers = #tpu.dot_dimension_numbers<[1], [0], [0], [1], [0, 0, 1, 1], [], []>} : vector<2x128xbf16>, vector<128x128xbf16>, vector<2x128xf32> -> vector<2x128xf32>
    %c0_19 = arith.constant 0 : index
    %c0_20 = arith.constant 0 : index
    %25 = vector.load %arg8[%c0_19, %c0_20] : memref<1x128xf32, #tpu.memory_space<vmem>>, vector<1x128xf32>
    %26 = vector.broadcast %25 : vector<1x128xf32> to vector<2x128xf32>
    %27 = arith.addf %24, %26 : vector<2x128xf32>
    %c0_21 = arith.constant 0 : index
    %c0_22 = arith.constant 0 : index
    %28 = vector.load %arg9[%c0_21, %c0_22] : memref<2x128xf32, #tpu.memory_space<vmem>>, vector<2x128xf32>
    tpu.vector_store %arg9[%c0_21, %c0_22], %27 {strides = array<i32>} : memref<2x128xf32, #tpu.memory_space<vmem>>, vector<2x128xf32>,
    return
  }
}

</mosaic_0001>

<bundles_post_ra>
// kernel: classifier_forward.5
= control target key start
LH: loop header
LB: loop body
LE: loop exit
PB: predicated region body
PF: predicated region fallthrough
CT: control target
= control target key end

     0   :  { %9 = vsyncpa [#allocation4], 0  ;;  %s528_s0 = inlined_call_operand.vmem [shape: bf16[22,117], index: 0, kind: input, shape index: {}]   ;;  %s529_s1 = inlined_call_operand.hbm [shape: bf16[117,256], index: 1, kind: input, shape index: {}]   ;;  %s530_s2 = inlined_call_operand.hbm [shape: f32[1,256], index: 2, kind: input, shape index: {}]   ;;  %s531_s3 = inlined_call_operand.hbm [shape: f32[1,256], index: 3, kind: input, shape index: {}]   ;;  %s532_s4 = inlined_call_operand.vmem [shape: bf16[22,256], index: 4, kind: output, shape index: {}]  }
   0x1   :  { %10 = vsyncpa [#allocation6], 0  ;;  %s471_s15 = smov [#allocation5]   ;;  %s472_s17 = smov [#allocation3]  }
   0x2   :  { %s31_s16 = sshll.u32 %s471_s15, 4  ;;  %s18_s18 = sshll.u32 %s472_s17, 4  ;;  %s32_s16 = int_to_ptr.vmem [resolvable:$true] %s31_s16  ;;  %s19_s18 = int_to_ptr.vmem [resolvable:$true] %s18_s18 }
   0x3   :  { %s415_s19 = scalar_lea.vmem %s32_s16, 32  ;;  %p420_p1 = scmp.lt.s32.totalorder %s32_s16, %s32_s16 }
   0x4   :  { %p416_p0 = scmp.ne.s32.totalorder %s32_s16, %s415_s19  ;;  %p421_p2 = scmp.lt.s32.totalorder %s415_s19, %s415_s19 }
   0x6   :  { %p422_p3 = por %p421_p2, %p420_p1 }
   0x8   :  { %p423_p4 = pnand %p422_p3, %p416_p0 }
   0xa   :  { %426 = shalt.err (!%p423_p4)
}
   0xb   :  { %34 = dma.hbm_to_vmem [thread:$0]  %s530_s2, 32, %s32_s16, [#allocation6]  }
   0xc   :  { %s435_s22 = scalar_lea.vmem %s19_s18, 1920  ;;  %p440_p6 = scmp.lt.s32.totalorder %s19_s18, %s19_s18 }
   0xd   :  { %p436_p5 = scmp.ne.s32.totalorder %s19_s18, %s435_s22  ;;  %p441_p7 = scmp.lt.s32.totalorder %s435_s22, %s435_s22 }
   0xf   :  { %p442_p8 = por %p441_p7, %p440_p6 }
  0x11   :  { %p443_p9 = pnand %p442_p8, %p436_p5 }
  0x13   :  { %446 = shalt.err (!%p443_p9)
}
  0x14   :  { %s473_s23 = smov 128   ;;  %s474_s24 = smov 8  }
  0x15   :  { %24 = dma.hbm_to_vmem [thread:$0]  %s529_s1, 1920, %s19_s18, [#allocation4], %s473_s23, %s473_s23, %s474_s24  }
  0x16   :  { %s475_s27 = smov [#allocation7]  }
  0x17   :  { %s41_s28 = sshll.u32 %s475_s27, 4  ;;  %s42_s28 = int_to_ptr.vmem [resolvable:$true] %s41_s28 }
  0x18   :  { %s455_s29 = scalar_lea.vmem %s42_s28, 32  ;;  %p460_p11 = scmp.lt.s32.totalorder %s42_s28, %s42_s28 }
  0x19   :  { %p456_p10 = scmp.ne.s32.totalorder %s42_s28, %s455_s29  ;;  %p461_p12 = scmp.lt.s32.totalorder %s455_s29, %s455_s29 }
  0x1b   :  { %p462_p13 = por %p461_p12, %p460_p11 }
  0x1d   :  { %p463_p0 = pnand %p462_p13, %p456_p10 }
  0x1f   :  { %466 = shalt.err (!%p463_p0)
}
  0x20   :  { %44 = dma.hbm_to_vmem [thread:$0]  %s531_s3, 32, %s42_s28, [#allocation6]  }
  0x21   :  { %467 = dma.done.wait [#allocation4], 1920  }
  0x22   :  { %468 = vsyncadd [#allocation4], 4294965376 }
  0x23   :  { %469 = dma.done.wait [#allocation6], 64  }
  0x24   :  { %470 = vsyncadd [#allocation6], 4294967232  ;;  %vm179_vm0 = vcmask 1041408   ;;  %v476_v0 = vmov 0   ;;  %v477_v1 = vmov 0.0   ;;  %vm180_vm1 = vcmask 1042432  }
  0x25   :  { %221 = vmatprep.mubr.bf16.mxu0 %v476_v0  ;;  %231 = vmatprep.mubr.bf16.mxu1 %v476_v0  ;;  %63 = vst [vmem:[#allocation2 + $0x18] sm:$0x3f] %v477_v1  ;;  %64 = vst [vmem:[#allocation2 + $0x20] sm:$0x3f] %v477_v1  ;;  %v478_v2 = vmov 65535   ;;  %v405_v24 = vld [vmem:[%s528_s0] sm:$0xff]   ;;  %v263_v26 = vlaneseq }
  0x26   :  { %v181_v3 = vsel %vm179_vm0, 4294967295, %v478_v2  ;;  %v88_v4 = vld [vmem:[#allocation3 + $0x70] sm:$0x77]  ;;  %v384_v10 = vld [vmem:[#allocation3 + $0x64] ss:$8 sps:$4 sm:$0xff]   ;;  %vm172_vm2 = vcmask 957440  }
  0x27   :  { %v182_v5 = vsel %vm180_vm1, %v181_v3, 0  ;;  %v349_v6 = vcombine.high %v88_v4, %v88_v4  ;;  %v348_v7 = vcombine.low %v88_v4, %v88_v4  ;;  %v386_v11 = vld [vmem:[#allocation3 + $0x60] ss:$8 sps:$4 sm:$0xff]   ;;  %v387_v12 = vld [vmem:[#allocation3 + $0x54] ss:$8 sps:$4 sm:$0xff]   ;;  %v264_v27 = vshrl.u32 %v263_v26, 7 }
  0x28   :  { %v389_v13 = vld [vmem:[#allocation3 + $0x50] ss:$8 sps:$4 sm:$0xff]   ;;  %v390_v14 = vld [vmem:[#allocation3 + $0x44] ss:$8 sps:$4 sm:$0xff]   ;;  %v392_v15 = vld [vmem:[#allocation3 + $0x40] ss:$8 sps:$4 sm:$0xff]  }
  0x29   :  { %v187_v8 = vand.u32 %v349_v6, %v182_v5  ;;  %v184_v9 = vand.u32 %v348_v7, %v182_v5  ;;  %v393_v16 = vld [vmem:[#allocation3 + $0x34] ss:$8 sps:$4 sm:$0xff]   ;;  %v395_v17 = vld [vmem:[#allocation3 + $0x30] ss:$8 sps:$4 sm:$0xff]   ;;  %v396_v18 = vld [vmem:[#allocation3 + $0x24] ss:$8 sps:$4 sm:$0xff]  }
  0x2a   :  { %v398_v19 = vld [vmem:[#allocation3 + $0x20] ss:$8 sps:$4 sm:$0xff]   ;;  %v399_v20 = vld [vmem:[#allocation3 + $0x14] ss:$8 sps:$4 sm:$0xff]   ;;  %v401_v21 = vld [vmem:[#allocation3 + $0x10] ss:$8 sps:$4 sm:$0xff]  }
  0x2b   :  { %189 = vmatprep.subr.bf16.mxu0 %v187_v8  ;;  %358 = vmatprep.subr.bf16.mxu1 %v187_v8  ;;  %v402_v22 = vld [vmem:[#allocation3 + $0x4] ss:$8 sps:$4 sm:$0xff]   ;;  %v404_v23 = vld [vmem:[#allocation3] ss:$8 sps:$4 sm:$0xff]   ;;  %v265_v28 = vsub.s32 0, %v264_v27  ;;  %v269_v30 = vsub.s32 1, %v264_v27 }
  0x2c   :  { %190 = vmatpush1.bf16.msra.mxu0 %v184_v9  ;;  %366 = vmatpush1.bf16.msra.mxu1 %v184_v9  ;;  %v406_v25 = vld [vmem:[%s528_s0 + $0x8] ss:$0 sps:$4 sm:$0x77]   ;;  %v279_v31 = vld [vmem:[#allocation7] sm:$0x3] }
  0x2d   :  { %191 = vmatprep.subr.bf16.mxu0 %v384_v10  ;;  %359 = vmatprep.subr.bf16.mxu1 %v384_v10  ;;  %v261_v29 = vld [vmem:[#allocation5] sm:$0x3]  ;;  %v69_v32 = vld [vmem:[#allocation2 + $0x18] sm:$0x3f]  ;;  %v70_v36 = vld [vmem:[#allocation2 + $0x20] sm:$0x3f]  ;;  %v284_v37 = vrot.slane %v279_v31, %v265_v28  ;;  %v288_v43 = vrot.slane %v279_v31, %v269_v30 }
  0x2e   :  { %v266_v33 = vrot.slane %v261_v29, %v265_v28  ;;  %v270_v39 = vrot.slane %v261_v29, %v269_v30 }
  0x30   :  { %192 = vmatpush1.bf16.msra.mxu0 %v386_v11  ;;  %367 = vmatpush1.bf16.msra.mxu1 %v386_v11 }
  0x31   :  { %193 = vmatprep.subr.bf16.mxu0 %v387_v12  ;;  %360 = vmatprep.subr.bf16.mxu1 %v387_v12 }
  0x34   :  { %194 = vmatpush1.bf16.msra.mxu0 %v389_v13  ;;  %368 = vmatpush1.bf16.msra.mxu1 %v389_v13 }
  0x35   :  { %195 = vmatprep.subr.bf16.mxu0 %v390_v14  ;;  %361 = vmatprep.subr.bf16.mxu1 %v390_v14 }
  0x38   :  { %196 = vmatpush1.bf16.msra.mxu0 %v392_v15  ;;  %369 = vmatpush1.bf16.msra.mxu1 %v392_v15 }
  0x39   :  { %197 = vmatprep.subr.bf16.mxu0 %v393_v16  ;;  %362 = vmatprep.subr.bf16.mxu1 %v393_v16 }
  0x3c   :  { %198 = vmatpush1.bf16.msra.mxu0 %v395_v17  ;;  %370 = vmatpush1.bf16.msra.mxu1 %v395_v17 }
  0x3d   :  { %199 = vmatprep.subr.bf16.mxu0 %v396_v18  ;;  %363 = vmatprep.subr.bf16.mxu1 %v396_v18 }
  0x40   :  { %200 = vmatpush1.bf16.msra.mxu0 %v398_v19  ;;  %371 = vmatpush1.bf16.msra.mxu1 %v398_v19 }
  0x41   :  { %201 = vmatprep.subr.bf16.mxu0 %v399_v20  ;;  %364 = vmatprep.subr.bf16.mxu1 %v399_v20 }
  0x44   :  { %202 = vmatpush1.bf16.msra.mxu0 %v401_v21  ;;  %372 = vmatpush1.bf16.msra.mxu1 %v401_v21 }
  0x45   :  { %203 = vmatprep.subr.bf16.mxu0 %v402_v22  ;;  %365 = vmatprep.subr.bf16.mxu1 %v402_v22 }
  0x48   :  { %204 = vmatpush1.bf16.msra.mxu0 %v404_v23  ;;  %373 = vmatpush1.bf16.msra.mxu1 %v404_v23 }
  0x4b   :  { %350 = vmatmul.mubr.msk.bf16.vlgmr.msra.gmra.mxu0 %vm172_vm2, %v405_v24  ;;  %351 = vmatmul.mubr.msk.bf16.vlgmr.msra.gmra.mxu1 %vm172_vm2, %v406_v25 }
 0x10b   :  { %v223_v34 = vpop.f32.mrf.mxu0  ;;  %v233_v35 = vpop.f32.mrf.mxu1 }
 0x10c   :  { %v244_v38 = vadd.f32 %v233_v35, %v69_v32  ;;  %v273_v42 = vmul.f32 %v266_v33, %v223_v34 }
 0x10d   :  { %v225_v40 = vpop.f32.mrf.mxu0  ;;  %v235_v41 = vpop.f32.mrf.mxu1 }
 0x10e   :  { %250 = vst [vmem:[#allocation2 + $0x18] sm:$0x3f] %v244_v38  ;;  %v245_v44 = vadd.f32 %v235_v41, %v70_v36  ;;  %v291_v47 = vadd.f32 %v284_v37, %v273_v42  ;;  %v274_v48 = vmul.f32 %v270_v39, %v225_v40 }
 0x10f   :  { %v227_v45 = vpop.f32.mrf.mxu0  ;;  %v237_v46 = vpop.f32.mrf.mxu1 }
 0x110   :  { %251 = vst [vmem:[#allocation2 + $0x20] sm:$0x3f] %v245_v44  ;;  %v297_v51 = vmax.f32 %v291_v47, 0.0  ;;  %v292_v52 = vadd.f32 %v288_v43, %v274_v48  ;;  %v275_v53 = vmul.f32 %v266_v33, %v227_v45 }
 0x111   :  { %v229_v49 = vpop.f32.mrf.mxu0  ;;  %v238_v50 = vpop.f32.mrf.mxu1 }
 0x112   :  { %v298_v54 = vmax.f32 %v292_v52, 0.0  ;;  %v293_v55 = vadd.f32 %v284_v37, %v275_v53  ;;  %v276_v56 = vmul.f32 %v270_v39, %v229_v49 }
 0x114   :  { %v355_v59 = vpack.c.bf16 %v298_v54, %v297_v51  ;;  %v294_v60 = vadd.f32 %v288_v43, %v276_v56  ;;  %v299_v0 = vmax.f32 %v293_v55, 0.0 }
 0x115   :  { %v259_v57 = vld [vmem:[#allocation2 + $0x18] sm:$0x3f] }
 0x116   :  { %v277_v58 = vmul.f32 %v266_v33, %v259_v57  ;;  %323 = vst [vmem:[%s532_s4] sm:$0xff] %v355_v59  ;;  %v300_v1 = vmax.f32 %v294_v60, 0.0 }
 0x117   :  { %v260_v61 = vld [vmem:[#allocation2 + $0x20] sm:$0x3f] }
 0x118   :  { %v295_v62 = vadd.f32 %v284_v37, %v277_v58  ;;  %v278_v63 = vmul.f32 %v270_v39, %v260_v61  ;;  %v356_v3 = vpack.c.bf16 %v300_v1, %v299_v0 }
 0x11a   :  { %v296_v2 = vadd.f32 %v288_v43, %v278_v63  ;;  %v301_v4 = vmax.f32 %v295_v62, 0.0  ;;  %324 = vst [vmem:[%s532_s4 + $0x8] sm:$0xff] %v356_v3 }
 0x11c   :  { %v302_v5 = vmax.f32 %v296_v2, 0.0 }
 0x11e   :  { %v357_v6 = vpack.c.bf16 %v302_v5, %v301_v4 }
 0x120   :  { %325 = vst [vmem:[%s532_s4 + $0x10] sm:$0x77] %v357_v6 }
 0x121   :  { %330 = vsyncpa [#allocation4], 1 }
 0x122   :  { %331 = vsyncpa [#allocation6], 1 }

// kernel: classifier_forward.6
= control target key start
LH: loop header
LB: loop body
LE: loop exit
PB: predicated region body
PF: predicated region fallthrough
CT: control target
= control target key end

     0   :  { %s2278_s0 = inlined_call_operand.vmem [shape: bf16[22,768], index: 0, kind: input, shape index: {}]   ;;  %s2279_s1 = inlined_call_operand.hbm [shape: bf16[768,512], index: 1, kind: input, shape index: {}]   ;;  %s2280_s2 = inlined_call_operand.hbm [shape: f32[1,512], index: 2, kind: input, shape index: {}]   ;;  %s2281_s3 = inlined_call_operand.hbm [shape: f32[1,512], index: 3, kind: input, shape index: {}]   ;;  %s2282_s4 = inlined_call_operand.vmem [shape: bf16[22,512], index: 4, kind: output, shape index: {}]  }
   0x1   :  { %2284 = sst [smem:[#allocation11_spill]] %s2279_s1 }
   0x2   :  { %2285 = sst [smem:[#allocation12_spill]] %s2280_s2 }
   0x3   :  { %9 = vsyncpa [#allocation4], 0 }
   0x4   :  { %11 = vsyncpa [#allocation4 + $0x1], 0 }
   0x5   :  { %12 = vsyncpa [#allocation6], 0 }
   0x6   :  { %14 = vsyncpa [#allocation6 + $0x1], 0  ;;  %s1975_s15 = smov 0   ;;  %s1977_s16 = smov 0  }
   0x7   :  { %s1979_s17 = smov 0   ;;  %s1981_s18 = smov 0  }
   0x8   :  { %s1983_s19 = smov 0   ;;  %s1985_s20 = smov 0  }
   0x9 LB: > { %s2004_s21 = sadd.s32 4294967295, %s1941_s20   ;;  %s32_s22 = sadd.s32 1, %s1937_s19  ;;  %s1941_s20 = sphi %s1985_s20, %s20_s20   ;;  %s1937_s19 = sphi %s1983_s19, %s2298_s19   ;;  %s1933_s18 = sphi %s1981_s18, %s2297_s18   ;;  %s1929_s17 = sphi %s1979_s17, %s2296_s17   ;;  %s1925_s16 = sphi %s1977_s16, %s2295_s16   ;;  %s1921_s15 = sphi %s1975_s15, %s2294_s15  }
   0xa   : > { %p34_p0 = scmp.ge.s32.totalorder %s32_s22, 2  ;;  %s67_s23 = sadd.s32 1, %s1929_s17 }
   0xb   : > { %p74_p1 = scmp.ne.s32.totalorder %s1929_s17, %s1925_s16  ;;  %p75_p2 = scmp.eq.s32.totalorder %s1941_s20, 0 }
   0xc   : > { %s2300_s22 = smov (%p34_p0, %s32_s22), 0  ;;  %p80_p4 = scmp.ne.s32.totalorder %s1925_s16, %s1921_s15 }
   0xd   : > { %p2013_p3 = por %p75_p2, %p74_p1  ;;  %s63_s25 = ssub.s32 %s1937_s19, %s2300_s22 }
   0xe   : > { %p81_p5 = scmp.eq.s32.totalorder %s2004_s21, 0  ;;  %p65_p6 = scmp.eq.s32.totalorder %s63_s25, 0 }
   0xf   : > { %p156_p7 = scmp.eq.s32.totalorder %s2004_s21, 1  ;;  %p1591_p10 = scmp.lt.s32.totalorder %s1941_s20, 2 }
  0x10   : > { %p2022_p8 = por %p81_p5, %p80_p4  ;;  %s2035_s29 = sand.u32 1, %s1929_s17  }
  0x11   : > { %s2027_s27 = scalar_select %p65_p6, %s1929_s17, %s67_s23  }
  0x12   : > { %p2029_p9 = por %p156_p7, %p74_p1  ;;  %s215_s30 = sand.u32 1, %s1941_s20  }
  0x13   : > { %s1572_s5 = smul.u32 768, %s2035_s29  ;;  %p2041_p11 = pnand %p1591_p10, %p2013_p3 }
  0x14   : > { %s2283_s7 = sshll.u32 %s2035_s29, 1  ;;  %s1534_s10 = sshll.u32 %s1937_s19, 5 }
  0x15   : > { %s195_s8 = scalar_lea.vmem [#allocation3], %s1572_s5  ;;  %s219_s11 = scalar_lea.vmem [#allocation5], %s2283_s7 }
  0x16   : > { %s205_s9 = sshll.u32 %s195_s8, 4  ;;  %s227_s12 = sshll.u32 %s219_s11, 4  ;;  %s2046_s9 = int_to_ptr.vmem [resolvable:$true] %s205_s9  ;;  %s228_s12 = int_to_ptr.vmem [resolvable:$true] %s227_s12 }
  0x17   : > { %s2290_s2 = sld [smem:[#allocation12_spill]]  ;;  %s2054_s23 = scalar_lea.sflag [#allocation6], %s215_s30 }
  0x18   : > { %p1805_p12 = pneg %p2041_p11  ;;  %s1816_s24 = scalar_lea.vmem %s228_s12, 32 }
  0x19   : > { %p1817_p13 = scmp.ne.s32.totalorder %s228_s12, %s1816_s24  ;;  %s1943_s25 = smov [#allocation5]  }
  0x1a   : > { %s1821_s5 = sshll.u32 %s1943_s25, 4  ;;  %s1822_s5 = int_to_ptr.vmem [resolvable:$false] %s1821_s5 }
  0x1b   : > { %p1819_p0 = pnand %p1817_p13, %p1805_p12  ;;  %s1823_s8 = scalar_lea.vmem %s1822_s5, 64 }
  0x1c   : > { %p1824_p2 = scmp.lt.s32.totalorder %s228_s12, %s1822_s5  ;;  %p1825_p3 = scmp.lt.s32.totalorder %s1823_s8, %s1816_s24 }
  0x1d   : > { %s225_s15 = scalar_lea.hbm %s2290_s2, %s1534_s10  ;;  %p1820_p1 = pneg %p1819_p0 }
  0x1e   : > { %p1826_p4 = por %p1825_p3, %p1824_p2 }
  0x20   : > { %p1827_p5 = pnand %p1826_p4, %p1820_p1 }
  0x22   : > { %1830 = shalt.err (!%p1827_p5)
}
  0x23   : > { %1587 = dma.hbm_to_vmem [thread:$0]  (!%p2041_p11), %s225_s15, 32, %s228_s12, %s2054_s23  }
  0x24   : > { %s2067_s13 = scalar_lea.hbm %s2281_s3, %s1534_s10  ;;  %p1415_p6 = scmp.ge.s32.totalorder %s1941_s20, 1 }
  0x25   : > { %p251_p7 = scmp.lt.s32.totalorder %s1941_s20, 3  ;;  %s1533_s14 = sshll.u32 %s1937_s19, 7 }
  0x26   : > { %s2292_s1 = sld [smem:[#allocation11_spill]]  ;;  %s192_s7 = scalar_lea.sflag [#allocation4], %s2035_s29 }
  0x27   : > { %p2072_p10 = pnand %p1415_p6, %p251_p7  ;;  %s1844_s2 = scalar_lea.vmem %s2046_s9, 12288 }
  0x28   : > { %p1845_p13 = scmp.ne.s32.totalorder %s2046_s9, %s1844_s2  ;;  %s1944_s10 = smov [#allocation3]  }
  0x29   : > { %s1849_s12 = sshll.u32 %s1944_s10, 4  ;;  %s1850_s12 = int_to_ptr.vmem [resolvable:$false] %s1849_s12 }
  0x2a   : > { %p1847_p0 = pnand %p1845_p13, %p1805_p12  ;;  %s1851_s15 = scalar_lea.vmem %s1850_s12, 24576 }
  0x2b   : > { %p1852_p2 = scmp.lt.s32.totalorder %s2046_s9, %s1850_s12  ;;  %p1853_p3 = scmp.lt.s32.totalorder %s1851_s15, %s1844_s2 }
  0x2c   : > { %s204_s8 = scalar_lea.hbm %s2292_s1, %s1533_s14  ;;  %p1848_p1 = pneg %p1847_p0 }
  0x2d   : > { %p1854_p4 = por %p1853_p3, %p1852_p2 }
  0x2f   : > { %p1855_p5 = pnand %p1854_p4, %p1848_p1 }
  0x31   : > { %1858 = shalt.err (!%p1855_p5)
}
  0x32   : > { %s1945_s30 = smov 256   ;;  %s1946_s11 = smov 128  }
  0x33   : > { %s1947_s14 = smov 8   ;;  %s2293_s25 = sshll.u32 %s2035_s29, 1 }
  0x34   : > { %1584 = dma.hbm_to_vmem [thread:$0]  (!%p2041_p11), %s204_s8, 12288, %s2046_s9, %s192_s7, %s1945_s30, %s1946_s11, %s1947_s14  }
  0x35   : > { %s238_s5 = scalar_lea.vmem [#allocation7], %s2293_s25  ;;  %s1948_s2 = smov [#allocation7]  }
  0x36   : > { %s246_s1 = sshll.u32 %s238_s5, 4  ;;  %s1877_s12 = sshll.u32 %s1948_s2, 4  ;;  %s247_s1 = int_to_ptr.vmem [resolvable:$true] %s246_s1  ;;  %s1878_s12 = int_to_ptr.vmem [resolvable:$false] %s1877_s12 }
  0x37   : > { %s1872_s10 = scalar_lea.vmem %s247_s1, 32  ;;  %s1879_s15 = scalar_lea.vmem %s1878_s12, 64 }
  0x38   : > { %p1873_p6 = scmp.ne.s32.totalorder %s247_s1, %s1872_s10  ;;  %p1880_p0 = scmp.lt.s32.totalorder %s247_s1, %s1878_s12 }
  0x39   : > { %p1881_p1 = scmp.lt.s32.totalorder %s1879_s15, %s1872_s10 }
  0x3a   : > { %p1875_p7 = pnand %p1873_p6, %p1805_p12 }
  0x3b   : > { %p1882_p2 = por %p1881_p1, %p1880_p0 }
  0x3c   : > { %p1876_p13 = pneg %p1875_p7 }
  0x3e   : > { %p1883_p3 = pnand %p1882_p2, %p1876_p13 }
  0x40   : > { %1886 = shalt.err (!%p1883_p3)
}
  0x41   : > { %1590 = dma.hbm_to_vmem [thread:$0]  (!%p2041_p11), %s2067_s13, 32, %s247_s1, %s2054_s23  }
  0x42   : > { %255 = sbr.rel (%p2072_p10) target bundleno = 429 (0x1ad), region = 36  ;;  %s2101_s29 = sand.u32 (!%p2072_p10), 1, %s1925_s16  }
  0x43   : > { %s1573_s7 = smul.u32 (!%p2072_p10), 768, %s2101_s29  ;;  %s258_s9 = scalar_lea.sflag (!%p2072_p10), [#allocation4], %s2101_s29 }
  0x45   : > { %s2105_s8 = scalar_lea.vmem (!%p2072_p10), [#allocation3], %s1573_s7 }
  0x47   : > { %1912 = dma.done.wait (%p2022_p8), %s258_s9, 12288  }
  0x48   : > { %1914 = vsyncadd (%p2022_p8), %s258_s9, 4294955008  ;;  %s266_s1 = sand.u32 1, %s2004_s21   ;;  %s1416_s6 = sshll.u32 %s2101_s29, 1 }
  0x49   : > { %s267_s23 = scalar_lea.sflag [#allocation6], %s266_s1  ;;  %s2115_s13 = scalar_lea.vmem [#allocation5], %s1416_s6 }
  0x4a   : > { %1916 = dma.done.wait (%p2022_p8), %s267_s23, 64  }
  0x4b   : > { %1918 = vsyncadd (%p2022_p8), %s267_s23, 4294967232  ;;  %v1644_v0 = vld [vmem:[%s2105_s8 + $0x74] ss:$8 sps:$4 sm:$0xff]   ;;  %v1648_v2 = vld [vmem:[%s2105_s8 + $0x70] ss:$8 sps:$4 sm:$0xff]  }
  0x4c   : > { %v1646_v1 = vld [vmem:[%s2105_s8 + $0x174] ss:$8 sps:$4 sm:$0xff]   ;;  %981 = vmatprep.subr.bf16.mxu0 %v1644_v0  ;;  %v1649_v3 = vld [vmem:[%s2105_s8 + $0x170] ss:$8 sps:$4 sm:$0xff]   ;;  %v1650_v4 = vld [vmem:[%s2105_s8 + $0x64] ss:$8 sps:$4 sm:$0xff]  }
  0x4d   : > { %1032 = vmatprep.subr.bf16.mxu1 %v1646_v1  ;;  %982 = vmatpush1.bf16.msra.mxu0 %v1648_v2  ;;  %v1652_v5 = vld [vmem:[%s2105_s8 + $0x164] ss:$8 sps:$4 sm:$0xff]   ;;  %v1654_v6 = vld [vmem:[%s2105_s8 + $0x60] ss:$8 sps:$4 sm:$0xff]   ;;  %v1656_v8 = vld [vmem:[%s2105_s8 + $0x54] ss:$8 sps:$4 sm:$0xff]  }
  0x4e   : > { %1033 = vmatpush1.bf16.msra.mxu1 %v1649_v3  ;;  %983 = vmatprep.subr.bf16.mxu0 %v1650_v4  ;;  %v1655_v7 = vld [vmem:[%s2105_s8 + $0x160] ss:$8 sps:$4 sm:$0xff]   ;;  %v1658_v9 = vld [vmem:[%s2105_s8 + $0x154] ss:$8 sps:$4 sm:$0xff]   ;;  %v1660_v10 = vld [vmem:[%s2105_s8 + $0x50] ss:$8 sps:$4 sm:$0xff]  }
  0x4f   : > { %1034 = vmatprep.subr.bf16.mxu1 %v1652_v5  ;;  %v1661_v11 = vld [vmem:[%s2105_s8 + $0x150] ss:$8 sps:$4 sm:$0xff]   ;;  %v1662_v12 = vld [vmem:[%s2105_s8 + $0x44] ss:$8 sps:$4 sm:$0xff]   ;;  %v1666_v14 = vld [vmem:[%s2105_s8 + $0x40] ss:$8 sps:$4 sm:$0xff]  }
  0x50   : > { %v1664_v13 = vld [vmem:[%s2105_s8 + $0x144] ss:$8 sps:$4 sm:$0xff]   ;;  %v1667_v15 = vld [vmem:[%s2105_s8 + $0x140] ss:$8 sps:$4 sm:$0xff]   ;;  %v1668_v16 = vld [vmem:[%s2105_s8 + $0x34] ss:$8 sps:$4 sm:$0xff]  }
  0x51   : > { %984 = vmatpush1.bf16.msra.mxu0 %v1654_v6  ;;  %v1670_v17 = vld [vmem:[%s2105_s8 + $0x134] ss:$8 sps:$4 sm:$0xff]   ;;  %v1672_v18 = vld [vmem:[%s2105_s8 + $0x30] ss:$8 sps:$4 sm:$0xff]   ;;  %v1674_v20 = vld [vmem:[%s2105_s8 + $0x24] ss:$8 sps:$4 sm:$0xff]  }
  0x52   : > { %1035 = vmatpush1.bf16.msra.mxu1 %v1655_v7  ;;  %985 = vmatprep.subr.bf16.mxu0 %v1656_v8  ;;  %v1673_v19 = vld [vmem:[%s2105_s8 + $0x130] ss:$8 sps:$4 sm:$0xff]   ;;  %v1676_v21 = vld [vmem:[%s2105_s8 + $0x124] ss:$8 sps:$4 sm:$0xff]   ;;  %v1678_v22 = vld [vmem:[%s2105_s8 + $0x20] ss:$8 sps:$4 sm:$0xff]  }
  0x53   : > { %1036 = vmatprep.subr.bf16.mxu1 %v1658_v9  ;;  %v1679_v23 = vld [vmem:[%s2105_s8 + $0x120] ss:$8 sps:$4 sm:$0xff]   ;;  %v1680_v24 = vld [vmem:[%s2105_s8 + $0x14] ss:$8 sps:$4 sm:$0xff]   ;;  %v1684_v26 = vld [vmem:[%s2105_s8 + $0x10] ss:$8 sps:$4 sm:$0xff]  }
  0x54   : > { %v1682_v25 = vld [vmem:[%s2105_s8 + $0x114] ss:$8 sps:$4 sm:$0xff]   ;;  %v1685_v27 = vld [vmem:[%s2105_s8 + $0x110] ss:$8 sps:$4 sm:$0xff]   ;;  %v1686_v28 = vld [vmem:[%s2105_s8 + $0x4] ss:$8 sps:$4 sm:$0xff]  }
  0x55   : > { %986 = vmatpush1.bf16.msra.mxu0 %v1660_v10  ;;  %v1688_v29 = vld [vmem:[%s2105_s8 + $0x104] ss:$8 sps:$4 sm:$0xff]   ;;  %v1690_v30 = vld [vmem:[%s2105_s8] ss:$8 sps:$4 sm:$0xff]   ;;  %v1692_v32 = vld [vmem:[%s2105_s8 + $0xf4] ss:$8 sps:$4 sm:$0xff]  }
  0x56   : > { %1037 = vmatpush1.bf16.msra.mxu1 %v1661_v11  ;;  %987 = vmatprep.subr.bf16.mxu0 %v1662_v12  ;;  %v1691_v31 = vld [vmem:[%s2105_s8 + $0x100] ss:$8 sps:$4 sm:$0xff]   ;;  %v1694_v33 = vld [vmem:[%s2105_s8 + $0x1f4] ss:$8 sps:$4 sm:$0xff]   ;;  %v1696_v34 = vld [vmem:[%s2105_s8 + $0xf0] ss:$8 sps:$4 sm:$0xff]  }
  0x57   : > { %1038 = vmatprep.subr.bf16.mxu1 %v1664_v13  ;;  %v1697_v35 = vld [vmem:[%s2105_s8 + $0x1f0] ss:$8 sps:$4 sm:$0xff]   ;;  %v1698_v36 = vld [vmem:[%s2105_s8 + $0xe4] ss:$8 sps:$4 sm:$0xff]   ;;  %v1702_v38 = vld [vmem:[%s2105_s8 + $0xe0] ss:$8 sps:$4 sm:$0xff]  }
  0x58   : > { %v1700_v37 = vld [vmem:[%s2105_s8 + $0x1e4] ss:$8 sps:$4 sm:$0xff]   ;;  %v1703_v39 = vld [vmem:[%s2105_s8 + $0x1e0] ss:$8 sps:$4 sm:$0xff]   ;;  %v1704_v40 = vld [vmem:[%s2105_s8 + $0xd4] ss:$8 sps:$4 sm:$0xff]  }
  0x59   : > { %988 = vmatpush1.bf16.msra.mxu0 %v1666_v14  ;;  %v1706_v41 = vld [vmem:[%s2105_s8 + $0x1d4] ss:$8 sps:$4 sm:$0xff]   ;;  %v1708_v42 = vld [vmem:[%s2105_s8 + $0xd0] ss:$8 sps:$4 sm:$0xff]   ;;  %v1710_v44 = vld [vmem:[%s2105_s8 + $0xc4] ss:$8 sps:$4 sm:$0xff]  }
  0x5a   : > { %1039 = vmatpush1.bf16.msra.mxu1 %v1667_v15  ;;  %989 = vmatprep.subr.bf16.mxu0 %v1668_v16  ;;  %v1709_v43 = vld [vmem:[%s2105_s8 + $0x1d0] ss:$8 sps:$4 sm:$0xff]   ;;  %v1712_v45 = vld [vmem:[%s2105_s8 + $0x1c4] ss:$8 sps:$4 sm:$0xff]   ;;  %v1714_v46 = vld [vmem:[%s2105_s8 + $0xc0] ss:$8 sps:$4 sm:$0xff]  }
  0x5b   : > { %1040 = vmatprep.subr.bf16.mxu1 %v1670_v17  ;;  %v1715_v47 = vld [vmem:[%s2105_s8 + $0x1c0] ss:$8 sps:$4 sm:$0xff]   ;;  %v1716_v48 = vld [vmem:[%s2105_s8 + $0xb4] ss:$8 sps:$4 sm:$0xff]   ;;  %v1720_v52 = vld [vmem:[%s2105_s8 + $0xb0] ss:$8 sps:$4 sm:$0xff]  }
  0x5c   : > { %v1742_v49 = vld [vmem:[%s2278_s0 + $0x4] ss:$24 sps:$4 sm:$0xff]   ;;  %v1721_v53 = vld [vmem:[%s2105_s8 + $0x1b0] ss:$8 sps:$4 sm:$0xff]   ;;  %v1726_v56 = vld [vmem:[%s2105_s8 + $0xa0] ss:$8 sps:$4 sm:$0xff]  }
  0x5d   : > { %990 = vmatpush1.bf16.msra.mxu0 %v1672_v18  ;;  %v1718_v50 = vld [vmem:[%s2105_s8 + $0x1b4] ss:$8 sps:$4 sm:$0xff]   ;;  %1013 = vmatprep.mubr.bf16.mxu0 %v1742_v49  ;;  %v1722_v54 = vld [vmem:[%s2105_s8 + $0xa4] ss:$8 sps:$4 sm:$0xff]   ;;  %v1727_v57 = vld [vmem:[%s2105_s8 + $0x1a0] ss:$8 sps:$4 sm:$0xff]  }
  0x5e   : > { %1041 = vmatpush1.bf16.msra.mxu1 %v1673_v19  ;;  %991 = vmatprep.subr.bf16.mxu0 %v1674_v20  ;;  %v1745_v51 = vld [vmem:[%s2278_s0 + $0xc] ss:$24 sps:$4 sm:$0xff]   ;;  %v1724_v55 = vld [vmem:[%s2105_s8 + $0x1a4] ss:$8 sps:$4 sm:$0xff]   ;;  %v1732_v60 = vld [vmem:[%s2105_s8 + $0x90] ss:$8 sps:$4 sm:$0xff]  }
  0x5f   : > { %1042 = vmatprep.subr.bf16.mxu1 %v1676_v21  ;;  %1064 = vmatprep.mubr.bf16.mxu1 %v1745_v51  ;;  %v1728_v58 = vld [vmem:[%s2105_s8 + $0x94] ss:$8 sps:$4 sm:$0xff]   ;;  %v1733_v61 = vld [vmem:[%s2105_s8 + $0x190] ss:$8 sps:$4 sm:$0xff]   ;;  %v1734_v62 = vld [vmem:[%s2105_s8 + $0x84] ss:$8 sps:$4 sm:$0xff]  }
  0x60   : > { %v1730_v59 = vld [vmem:[%s2105_s8 + $0x194] ss:$8 sps:$4 sm:$0xff]   ;;  %v1736_v63 = vld [vmem:[%s2105_s8 + $0x184] ss:$8 sps:$4 sm:$0xff]   ;;  %v1738_v0 = vld [vmem:[%s2105_s8 + $0x80] ss:$8 sps:$4 sm:$0xff]  }
  0x61   : > { %992 = vmatpush1.bf16.msra.mxu0 %v1678_v22  ;;  %v1739_v1 = vld [vmem:[%s2105_s8 + $0x180] ss:$8 sps:$4 sm:$0xff]   ;;  %v1748_v2 = vld [vmem:[%s2105_s8 + $0x274] ss:$8 sps:$4 sm:$0xff]   ;;  %v1743_v4 = vld [vmem:[%s2278_s0 + $0x8] ss:$24 sps:$4 sm:$0xff]  }
  0x62   : > { %1043 = vmatpush1.bf16.msra.mxu1 %v1679_v23  ;;  %993 = vmatprep.subr.bf16.mxu0 %v1680_v24  ;;  %v1740_v3 = vld [vmem:[%s2278_s0] ss:$24 sps:$4 sm:$0xff]   ;;  %v351_v5 = vld [vmem:[%s2278_s0 + $0x30] sm:$0x77]  ;;  %v1754_v12 = vld [vmem:[%s2105_s8 + $0x254] ss:$8 sps:$4 sm:$0xff]  }
  0x63   : > { %1044 = vmatprep.subr.bf16.mxu1 %v1682_v25  ;;  %v1746_v6 = vld [vmem:[%s2105_s8 + $0x270] ss:$8 sps:$4 sm:$0xff]   ;;  %v352_v7 = vld [vmem:[%s2278_s0 + $0x38] sm:$0x77]  ;;  %v1425_v9 = vcombine.high %v351_v5, %v351_v5  ;;  %v1424_v13 = vcombine.low %v351_v5, %v351_v5  ;;  %v1800_v18 = vld [vmem:[%s2278_s0 + $0x14] ss:$24 sps:$4 sm:$0xff]  }
  0x64   : > { %v1751_v8 = vld [vmem:[%s2105_s8 + $0x264] ss:$8 sps:$4 sm:$0xff]   ;;  %v1427_v10 = vcombine.high %v352_v7, %v352_v7  ;;  %v1749_v11 = vld [vmem:[%s2105_s8 + $0x260] ss:$8 sps:$4 sm:$0xff]   ;;  %v1426_v14 = vcombine.low %v352_v7, %v352_v7  ;;  %v2211_v15 = vld [vmem:[%s2278_s0 + $0x40] sm:$0x77] }
  0x65   : > { %994 = vmatpush1.bf16.msra.mxu0 %v1684_v26  ;;  %v1752_v16 = vld [vmem:[%s2105_s8 + $0x250] ss:$8 sps:$4 sm:$0xff]   ;;  %v1757_v17 = vld [vmem:[%s2105_s8 + $0x244] ss:$8 sps:$4 sm:$0xff]   ;;  %v1429_v19 = vcombine.high %v2211_v15, %v2211_v15  ;;  %v1755_v20 = vld [vmem:[%s2105_s8 + $0x240] ss:$8 sps:$4 sm:$0xff]  }
  0x66   : > { %1045 = vmatpush1.bf16.msra.mxu1 %v1685_v27  ;;  %995 = vmatprep.subr.bf16.mxu0 %v1686_v28  ;;  %v1760_v21 = vld [vmem:[%s2105_s8 + $0x234] ss:$8 sps:$4 sm:$0xff]   ;;  %v1758_v22 = vld [vmem:[%s2105_s8 + $0x230] ss:$8 sps:$4 sm:$0xff]   ;;  %v1763_v23 = vld [vmem:[%s2105_s8 + $0x224] ss:$8 sps:$4 sm:$0xff]  }
  0x67   : > { %1046 = vmatprep.subr.bf16.mxu1 %v1688_v29  ;;  %v1761_v24 = vld [vmem:[%s2105_s8 + $0x220] ss:$8 sps:$4 sm:$0xff]   ;;  %v1766_v25 = vld [vmem:[%s2105_s8 + $0x214] ss:$8 sps:$4 sm:$0xff]   ;;  %v1764_v26 = vld [vmem:[%s2105_s8 + $0x210] ss:$8 sps:$4 sm:$0xff]  }
  0x68   : > { %v1769_v27 = vld [vmem:[%s2105_s8 + $0x204] ss:$8 sps:$4 sm:$0xff]   ;;  %v1767_v28 = vld [vmem:[%s2105_s8 + $0x200] ss:$8 sps:$4 sm:$0xff]   ;;  %v1772_v29 = vld [vmem:[%s2105_s8 + $0x2f4] ss:$8 sps:$4 sm:$0xff]  }
  0x69   : > { %996 = vmatpush1.bf16.msra.mxu0 %v1690_v30  ;;  %v1770_v30 = vld [vmem:[%s2105_s8 + $0x2f0] ss:$8 sps:$4 sm:$0xff]  }
  0x6a   : > { %1047 = vmatpush1.bf16.msra.mxu1 %v1691_v31  ;;  %997 = vmatprep.subr.bf16.mxu0 %v1692_v32  ;;  %v1775_v31 = vld [vmem:[%s2105_s8 + $0x2e4] ss:$8 sps:$4 sm:$0xff]   ;;  %v1773_v32 = vld [vmem:[%s2105_s8 + $0x2e0] ss:$8 sps:$4 sm:$0xff]  }
  0x6b   : > { %1048 = vmatprep.subr.bf16.mxu1 %v1694_v33  ;;  %v1778_v33 = vld [vmem:[%s2105_s8 + $0x2d4] ss:$8 sps:$4 sm:$0xff]  }
  0x6d   : > { %998 = vmatpush2.bf16.msra.mxu0 %v1696_v34  ;;  %v1776_v34 = vld [vmem:[%s2105_s8 + $0x2d0] ss:$8 sps:$4 sm:$0xff]  }
  0x6e   : > { %1049 = vmatpush2.bf16.msra.mxu1 %v1697_v35  ;;  %999 = vmatprep.subr.bf16.mxu0 %v1698_v36  ;;  %v1781_v35 = vld [vmem:[%s2105_s8 + $0x2c4] ss:$8 sps:$4 sm:$0xff]   ;;  %v1779_v36 = vld [vmem:[%s2105_s8 + $0x2c0] ss:$8 sps:$4 sm:$0xff]  }
  0x6f   : > { %1050 = vmatprep.subr.bf16.mxu1 %v1700_v37  ;;  %v1784_v37 = vld [vmem:[%s2105_s8 + $0x2b4] ss:$8 sps:$4 sm:$0xff]  }
  0x71   : > { %1000 = vmatpush2.bf16.msra.mxu0 %v1702_v38  ;;  %v1782_v38 = vld [vmem:[%s2105_s8 + $0x2b0] ss:$8 sps:$4 sm:$0xff]  }
  0x72   : > { %1051 = vmatpush2.bf16.msra.mxu1 %v1703_v39  ;;  %1001 = vmatprep.subr.bf16.mxu0 %v1704_v40  ;;  %v1789_v39 = vld [vmem:[%s2105_s8 + $0x2a4] ss:$8 sps:$4 sm:$0xff]   ;;  %v1787_v40 = vld [vmem:[%s2105_s8 + $0x2a0] ss:$8 sps:$4 sm:$0xff]  }
  0x73   : > { %1052 = vmatprep.subr.bf16.mxu1 %v1706_v41  ;;  %v1794_v41 = vld [vmem:[%s2105_s8 + $0x294] ss:$8 sps:$4 sm:$0xff]  }
  0x75   : > { %1002 = vmatpush2.bf16.msra.mxu0 %v1708_v42  ;;  %v1792_v42 = vld [vmem:[%s2105_s8 + $0x290] ss:$8 sps:$4 sm:$0xff]  }
  0x76   : > { %1053 = vmatpush2.bf16.msra.mxu1 %v1709_v43  ;;  %1003 = vmatprep.subr.bf16.mxu0 %v1710_v44  ;;  %v1797_v43 = vld [vmem:[%s2105_s8 + $0x284] ss:$8 sps:$4 sm:$0xff]   ;;  %v1795_v44 = vld [vmem:[%s2105_s8 + $0x280] ss:$8 sps:$4 sm:$0xff]   ;;  %s279_s8 = scalar_lea.vmem [#allocation7], %s1416_s6  ;;  %s1574_s6 = smul.u32 24, %s2101_s29 }
  0x77   : > { %1054 = vmatprep.subr.bf16.mxu1 %v1712_v45  ;;  %v1798_v45 = vld [vmem:[%s2278_s0 + $0x10] ss:$24 sps:$4 sm:$0xff]   ;;  %v1173_v7 = vld [vmem:[%s279_s8] sm:$0x3]  ;;  %s1539_s29 = sshll.u32 (%p2029_p9), %s1933_s18, 3 }
  0x78   : > { %s1229_s11 = scalar_lea.vmem (%p2029_p9), %s2282_s4, %s1539_s29 }
  0x79   : > { %1004 = vmatpush2.bf16.msra.mxu0 %v1714_v46  ;;  %v1428_v46 = vcombine.low %v2211_v15, %v2211_v15 }
  0x7a   : > { %1055 = vmatpush2.bf16.msra.mxu1 %v1715_v47  ;;  %1005 = vmatprep.subr.bf16.mxu0 %v1716_v48  ;;  %v1949_v47 = vmov 0.0  }
  0x7b   : > { %1056 = vmatprep.subr.bf16.mxu1 %v1718_v50  ;;  %337 = vst [vmem:[#allocation2 + $0x18] sm:$0x3f] %v1949_v47  ;;  %338 = vst [vmem:[#allocation2 + $0x20] sm:$0x3f] %v1949_v47 }
  0x7d   : > { %1006 = vmatpush2.bf16.msra.mxu0 %v1720_v52 }
  0x7e   : > { %1057 = vmatpush2.bf16.msra.mxu1 %v1721_v53  ;;  %1007 = vmatprep.subr.bf16.mxu0 %v1722_v54 }
  0x7f   : > { %1058 = vmatprep.subr.bf16.mxu1 %v1724_v55 }
  0x81   : > { %1008 = vmatpush2.bf16.msra.mxu0 %v1726_v56 }
  0x82   : > { %1059 = vmatpush2.bf16.msra.mxu1 %v1727_v57  ;;  %1009 = vmatprep.subr.bf16.mxu0 %v1728_v58 }
  0x83   : > { %1060 = vmatprep.subr.bf16.mxu1 %v1730_v59 }
  0x85   : > { %1010 = vmatpush2.bf16.msra.mxu0 %v1732_v60 }
  0x86   : > { %1061 = vmatpush2.bf16.msra.mxu1 %v1733_v61  ;;  %1011 = vmatprep.subr.bf16.mxu0 %v1734_v62 }
  0x87   : > { %1062 = vmatprep.subr.bf16.mxu1 %v1736_v63 }
  0x89   : > { %1012 = vmatpush2.bf16.msra.mxu0 %v1738_v0  ;;  %v1157_v0 = vlaneseq }
  0x8a   : > { %1063 = vmatpush2.bf16.msra.mxu1 %v1739_v1  ;;  %1083 = vmatprep.subr.bf16.mxu0 %v1748_v2 }
  0x8b   : > { %1540 = vmatprep.subr.bf16.mxu1 %v1748_v2  ;;  %v1158_v1 = vshrl.u32 %v1157_v0, 7 }
  0x8c   : > { %1014 = vmatmul.mubr.bf16.vlgmr.msra.gmra.mxu0 %v1740_v3  ;;  %v1155_v3 = vld [vmem:[%s2115_s13] sm:$0x3]  ;;  %s317_s13 = scalar_lea.vmem [#allocation8], %s1574_s6 }
  0x8d   : > { %1065 = vmatmul.mubr.bf16.vlgmr.msra.gmra.mxu1 %v1743_v4  ;;  %1084 = vmatpush1.bf16.msra.mxu0 %v1746_v6  ;;  %v1159_v2 = vsub.s32 0, %v1158_v1  ;;  %v1163_v4 = vsub.s32 1, %v1158_v1 }
  0x8e   : > { %1556 = vmatpush1.bf16.msra.mxu1 %v1746_v6  ;;  %1085 = vmatprep.subr.bf16.mxu0 %v1751_v8 }
  0x8f   : > { %1541 = vmatprep.subr.bf16.mxu1 %v1751_v8  ;;  %1023 = vmatprep.mubr.bf16.mxu0 %v1425_v9  ;;  %v1160_v9 = vrot.slane %v1155_v3, %v1159_v2 }
  0x90   : > { %1074 = vmatprep.mubr.bf16.mxu1 %v1427_v10  ;;  %v343_v10 = vld [vmem:[#allocation2 + $0x18] sm:$0x3f] }
  0x91   : > { %1086 = vmatpush1.bf16.msra.mxu0 %v1749_v11 }
  0x92   : > { %1557 = vmatpush1.bf16.msra.mxu1 %v1749_v11  ;;  %1087 = vmatprep.subr.bf16.mxu0 %v1754_v12 }
  0x93   : > { %1542 = vmatprep.subr.bf16.mxu1 %v1754_v12 }
  0x94   : > { %1024 = vmatmul.mubr.bf16.gmra.mxu0 %v1424_v13 }
  0x95   : > { %1075 = vmatmul.mubr.bf16.gmra.mxu1 %v1426_v14  ;;  %1088 = vmatpush1.bf16.msra.mxu0 %v1752_v16 }
  0x96   : > { %1558 = vmatpush1.bf16.msra.mxu1 %v1752_v16  ;;  %1089 = vmatprep.subr.bf16.mxu0 %v1757_v17 }
  0x97   : > { %1543 = vmatprep.subr.bf16.mxu1 %v1757_v17  ;;  %1115 = vmatprep.mubr.bf16.mxu0 %v1800_v18  ;;  %v1178_v17 = vrot.slane %v1173_v7, %v1159_v2 }
  0x98   : > { %1125 = vmatprep.mubr.bf16.mxu1 %v1429_v19  ;;  %v1164_v19 = vrot.slane %v1155_v3, %v1163_v4 }
  0x99   : > { %1090 = vmatpush1.bf16.msra.mxu0 %v1755_v20 }
  0x9a   : > { %1559 = vmatpush1.bf16.msra.mxu1 %v1755_v20  ;;  %1091 = vmatprep.subr.bf16.mxu0 %v1760_v21  ;;  %v344_v20 = vld [vmem:[#allocation2 + $0x20] sm:$0x3f] }
  0x9b   : > { %1544 = vmatprep.subr.bf16.mxu1 %v1760_v21 }
  0x9d   : > { %1092 = vmatpush1.bf16.msra.mxu0 %v1758_v22 }
  0x9e   : > { %1560 = vmatpush1.bf16.msra.mxu1 %v1758_v22  ;;  %1093 = vmatprep.subr.bf16.mxu0 %v1763_v23 }
  0x9f   : > { %1545 = vmatprep.subr.bf16.mxu1 %v1763_v23 }
  0xa1   : > { %1094 = vmatpush1.bf16.msra.mxu0 %v1761_v24 }
  0xa2   : > { %1561 = vmatpush1.bf16.msra.mxu1 %v1761_v24  ;;  %1095 = vmatprep.subr.bf16.mxu0 %v1766_v25 }
  0xa3   : > { %1546 = vmatprep.subr.bf16.mxu1 %v1766_v25 }
  0xa5   : > { %1096 = vmatpush1.bf16.msra.mxu0 %v1764_v26 }
  0xa6   : > { %1562 = vmatpush1.bf16.msra.mxu1 %v1764_v26  ;;  %1097 = vmatprep.subr.bf16.mxu0 %v1769_v27  ;;  %v1182_v26 = vrot.slane %v1173_v7, %v1163_v4 }
  0xa7   : > { %1547 = vmatprep.subr.bf16.mxu1 %v1769_v27 }
  0xa9   : > { %1098 = vmatpush1.bf16.msra.mxu0 %v1767_v28 }
  0xaa   : > { %1563 = vmatpush1.bf16.msra.mxu1 %v1767_v28  ;;  %1099 = vmatprep.subr.bf16.mxu0 %v1772_v29 }
  0xab   : > { %1548 = vmatprep.subr.bf16.mxu1 %v1772_v29 }
  0xad   : > { %1100 = vmatpush2.bf16.msra.mxu0 %v1770_v30 }
  0xae   : > { %1564 = vmatpush2.bf16.msra.mxu1 %v1770_v30  ;;  %1101 = vmatprep.subr.bf16.mxu0 %v1775_v31 }
  0xaf   : > { %1549 = vmatprep.subr.bf16.mxu1 %v1775_v31 }
  0xb1   : > { %1102 = vmatpush2.bf16.msra.mxu0 %v1773_v32 }
  0xb2   : > { %1565 = vmatpush2.bf16.msra.mxu1 %v1773_v32  ;;  %1103 = vmatprep.subr.bf16.mxu0 %v1778_v33 }
  0xb3   : > { %1550 = vmatprep.subr.bf16.mxu1 %v1778_v33 }
  0xb5   : > { %1104 = vmatpush2.bf16.msra.mxu0 %v1776_v34 }
  0xb6   : > { %1566 = vmatpush2.bf16.msra.mxu1 %v1776_v34  ;;  %1105 = vmatprep.subr.bf16.mxu0 %v1781_v35 }
  0xb7   : > { %1551 = vmatprep.subr.bf16.mxu1 %v1781_v35 }
  0xb9   : > { %1106 = vmatpush2.bf16.msra.mxu0 %v1779_v36 }
  0xba   : > { %1567 = vmatpush2.bf16.msra.mxu1 %v1779_v36  ;;  %1107 = vmatprep.subr.bf16.mxu0 %v1784_v37 }
  0xbb   : > { %1552 = vmatprep.subr.bf16.mxu1 %v1784_v37 }
  0xbd   : > { %1108 = vmatpush2.bf16.msra.mxu0 %v1782_v38 }
  0xbe   : > { %1568 = vmatpush2.bf16.msra.mxu1 %v1782_v38  ;;  %1109 = vmatprep.subr.bf16.mxu0 %v1789_v39 }
  0xbf   : > { %1553 = vmatprep.subr.bf16.mxu1 %v1789_v39 }
  0xc1   : > { %1110 = vmatpush2.bf16.msra.mxu0 %v1787_v40 }
  0xc2   : > { %1569 = vmatpush2.bf16.msra.mxu1 %v1787_v40  ;;  %1111 = vmatprep.subr.bf16.mxu0 %v1794_v41 }
  0xc3   : > { %1554 = vmatprep.subr.bf16.mxu1 %v1794_v41 }
  0xc5   : > { %1112 = vmatpush2.bf16.msra.mxu0 %v1792_v42 }
  0xc6   : > { %1570 = vmatpush2.bf16.msra.mxu1 %v1792_v42  ;;  %1113 = vmatprep.subr.bf16.mxu0 %v1797_v43 }
  0xc7   : > { %1555 = vmatprep.subr.bf16.mxu1 %v1797_v43 }
  0xc9   : > { %1114 = vmatpush2.bf16.msra.mxu0 %v1795_v44 }
  0xca   : > { %1571 = vmatpush2.bf16.msra.mxu1 %v1795_v44 }
  0xcc   : > { %1116 = vmatmul.mubr.bf16.vlgmr.msra.gmra.mxu0 %v1798_v45 }
  0xcd   : > { %1126 = vmatmul.mubr.bf16.vlgmr.msra.gmra.mxu1 %v1428_v46 }
 0x14c   : > { %v1015_v48 = vpop.f32.mrf.mxu0 }
 0x14d   : > { %v1066_v49 = vpop.f32.mrf.mxu1 }
 0x14e   : > { %v1017_v50 = vpop.f32.mrf.mxu0  ;;  %v1067_v5 = vadd.f32 %v1066_v49, %v1015_v48 }
 0x14f   : > { %v1068_v51 = vpop.f32.mrf.mxu1 }
 0x150   : > { %v1019_v52 = vpop.f32.mrf.mxu0  ;;  %v1069_v12 = vadd.f32 %v1068_v51, %v1017_v50 }
 0x151   : > { %v1070_v53 = vpop.f32.mrf.mxu1 }
 0x152   : > { %v1021_v54 = vpop.f32.mrf.mxu0  ;;  %v1071_v16 = vadd.f32 %v1070_v53, %v1019_v52 }
 0x153   : > { %v1072_v55 = vpop.f32.mrf.mxu1 }
 0x154   : > { %v1025_v56 = vpop.f32.mrf.mxu0  ;;  %v1073_v25 = vadd.f32 %v1072_v55, %v1021_v54 }
 0x155   : > { %v1076_v57 = vpop.f32.mrf.mxu1 }
 0x156   : > { %v1027_v58 = vpop.f32.mrf.mxu0  ;;  %v1077_v6 = vadd.f32 %v1076_v57, %v1025_v56 }
 0x157   : > { %v1078_v59 = vpop.f32.mrf.mxu1 }
 0x158   : > { %v1029_v60 = vpop.f32.mrf.mxu0  ;;  %v1079_v13 = vadd.f32 %v1078_v59, %v1027_v58 }
 0x159   : > { %v1080_v61 = vpop.f32.mrf.mxu1 }
 0x15a   : > { %v1030_v62 = vpop.f32.mrf.mxu0 }
 0x15b   : > { %v1081_v63 = vpop.f32.mrf.mxu1 }
 0x18c   : > { %v1117_v8 = vpop.f32.mrf.mxu0 }
 0x18d   : > { %v1127_v11 = vpop.f32.mrf.mxu1  ;;  %v1118_v14 = vadd.f32 %v1117_v8, %v1067_v5 }
 0x18e   : > { %v1128_v15 = vadd.f32 %v1127_v11, %v1077_v6  ;;  %v1119_v18 = vpop.f32.mrf.mxu0 }
 0x18f   : > { %v1129_v21 = vpop.f32.mrf.mxu1  ;;  %v1120_v23 = vadd.f32 %v1119_v18, %v1069_v12  ;;  %v1167_v29 = vmul.f32 %v1160_v9, %v1118_v14 }
 0x190   : > { %v1138_v22 = vadd.f32 %v1128_v15, %v343_v10  ;;  %v1130_v24 = vadd.f32 %v1129_v21, %v1079_v13  ;;  %v1121_v27 = vpop.f32.mrf.mxu0 }
 0x191   : > { %v1131_v28 = vpop.f32.mrf.mxu1  ;;  %v1122_v31 = vadd.f32 %v1121_v27, %v1071_v16  ;;  %v1185_v34 = vadd.f32 %v1178_v17, %v1167_v29  ;;  %v1168_v35 = vmul.f32 %v1164_v19, %v1120_v23 }
 0x192   : > { %1144 = vst [vmem:[#allocation2 + $0x18] sm:$0x3f] %v1138_v22  ;;  %v1139_v30 = vadd.f32 %v1130_v24, %v344_v20  ;;  %v1123_v32 = vpop.f32.mrf.mxu0 }
 0x193   : > { %v1132_v33 = vpop.f32.mrf.mxu1  ;;  %v1124_v36 = vadd.f32 %v1123_v32, %v1073_v25  ;;  %v1186_v37 = vadd.f32 %v1182_v26, %v1168_v35  ;;  %v1169_v38 = vmul.f32 %v1160_v9, %v1122_v31  ;;  %v1191_v39 = vmax.f32 %v1185_v34, 0.0 }
 0x194   : > { %1145 = vst [vmem:[#allocation2 + $0x20] sm:$0x3f] %v1139_v30 }
 0x195   : > { %v1192_v40 = vmax.f32 %v1186_v37, 0.0  ;;  %v1187_v41 = vadd.f32 %v1178_v17, %v1169_v38  ;;  %v1170_v42 = vmul.f32 %v1164_v19, %v1124_v36 }
 0x197   : > { %v1536_v45 = vpack.c.bf16 %v1192_v40, %v1191_v39  ;;  %v1188_v46 = vadd.f32 %v1182_v26, %v1170_v42  ;;  %v1193_v50 = vmax.f32 %v1187_v41, 0.0 }
 0x199   : > { %v1153_v43 = vld [vmem:[#allocation2 + $0x18] sm:$0x3f]  ;;  %1217 = vst [vmem:[%s317_s13] sm:$0xff] %v1536_v45  ;;  %v1194_v51 = vmax.f32 %v1188_v46, 0.0 }
 0x19a   : > { %v1171_v44 = vmul.f32 %v1160_v9, %v1153_v43 }
 0x19b   : > { %v1154_v47 = vld [vmem:[#allocation2 + $0x20] sm:$0x3f]  ;;  %v1537_v53 = vpack.c.bf16 %v1194_v51, %v1193_v50 }
 0x19c   : > { %v1189_v48 = vadd.f32 %v1178_v17, %v1171_v44  ;;  %v1172_v49 = vmul.f32 %v1164_v19, %v1154_v47 }
 0x19d   : > { %1218 = vst [vmem:[%s317_s13 + $0x8] sm:$0xff] %v1537_v53 }
 0x19e   : > { %v1190_v52 = vadd.f32 %v1182_v26, %v1172_v49  ;;  %v1195_v54 = vmax.f32 %v1189_v48, 0.0 }
 0x1a0   : > { %v1196_v55 = vmax.f32 %v1190_v52, 0.0  ;;  %1226 = sbr.rel (!%p2029_p9) target bundleno = 429 (0x1ad), region = 60  ;;  %v1262_v57 = vld [vmem:[%s317_s13] sm:$0xff] (%p2029_p9) }
 0x1a1   : > { %1263 = vst [vmem:[%s1229_s11] sm:$0xff] (%p2029_p9), %v1262_v57 }
 0x1a2   : > { %v1538_v56 = vpack.c.bf16 %v1196_v55, %v1195_v54 }
 0x1a4   : > { %1219 = vst [vmem:[%s317_s13 + $0x10] sm:$0x77] %v1538_v56  ;;  %v1264_v58 = vld [vmem:[%s317_s13 + $0x8] sm:$0xff] (%p2029_p9) }
 0x1a5   : > { %1265 = vst [vmem:[%s1229_s11 + $0x10] sm:$0xff] %v1264_v58 }
 0x1ab   : > { %v1266_v59 = vld [vmem:[%s317_s13 + $0x10] sm:$0xff] }
 0x1ac   : > { %1267 = vst [vmem:[%s1229_s11 + $0x20] sm:$0xff] %v1266_v59 }
 0x1ad PF: > { %s20_s20 = sadd.s32 1, %s1941_s20   ;;  %s2294_s15 = smov %s1925_s16 }
 0x1ae   : > { %p17_p8 = scmp.ge.s32.totalorder %s20_s20, 4   ;;  %s2295_s16 = smov %s1929_s17 }
 0x1af   : > { %s2296_s17 = smov %s2027_s27  ;;  %s2297_s18 = smov %s1937_s19 }
 0x1b0   : > { %s2298_s19 = smov %s2300_s22  ;;  %19 = sbr.rel (!%p17_p8) target bundleno = 9 (0x9), region = 149 }
 0x1b5   :  { %1283 = vsyncpa [#allocation4], 1 }
 0x1b6   :  { %1285 = vsyncpa [#allocation4 + $0x1], 1 }
 0x1b7   :  { %1286 = vsyncpa [#allocation6], 1 }
 0x1b8   :  { %1288 = vsyncpa [#allocation6 + $0x1], 1 }

// kernel: classifier_forward.7
= control target key start
LH: loop header
LB: loop body
LE: loop exit
PB: predicated region body
PF: predicated region fallthrough
CT: control target
= control target key end

     0   :  { %s5814_s0 = inlined_call_operand.vmem [shape: bf16[22,1536], index: 0, kind: input, shape index: {}]   ;;  %s5815_s1 = inlined_call_operand.hbm [shape: bf16[1536,1024], index: 1, kind: input, shape index: {}]   ;;  %s5816_s2 = inlined_call_operand.hbm [shape: f32[1,1024], index: 2, kind: input, shape index: {}]   ;;  %s5817_s3 = inlined_call_operand.hbm [shape: f32[1,1024], index: 3, kind: input, shape index: {}]   ;;  %s5818_s4 = inlined_call_operand.vmem [shape: bf16[22,1024], index: 4, kind: output, shape index: {}]  }
   0x1   :  { %5820 = sst [smem:[#allocation11_spill]] %s5815_s1 }
   0x2   :  { %5821 = sst [smem:[#allocation12_spill]] %s5816_s2 }
   0x3   :  { %9 = vsyncpa [#allocation4], 0 }
   0x4   :  { %11 = vsyncpa [#allocation4 + $0x1], 0 }
   0x5   :  { %12 = vsyncpa [#allocation6], 0 }
   0x6   :  { %14 = vsyncpa [#allocation6 + $0x1], 0  ;;  %s5032_s15 = smov 0   ;;  %s5034_s16 = smov 0  }
   0x7   :  { %s5036_s17 = smov 0   ;;  %s5038_s18 = smov 0  }
   0x8   :  { %s5040_s19 = smov 0   ;;  %s5042_s20 = smov 0  }
   0x9 LB: > { %s5061_s21 = sadd.s32 4294967295, %s4998_s20   ;;  %s32_s22 = sadd.s32 1, %s4994_s19  ;;  %s4998_s20 = sphi %s5042_s20, %s20_s20   ;;  %s4994_s19 = sphi %s5040_s19, %s5834_s19   ;;  %s4990_s18 = sphi %s5038_s18, %s5833_s18   ;;  %s4986_s17 = sphi %s5036_s17, %s5832_s17   ;;  %s4982_s16 = sphi %s5034_s16, %s5831_s16   ;;  %s4978_s15 = sphi %s5032_s15, %s5830_s15  }
   0xa   : > { %p34_p0 = scmp.ge.s32.totalorder %s32_s22, 2  ;;  %s67_s23 = sadd.s32 1, %s4986_s17 }
   0xb   : > { %p74_p1 = scmp.ne.s32.totalorder %s4986_s17, %s4982_s16  ;;  %p75_p2 = scmp.eq.s32.totalorder %s4998_s20, 0 }
   0xc   : > { %s5836_s22 = smov (%p34_p0, %s32_s22), 0  ;;  %p80_p4 = scmp.ne.s32.totalorder %s4982_s16, %s4978_s15 }
   0xd   : > { %p5070_p3 = por %p75_p2, %p74_p1  ;;  %s63_s25 = ssub.s32 %s4994_s19, %s5836_s22 }
   0xe   : > { %p81_p5 = scmp.eq.s32.totalorder %s5061_s21, 0  ;;  %p65_p6 = scmp.eq.s32.totalorder %s63_s25, 0 }
   0xf   : > { %p156_p7 = scmp.eq.s32.totalorder %s5061_s21, 1  ;;  %p4189_p10 = scmp.lt.s32.totalorder %s4998_s20, 2 }
  0x10   : > { %p5079_p8 = por %p81_p5, %p80_p4  ;;  %s5092_s29 = sand.u32 1, %s4986_s17  }
  0x11   : > { %s5084_s27 = scalar_select %p65_p6, %s4986_s17, %s67_s23  }
  0x12   : > { %p5086_p9 = por %p156_p7, %p74_p1  ;;  %s215_s30 = sand.u32 1, %s4998_s20  }
  0x13   : > { %s4170_s5 = smul.u32 3072, %s5092_s29  ;;  %p5098_p11 = pnand %p4189_p10, %p5070_p3 }
  0x14   : > { %s5819_s7 = sshll.u32 %s5092_s29, 2  ;;  %s4161_s10 = sshll.u32 %s4994_s19, 6 }
  0x15   : > { %s195_s8 = scalar_lea.vmem [#allocation3], %s4170_s5  ;;  %s219_s11 = scalar_lea.vmem [#allocation5], %s5819_s7 }
  0x16   : > { %s205_s9 = sshll.u32 %s195_s8, 4  ;;  %s227_s12 = sshll.u32 %s219_s11, 4  ;;  %s5103_s9 = int_to_ptr.vmem [resolvable:$true] %s205_s9  ;;  %s228_s12 = int_to_ptr.vmem [resolvable:$true] %s227_s12 }
  0x17   : > { %s5826_s2 = sld [smem:[#allocation12_spill]]  ;;  %s5111_s23 = scalar_lea.sflag [#allocation6], %s215_s30 }
  0x18   : > { %p4862_p12 = pneg %p5098_p11  ;;  %s4873_s24 = scalar_lea.vmem %s228_s12, 64 }
  0x19   : > { %p4874_p13 = scmp.ne.s32.totalorder %s228_s12, %s4873_s24  ;;  %s5000_s25 = smov [#allocation5]  }
  0x1a   : > { %s4878_s5 = sshll.u32 %s5000_s25, 4  ;;  %s4879_s5 = int_to_ptr.vmem [resolvable:$false] %s4878_s5 }
  0x1b   : > { %p4876_p0 = pnand %p4874_p13, %p4862_p12  ;;  %s4880_s8 = scalar_lea.vmem %s4879_s5, 128 }
  0x1c   : > { %p4881_p2 = scmp.lt.s32.totalorder %s228_s12, %s4879_s5  ;;  %p4882_p3 = scmp.lt.s32.totalorder %s4880_s8, %s4873_s24 }
  0x1d   : > { %s225_s15 = scalar_lea.hbm %s5826_s2, %s4161_s10  ;;  %p4877_p1 = pneg %p4876_p0 }
  0x1e   : > { %p4883_p4 = por %p4882_p3, %p4881_p2 }
  0x20   : > { %p4884_p5 = pnand %p4883_p4, %p4877_p1 }
  0x22   : > { %4887 = shalt.err (!%p4884_p5)
}
  0x23   : > { %4185 = dma.hbm_to_vmem [thread:$0]  (!%p5098_p11), %s225_s15, 64, %s228_s12, %s5111_s23  }
  0x24   : > { %s5124_s13 = scalar_lea.hbm %s5817_s3, %s4161_s10  ;;  %p3739_p6 = scmp.ge.s32.totalorder %s4998_s20, 1 }
  0x25   : > { %p251_p7 = scmp.lt.s32.totalorder %s4998_s20, 3  ;;  %s4160_s14 = sshll.u32 %s4994_s19, 8 }
  0x26   : > { %s5828_s1 = sld [smem:[#allocation11_spill]]  ;;  %s192_s7 = scalar_lea.sflag [#allocation4], %s5092_s29 }
  0x27   : > { %p5129_p10 = pnand %p3739_p6, %p251_p7  ;;  %s4901_s2 = scalar_lea.vmem %s5103_s9, 49152 }
  0x28   : > { %p4902_p13 = scmp.ne.s32.totalorder %s5103_s9, %s4901_s2  ;;  %s5001_s10 = smov [#allocation3]  }
  0x29   : > { %s4906_s12 = sshll.u32 %s5001_s10, 4  ;;  %s4907_s12 = int_to_ptr.vmem [resolvable:$false] %s4906_s12 }
  0x2a   : > { %p4904_p0 = pnand %p4902_p13, %p4862_p12  ;;  %s4908_s15 = scalar_lea.vmem %s4907_s12, 98304 }
  0x2b   : > { %p4909_p2 = scmp.lt.s32.totalorder %s5103_s9, %s4907_s12  ;;  %p4910_p3 = scmp.lt.s32.totalorder %s4908_s15, %s4901_s2 }
  0x2c   : > { %s204_s8 = scalar_lea.hbm %s5828_s1, %s4160_s14  ;;  %p4905_p1 = pneg %p4904_p0 }
  0x2d   : > { %p4911_p4 = por %p4910_p3, %p4909_p2 }
  0x2f   : > { %p4912_p5 = pnand %p4911_p4, %p4905_p1 }
  0x31   : > { %4915 = shalt.err (!%p4912_p5)
}
  0x32   : > { %s5002_s30 = smov 512   ;;  %s5003_s11 = smov 256  }
  0x33   : > { %s5004_s14 = smov 16   ;;  %s5829_s25 = sshll.u32 %s5092_s29, 2 }
  0x34   : > { %4182 = dma.hbm_to_vmem [thread:$0]  (!%p5098_p11), %s204_s8, 49152, %s5103_s9, %s192_s7, %s5002_s30, %s5003_s11, %s5004_s14  }
  0x35   : > { %s238_s5 = scalar_lea.vmem [#allocation7], %s5829_s25  ;;  %s5005_s2 = smov [#allocation7]  }
  0x36   : > { %s246_s1 = sshll.u32 %s238_s5, 4  ;;  %s4934_s12 = sshll.u32 %s5005_s2, 4  ;;  %s247_s1 = int_to_ptr.vmem [resolvable:$true] %s246_s1  ;;  %s4935_s12 = int_to_ptr.vmem [resolvable:$false] %s4934_s12 }
  0x37   : > { %s4929_s10 = scalar_lea.vmem %s247_s1, 64  ;;  %s4936_s15 = scalar_lea.vmem %s4935_s12, 128 }
  0x38   : > { %p4930_p6 = scmp.ne.s32.totalorder %s247_s1, %s4929_s10  ;;  %p4937_p0 = scmp.lt.s32.totalorder %s247_s1, %s4935_s12 }
  0x39   : > { %p4938_p1 = scmp.lt.s32.totalorder %s4936_s15, %s4929_s10 }
  0x3a   : > { %p4932_p7 = pnand %p4930_p6, %p4862_p12 }
  0x3b   : > { %p4939_p2 = por %p4938_p1, %p4937_p0 }
  0x3c   : > { %p4933_p13 = pneg %p4932_p7 }
  0x3e   : > { %p4940_p3 = pnand %p4939_p2, %p4933_p13 }
  0x40   : > { %4943 = shalt.err (!%p4940_p3)
}
  0x41   : > { %4188 = dma.hbm_to_vmem [thread:$0]  (!%p5098_p11), %s5124_s13, 64, %s247_s1, %s5111_s23  }
  0x42   : > { %255 = sbr.rel (%p5129_p10) target bundleno = 694 (0x2b6), region = 36  ;;  %s5158_s29 = sand.u32 (!%p5129_p10), 1, %s4982_s16  }
  0x43   : > { %s4171_s7 = smul.u32 (!%p5129_p10), 3072, %s5158_s29  ;;  %s258_s9 = scalar_lea.sflag (!%p5129_p10), [#allocation4], %s5158_s29 }
  0x45   : > { %s5162_s8 = scalar_lea.vmem (!%p5129_p10), [#allocation3], %s4171_s7 }
  0x47   : > { %4969 = dma.done.wait (%p5079_p8), %s258_s9, 49152  }
  0x48   : > { %4971 = vsyncadd (%p5079_p8), %s258_s9, 4294918144  ;;  %s266_s1 = sand.u32 1, %s5061_s21   ;;  %s3740_s6 = sshll.u32 %s5158_s29, 2 }
  0x49   : > { %s267_s23 = scalar_lea.sflag [#allocation6], %s266_s1  ;;  %s5172_s13 = scalar_lea.vmem [#allocation5], %s3740_s6 }
  0x4a   : > { %4973 = dma.done.wait (%p5079_p8), %s267_s23, 128  }
  0x4b   : > { %4975 = vsyncadd (%p5079_p8), %s267_s23, 4294967168  ;;  %v4242_v0 = vld [vmem:[%s5162_s8 + $0xe4] ss:$16 sps:$4 sm:$0xff]   ;;  %v4246_v2 = vld [vmem:[%s5162_s8 + $0xe0] ss:$16 sps:$4 sm:$0xff]   ;;  %s4169_s15 = sshll.u32 (%p5086_p9), %s4990_s18, 4 }
  0x4c   : > { %v4244_v1 = vld [vmem:[%s5162_s8 + $0x2e4] ss:$16 sps:$4 sm:$0xff]   ;;  %2781 = vmatprep.subr.bf16.mxu0 %v4242_v0  ;;  %v4247_v3 = vld [vmem:[%s5162_s8 + $0x2e0] ss:$16 sps:$4 sm:$0xff]   ;;  %v4343_v51 = vld [vmem:[%s5814_s0 + $0xc] ss:$48 sps:$4 sm:$0xff]   ;;  %s3567_s1 = scalar_lea.vmem (%p5086_p9), %s5818_s4, %s4169_s15 }
  0x4d   : > { %2832 = vmatprep.subr.bf16.mxu1 %v4244_v1  ;;  %v4248_v4 = vld [vmem:[%s5162_s8 + $0xc4] ss:$16 sps:$4 sm:$0xff]   ;;  %2782 = vmatpush1.bf16.msra.mxu0 %v4246_v2  ;;  %v4252_v6 = vld [vmem:[%s5162_s8 + $0xc0] ss:$16 sps:$4 sm:$0xff]  }
  0x4e   : > { %2833 = vmatpush1.bf16.msra.mxu1 %v4247_v3  ;;  %v4250_v5 = vld [vmem:[%s5162_s8 + $0x2c4] ss:$16 sps:$4 sm:$0xff]   ;;  %2783 = vmatprep.subr.bf16.mxu0 %v4248_v4  ;;  %v4253_v7 = vld [vmem:[%s5162_s8 + $0x2c0] ss:$16 sps:$4 sm:$0xff]  }
  0x4f   : > { %2834 = vmatprep.subr.bf16.mxu1 %v4250_v5  ;;  %v4254_v8 = vld [vmem:[%s5162_s8 + $0xa4] ss:$16 sps:$4 sm:$0xff]   ;;  %v4258_v10 = vld [vmem:[%s5162_s8 + $0xa0] ss:$16 sps:$4 sm:$0xff]   ;;  %2864 = vmatprep.mubr.bf16.mxu1 %v4343_v51  ;;  %v4341_v5 = vld [vmem:[%s5814_s0 + $0x8] ss:$48 sps:$4 sm:$0xff]  }
  0x50   : > { %v4256_v9 = vld [vmem:[%s5162_s8 + $0x2a4] ss:$16 sps:$4 sm:$0xff]   ;;  %v4259_v11 = vld [vmem:[%s5162_s8 + $0x2a0] ss:$16 sps:$4 sm:$0xff]  }
  0x51   : > { %2784 = vmatpush1.bf16.msra.mxu0 %v4252_v6  ;;  %v4260_v12 = vld [vmem:[%s5162_s8 + $0x84] ss:$16 sps:$4 sm:$0xff]   ;;  %v4264_v14 = vld [vmem:[%s5162_s8 + $0x80] ss:$16 sps:$4 sm:$0xff]  }
  0x52   : > { %2835 = vmatpush1.bf16.msra.mxu1 %v4253_v7  ;;  %2785 = vmatprep.subr.bf16.mxu0 %v4254_v8  ;;  %v4262_v13 = vld [vmem:[%s5162_s8 + $0x284] ss:$16 sps:$4 sm:$0xff]   ;;  %v4265_v15 = vld [vmem:[%s5162_s8 + $0x280] ss:$16 sps:$4 sm:$0xff]  }
  0x53   : > { %2836 = vmatprep.subr.bf16.mxu1 %v4256_v9  ;;  %v4266_v16 = vld [vmem:[%s5162_s8 + $0x64] ss:$16 sps:$4 sm:$0xff]   ;;  %v4270_v18 = vld [vmem:[%s5162_s8 + $0x60] ss:$16 sps:$4 sm:$0xff]  }
  0x54   : > { %v4268_v17 = vld [vmem:[%s5162_s8 + $0x264] ss:$16 sps:$4 sm:$0xff]   ;;  %v4271_v19 = vld [vmem:[%s5162_s8 + $0x260] ss:$16 sps:$4 sm:$0xff]  }
  0x55   : > { %2786 = vmatpush1.bf16.msra.mxu0 %v4258_v10  ;;  %v4272_v20 = vld [vmem:[%s5162_s8 + $0x44] ss:$16 sps:$4 sm:$0xff]   ;;  %v4276_v22 = vld [vmem:[%s5162_s8 + $0x40] ss:$16 sps:$4 sm:$0xff]  }
  0x56   : > { %2837 = vmatpush1.bf16.msra.mxu1 %v4259_v11  ;;  %2787 = vmatprep.subr.bf16.mxu0 %v4260_v12  ;;  %v4274_v21 = vld [vmem:[%s5162_s8 + $0x244] ss:$16 sps:$4 sm:$0xff]   ;;  %v4277_v23 = vld [vmem:[%s5162_s8 + $0x240] ss:$16 sps:$4 sm:$0xff]  }
  0x57   : > { %2838 = vmatprep.subr.bf16.mxu1 %v4262_v13  ;;  %v4278_v24 = vld [vmem:[%s5162_s8 + $0x24] ss:$16 sps:$4 sm:$0xff]   ;;  %v4282_v26 = vld [vmem:[%s5162_s8 + $0x20] ss:$16 sps:$4 sm:$0xff]  }
  0x58   : > { %v4280_v25 = vld [vmem:[%s5162_s8 + $0x224] ss:$16 sps:$4 sm:$0xff]   ;;  %v4283_v27 = vld [vmem:[%s5162_s8 + $0x220] ss:$16 sps:$4 sm:$0xff]  }
  0x59   : > { %2788 = vmatpush1.bf16.msra.mxu0 %v4264_v14  ;;  %v4284_v28 = vld [vmem:[%s5162_s8 + $0x4] ss:$16 sps:$4 sm:$0xff]   ;;  %v4288_v30 = vld [vmem:[%s5162_s8] ss:$16 sps:$4 sm:$0xff]  }
  0x5a   : > { %2839 = vmatpush1.bf16.msra.mxu1 %v4265_v15  ;;  %2789 = vmatprep.subr.bf16.mxu0 %v4266_v16  ;;  %v4286_v29 = vld [vmem:[%s5162_s8 + $0x204] ss:$16 sps:$4 sm:$0xff]   ;;  %v4289_v31 = vld [vmem:[%s5162_s8 + $0x200] ss:$16 sps:$4 sm:$0xff]  }
  0x5b   : > { %2840 = vmatprep.subr.bf16.mxu1 %v4268_v17  ;;  %v4290_v32 = vld [vmem:[%s5162_s8 + $0x1e4] ss:$16 sps:$4 sm:$0xff]   ;;  %v4294_v34 = vld [vmem:[%s5162_s8 + $0x1e0] ss:$16 sps:$4 sm:$0xff]  }
  0x5c   : > { %v4292_v33 = vld [vmem:[%s5162_s8 + $0x3e4] ss:$16 sps:$4 sm:$0xff]   ;;  %v4295_v35 = vld [vmem:[%s5162_s8 + $0x3e0] ss:$16 sps:$4 sm:$0xff]  }
  0x5d   : > { %2790 = vmatpush1.bf16.msra.mxu0 %v4270_v18  ;;  %v4296_v36 = vld [vmem:[%s5162_s8 + $0x1c4] ss:$16 sps:$4 sm:$0xff]   ;;  %v4300_v38 = vld [vmem:[%s5162_s8 + $0x1c0] ss:$16 sps:$4 sm:$0xff]  }
  0x5e   : > { %2841 = vmatpush1.bf16.msra.mxu1 %v4271_v19  ;;  %2791 = vmatprep.subr.bf16.mxu0 %v4272_v20  ;;  %v4298_v37 = vld [vmem:[%s5162_s8 + $0x3c4] ss:$16 sps:$4 sm:$0xff]   ;;  %v4301_v39 = vld [vmem:[%s5162_s8 + $0x3c0] ss:$16 sps:$4 sm:$0xff]  }
  0x5f   : > { %2842 = vmatprep.subr.bf16.mxu1 %v4274_v21  ;;  %v4302_v40 = vld [vmem:[%s5162_s8 + $0x1a4] ss:$16 sps:$4 sm:$0xff]   ;;  %v4306_v42 = vld [vmem:[%s5162_s8 + $0x1a0] ss:$16 sps:$4 sm:$0xff]  }
  0x60   : > { %v4304_v41 = vld [vmem:[%s5162_s8 + $0x3a4] ss:$16 sps:$4 sm:$0xff]   ;;  %v4307_v43 = vld [vmem:[%s5162_s8 + $0x3a0] ss:$16 sps:$4 sm:$0xff]  }
  0x61   : > { %2792 = vmatpush1.bf16.msra.mxu0 %v4276_v22  ;;  %v4308_v44 = vld [vmem:[%s5162_s8 + $0x184] ss:$16 sps:$4 sm:$0xff]   ;;  %v4312_v46 = vld [vmem:[%s5162_s8 + $0x180] ss:$16 sps:$4 sm:$0xff]  }
  0x62   : > { %2843 = vmatpush1.bf16.msra.mxu1 %v4277_v23  ;;  %2793 = vmatprep.subr.bf16.mxu0 %v4278_v24  ;;  %v4310_v45 = vld [vmem:[%s5162_s8 + $0x384] ss:$16 sps:$4 sm:$0xff]   ;;  %v4313_v47 = vld [vmem:[%s5162_s8 + $0x380] ss:$16 sps:$4 sm:$0xff]  }
  0x63   : > { %2844 = vmatprep.subr.bf16.mxu1 %v4280_v25  ;;  %v4314_v48 = vld [vmem:[%s5162_s8 + $0x164] ss:$16 sps:$4 sm:$0xff]   ;;  %v4318_v52 = vld [vmem:[%s5162_s8 + $0x160] ss:$16 sps:$4 sm:$0xff]   ;;  %v370_v25 = vld [vmem:[%s5814_s0 + $0x68] sm:$0x77] }
  0x64   : > { %v4340_v49 = vld [vmem:[%s5814_s0 + $0x4] ss:$48 sps:$4 sm:$0xff]   ;;  %v4319_v53 = vld [vmem:[%s5162_s8 + $0x360] ss:$16 sps:$4 sm:$0xff]  }
  0x65   : > { %2794 = vmatpush1.bf16.msra.mxu0 %v4282_v26  ;;  %v4316_v50 = vld [vmem:[%s5162_s8 + $0x364] ss:$16 sps:$4 sm:$0xff]   ;;  %2813 = vmatprep.mubr.bf16.mxu0 %v4340_v49  ;;  %v4324_v56 = vld [vmem:[%s5162_s8 + $0x140] ss:$16 sps:$4 sm:$0xff]  }
  0x66   : > { %2845 = vmatpush1.bf16.msra.mxu1 %v4283_v27  ;;  %2795 = vmatprep.subr.bf16.mxu0 %v4284_v28  ;;  %v4320_v54 = vld [vmem:[%s5162_s8 + $0x144] ss:$16 sps:$4 sm:$0xff]   ;;  %v4325_v57 = vld [vmem:[%s5162_s8 + $0x340] ss:$16 sps:$4 sm:$0xff]  }
  0x67   : > { %2846 = vmatprep.subr.bf16.mxu1 %v4286_v29  ;;  %v4322_v55 = vld [vmem:[%s5162_s8 + $0x344] ss:$16 sps:$4 sm:$0xff]   ;;  %v4330_v60 = vld [vmem:[%s5162_s8 + $0x120] ss:$16 sps:$4 sm:$0xff]   ;;  %v5284_v29 = vcombine.high %v370_v25, %v370_v25 }
  0x68   : > { %v4326_v58 = vld [vmem:[%s5162_s8 + $0x124] ss:$16 sps:$4 sm:$0xff]   ;;  %v4331_v61 = vld [vmem:[%s5162_s8 + $0x320] ss:$16 sps:$4 sm:$0xff]  }
  0x69   : > { %2796 = vmatpush1.bf16.msra.mxu0 %v4288_v30  ;;  %v4328_v59 = vld [vmem:[%s5162_s8 + $0x324] ss:$16 sps:$4 sm:$0xff]   ;;  %v4336_v0 = vld [vmem:[%s5162_s8 + $0x100] ss:$16 sps:$4 sm:$0xff]  }
  0x6a   : > { %2847 = vmatpush1.bf16.msra.mxu1 %v4289_v31  ;;  %2797 = vmatprep.subr.bf16.mxu0 %v4290_v32  ;;  %v4332_v62 = vld [vmem:[%s5162_s8 + $0x104] ss:$16 sps:$4 sm:$0xff]   ;;  %v4337_v1 = vld [vmem:[%s5162_s8 + $0x300] ss:$16 sps:$4 sm:$0xff]   ;;  %v5288_v31 = vcombine.low %v370_v25, %v370_v25 }
  0x6b   : > { %2848 = vmatprep.subr.bf16.mxu1 %v4292_v33  ;;  %v4334_v63 = vld [vmem:[%s5162_s8 + $0x304] ss:$16 sps:$4 sm:$0xff]   ;;  %v4338_v4 = vld [vmem:[%s5814_s0] ss:$48 sps:$4 sm:$0xff]  }
  0x6c   : > { %v4346_v2 = vld [vmem:[%s5162_s8 + $0x4e4] ss:$16 sps:$4 sm:$0xff]   ;;  %v4344_v6 = vld [vmem:[%s5162_s8 + $0x4e0] ss:$16 sps:$4 sm:$0xff]  }
  0x6d   : > { %2798 = vmatpush2.bf16.msra.mxu0 %v4294_v34  ;;  %v4349_v3 = vld [vmem:[%s5162_s8 + $0x6e4] ss:$16 sps:$4 sm:$0xff]   ;;  %v4347_v7 = vld [vmem:[%s5162_s8 + $0x6e0] ss:$16 sps:$4 sm:$0xff]  }
  0x6e   : > { %2849 = vmatpush2.bf16.msra.mxu1 %v4295_v35  ;;  %2799 = vmatprep.subr.bf16.mxu0 %v4296_v36  ;;  %v4352_v8 = vld [vmem:[%s5162_s8 + $0x4c4] ss:$16 sps:$4 sm:$0xff]   ;;  %v4350_v10 = vld [vmem:[%s5162_s8 + $0x4c0] ss:$16 sps:$4 sm:$0xff]  }
  0x6f   : > { %2850 = vmatprep.subr.bf16.mxu1 %v4298_v37  ;;  %v4355_v9 = vld [vmem:[%s5162_s8 + $0x6c4] ss:$16 sps:$4 sm:$0xff]   ;;  %v4353_v11 = vld [vmem:[%s5162_s8 + $0x6c0] ss:$16 sps:$4 sm:$0xff]  }
  0x70   : > { %v4358_v12 = vld [vmem:[%s5162_s8 + $0x4a4] ss:$16 sps:$4 sm:$0xff]   ;;  %v4356_v14 = vld [vmem:[%s5162_s8 + $0x4a0] ss:$16 sps:$4 sm:$0xff]  }
  0x71   : > { %2800 = vmatpush2.bf16.msra.mxu0 %v4300_v38  ;;  %v4361_v13 = vld [vmem:[%s5162_s8 + $0x6a4] ss:$16 sps:$4 sm:$0xff]   ;;  %v4359_v15 = vld [vmem:[%s5162_s8 + $0x6a0] ss:$16 sps:$4 sm:$0xff]  }
  0x72   : > { %2851 = vmatpush2.bf16.msra.mxu1 %v4301_v39  ;;  %2801 = vmatprep.subr.bf16.mxu0 %v4302_v40  ;;  %v4364_v16 = vld [vmem:[%s5162_s8 + $0x484] ss:$16 sps:$4 sm:$0xff]   ;;  %v4362_v18 = vld [vmem:[%s5162_s8 + $0x480] ss:$16 sps:$4 sm:$0xff]  }
  0x73   : > { %2852 = vmatprep.subr.bf16.mxu1 %v4304_v41  ;;  %v4367_v17 = vld [vmem:[%s5162_s8 + $0x684] ss:$16 sps:$4 sm:$0xff]   ;;  %v4365_v19 = vld [vmem:[%s5162_s8 + $0x680] ss:$16 sps:$4 sm:$0xff]   ;;  %v4449_v41 = vld [vmem:[%s5814_s0 + $0x1c] ss:$48 sps:$4 sm:$0xff]  }
  0x74   : > { %v4370_v20 = vld [vmem:[%s5162_s8 + $0x464] ss:$16 sps:$4 sm:$0xff]   ;;  %v4368_v22 = vld [vmem:[%s5162_s8 + $0x460] ss:$16 sps:$4 sm:$0xff]  }
  0x75   : > { %2802 = vmatpush2.bf16.msra.mxu0 %v4306_v42  ;;  %v4373_v21 = vld [vmem:[%s5162_s8 + $0x664] ss:$16 sps:$4 sm:$0xff]   ;;  %v4371_v23 = vld [vmem:[%s5162_s8 + $0x660] ss:$16 sps:$4 sm:$0xff]  }
  0x76   : > { %2853 = vmatpush2.bf16.msra.mxu1 %v4307_v43  ;;  %2803 = vmatprep.subr.bf16.mxu0 %v4308_v44  ;;  %v369_v24 = vld [vmem:[%s5814_s0 + $0x60] sm:$0x77] }
  0x77   : > { %2854 = vmatprep.subr.bf16.mxu1 %v4310_v45  ;;  %v4376_v26 = vld [vmem:[%s5162_s8 + $0x444] ss:$16 sps:$4 sm:$0xff]   ;;  %v5282_v28 = vcombine.high %v369_v24, %v369_v24  ;;  %v5286_v30 = vcombine.low %v369_v24, %v369_v24  ;;  %v4374_v32 = vld [vmem:[%s5162_s8 + $0x440] ss:$16 sps:$4 sm:$0xff]  }
  0x78   : > { %v4379_v27 = vld [vmem:[%s5162_s8 + $0x644] ss:$16 sps:$4 sm:$0xff]   ;;  %v4377_v33 = vld [vmem:[%s5162_s8 + $0x640] ss:$16 sps:$4 sm:$0xff]  }
  0x79   : > { %2804 = vmatpush2.bf16.msra.mxu0 %v4312_v46  ;;  %v4382_v34 = vld [vmem:[%s5162_s8 + $0x424] ss:$16 sps:$4 sm:$0xff]   ;;  %v4380_v36 = vld [vmem:[%s5162_s8 + $0x420] ss:$16 sps:$4 sm:$0xff]  }
  0x7a   : > { %2855 = vmatpush2.bf16.msra.mxu1 %v4313_v47  ;;  %2805 = vmatprep.subr.bf16.mxu0 %v4314_v48  ;;  %v4385_v35 = vld [vmem:[%s5162_s8 + $0x624] ss:$16 sps:$4 sm:$0xff]   ;;  %v4383_v37 = vld [vmem:[%s5162_s8 + $0x620] ss:$16 sps:$4 sm:$0xff]  }
  0x7b   : > { %2856 = vmatprep.subr.bf16.mxu1 %v4316_v50  ;;  %v4388_v38 = vld [vmem:[%s5162_s8 + $0x404] ss:$16 sps:$4 sm:$0xff]   ;;  %v4386_v42 = vld [vmem:[%s5162_s8 + $0x400] ss:$16 sps:$4 sm:$0xff]  }
  0x7c   : > { %v4391_v39 = vld [vmem:[%s5162_s8 + $0x604] ss:$16 sps:$4 sm:$0xff]   ;;  %v4389_v43 = vld [vmem:[%s5162_s8 + $0x600] ss:$16 sps:$4 sm:$0xff]  }
  0x7d   : > { %2806 = vmatpush2.bf16.msra.mxu0 %v4318_v52  ;;  %v4446_v40 = vld [vmem:[%s5814_s0 + $0x14] ss:$48 sps:$4 sm:$0xff]   ;;  %v4392_v46 = vld [vmem:[%s5162_s8 + $0x5e0] ss:$16 sps:$4 sm:$0xff]  }
  0x7e   : > { %2857 = vmatpush2.bf16.msra.mxu1 %v4319_v53  ;;  %2807 = vmatprep.subr.bf16.mxu0 %v4320_v54  ;;  %v4394_v44 = vld [vmem:[%s5162_s8 + $0x5e4] ss:$16 sps:$4 sm:$0xff]   ;;  %v4395_v47 = vld [vmem:[%s5162_s8 + $0x7e0] ss:$16 sps:$4 sm:$0xff]  }
  0x7f   : > { %2858 = vmatprep.subr.bf16.mxu1 %v4322_v55  ;;  %v4397_v45 = vld [vmem:[%s5162_s8 + $0x7e4] ss:$16 sps:$4 sm:$0xff]   ;;  %v4398_v50 = vld [vmem:[%s5162_s8 + $0x5c0] ss:$16 sps:$4 sm:$0xff]  }
  0x80   : > { %v4400_v48 = vld [vmem:[%s5162_s8 + $0x5c4] ss:$16 sps:$4 sm:$0xff]   ;;  %v4401_v51 = vld [vmem:[%s5162_s8 + $0x7c0] ss:$16 sps:$4 sm:$0xff]  }
  0x81   : > { %2808 = vmatpush2.bf16.msra.mxu0 %v4324_v56  ;;  %v4403_v49 = vld [vmem:[%s5162_s8 + $0x7c4] ss:$16 sps:$4 sm:$0xff]   ;;  %v4404_v54 = vld [vmem:[%s5162_s8 + $0x5a0] ss:$16 sps:$4 sm:$0xff]  }
  0x82   : > { %2859 = vmatpush2.bf16.msra.mxu1 %v4325_v57  ;;  %2809 = vmatprep.subr.bf16.mxu0 %v4326_v58  ;;  %v4406_v52 = vld [vmem:[%s5162_s8 + $0x5a4] ss:$16 sps:$4 sm:$0xff]   ;;  %v4407_v55 = vld [vmem:[%s5162_s8 + $0x7a0] ss:$16 sps:$4 sm:$0xff]  }
  0x83   : > { %2860 = vmatprep.subr.bf16.mxu1 %v4328_v59  ;;  %v4409_v53 = vld [vmem:[%s5162_s8 + $0x7a4] ss:$16 sps:$4 sm:$0xff]   ;;  %v4410_v58 = vld [vmem:[%s5162_s8 + $0x580] ss:$16 sps:$4 sm:$0xff]  }
  0x84   : > { %v4412_v56 = vld [vmem:[%s5162_s8 + $0x584] ss:$16 sps:$4 sm:$0xff]   ;;  %v4413_v59 = vld [vmem:[%s5162_s8 + $0x780] ss:$16 sps:$4 sm:$0xff]  }
  0x85   : > { %2810 = vmatpush2.bf16.msra.mxu0 %v4330_v60  ;;  %v4415_v57 = vld [vmem:[%s5162_s8 + $0x784] ss:$16 sps:$4 sm:$0xff]   ;;  %v4456_v24 = vld [vmem:[%s5162_s8 + $0x8c0] ss:$16 sps:$4 sm:$0xff]  }
  0x86   : > { %2861 = vmatpush2.bf16.msra.mxu1 %v4331_v61  ;;  %2811 = vmatprep.subr.bf16.mxu0 %v4332_v62  ;;  %v4418_v60 = vld [vmem:[%s5162_s8 + $0x564] ss:$16 sps:$4 sm:$0xff]   ;;  %v4416_v62 = vld [vmem:[%s5162_s8 + $0x560] ss:$16 sps:$4 sm:$0xff]  }
  0x87   : > { %2862 = vmatprep.subr.bf16.mxu1 %v4334_v63  ;;  %v4421_v61 = vld [vmem:[%s5162_s8 + $0x764] ss:$16 sps:$4 sm:$0xff]   ;;  %v4419_v63 = vld [vmem:[%s5162_s8 + $0x760] ss:$16 sps:$4 sm:$0xff]  }
  0x88   : > { %v4459_v25 = vld [vmem:[%s5162_s8 + $0xac0] ss:$16 sps:$4 sm:$0xff]  }
  0x89   : > { %2812 = vmatpush2.bf16.msra.mxu0 %v4336_v0  ;;  %v4427_v0 = vld [vmem:[%s5162_s8 + $0x544] ss:$16 sps:$4 sm:$0xff]  }
  0x8a   : > { %2863 = vmatpush2.bf16.msra.mxu1 %v4337_v1  ;;  %2883 = vmatprep.subr.bf16.mxu0 %v4346_v2  ;;  %v4430_v1 = vld [vmem:[%s5162_s8 + $0x744] ss:$16 sps:$4 sm:$0xff]   ;;  %v4425_v2 = vld [vmem:[%s5162_s8 + $0x540] ss:$16 sps:$4 sm:$0xff]  }
  0x8b   : > { %2934 = vmatprep.subr.bf16.mxu1 %v4349_v3  ;;  %v4428_v3 = vld [vmem:[%s5162_s8 + $0x740] ss:$16 sps:$4 sm:$0xff]  }
  0x8c   : > { %2814 = vmatmul.mubr.bf16.vlgmr.msra.gmra.mxu0 %v4338_v4  ;;  %v4434_v4 = vld [vmem:[%s5162_s8 + $0x524] ss:$16 sps:$4 sm:$0xff]  }
  0x8d   : > { %2865 = vmatmul.mubr.bf16.vlgmr.msra.gmra.mxu1 %v4341_v5  ;;  %2884 = vmatpush1.bf16.msra.mxu0 %v4344_v6  ;;  %v4437_v5 = vld [vmem:[%s5162_s8 + $0x724] ss:$16 sps:$4 sm:$0xff]   ;;  %v4432_v6 = vld [vmem:[%s5162_s8 + $0x520] ss:$16 sps:$4 sm:$0xff]  }
  0x8e   : > { %2935 = vmatpush1.bf16.msra.mxu1 %v4347_v7  ;;  %2885 = vmatprep.subr.bf16.mxu0 %v4352_v8  ;;  %v4435_v7 = vld [vmem:[%s5162_s8 + $0x720] ss:$16 sps:$4 sm:$0xff]   ;;  %v4440_v8 = vld [vmem:[%s5162_s8 + $0x504] ss:$16 sps:$4 sm:$0xff]  }
  0x8f   : > { %2936 = vmatprep.subr.bf16.mxu1 %v4355_v9  ;;  %2823 = vmatprep.mubr.bf16.mxu0 %v5282_v28  ;;  %v4443_v9 = vld [vmem:[%s5162_s8 + $0x704] ss:$16 sps:$4 sm:$0xff]  }
  0x90   : > { %2874 = vmatprep.mubr.bf16.mxu1 %v5284_v29 }
  0x91   : > { %2886 = vmatpush1.bf16.msra.mxu0 %v4350_v10  ;;  %v4438_v10 = vld [vmem:[%s5162_s8 + $0x500] ss:$16 sps:$4 sm:$0xff]  }
  0x92   : > { %2937 = vmatpush1.bf16.msra.mxu1 %v4353_v11  ;;  %2887 = vmatprep.subr.bf16.mxu0 %v4358_v12  ;;  %v4441_v11 = vld [vmem:[%s5162_s8 + $0x700] ss:$16 sps:$4 sm:$0xff]   ;;  %v4452_v12 = vld [vmem:[%s5162_s8 + $0x8e4] ss:$16 sps:$4 sm:$0xff]  }
  0x93   : > { %2938 = vmatprep.subr.bf16.mxu1 %v4361_v13  ;;  %v4444_v13 = vld [vmem:[%s5814_s0 + $0x10] ss:$48 sps:$4 sm:$0xff]  }
  0x94   : > { %2824 = vmatmul.mubr.bf16.gmra.mxu0 %v5286_v30 }
  0x95   : > { %2888 = vmatpush1.bf16.msra.mxu0 %v4356_v14  ;;  %2875 = vmatmul.mubr.bf16.gmra.mxu1 %v5288_v31  ;;  %v4447_v14 = vld [vmem:[%s5814_s0 + $0x18] ss:$48 sps:$4 sm:$0xff]  }
  0x96   : > { %2939 = vmatpush1.bf16.msra.mxu1 %v4359_v15  ;;  %2889 = vmatprep.subr.bf16.mxu0 %v4364_v16  ;;  %v4455_v15 = vld [vmem:[%s5162_s8 + $0xae4] ss:$16 sps:$4 sm:$0xff]   ;;  %v4450_v16 = vld [vmem:[%s5162_s8 + $0x8e0] ss:$16 sps:$4 sm:$0xff]  }
  0x97   : > { %2940 = vmatprep.subr.bf16.mxu1 %v4367_v17  ;;  %2915 = vmatprep.mubr.bf16.mxu0 %v4446_v40  ;;  %v4453_v17 = vld [vmem:[%s5162_s8 + $0xae0] ss:$16 sps:$4 sm:$0xff]  }
  0x98   : > { %2966 = vmatprep.mubr.bf16.mxu1 %v4449_v41  ;;  %v4472_v40 = vld [vmem:[%s5162_s8 + $0x880] ss:$16 sps:$4 sm:$0xff]  }
  0x99   : > { %2890 = vmatpush1.bf16.msra.mxu0 %v4362_v18  ;;  %v371_v18 = vld [vmem:[%s5814_s0 + $0x70] sm:$0x77] }
  0x9a   : > { %2941 = vmatpush1.bf16.msra.mxu1 %v4365_v19  ;;  %2891 = vmatprep.subr.bf16.mxu0 %v4370_v20  ;;  %v372_v19 = vld [vmem:[%s5814_s0 + $0x78] sm:$0x77]  ;;  %v4458_v20 = vld [vmem:[%s5162_s8 + $0x8c4] ss:$16 sps:$4 sm:$0xff]   ;;  %v4475_v41 = vld [vmem:[%s5162_s8 + $0xa80] ss:$16 sps:$4 sm:$0xff]  }
  0x9b   : > { %2942 = vmatprep.subr.bf16.mxu1 %v4373_v21  ;;  %v4461_v21 = vld [vmem:[%s5162_s8 + $0xac4] ss:$16 sps:$4 sm:$0xff]  }
  0x9d   : > { %2892 = vmatpush1.bf16.msra.mxu0 %v4368_v22  ;;  %v5360_v22 = vcombine.high %v371_v18, %v371_v18 }
  0x9e   : > { %2943 = vmatpush1.bf16.msra.mxu1 %v4371_v23  ;;  %2893 = vmatprep.subr.bf16.mxu0 %v4376_v26  ;;  %v5362_v23 = vcombine.high %v372_v19, %v372_v19  ;;  %v4466_v26 = vld [vmem:[%s5162_s8 + $0x8a4] ss:$16 sps:$4 sm:$0xff]  }
  0x9f   : > { %2944 = vmatprep.subr.bf16.mxu1 %v4379_v27  ;;  %v4469_v27 = vld [vmem:[%s5162_s8 + $0xaa4] ss:$16 sps:$4 sm:$0xff]  }
  0xa1   : > { %2894 = vmatpush1.bf16.msra.mxu0 %v4374_v32  ;;  %v5370_v32 = vcombine.low %v371_v18, %v371_v18  ;;  %v4540_v18 = vld [vmem:[%s5162_s8 + $0x924] ss:$16 sps:$4 sm:$0xff]  }
  0xa2   : > { %2945 = vmatpush1.bf16.msra.mxu1 %v4377_v33  ;;  %2895 = vmatprep.subr.bf16.mxu0 %v4382_v34  ;;  %v4464_v33 = vld [vmem:[%s5162_s8 + $0x8a0] ss:$16 sps:$4 sm:$0xff]  }
  0xa3   : > { %2946 = vmatprep.subr.bf16.mxu1 %v4385_v35  ;;  %v4467_v34 = vld [vmem:[%s5162_s8 + $0xaa0] ss:$16 sps:$4 sm:$0xff]   ;;  %v5374_v35 = vcombine.low %v372_v19, %v372_v19  ;;  %v4543_v19 = vld [vmem:[%s5162_s8 + $0xb24] ss:$16 sps:$4 sm:$0xff]  }
  0xa5   : > { %2896 = vmatpush1.bf16.msra.mxu0 %v4380_v36  ;;  %v4474_v36 = vld [vmem:[%s5162_s8 + $0x884] ss:$16 sps:$4 sm:$0xff]  }
  0xa6   : > { %2947 = vmatpush1.bf16.msra.mxu1 %v4383_v37  ;;  %2897 = vmatprep.subr.bf16.mxu0 %v4388_v38  ;;  %v4477_v37 = vld [vmem:[%s5162_s8 + $0xa84] ss:$16 sps:$4 sm:$0xff]  }
  0xa7   : > { %2948 = vmatprep.subr.bf16.mxu1 %v4391_v39  ;;  %v4552_v38 = vld [vmem:[%s5814_s0 + $0x24] ss:$48 sps:$4 sm:$0xff]   ;;  %v4555_v39 = vld [vmem:[%s5814_s0 + $0x2c] ss:$48 sps:$4 sm:$0xff]  }
  0xa9   : > { %2898 = vmatpush1.bf16.msra.mxu0 %v4386_v42  ;;  %v4480_v42 = vld [vmem:[%s5162_s8 + $0x864] ss:$16 sps:$4 sm:$0xff]  }
  0xaa   : > { %2949 = vmatpush1.bf16.msra.mxu1 %v4389_v43  ;;  %2899 = vmatprep.subr.bf16.mxu0 %v4394_v44  ;;  %v4483_v43 = vld [vmem:[%s5162_s8 + $0xa64] ss:$16 sps:$4 sm:$0xff]   ;;  %v4478_v44 = vld [vmem:[%s5162_s8 + $0x860] ss:$16 sps:$4 sm:$0xff]  }
  0xab   : > { %2950 = vmatprep.subr.bf16.mxu1 %v4397_v45  ;;  %v4481_v45 = vld [vmem:[%s5162_s8 + $0xa60] ss:$16 sps:$4 sm:$0xff]  }
  0xad   : > { %2900 = vmatpush2.bf16.msra.mxu0 %v4392_v46  ;;  %v4486_v46 = vld [vmem:[%s5162_s8 + $0x844] ss:$16 sps:$4 sm:$0xff]  }
  0xae   : > { %2951 = vmatpush2.bf16.msra.mxu1 %v4395_v47  ;;  %2901 = vmatprep.subr.bf16.mxu0 %v4400_v48  ;;  %v4489_v47 = vld [vmem:[%s5162_s8 + $0xa44] ss:$16 sps:$4 sm:$0xff]   ;;  %v4484_v48 = vld [vmem:[%s5162_s8 + $0x840] ss:$16 sps:$4 sm:$0xff]  }
  0xaf   : > { %2952 = vmatprep.subr.bf16.mxu1 %v4403_v49  ;;  %v4487_v49 = vld [vmem:[%s5162_s8 + $0xa40] ss:$16 sps:$4 sm:$0xff]  }
  0xb1   : > { %2902 = vmatpush2.bf16.msra.mxu0 %v4398_v50  ;;  %v4492_v50 = vld [vmem:[%s5162_s8 + $0x824] ss:$16 sps:$4 sm:$0xff]  }
  0xb2   : > { %2953 = vmatpush2.bf16.msra.mxu1 %v4401_v51  ;;  %2903 = vmatprep.subr.bf16.mxu0 %v4406_v52  ;;  %v4495_v51 = vld [vmem:[%s5162_s8 + $0xa24] ss:$16 sps:$4 sm:$0xff]   ;;  %v4490_v52 = vld [vmem:[%s5162_s8 + $0x820] ss:$16 sps:$4 sm:$0xff]  }
  0xb3   : > { %2954 = vmatprep.subr.bf16.mxu1 %v4409_v53  ;;  %v4493_v53 = vld [vmem:[%s5162_s8 + $0xa20] ss:$16 sps:$4 sm:$0xff]  }
  0xb5   : > { %2904 = vmatpush2.bf16.msra.mxu0 %v4404_v54  ;;  %v4498_v54 = vld [vmem:[%s5162_s8 + $0x804] ss:$16 sps:$4 sm:$0xff]  }
  0xb6   : > { %2955 = vmatpush2.bf16.msra.mxu1 %v4407_v55  ;;  %2905 = vmatprep.subr.bf16.mxu0 %v4412_v56  ;;  %v4501_v55 = vld [vmem:[%s5162_s8 + $0xa04] ss:$16 sps:$4 sm:$0xff]   ;;  %v4496_v56 = vld [vmem:[%s5162_s8 + $0x800] ss:$16 sps:$4 sm:$0xff]  }
  0xb7   : > { %2956 = vmatprep.subr.bf16.mxu1 %v4415_v57  ;;  %v4499_v57 = vld [vmem:[%s5162_s8 + $0xa00] ss:$16 sps:$4 sm:$0xff]  }
  0xb9   : > { %2906 = vmatpush2.bf16.msra.mxu0 %v4410_v58  ;;  %v4504_v58 = vld [vmem:[%s5162_s8 + $0x9e4] ss:$16 sps:$4 sm:$0xff]  }
  0xba   : > { %2957 = vmatpush2.bf16.msra.mxu1 %v4413_v59  ;;  %2907 = vmatprep.subr.bf16.mxu0 %v4418_v60  ;;  %v4507_v59 = vld [vmem:[%s5162_s8 + $0xbe4] ss:$16 sps:$4 sm:$0xff]   ;;  %v4502_v60 = vld [vmem:[%s5162_s8 + $0x9e0] ss:$16 sps:$4 sm:$0xff]  }
  0xbb   : > { %2958 = vmatprep.subr.bf16.mxu1 %v4421_v61  ;;  %v4505_v61 = vld [vmem:[%s5162_s8 + $0xbe0] ss:$16 sps:$4 sm:$0xff]  }
  0xbd   : > { %2908 = vmatpush2.bf16.msra.mxu0 %v4416_v62  ;;  %v4510_v62 = vld [vmem:[%s5162_s8 + $0x9c4] ss:$16 sps:$4 sm:$0xff]  }
  0xbe   : > { %2959 = vmatpush2.bf16.msra.mxu1 %v4419_v63  ;;  %2909 = vmatprep.subr.bf16.mxu0 %v4427_v0  ;;  %v4513_v63 = vld [vmem:[%s5162_s8 + $0xbc4] ss:$16 sps:$4 sm:$0xff]   ;;  %v4508_v0 = vld [vmem:[%s5162_s8 + $0x9c0] ss:$16 sps:$4 sm:$0xff]  }
  0xbf   : > { %2960 = vmatprep.subr.bf16.mxu1 %v4430_v1  ;;  %v4511_v1 = vld [vmem:[%s5162_s8 + $0xbc0] ss:$16 sps:$4 sm:$0xff]  }
  0xc1   : > { %2910 = vmatpush2.bf16.msra.mxu0 %v4425_v2  ;;  %v4516_v2 = vld [vmem:[%s5162_s8 + $0x9a4] ss:$16 sps:$4 sm:$0xff]  }
  0xc2   : > { %2961 = vmatpush2.bf16.msra.mxu1 %v4428_v3  ;;  %2911 = vmatprep.subr.bf16.mxu0 %v4434_v4  ;;  %v4519_v3 = vld [vmem:[%s5162_s8 + $0xba4] ss:$16 sps:$4 sm:$0xff]   ;;  %v4514_v4 = vld [vmem:[%s5162_s8 + $0x9a0] ss:$16 sps:$4 sm:$0xff]  }
  0xc3   : > { %2962 = vmatprep.subr.bf16.mxu1 %v4437_v5  ;;  %v4517_v5 = vld [vmem:[%s5162_s8 + $0xba0] ss:$16 sps:$4 sm:$0xff]  }
  0xc5   : > { %2912 = vmatpush2.bf16.msra.mxu0 %v4432_v6  ;;  %v4522_v6 = vld [vmem:[%s5162_s8 + $0x984] ss:$16 sps:$4 sm:$0xff]  }
  0xc6   : > { %2963 = vmatpush2.bf16.msra.mxu1 %v4435_v7  ;;  %2913 = vmatprep.subr.bf16.mxu0 %v4440_v8  ;;  %v4525_v7 = vld [vmem:[%s5162_s8 + $0xb84] ss:$16 sps:$4 sm:$0xff]   ;;  %v4520_v8 = vld [vmem:[%s5162_s8 + $0x980] ss:$16 sps:$4 sm:$0xff]  }
  0xc7   : > { %2964 = vmatprep.subr.bf16.mxu1 %v4443_v9  ;;  %v4523_v9 = vld [vmem:[%s5162_s8 + $0xb80] ss:$16 sps:$4 sm:$0xff]  }
  0xc9   : > { %2914 = vmatpush2.bf16.msra.mxu0 %v4438_v10  ;;  %v4528_v10 = vld [vmem:[%s5162_s8 + $0x964] ss:$16 sps:$4 sm:$0xff]  }
  0xca   : > { %2965 = vmatpush2.bf16.msra.mxu1 %v4441_v11  ;;  %2985 = vmatprep.subr.bf16.mxu0 %v4452_v12  ;;  %v4531_v11 = vld [vmem:[%s5162_s8 + $0xb64] ss:$16 sps:$4 sm:$0xff]   ;;  %v4526_v12 = vld [vmem:[%s5162_s8 + $0x960] ss:$16 sps:$4 sm:$0xff]  }
  0xcb   : > { %3036 = vmatprep.subr.bf16.mxu1 %v4455_v15  ;;  %v4537_v15 = vld [vmem:[%s5162_s8 + $0xb44] ss:$16 sps:$4 sm:$0xff]  }
  0xcc   : > { %2916 = vmatmul.mubr.bf16.vlgmr.msra.gmra.mxu0 %v4444_v13  ;;  %v4529_v13 = vld [vmem:[%s5162_s8 + $0xb60] ss:$16 sps:$4 sm:$0xff]  }
  0xcd   : > { %2967 = vmatmul.mubr.bf16.vlgmr.msra.gmra.mxu1 %v4447_v14  ;;  %2986 = vmatpush1.bf16.msra.mxu0 %v4450_v16  ;;  %v4534_v14 = vld [vmem:[%s5162_s8 + $0x944] ss:$16 sps:$4 sm:$0xff]   ;;  %v4532_v16 = vld [vmem:[%s5162_s8 + $0x940] ss:$16 sps:$4 sm:$0xff]  }
  0xce   : > { %3037 = vmatpush1.bf16.msra.mxu1 %v4453_v17  ;;  %2987 = vmatprep.subr.bf16.mxu0 %v4458_v20  ;;  %v4535_v17 = vld [vmem:[%s5162_s8 + $0xb40] ss:$16 sps:$4 sm:$0xff]  }
  0xcf   : > { %3038 = vmatprep.subr.bf16.mxu1 %v4461_v21  ;;  %2925 = vmatprep.mubr.bf16.mxu0 %v5360_v22  ;;  %v4538_v20 = vld [vmem:[%s5162_s8 + $0x920] ss:$16 sps:$4 sm:$0xff]  }
  0xd0   : > { %2976 = vmatprep.mubr.bf16.mxu1 %v5362_v23  ;;  %v4541_v21 = vld [vmem:[%s5162_s8 + $0xb20] ss:$16 sps:$4 sm:$0xff]  }
  0xd1   : > { %2988 = vmatpush1.bf16.msra.mxu0 %v4456_v24  ;;  %v4546_v24 = vld [vmem:[%s5162_s8 + $0x904] ss:$16 sps:$4 sm:$0xff]  }
  0xd2   : > { %3039 = vmatpush1.bf16.msra.mxu1 %v4459_v25  ;;  %2989 = vmatprep.subr.bf16.mxu0 %v4466_v26  ;;  %v4549_v25 = vld [vmem:[%s5162_s8 + $0xb04] ss:$16 sps:$4 sm:$0xff]   ;;  %v4544_v26 = vld [vmem:[%s5162_s8 + $0x900] ss:$16 sps:$4 sm:$0xff]  }
  0xd3   : > { %3040 = vmatprep.subr.bf16.mxu1 %v4469_v27  ;;  %v4547_v27 = vld [vmem:[%s5162_s8 + $0xb00] ss:$16 sps:$4 sm:$0xff]  }
  0xd4   : > { %2926 = vmatmul.mubr.bf16.gmra.mxu0 %v5370_v32 }
  0xd5   : > { %2977 = vmatmul.mubr.bf16.gmra.mxu1 %v5374_v35  ;;  %2990 = vmatpush1.bf16.msra.mxu0 %v4464_v33  ;;  %v4550_v33 = vld [vmem:[%s5814_s0 + $0x20] ss:$48 sps:$4 sm:$0xff]  }
  0xd6   : > { %3041 = vmatpush1.bf16.msra.mxu1 %v4467_v34  ;;  %2991 = vmatprep.subr.bf16.mxu0 %v4474_v36  ;;  %v4553_v34 = vld [vmem:[%s5814_s0 + $0x28] ss:$48 sps:$4 sm:$0xff]   ;;  %v4558_v36 = vld [vmem:[%s5162_s8 + $0xec] ss:$16 sps:$4 sm:$0xff]  }
  0xd7   : > { %3042 = vmatprep.subr.bf16.mxu1 %v4477_v37  ;;  %3017 = vmatprep.mubr.bf16.mxu0 %v4552_v38  ;;  %v4561_v37 = vld [vmem:[%s5162_s8 + $0x2ec] ss:$16 sps:$4 sm:$0xff]   ;;  %v373_v38 = vld [vmem:[%s5814_s0 + $0x80] sm:$0x77] }
  0xd8   : > { %3068 = vmatprep.mubr.bf16.mxu1 %v4555_v39  ;;  %v374_v39 = vld [vmem:[%s5814_s0 + $0x88] sm:$0x77] }
  0xd9   : > { %2992 = vmatpush1.bf16.msra.mxu0 %v4472_v40  ;;  %v4556_v40 = vld [vmem:[%s5162_s8 + $0xe8] ss:$16 sps:$4 sm:$0xff]  }
  0xda   : > { %3043 = vmatpush1.bf16.msra.mxu1 %v4475_v41  ;;  %2993 = vmatprep.subr.bf16.mxu0 %v4480_v42  ;;  %v4559_v41 = vld [vmem:[%s5162_s8 + $0x2e8] ss:$16 sps:$4 sm:$0xff]   ;;  %v4564_v42 = vld [vmem:[%s5162_s8 + $0xcc] ss:$16 sps:$4 sm:$0xff]  }
  0xdb   : > { %3044 = vmatprep.subr.bf16.mxu1 %v4483_v43  ;;  %v4567_v43 = vld [vmem:[%s5162_s8 + $0x2cc] ss:$16 sps:$4 sm:$0xff]  }
  0xdd   : > { %2994 = vmatpush1.bf16.msra.mxu0 %v4478_v44  ;;  %v5454_v44 = vcombine.high %v373_v38, %v373_v38 }
  0xde   : > { %3045 = vmatpush1.bf16.msra.mxu1 %v4481_v45  ;;  %2995 = vmatprep.subr.bf16.mxu0 %v4486_v46  ;;  %v5456_v45 = vcombine.high %v374_v39, %v374_v39  ;;  %v4562_v46 = vld [vmem:[%s5162_s8 + $0xc8] ss:$16 sps:$4 sm:$0xff]  }
  0xdf   : > { %3046 = vmatprep.subr.bf16.mxu1 %v4489_v47  ;;  %v4565_v47 = vld [vmem:[%s5162_s8 + $0x2c8] ss:$16 sps:$4 sm:$0xff]  }
  0xe1   : > { %2996 = vmatpush1.bf16.msra.mxu0 %v4484_v48  ;;  %v4572_v48 = vld [vmem:[%s5162_s8 + $0xac] ss:$16 sps:$4 sm:$0xff]  }
  0xe2   : > { %3047 = vmatpush1.bf16.msra.mxu1 %v4487_v49  ;;  %2997 = vmatprep.subr.bf16.mxu0 %v4492_v50  ;;  %v4575_v49 = vld [vmem:[%s5162_s8 + $0x2ac] ss:$16 sps:$4 sm:$0xff]   ;;  %v5464_v50 = vcombine.low %v373_v38, %v373_v38  ;;  %v4632_v38 = vld [vmem:[%s5162_s8 + $0x168] ss:$16 sps:$4 sm:$0xff]  }
  0xe3   : > { %3048 = vmatprep.subr.bf16.mxu1 %v4495_v51  ;;  %v5466_v51 = vcombine.low %v374_v39, %v374_v39  ;;  %v4635_v39 = vld [vmem:[%s5162_s8 + $0x368] ss:$16 sps:$4 sm:$0xff]  }
  0xe5   : > { %2998 = vmatpush1.bf16.msra.mxu0 %v4490_v52  ;;  %v4570_v52 = vld [vmem:[%s5162_s8 + $0xa8] ss:$16 sps:$4 sm:$0xff]  }
  0xe6   : > { %3049 = vmatpush1.bf16.msra.mxu1 %v4493_v53  ;;  %2999 = vmatprep.subr.bf16.mxu0 %v4498_v54  ;;  %v4573_v53 = vld [vmem:[%s5162_s8 + $0x2a8] ss:$16 sps:$4 sm:$0xff]   ;;  %v4580_v54 = vld [vmem:[%s5162_s8 + $0x8c] ss:$16 sps:$4 sm:$0xff]  }
  0xe7   : > { %3050 = vmatprep.subr.bf16.mxu1 %v4501_v55  ;;  %v4583_v55 = vld [vmem:[%s5162_s8 + $0x28c] ss:$16 sps:$4 sm:$0xff]  }
  0xe9   : > { %3000 = vmatpush1.bf16.msra.mxu0 %v4496_v56  ;;  %v4578_v56 = vld [vmem:[%s5162_s8 + $0x88] ss:$16 sps:$4 sm:$0xff]  }
  0xea   : > { %3051 = vmatpush1.bf16.msra.mxu1 %v4499_v57  ;;  %3001 = vmatprep.subr.bf16.mxu0 %v4504_v58  ;;  %v4581_v57 = vld [vmem:[%s5162_s8 + $0x288] ss:$16 sps:$4 sm:$0xff]   ;;  %v4586_v58 = vld [vmem:[%s5162_s8 + $0x6c] ss:$16 sps:$4 sm:$0xff]  }
  0xeb   : > { %3052 = vmatprep.subr.bf16.mxu1 %v4507_v59  ;;  %v4589_v59 = vld [vmem:[%s5162_s8 + $0x26c] ss:$16 sps:$4 sm:$0xff]  }
  0xed   : > { %3002 = vmatpush2.bf16.msra.mxu0 %v4502_v60  ;;  %v4848_v60 = vld [vmem:[%s5814_s0 + $0x4] ss:$48 sps:$4 sm:$0xff]  }
  0xee   : > { %3053 = vmatpush2.bf16.msra.mxu1 %v4505_v61  ;;  %3003 = vmatprep.subr.bf16.mxu0 %v4510_v62  ;;  %v4849_v61 = vld [vmem:[%s5814_s0 + $0xc] ss:$48 sps:$4 sm:$0xff]   ;;  %v4584_v62 = vld [vmem:[%s5162_s8 + $0x68] ss:$16 sps:$4 sm:$0xff]  }
  0xef   : > { %3054 = vmatprep.subr.bf16.mxu1 %v4513_v63  ;;  %v4587_v63 = vld [vmem:[%s5162_s8 + $0x268] ss:$16 sps:$4 sm:$0xff]  }
  0xf1   : > { %3004 = vmatpush2.bf16.msra.mxu0 %v4508_v0  ;;  %v4592_v0 = vld [vmem:[%s5162_s8 + $0x4c] ss:$16 sps:$4 sm:$0xff]  }
  0xf2   : > { %3055 = vmatpush2.bf16.msra.mxu1 %v4511_v1  ;;  %3005 = vmatprep.subr.bf16.mxu0 %v4516_v2  ;;  %v4595_v1 = vld [vmem:[%s5162_s8 + $0x24c] ss:$16 sps:$4 sm:$0xff]   ;;  %v4590_v2 = vld [vmem:[%s5162_s8 + $0x48] ss:$16 sps:$4 sm:$0xff]  }
  0xf3   : > { %3056 = vmatprep.subr.bf16.mxu1 %v4519_v3  ;;  %v4593_v3 = vld [vmem:[%s5162_s8 + $0x248] ss:$16 sps:$4 sm:$0xff]  }
  0xf5   : > { %3006 = vmatpush2.bf16.msra.mxu0 %v4514_v4  ;;  %v4598_v4 = vld [vmem:[%s5162_s8 + $0x2c] ss:$16 sps:$4 sm:$0xff]  }
  0xf6   : > { %3057 = vmatpush2.bf16.msra.mxu1 %v4517_v5  ;;  %3007 = vmatprep.subr.bf16.mxu0 %v4522_v6  ;;  %v4601_v5 = vld [vmem:[%s5162_s8 + $0x22c] ss:$16 sps:$4 sm:$0xff]   ;;  %v4596_v6 = vld [vmem:[%s5162_s8 + $0x28] ss:$16 sps:$4 sm:$0xff]  }
  0xf7   : > { %3058 = vmatprep.subr.bf16.mxu1 %v4525_v7  ;;  %v4599_v7 = vld [vmem:[%s5162_s8 + $0x228] ss:$16 sps:$4 sm:$0xff]  }
  0xf9   : > { %3008 = vmatpush2.bf16.msra.mxu0 %v4520_v8  ;;  %v4604_v8 = vld [vmem:[%s5162_s8 + $0xc] ss:$16 sps:$4 sm:$0xff]  }
  0xfa   : > { %3059 = vmatpush2.bf16.msra.mxu1 %v4523_v9  ;;  %3009 = vmatprep.subr.bf16.mxu0 %v4528_v10  ;;  %v4607_v9 = vld [vmem:[%s5162_s8 + $0x20c] ss:$16 sps:$4 sm:$0xff]   ;;  %v4602_v10 = vld [vmem:[%s5162_s8 + $0x8] ss:$16 sps:$4 sm:$0xff]  }
  0xfb   : > { %3060 = vmatprep.subr.bf16.mxu1 %v4531_v11  ;;  %v4605_v11 = vld [vmem:[%s5162_s8 + $0x208] ss:$16 sps:$4 sm:$0xff]  }
  0xfd   : > { %3010 = vmatpush2.bf16.msra.mxu0 %v4526_v12  ;;  %v4610_v12 = vld [vmem:[%s5162_s8 + $0x1ec] ss:$16 sps:$4 sm:$0xff]  }
  0xfe   : > { %3061 = vmatpush2.bf16.msra.mxu1 %v4529_v13  ;;  %3011 = vmatprep.subr.bf16.mxu0 %v4534_v14  ;;  %v4613_v13 = vld [vmem:[%s5162_s8 + $0x3ec] ss:$16 sps:$4 sm:$0xff]   ;;  %v4608_v14 = vld [vmem:[%s5162_s8 + $0x1e8] ss:$16 sps:$4 sm:$0xff]  }
  0xff   : > { %3062 = vmatprep.subr.bf16.mxu1 %v4537_v15  ;;  %v4611_v15 = vld [vmem:[%s5162_s8 + $0x3e8] ss:$16 sps:$4 sm:$0xff]  }
 0x101   : > { %3012 = vmatpush2.bf16.msra.mxu0 %v4532_v16  ;;  %v4616_v16 = vld [vmem:[%s5162_s8 + $0x1cc] ss:$16 sps:$4 sm:$0xff]  }
 0x102   : > { %3063 = vmatpush2.bf16.msra.mxu1 %v4535_v17  ;;  %3013 = vmatprep.subr.bf16.mxu0 %v4540_v18  ;;  %v4619_v17 = vld [vmem:[%s5162_s8 + $0x3cc] ss:$16 sps:$4 sm:$0xff]   ;;  %v4614_v18 = vld [vmem:[%s5162_s8 + $0x1c8] ss:$16 sps:$4 sm:$0xff]  }
 0x103   : > { %3064 = vmatprep.subr.bf16.mxu1 %v4543_v19  ;;  %v4617_v19 = vld [vmem:[%s5162_s8 + $0x3c8] ss:$16 sps:$4 sm:$0xff]  }
 0x105   : > { %3014 = vmatpush2.bf16.msra.mxu0 %v4538_v20  ;;  %v4622_v20 = vld [vmem:[%s5162_s8 + $0x1ac] ss:$16 sps:$4 sm:$0xff]  }
 0x106   : > { %3065 = vmatpush2.bf16.msra.mxu1 %v4541_v21  ;;  %3015 = vmatprep.subr.bf16.mxu0 %v4546_v24  ;;  %v4625_v21 = vld [vmem:[%s5162_s8 + $0x3ac] ss:$16 sps:$4 sm:$0xff]   ;;  %v4620_v24 = vld [vmem:[%s5162_s8 + $0x1a8] ss:$16 sps:$4 sm:$0xff]  }
 0x107   : > { %3066 = vmatprep.subr.bf16.mxu1 %v4549_v25  ;;  %v4623_v25 = vld [vmem:[%s5162_s8 + $0x3a8] ss:$16 sps:$4 sm:$0xff]  }
 0x109   : > { %3016 = vmatpush2.bf16.msra.mxu0 %v4544_v26  ;;  %v4628_v26 = vld [vmem:[%s5162_s8 + $0x18c] ss:$16 sps:$4 sm:$0xff]  }
 0x10a   : > { %3067 = vmatpush2.bf16.msra.mxu1 %v4547_v27  ;;  %3087 = vmatprep.subr.bf16.mxu0 %v4558_v36  ;;  %v4631_v27 = vld [vmem:[%s5162_s8 + $0x38c] ss:$16 sps:$4 sm:$0xff]  }
 0x10b   : > { %3138 = vmatprep.subr.bf16.mxu1 %v4561_v37  ;;  %v4634_v36 = vld [vmem:[%s5162_s8 + $0x16c] ss:$16 sps:$4 sm:$0xff]  }
 0x10c   : > { %3018 = vmatmul.mubr.bf16.vlgmr.msra.gmra.mxu0 %v4550_v33  ;;  %v4626_v33 = vld [vmem:[%s5162_s8 + $0x188] ss:$16 sps:$4 sm:$0xff]   ;;  %v4637_v37 = vld [vmem:[%s5162_s8 + $0x36c] ss:$16 sps:$4 sm:$0xff]  }
 0x10d   : > { %3069 = vmatmul.mubr.bf16.vlgmr.msra.gmra.mxu1 %v4553_v34  ;;  %3088 = vmatpush1.bf16.msra.mxu0 %v4556_v40  ;;  %v4629_v34 = vld [vmem:[%s5162_s8 + $0x388] ss:$16 sps:$4 sm:$0xff]   ;;  %v4640_v40 = vld [vmem:[%s5162_s8 + $0x14c] ss:$16 sps:$4 sm:$0xff]  }
 0x10e   : > { %3139 = vmatpush1.bf16.msra.mxu1 %v4559_v41  ;;  %3089 = vmatprep.subr.bf16.mxu0 %v4564_v42  ;;  %v4643_v41 = vld [vmem:[%s5162_s8 + $0x34c] ss:$16 sps:$4 sm:$0xff]   ;;  %v4638_v42 = vld [vmem:[%s5162_s8 + $0x148] ss:$16 sps:$4 sm:$0xff]  }
 0x10f   : > { %3140 = vmatprep.subr.bf16.mxu1 %v4567_v43  ;;  %3027 = vmatprep.mubr.bf16.mxu0 %v5454_v44  ;;  %v4641_v43 = vld [vmem:[%s5162_s8 + $0x348] ss:$16 sps:$4 sm:$0xff]  }
 0x110   : > { %3078 = vmatprep.mubr.bf16.mxu1 %v5456_v45 }
 0x111   : > { %3090 = vmatpush1.bf16.msra.mxu0 %v4562_v46  ;;  %v4646_v46 = vld [vmem:[%s5162_s8 + $0x12c] ss:$16 sps:$4 sm:$0xff]  }
 0x112   : > { %3141 = vmatpush1.bf16.msra.mxu1 %v4565_v47  ;;  %3091 = vmatprep.subr.bf16.mxu0 %v4572_v48  ;;  %v4649_v47 = vld [vmem:[%s5162_s8 + $0x32c] ss:$16 sps:$4 sm:$0xff]   ;;  %v4644_v48 = vld [vmem:[%s5162_s8 + $0x128] ss:$16 sps:$4 sm:$0xff]  }
 0x113   : > { %3142 = vmatprep.subr.bf16.mxu1 %v4575_v49  ;;  %v4647_v49 = vld [vmem:[%s5162_s8 + $0x328] ss:$16 sps:$4 sm:$0xff]  }
 0x114   : > { %3028 = vmatmul.mubr.bf16.gmra.mxu0 %v5464_v50 }
 0x115   : > { %3079 = vmatmul.mubr.bf16.gmra.mxu1 %v5466_v51  ;;  %3092 = vmatpush1.bf16.msra.mxu0 %v4570_v52  ;;  %v4652_v52 = vld [vmem:[%s5162_s8 + $0x10c] ss:$16 sps:$4 sm:$0xff]  }
 0x116   : > { %3143 = vmatpush1.bf16.msra.mxu1 %v4573_v53  ;;  %3093 = vmatprep.subr.bf16.mxu0 %v4580_v54  ;;  %v4655_v53 = vld [vmem:[%s5162_s8 + $0x30c] ss:$16 sps:$4 sm:$0xff]   ;;  %v4650_v54 = vld [vmem:[%s5162_s8 + $0x108] ss:$16 sps:$4 sm:$0xff]  }
 0x117   : > { %3144 = vmatprep.subr.bf16.mxu1 %v4583_v55  ;;  %3119 = vmatprep.mubr.bf16.mxu0 %v4848_v60  ;;  %v4653_v55 = vld [vmem:[%s5162_s8 + $0x308] ss:$16 sps:$4 sm:$0xff]   ;;  %v4664_v60 = vld [vmem:[%s5162_s8 + $0x4cc] ss:$16 sps:$4 sm:$0xff]  }
 0x118   : > { %3170 = vmatprep.mubr.bf16.mxu1 %v4849_v61  ;;  %v4667_v61 = vld [vmem:[%s5162_s8 + $0x6cc] ss:$16 sps:$4 sm:$0xff]  }
 0x119   : > { %3094 = vmatpush1.bf16.msra.mxu0 %v4578_v56  ;;  %v4658_v56 = vld [vmem:[%s5162_s8 + $0x4ec] ss:$16 sps:$4 sm:$0xff]  }
 0x11a   : > { %3145 = vmatpush1.bf16.msra.mxu1 %v4581_v57  ;;  %3095 = vmatprep.subr.bf16.mxu0 %v4586_v58  ;;  %v4661_v57 = vld [vmem:[%s5162_s8 + $0x6ec] ss:$16 sps:$4 sm:$0xff]   ;;  %v4656_v58 = vld [vmem:[%s5162_s8 + $0x4e8] ss:$16 sps:$4 sm:$0xff]  }
 0x11b   : > { %3146 = vmatprep.subr.bf16.mxu1 %v4589_v59  ;;  %v4659_v59 = vld [vmem:[%s5162_s8 + $0x6e8] ss:$16 sps:$4 sm:$0xff]  }
 0x11d   : > { %3096 = vmatpush1.bf16.msra.mxu0 %v4584_v62 }
 0x11e   : > { %3147 = vmatpush1.bf16.msra.mxu1 %v4587_v63  ;;  %3097 = vmatprep.subr.bf16.mxu0 %v4592_v0  ;;  %v4850_v0 = vld [vmem:[%s5814_s0] ss:$48 sps:$4 sm:$0xff]  }
 0x11f   : > { %3148 = vmatprep.subr.bf16.mxu1 %v4595_v1  ;;  %v4851_v1 = vld [vmem:[%s5814_s0 + $0x8] ss:$48 sps:$4 sm:$0xff]  }
 0x121   : > { %3098 = vmatpush1.bf16.msra.mxu0 %v4590_v2 }
 0x122   : > { %3149 = vmatpush1.bf16.msra.mxu1 %v4593_v3  ;;  %3099 = vmatprep.subr.bf16.mxu0 %v4598_v4  ;;  %v4662_v3 = vld [vmem:[%s5162_s8 + $0x4c8] ss:$16 sps:$4 sm:$0xff]  }
 0x123   : > { %3150 = vmatprep.subr.bf16.mxu1 %v4601_v5  ;;  %v4665_v4 = vld [vmem:[%s5162_s8 + $0x6c8] ss:$16 sps:$4 sm:$0xff]  }
 0x125   : > { %3100 = vmatpush1.bf16.msra.mxu0 %v4596_v6 }
 0x126   : > { %3151 = vmatpush1.bf16.msra.mxu1 %v4599_v7  ;;  %3101 = vmatprep.subr.bf16.mxu0 %v4604_v8  ;;  %v4670_v7 = vld [vmem:[%s5162_s8 + $0x4ac] ss:$16 sps:$4 sm:$0xff]  }
 0x127   : > { %3152 = vmatprep.subr.bf16.mxu1 %v4607_v9  ;;  %v4673_v8 = vld [vmem:[%s5162_s8 + $0x6ac] ss:$16 sps:$4 sm:$0xff]  }
 0x129   : > { %3102 = vmatpush1.bf16.msra.mxu0 %v4602_v10  ;;  %v5006_v10 = vmov 0.0  }
 0x12a   : > { %3153 = vmatpush1.bf16.msra.mxu1 %v4605_v11  ;;  %3103 = vmatprep.subr.bf16.mxu0 %v4610_v12  ;;  %341 = vst [vmem:[#allocation2 + $0x28] sm:$0x3f] %v5006_v10  ;;  %342 = vst [vmem:[#allocation2 + $0x48] sm:$0x3f] %v5006_v10 }
 0x12b   : > { %3154 = vmatprep.subr.bf16.mxu1 %v4613_v13  ;;  %343 = vst [vmem:[#allocation2 + $0x10] sm:$0x3f] %v5006_v10  ;;  %344 = vst [vmem:[#allocation2 + $0x40] sm:$0x3f] %v5006_v10  ;;  %v4727_v10 = vld [vmem:[%s5162_s8 + $0x78c] ss:$16 sps:$4 sm:$0xff]  }
 0x12d   : > { %3104 = vmatpush2.bf16.msra.mxu0 %v4608_v14  ;;  %v4668_v14 = vld [vmem:[%s5162_s8 + $0x4a8] ss:$16 sps:$4 sm:$0xff]  }
 0x12e   : > { %3155 = vmatpush2.bf16.msra.mxu1 %v4611_v15  ;;  %3105 = vmatprep.subr.bf16.mxu0 %v4616_v16  ;;  %v4671_v15 = vld [vmem:[%s5162_s8 + $0x6a8] ss:$16 sps:$4 sm:$0xff]   ;;  %v4676_v16 = vld [vmem:[%s5162_s8 + $0x48c] ss:$16 sps:$4 sm:$0xff]  }
 0x12f   : > { %3156 = vmatprep.subr.bf16.mxu1 %v4619_v17  ;;  %v4679_v17 = vld [vmem:[%s5162_s8 + $0x68c] ss:$16 sps:$4 sm:$0xff]  }
 0x131   : > { %3106 = vmatpush2.bf16.msra.mxu0 %v4614_v18 }
 0x132   : > { %3157 = vmatpush2.bf16.msra.mxu1 %v4617_v19  ;;  %3107 = vmatprep.subr.bf16.mxu0 %v4622_v20  ;;  %v4674_v19 = vld [vmem:[%s5162_s8 + $0x488] ss:$16 sps:$4 sm:$0xff]  }
 0x133   : > { %3158 = vmatprep.subr.bf16.mxu1 %v4625_v21  ;;  %v4677_v20 = vld [vmem:[%s5162_s8 + $0x688] ss:$16 sps:$4 sm:$0xff]   ;;  %v4682_v21 = vld [vmem:[%s5162_s8 + $0x46c] ss:$16 sps:$4 sm:$0xff]  }
 0x135   : > { %3108 = vmatpush2.bf16.msra.mxu0 %v4620_v24  ;;  %v4685_v24 = vld [vmem:[%s5162_s8 + $0x66c] ss:$16 sps:$4 sm:$0xff]  }
 0x136   : > { %3159 = vmatpush2.bf16.msra.mxu1 %v4623_v25  ;;  %3109 = vmatprep.subr.bf16.mxu0 %v4628_v26  ;;  %v4680_v25 = vld [vmem:[%s5162_s8 + $0x468] ss:$16 sps:$4 sm:$0xff]  }
 0x137   : > { %3160 = vmatprep.subr.bf16.mxu1 %v4631_v27  ;;  %v4683_v26 = vld [vmem:[%s5162_s8 + $0x668] ss:$16 sps:$4 sm:$0xff]   ;;  %v4688_v27 = vld [vmem:[%s5162_s8 + $0x44c] ss:$16 sps:$4 sm:$0xff]  }
 0x139   : > { %3110 = vmatpush2.bf16.msra.mxu0 %v4626_v33  ;;  %v4691_v33 = vld [vmem:[%s5162_s8 + $0x64c] ss:$16 sps:$4 sm:$0xff]  }
 0x13a   : > { %3161 = vmatpush2.bf16.msra.mxu1 %v4629_v34  ;;  %3111 = vmatprep.subr.bf16.mxu0 %v4634_v36  ;;  %v4686_v34 = vld [vmem:[%s5162_s8 + $0x448] ss:$16 sps:$4 sm:$0xff]  }
 0x13b   : > { %3162 = vmatprep.subr.bf16.mxu1 %v4637_v37  ;;  %v4689_v36 = vld [vmem:[%s5162_s8 + $0x648] ss:$16 sps:$4 sm:$0xff]   ;;  %v4694_v37 = vld [vmem:[%s5162_s8 + $0x42c] ss:$16 sps:$4 sm:$0xff]  }
 0x13d   : > { %3112 = vmatpush2.bf16.msra.mxu0 %v4632_v38  ;;  %v4697_v38 = vld [vmem:[%s5162_s8 + $0x62c] ss:$16 sps:$4 sm:$0xff]  }
 0x13e   : > { %3163 = vmatpush2.bf16.msra.mxu1 %v4635_v39  ;;  %3113 = vmatprep.subr.bf16.mxu0 %v4640_v40 }
 0x13f   : > { %3164 = vmatprep.subr.bf16.mxu1 %v4643_v41 }
 0x141   : > { %3114 = vmatpush2.bf16.msra.mxu0 %v4638_v42  ;;  %v4692_v42 = vld [vmem:[%s5162_s8 + $0x428] ss:$16 sps:$4 sm:$0xff]  }
 0x142   : > { %3165 = vmatpush2.bf16.msra.mxu1 %v4641_v43  ;;  %3115 = vmatprep.subr.bf16.mxu0 %v4646_v46  ;;  %v4695_v43 = vld [vmem:[%s5162_s8 + $0x628] ss:$16 sps:$4 sm:$0xff]  }
 0x143   : > { %3166 = vmatprep.subr.bf16.mxu1 %v4649_v47 }
 0x145   : > { %3116 = vmatpush2.bf16.msra.mxu0 %v4644_v48  ;;  %v4700_v48 = vld [vmem:[%s5162_s8 + $0x40c] ss:$16 sps:$4 sm:$0xff]  }
 0x146   : > { %3167 = vmatpush2.bf16.msra.mxu1 %v4647_v49  ;;  %3117 = vmatprep.subr.bf16.mxu0 %v4652_v52  ;;  %v4703_v49 = vld [vmem:[%s5162_s8 + $0x60c] ss:$16 sps:$4 sm:$0xff]  }
 0x147   : > { %3168 = vmatprep.subr.bf16.mxu1 %v4655_v53 }
 0x149   : > { %3118 = vmatpush2.bf16.msra.mxu0 %v4650_v54 }
 0x14a   : > { %3169 = vmatpush2.bf16.msra.mxu1 %v4653_v55  ;;  %3189 = vmatprep.subr.bf16.mxu0 %v4658_v56  ;;  %v4698_v55 = vld [vmem:[%s5162_s8 + $0x408] ss:$16 sps:$4 sm:$0xff]  }
 0x14b   : > { %3240 = vmatprep.subr.bf16.mxu1 %v4661_v57  ;;  %v4701_v56 = vld [vmem:[%s5162_s8 + $0x608] ss:$16 sps:$4 sm:$0xff]  }
 0x14c   : > { %v2815_v62 = vpop.f32.mrf.mxu0  ;;  %3120 = vmatmul.mubr.bf16.vlgmr.msra.gmra.mxu0 %v4850_v0  ;;  %v4715_v0 = vld [vmem:[%s5162_s8 + $0x7cc] ss:$16 sps:$4 sm:$0xff]  }
 0x14d   : > { %v2866_v63 = vpop.f32.mrf.mxu1  ;;  %3171 = vmatmul.mubr.bf16.vlgmr.msra.gmra.mxu1 %v4851_v1  ;;  %3190 = vmatpush1.bf16.msra.mxu0 %v4656_v58  ;;  %v4710_v1 = vld [vmem:[%s5162_s8 + $0x5c8] ss:$16 sps:$4 sm:$0xff]  }
 0x14e   : > { %v5542_v2 = vadd.f32 %v2866_v63, %v2815_v62  ;;  %3241 = vmatpush1.bf16.msra.mxu1 %v4659_v59  ;;  %v2817_v5 = vpop.f32.mrf.mxu0  ;;  %3191 = vmatprep.subr.bf16.mxu0 %v4664_v60  ;;  %v4706_v59 = vld [vmem:[%s5162_s8 + $0x5ec] ss:$16 sps:$4 sm:$0xff]   ;;  %v4707_v62 = vld [vmem:[%s5162_s8 + $0x7e8] ss:$16 sps:$4 sm:$0xff]  }
 0x14f   : > { %v2868_v6 = vpop.f32.mrf.mxu1  ;;  %3242 = vmatprep.subr.bf16.mxu1 %v4667_v61  ;;  %3129 = vmatprep.mubr.bf16.mxu0 %v5282_v28  ;;  %v4709_v60 = vld [vmem:[%s5162_s8 + $0x7ec] ss:$16 sps:$4 sm:$0xff]   ;;  %v4704_v61 = vld [vmem:[%s5162_s8 + $0x5e8] ss:$16 sps:$4 sm:$0xff]  }
 0x150   : > { %v5548_v9 = vadd.f32 %v2868_v6, %v2817_v5  ;;  %3180 = vmatprep.mubr.bf16.mxu1 %v5284_v29  ;;  %v2819_v11 = vpop.f32.mrf.mxu0  ;;  %v4712_v63 = vld [vmem:[%s5162_s8 + $0x5cc] ss:$16 sps:$4 sm:$0xff]   ;;  %v4716_v6 = vld [vmem:[%s5162_s8 + $0x5a8] ss:$16 sps:$4 sm:$0xff]  }
 0x151   : > { %v2870_v12 = vpop.f32.mrf.mxu1  ;;  %3192 = vmatpush1.bf16.msra.mxu0 %v4662_v3  ;;  %v4713_v3 = vld [vmem:[%s5162_s8 + $0x7c8] ss:$16 sps:$4 sm:$0xff]   ;;  %v4721_v5 = vld [vmem:[%s5162_s8 + $0x7ac] ss:$16 sps:$4 sm:$0xff]  }
 0x152   : > { %v5552_v13 = vadd.f32 %v2870_v12, %v2819_v11  ;;  %3243 = vmatpush1.bf16.msra.mxu1 %v4665_v4  ;;  %v2821_v28 = vpop.f32.mrf.mxu0  ;;  %3193 = vmatprep.subr.bf16.mxu0 %v4670_v7  ;;  %v4718_v4 = vld [vmem:[%s5162_s8 + $0x5ac] ss:$16 sps:$4 sm:$0xff]   ;;  %v4719_v7 = vld [vmem:[%s5162_s8 + $0x7a8] ss:$16 sps:$4 sm:$0xff]  }
 0x153   : > { %v2872_v29 = vpop.f32.mrf.mxu1  ;;  %3244 = vmatprep.subr.bf16.mxu1 %v4673_v8  ;;  %v4724_v8 = vld [vmem:[%s5162_s8 + $0x58c] ss:$16 sps:$4 sm:$0xff]   ;;  %v4722_v11 = vld [vmem:[%s5162_s8 + $0x588] ss:$16 sps:$4 sm:$0xff]  }
 0x154   : > { %v5558_v18 = vadd.f32 %v2872_v29, %v2821_v28  ;;  %3130 = vmatmul.mubr.bf16.gmra.mxu0 %v5286_v30  ;;  %v4852_v30 = vld [vmem:[%s5814_s0 + $0x14] ss:$48 sps:$4 sm:$0xff]   ;;  %v2825_v39 = vpop.f32.mrf.mxu0  ;;  %v4725_v12 = vld [vmem:[%s5162_s8 + $0x788] ss:$16 sps:$4 sm:$0xff]  }
 0x155   : > { %3181 = vmatmul.mubr.bf16.gmra.mxu1 %v5288_v31  ;;  %3194 = vmatpush1.bf16.msra.mxu0 %v4668_v14  ;;  %v4853_v31 = vld [vmem:[%s5814_s0 + $0x1c] ss:$48 sps:$4 sm:$0xff]   ;;  %v2876_v40 = vpop.f32.mrf.mxu1  ;;  %v4728_v28 = vld [vmem:[%s5162_s8 + $0x568] ss:$16 sps:$4 sm:$0xff]  }
 0x156   : > { %3245 = vmatpush1.bf16.msra.mxu1 %v4671_v15  ;;  %3195 = vmatprep.subr.bf16.mxu0 %v4676_v16  ;;  %v5580_v41 = vadd.f32 %v2876_v40, %v2825_v39  ;;  %v2827_v46 = vpop.f32.mrf.mxu0  ;;  %v4730_v14 = vld [vmem:[%s5162_s8 + $0x56c] ss:$16 sps:$4 sm:$0xff]   ;;  %v4731_v29 = vld [vmem:[%s5162_s8 + $0x768] ss:$16 sps:$4 sm:$0xff]  }
 0x157   : > { %3246 = vmatprep.subr.bf16.mxu1 %v4679_v17  ;;  %3221 = vmatprep.mubr.bf16.mxu0 %v4852_v30  ;;  %v2878_v47 = vpop.f32.mrf.mxu1  ;;  %v4733_v15 = vld [vmem:[%s5162_s8 + $0x76c] ss:$16 sps:$4 sm:$0xff]   ;;  %v4740_v30 = vld [vmem:[%s5162_s8 + $0x528] ss:$16 sps:$4 sm:$0xff]  }
 0x158   : > { %3272 = vmatprep.mubr.bf16.mxu1 %v4853_v31  ;;  %v5586_v52 = vadd.f32 %v2878_v47, %v2827_v46  ;;  %v2829_v53 = vpop.f32.mrf.mxu0  ;;  %v4736_v16 = vld [vmem:[%s5162_s8 + $0x54c] ss:$16 sps:$4 sm:$0xff]   ;;  %v4743_v31 = vld [vmem:[%s5162_s8 + $0x728] ss:$16 sps:$4 sm:$0xff]   ;;  %v4854_v46 = vld [vmem:[%s5814_s0 + $0x10] ss:$48 sps:$4 sm:$0xff]  }
 0x159   : > { %3196 = vmatpush1.bf16.msra.mxu0 %v4674_v19  ;;  %v2880_v54 = vpop.f32.mrf.mxu1  ;;  %v4739_v17 = vld [vmem:[%s5162_s8 + $0x74c] ss:$16 sps:$4 sm:$0xff]   ;;  %v4734_v19 = vld [vmem:[%s5162_s8 + $0x548] ss:$16 sps:$4 sm:$0xff]  }
 0x15a   : > { %3247 = vmatpush1.bf16.msra.mxu1 %v4677_v20  ;;  %3197 = vmatprep.subr.bf16.mxu0 %v4682_v21  ;;  %v2830_v57 = vpop.f32.mrf.mxu0  ;;  %v4737_v20 = vld [vmem:[%s5162_s8 + $0x748] ss:$16 sps:$4 sm:$0xff]   ;;  %v4742_v21 = vld [vmem:[%s5162_s8 + $0x52c] ss:$16 sps:$4 sm:$0xff]  }
 0x15b   : > { %3248 = vmatprep.subr.bf16.mxu1 %v4685_v24  ;;  %v2881_v58 = vpop.f32.mrf.mxu1  ;;  %v4745_v24 = vld [vmem:[%s5162_s8 + $0x72c] ss:$16 sps:$4 sm:$0xff]   ;;  %v4855_v47 = vld [vmem:[%s5814_s0 + $0x18] ss:$48 sps:$4 sm:$0xff]  }
 0x15c   : > { %v4760_v39 = vld [vmem:[%s5162_s8 + $0x8cc] ss:$16 sps:$4 sm:$0xff]  }
 0x15d   : > { %3198 = vmatpush1.bf16.msra.mxu0 %v4680_v25  ;;  %v4748_v25 = vld [vmem:[%s5162_s8 + $0x50c] ss:$16 sps:$4 sm:$0xff]  }
 0x15e   : > { %3249 = vmatpush1.bf16.msra.mxu1 %v4683_v26  ;;  %3199 = vmatprep.subr.bf16.mxu0 %v4688_v27  ;;  %v4751_v26 = vld [vmem:[%s5162_s8 + $0x70c] ss:$16 sps:$4 sm:$0xff]   ;;  %v4746_v27 = vld [vmem:[%s5162_s8 + $0x508] ss:$16 sps:$4 sm:$0xff]  }
 0x15f   : > { %3250 = vmatprep.subr.bf16.mxu1 %v4691_v33  ;;  %v4749_v33 = vld [vmem:[%s5162_s8 + $0x708] ss:$16 sps:$4 sm:$0xff]   ;;  %v4763_v40 = vld [vmem:[%s5162_s8 + $0xacc] ss:$16 sps:$4 sm:$0xff]  }
 0x161   : > { %3200 = vmatpush1.bf16.msra.mxu0 %v4686_v34  ;;  %v4754_v34 = vld [vmem:[%s5162_s8 + $0x8ec] ss:$16 sps:$4 sm:$0xff]  }
 0x162   : > { %3251 = vmatpush1.bf16.msra.mxu1 %v4689_v36  ;;  %3201 = vmatprep.subr.bf16.mxu0 %v4694_v37  ;;  %v4757_v36 = vld [vmem:[%s5162_s8 + $0xaec] ss:$16 sps:$4 sm:$0xff]   ;;  %v4752_v37 = vld [vmem:[%s5162_s8 + $0x8e8] ss:$16 sps:$4 sm:$0xff]  }
 0x163   : > { %3252 = vmatprep.subr.bf16.mxu1 %v4697_v38  ;;  %v4755_v38 = vld [vmem:[%s5162_s8 + $0xae8] ss:$16 sps:$4 sm:$0xff]  }
 0x165   : > { %3202 = vmatpush1.bf16.msra.mxu0 %v4692_v42 }
 0x166   : > { %3253 = vmatpush1.bf16.msra.mxu1 %v4695_v43  ;;  %3203 = vmatprep.subr.bf16.mxu0 %v4700_v48  ;;  %v4758_v48 = vld [vmem:[%s5162_s8 + $0x8c8] ss:$16 sps:$4 sm:$0xff]  }
 0x167   : > { %3254 = vmatprep.subr.bf16.mxu1 %v4703_v49  ;;  %v4761_v49 = vld [vmem:[%s5162_s8 + $0xac8] ss:$16 sps:$4 sm:$0xff]  }
 0x169   : > { %3204 = vmatpush1.bf16.msra.mxu0 %v4698_v55  ;;  %v4766_v55 = vld [vmem:[%s5162_s8 + $0x8ac] ss:$16 sps:$4 sm:$0xff]  }
 0x16a   : > { %3255 = vmatpush1.bf16.msra.mxu1 %v4701_v56  ;;  %3205 = vmatprep.subr.bf16.mxu0 %v4706_v59  ;;  %v4769_v56 = vld [vmem:[%s5162_s8 + $0xaac] ss:$16 sps:$4 sm:$0xff]   ;;  %v4764_v59 = vld [vmem:[%s5162_s8 + $0x8a8] ss:$16 sps:$4 sm:$0xff]  }
 0x16b   : > { %3256 = vmatprep.subr.bf16.mxu1 %v4709_v60  ;;  %v4767_v60 = vld [vmem:[%s5162_s8 + $0xaa8] ss:$16 sps:$4 sm:$0xff]  }
 0x16d   : > { %3206 = vmatpush2.bf16.msra.mxu0 %v4704_v61 }
 0x16e   : > { %3257 = vmatpush2.bf16.msra.mxu1 %v4707_v62  ;;  %3207 = vmatprep.subr.bf16.mxu0 %v4712_v63 }
 0x16f   : > { %3258 = vmatprep.subr.bf16.mxu1 %v4715_v0 }
 0x171   : > { %3208 = vmatpush2.bf16.msra.mxu0 %v4710_v1  ;;  %v4770_v1 = vld [vmem:[%s5162_s8 + $0x888] ss:$16 sps:$4 sm:$0xff]  }
 0x172   : > { %3259 = vmatpush2.bf16.msra.mxu1 %v4713_v3  ;;  %3209 = vmatprep.subr.bf16.mxu0 %v4718_v4  ;;  %v4773_v3 = vld [vmem:[%s5162_s8 + $0xa88] ss:$16 sps:$4 sm:$0xff]  }
 0x173   : > { %3260 = vmatprep.subr.bf16.mxu1 %v4721_v5 }
 0x175   : > { %3210 = vmatpush2.bf16.msra.mxu0 %v4716_v6  ;;  %v4778_v6 = vld [vmem:[%s5162_s8 + $0x86c] ss:$16 sps:$4 sm:$0xff]  }
 0x176   : > { %3261 = vmatpush2.bf16.msra.mxu1 %v4719_v7  ;;  %3211 = vmatprep.subr.bf16.mxu0 %v4724_v8  ;;  %v4857_v7 = vld [vmem:[%s5814_s0 + $0x2c] ss:$48 sps:$4 sm:$0xff]  }
 0x177   : > { %3262 = vmatprep.subr.bf16.mxu1 %v4727_v10 }
 0x179   : > { %3212 = vmatpush2.bf16.msra.mxu0 %v4722_v11  ;;  %v4776_v11 = vld [vmem:[%s5162_s8 + $0x868] ss:$16 sps:$4 sm:$0xff]  }
 0x17a   : > { %3263 = vmatpush2.bf16.msra.mxu1 %v4725_v12  ;;  %3213 = vmatprep.subr.bf16.mxu0 %v4730_v14  ;;  %v4779_v12 = vld [vmem:[%s5162_s8 + $0xa68] ss:$16 sps:$4 sm:$0xff]   ;;  %v4784_v14 = vld [vmem:[%s5162_s8 + $0x84c] ss:$16 sps:$4 sm:$0xff]  }
 0x17b   : > { %3264 = vmatprep.subr.bf16.mxu1 %v4733_v15  ;;  %v4787_v15 = vld [vmem:[%s5162_s8 + $0xa4c] ss:$16 sps:$4 sm:$0xff]  }
 0x17d   : > { %3214 = vmatpush2.bf16.msra.mxu0 %v4728_v28 }
 0x17e   : > { %3265 = vmatpush2.bf16.msra.mxu1 %v4731_v29  ;;  %3215 = vmatprep.subr.bf16.mxu0 %v4736_v16  ;;  %v4782_v16 = vld [vmem:[%s5162_s8 + $0x848] ss:$16 sps:$4 sm:$0xff]  }
 0x17f   : > { %3266 = vmatprep.subr.bf16.mxu1 %v4739_v17  ;;  %v4785_v17 = vld [vmem:[%s5162_s8 + $0xa48] ss:$16 sps:$4 sm:$0xff]  }
 0x181   : > { %3216 = vmatpush2.bf16.msra.mxu0 %v4734_v19  ;;  %v4790_v19 = vld [vmem:[%s5162_s8 + $0x82c] ss:$16 sps:$4 sm:$0xff]  }
 0x182   : > { %3267 = vmatpush2.bf16.msra.mxu1 %v4737_v20  ;;  %3217 = vmatprep.subr.bf16.mxu0 %v4742_v21  ;;  %v4793_v20 = vld [vmem:[%s5162_s8 + $0xa2c] ss:$16 sps:$4 sm:$0xff]   ;;  %v4788_v21 = vld [vmem:[%s5162_s8 + $0x828] ss:$16 sps:$4 sm:$0xff]  }
 0x183   : > { %3268 = vmatprep.subr.bf16.mxu1 %v4745_v24  ;;  %v4791_v24 = vld [vmem:[%s5162_s8 + $0xa28] ss:$16 sps:$4 sm:$0xff]  }
 0x185   : > { %3218 = vmatpush2.bf16.msra.mxu0 %v4740_v30  ;;  %v4796_v30 = vld [vmem:[%s5162_s8 + $0x80c] ss:$16 sps:$4 sm:$0xff]  }
 0x186   : > { %3269 = vmatpush2.bf16.msra.mxu1 %v4743_v31  ;;  %3219 = vmatprep.subr.bf16.mxu0 %v4748_v25  ;;  %v4799_v31 = vld [vmem:[%s5162_s8 + $0xa0c] ss:$16 sps:$4 sm:$0xff]   ;;  %v4794_v25 = vld [vmem:[%s5162_s8 + $0x808] ss:$16 sps:$4 sm:$0xff]  }
 0x187   : > { %3270 = vmatprep.subr.bf16.mxu1 %v4751_v26  ;;  %v4797_v26 = vld [vmem:[%s5162_s8 + $0xa08] ss:$16 sps:$4 sm:$0xff]  }
 0x189   : > { %3220 = vmatpush2.bf16.msra.mxu0 %v4746_v27  ;;  %v4802_v27 = vld [vmem:[%s5162_s8 + $0x9ec] ss:$16 sps:$4 sm:$0xff]  }
 0x18a   : > { %3271 = vmatpush2.bf16.msra.mxu1 %v4749_v33  ;;  %3291 = vmatprep.subr.bf16.mxu0 %v4754_v34  ;;  %v4805_v33 = vld [vmem:[%s5162_s8 + $0xbec] ss:$16 sps:$4 sm:$0xff]   ;;  %v4800_v34 = vld [vmem:[%s5162_s8 + $0x9e8] ss:$16 sps:$4 sm:$0xff]  }
 0x18b   : > { %3342 = vmatprep.subr.bf16.mxu1 %v4757_v36  ;;  %v4803_v36 = vld [vmem:[%s5162_s8 + $0xbe8] ss:$16 sps:$4 sm:$0xff]  }
 0x18c   : > { %v5628_v42 = vpop.f32.mrf.mxu0  ;;  %3222 = vmatmul.mubr.bf16.vlgmr.msra.gmra.mxu0 %v4854_v46  ;;  %v4814_v46 = vld [vmem:[%s5162_s8 + $0x9ac] ss:$16 sps:$4 sm:$0xff]  }
 0x18d   : > { %v5630_v43 = vpop.f32.mrf.mxu1  ;;  %3273 = vmatmul.mubr.bf16.vlgmr.msra.gmra.mxu1 %v4855_v47  ;;  %3292 = vmatpush1.bf16.msra.mxu0 %v4752_v37  ;;  %v4808_v37 = vld [vmem:[%s5162_s8 + $0x9cc] ss:$16 sps:$4 sm:$0xff]  }
 0x18e   : > { %3343 = vmatpush1.bf16.msra.mxu1 %v4755_v38  ;;  %v5640_v53 = vpop.f32.mrf.mxu0  ;;  %3293 = vmatprep.subr.bf16.mxu0 %v4760_v39  ;;  %v4811_v38 = vld [vmem:[%s5162_s8 + $0xbcc] ss:$16 sps:$4 sm:$0xff]   ;;  %v4806_v39 = vld [vmem:[%s5162_s8 + $0x9c8] ss:$16 sps:$4 sm:$0xff]  }
 0x18f   : > { %v5642_v54 = vpop.f32.mrf.mxu1  ;;  %3344 = vmatprep.subr.bf16.mxu1 %v4763_v40  ;;  %3231 = vmatprep.mubr.bf16.mxu0 %v5360_v22  ;;  %v4772_v22 = vld [vmem:[%s5162_s8 + $0x88c] ss:$16 sps:$4 sm:$0xff]   ;;  %v4809_v40 = vld [vmem:[%s5162_s8 + $0xbc8] ss:$16 sps:$4 sm:$0xff]  }
 0x190   : > { %3282 = vmatprep.mubr.bf16.mxu1 %v5362_v23  ;;  %v5648_v57 = vpop.f32.mrf.mxu0  ;;  %v4775_v23 = vld [vmem:[%s5162_s8 + $0xa8c] ss:$16 sps:$4 sm:$0xff]  }
 0x191   : > { %v5650_v58 = vpop.f32.mrf.mxu1  ;;  %3294 = vmatpush1.bf16.msra.mxu0 %v4758_v48  ;;  %v4817_v47 = vld [vmem:[%s5162_s8 + $0xbac] ss:$16 sps:$4 sm:$0xff]   ;;  %v4812_v48 = vld [vmem:[%s5162_s8 + $0x9a8] ss:$16 sps:$4 sm:$0xff]  }
 0x192   : > { %3345 = vmatpush1.bf16.msra.mxu1 %v4761_v49  ;;  %v5654_v61 = vpop.f32.mrf.mxu0  ;;  %3295 = vmatprep.subr.bf16.mxu0 %v4766_v55  ;;  %v4815_v49 = vld [vmem:[%s5162_s8 + $0xba8] ss:$16 sps:$4 sm:$0xff]   ;;  %v4820_v55 = vld [vmem:[%s5162_s8 + $0x98c] ss:$16 sps:$4 sm:$0xff]  }
 0x193   : > { %v5656_v62 = vpop.f32.mrf.mxu1  ;;  %3346 = vmatprep.subr.bf16.mxu1 %v4769_v56  ;;  %v4823_v56 = vld [vmem:[%s5162_s8 + $0xb8c] ss:$16 sps:$4 sm:$0xff]  }
 0x194   : > { %v5660_v63 = vpop.f32.mrf.mxu0  ;;  %3232 = vmatmul.mubr.bf16.gmra.mxu0 %v5370_v32  ;;  %v4781_v32 = vld [vmem:[%s5162_s8 + $0xa6c] ss:$16 sps:$4 sm:$0xff]  }
 0x195   : > { %v5663_v0 = vpop.f32.mrf.mxu1  ;;  %3283 = vmatmul.mubr.bf16.gmra.mxu1 %v5374_v35  ;;  %3296 = vmatpush1.bf16.msra.mxu0 %v4764_v59  ;;  %v4856_v35 = vld [vmem:[%s5814_s0 + $0x24] ss:$48 sps:$4 sm:$0xff]   ;;  %v4818_v59 = vld [vmem:[%s5162_s8 + $0x988] ss:$16 sps:$4 sm:$0xff]  }
 0x196   : > { %3347 = vmatpush1.bf16.msra.mxu1 %v4767_v60  ;;  %v5668_v4 = vpop.f32.mrf.mxu0  ;;  %3297 = vmatprep.subr.bf16.mxu0 %v4772_v22  ;;  %v4821_v60 = vld [vmem:[%s5162_s8 + $0xb88] ss:$16 sps:$4 sm:$0xff]   ;;  %v4826_v22 = vld [vmem:[%s5162_s8 + $0x96c] ss:$16 sps:$4 sm:$0xff]  }
 0x197   : > { %v5670_v5 = vpop.f32.mrf.mxu1  ;;  %3348 = vmatprep.subr.bf16.mxu1 %v4775_v23  ;;  %3323 = vmatprep.mubr.bf16.mxu0 %v4856_v35  ;;  %v4829_v23 = vld [vmem:[%s5162_s8 + $0xb6c] ss:$16 sps:$4 sm:$0xff]   ;;  %v4830_v35 = vld [vmem:[%s5162_s8 + $0x948] ss:$16 sps:$4 sm:$0xff]  }
 0x198   : > { %3374 = vmatprep.mubr.bf16.mxu1 %v4857_v7  ;;  %v2931_v8 = vpop.f32.mrf.mxu0  ;;  %v4833_v7 = vld [vmem:[%s5162_s8 + $0xb48] ss:$16 sps:$4 sm:$0xff]  }
 0x199   : > { %v2982_v10 = vpop.f32.mrf.mxu1  ;;  %3298 = vmatpush1.bf16.msra.mxu0 %v4770_v1  ;;  %v4824_v1 = vld [vmem:[%s5162_s8 + $0x968] ss:$16 sps:$4 sm:$0xff]   ;;  %v4838_v8 = vld [vmem:[%s5162_s8 + $0x92c] ss:$16 sps:$4 sm:$0xff]  }
 0x19a   : > { %3349 = vmatpush1.bf16.msra.mxu1 %v4773_v3  ;;  %3299 = vmatprep.subr.bf16.mxu0 %v4778_v6  ;;  %v2932_v28 = vpop.f32.mrf.mxu0  ;;  %v4827_v3 = vld [vmem:[%s5162_s8 + $0xb68] ss:$16 sps:$4 sm:$0xff]   ;;  %v4832_v6 = vld [vmem:[%s5162_s8 + $0x94c] ss:$16 sps:$4 sm:$0xff]  }
 0x19b   : > { %3350 = vmatprep.subr.bf16.mxu1 %v4781_v32  ;;  %v2983_v29 = vpop.f32.mrf.mxu1  ;;  %v4835_v32 = vld [vmem:[%s5162_s8 + $0xb4c] ss:$16 sps:$4 sm:$0xff]   ;;  %v3434_v28 = vlaneseq }
 0x19c   : > { %v4841_v10 = vld [vmem:[%s5162_s8 + $0xb2c] ss:$16 sps:$4 sm:$0xff]   ;;  %v4842_v29 = vld [vmem:[%s5162_s8 + $0x908] ss:$16 sps:$4 sm:$0xff]  }
 0x19d   : > { %3300 = vmatpush1.bf16.msra.mxu0 %v4776_v11  ;;  %v4836_v11 = vld [vmem:[%s5162_s8 + $0x928] ss:$16 sps:$4 sm:$0xff]  }
 0x19e   : > { %3351 = vmatpush1.bf16.msra.mxu1 %v4779_v12  ;;  %3301 = vmatprep.subr.bf16.mxu0 %v4784_v14  ;;  %v4839_v12 = vld [vmem:[%s5162_s8 + $0xb28] ss:$16 sps:$4 sm:$0xff]   ;;  %v4844_v14 = vld [vmem:[%s5162_s8 + $0x90c] ss:$16 sps:$4 sm:$0xff]  }
 0x19f   : > { %3352 = vmatprep.subr.bf16.mxu1 %v4787_v15  ;;  %v4847_v15 = vld [vmem:[%s5162_s8 + $0xb0c] ss:$16 sps:$4 sm:$0xff]  }
 0x1a1   : > { %3302 = vmatpush1.bf16.msra.mxu0 %v4782_v16  ;;  %v4845_v16 = vld [vmem:[%s5162_s8 + $0xb08] ss:$16 sps:$4 sm:$0xff]  }
 0x1a2   : > { %3353 = vmatpush1.bf16.msra.mxu1 %v4785_v17  ;;  %3303 = vmatprep.subr.bf16.mxu0 %v4790_v19  ;;  %v2918_v17 = vadd.f32 %v5628_v42, %v5542_v2  ;;  %v5728_v19 = vshrl.u32 %v3434_v28, 7  ;;  %v4858_v2 = vld [vmem:[%s5814_s0 + $0x20] ss:$48 sps:$4 sm:$0xff]  }
 0x1a3   : > { %3354 = vmatprep.subr.bf16.mxu1 %v4793_v20  ;;  %v2920_v20 = vadd.f32 %v5640_v53, %v5548_v9  ;;  %v4859_v9 = vld [vmem:[%s5814_s0 + $0x28] ss:$48 sps:$4 sm:$0xff]  }
 0x1a4   : > { %v3440_v42 = vsub.s32 1, %v5728_v19 }
 0x1a5   : > { %3304 = vmatpush1.bf16.msra.mxu0 %v4788_v21  ;;  %v2969_v21 = vadd.f32 %v5630_v43, %v2918_v17  ;;  %v2924_v43 = vadd.f32 %v5654_v61, %v5558_v18  ;;  %v2928_v18 = vadd.f32 %v5660_v63, %v5580_v41 }
 0x1a6   : > { %3355 = vmatpush1.bf16.msra.mxu1 %v4791_v24  ;;  %3305 = vmatprep.subr.bf16.mxu0 %v4796_v30  ;;  %v2922_v24 = vadd.f32 %v5648_v57, %v5552_v13  ;;  %v3436_v30 = vsub.s32 0, %v5728_v19  ;;  %v2971_v13 = vadd.f32 %v5642_v54, %v2920_v20 }
 0x1a7   : > { %3356 = vmatprep.subr.bf16.mxu1 %v4799_v31 }
 0x1a9   : > { %3306 = vmatpush1.bf16.msra.mxu0 %v4794_v25 }
 0x1aa   : > { %3357 = vmatpush1.bf16.msra.mxu1 %v4797_v26  ;;  %3307 = vmatprep.subr.bf16.mxu0 %v4802_v27  ;;  %v5737_v26 = vld [vmem:[%s5172_s13] sm:$0xf]  ;;  %s279_s13 = scalar_lea.vmem [#allocation7], %s3740_s6  ;;  %s4172_s6 = smul.u32 48, %s5158_s29 }
 0x1ab   : > { %3358 = vmatprep.subr.bf16.mxu1 %v4805_v33  ;;  %v5751_v57 = vld [vmem:[%s279_s13] sm:$0xf] }
 0x1ac   : > { %v3471_v61 = vrot.slane %v5751_v57, %v3436_v30  ;;  %s5770_s29 = scalar_lea.vmem [#allocation8], %s4172_s6 }
 0x1ad   : > { %3308 = vmatpush2.bf16.msra.mxu0 %v4800_v34  ;;  %v2973_v34 = vadd.f32 %v5650_v58, %v2922_v24  ;;  %v2930_v58 = vadd.f32 %v5668_v4, %v5586_v52 }
 0x1ae   : > { %3359 = vmatpush2.bf16.msra.mxu1 %v4803_v36  ;;  %3309 = vmatprep.subr.bf16.mxu0 %v4808_v37  ;;  %v3437_v37 = vrot.slane %v5737_v26, %v3436_v30 }
 0x1af   : > { %3360 = vmatprep.subr.bf16.mxu1 %v4811_v38  ;;  %v3441_v38 = vrot.slane %v5737_v26, %v3440_v42  ;;  %v2981_v52 = vadd.f32 %v5670_v5, %v2930_v58 }
 0x1b1   : > { %3310 = vmatpush2.bf16.msra.mxu0 %v4806_v39 }
 0x1b2   : > { %3361 = vmatpush2.bf16.msra.mxu1 %v4809_v40  ;;  %3311 = vmatprep.subr.bf16.mxu0 %v4814_v46 }
 0x1b3   : > { %3362 = vmatprep.subr.bf16.mxu1 %v4817_v47  ;;  %v3475_v47 = vrot.slane %v5751_v57, %v3440_v42 }
 0x1b5   : > { %3312 = vmatpush2.bf16.msra.mxu0 %v4812_v48 }
 0x1b6   : > { %3363 = vmatpush2.bf16.msra.mxu1 %v4815_v49  ;;  %3313 = vmatprep.subr.bf16.mxu0 %v4820_v55 }
 0x1b7   : > { %3364 = vmatprep.subr.bf16.mxu1 %v4823_v56  ;;  %v2979_v56 = vadd.f32 %v5663_v0, %v2928_v18 }
 0x1b9   : > { %3314 = vmatpush2.bf16.msra.mxu0 %v4818_v59 }
 0x1ba   : > { %3365 = vmatpush2.bf16.msra.mxu1 %v4821_v60  ;;  %3315 = vmatprep.subr.bf16.mxu0 %v4826_v22 }
 0x1bb   : > { %3366 = vmatprep.subr.bf16.mxu1 %v4829_v23 }
 0x1bd   : > { %3316 = vmatpush2.bf16.msra.mxu0 %v4824_v1 }
 0x1be   : > { %3367 = vmatpush2.bf16.msra.mxu1 %v4827_v3  ;;  %3317 = vmatprep.subr.bf16.mxu0 %v4832_v6 }
 0x1bf   : > { %3368 = vmatprep.subr.bf16.mxu1 %v4835_v32 }
 0x1c1   : > { %3318 = vmatpush2.bf16.msra.mxu0 %v4830_v35  ;;  %v353_v35 = vld [vmem:[#allocation2 + $0x28] sm:$0x3f] }
 0x1c2   : > { %3369 = vmatpush2.bf16.msra.mxu1 %v4833_v7  ;;  %3319 = vmatprep.subr.bf16.mxu0 %v4838_v8 }
 0x1c3   : > { %3370 = vmatprep.subr.bf16.mxu1 %v4841_v10 }
 0x1c5   : > { %3320 = vmatpush2.bf16.msra.mxu0 %v4836_v11 }
 0x1c6   : > { %3371 = vmatpush2.bf16.msra.mxu1 %v4839_v12  ;;  %3321 = vmatprep.subr.bf16.mxu0 %v4844_v14  ;;  %v354_v14 = vld [vmem:[#allocation2 + $0x48] sm:$0x3f] }
 0x1c7   : > { %3372 = vmatprep.subr.bf16.mxu1 %v4847_v15 }
 0x1c9   : > { %3322 = vmatpush2.bf16.msra.mxu0 %v4842_v29 }
 0x1ca   : > { %3373 = vmatpush2.bf16.msra.mxu1 %v4845_v16 }
 0x1cc   : > { %v3019_v31 = vpop.f32.mrf.mxu0  ;;  %3324 = vmatmul.mubr.bf16.vlgmr.msra.gmra.mxu0 %v4858_v2 }
 0x1cd   : > { %v3070_v25 = vpop.f32.mrf.mxu1  ;;  %3375 = vmatmul.mubr.bf16.vlgmr.msra.gmra.mxu1 %v4859_v9  ;;  %v3020_v53 = vadd.f32 %v3019_v31, %v2969_v21  ;;  %3333 = vmatprep.mubr.bf16.mxu0 %v5454_v44  ;;  %v2975_v44 = vadd.f32 %v5656_v62, %v2924_v43 }
 0x1ce   : > { %3384 = vmatprep.mubr.bf16.mxu1 %v5456_v45  ;;  %v3021_v27 = vpop.f32.mrf.mxu0 }
 0x1cf   : > { %v3072_v33 = vpop.f32.mrf.mxu1  ;;  %v3071_v36 = vadd.f32 %v3070_v25, %v3020_v53  ;;  %v3022_v54 = vadd.f32 %v3021_v27, %v2971_v13 }
 0x1d0   : > { %v3023_v39 = vpop.f32.mrf.mxu0 }
 0x1d1   : > { %v3074_v40 = vpop.f32.mrf.mxu1  ;;  %v3073_v45 = vadd.f32 %v3072_v33, %v3022_v54  ;;  %v3024_v46 = vadd.f32 %v3023_v39, %v2973_v34  ;;  %v3454_v55 = vmul.f32 %v3437_v37, %v3071_v36 }
 0x1d2   : > { %v3025_v48 = vpop.f32.mrf.mxu0 }
 0x1d3   : > { %v3076_v49 = vpop.f32.mrf.mxu1  ;;  %v3075_v41 = vadd.f32 %v3074_v40, %v3024_v46  ;;  %v3026_v63 = vadd.f32 %v3025_v48, %v2975_v44  ;;  %v3488_v60 = vadd.f32 %v3471_v61, %v3454_v55  ;;  %v3455_v22 = vmul.f32 %v3441_v38, %v3073_v45 }
 0x1d4   : > { %v3029_v59 = vpop.f32.mrf.mxu0  ;;  %3334 = vmatmul.mubr.bf16.gmra.mxu0 %v5464_v50 }
 0x1d5   : > { %3385 = vmatmul.mubr.bf16.gmra.mxu1 %v5466_v51  ;;  %v3080_v62 = vpop.f32.mrf.mxu1  ;;  %v3077_v23 = vadd.f32 %v3076_v49, %v3026_v63  ;;  %v3030_v4 = vadd.f32 %v3029_v59, %v2979_v56  ;;  %v3489_v6 = vadd.f32 %v3475_v47, %v3455_v22  ;;  %v3458_v32 = vmul.f32 %v3437_v37, %v3075_v41 }
 0x1d6   : > { %v3031_v1 = vpop.f32.mrf.mxu0  ;;  %v3500_v50 = vmax.f32 %v3488_v60, 0.0 }
 0x1d7   : > { %v3082_v3 = vpop.f32.mrf.mxu1  ;;  %v3032_v7 = vadd.f32 %v3031_v1, %v2981_v52  ;;  %v3081_v0 = vadd.f32 %v3080_v62, %v3030_v4  ;;  %v3501_v11 = vmax.f32 %v3489_v6, 0.0  ;;  %v3492_v51 = vadd.f32 %v3471_v61, %v3458_v32 }
 0x1d8   : > { %v3033_v8 = vpop.f32.mrf.mxu0  ;;  %v3459_v12 = vmul.f32 %v3441_v38, %v3077_v23 }
 0x1d9   : > { %v3084_v10 = vpop.f32.mrf.mxu1  ;;  %v3401_v15 = vadd.f32 %v3081_v0, %v353_v35  ;;  %v3083_v28 = vadd.f32 %v3082_v3, %v3032_v7  ;;  %v4163_v16 = vpack.c.bf16 %v3501_v11, %v3500_v50  ;;  %v3504_v21 = vmax.f32 %v3492_v51, 0.0 }
 0x1da   : > { %v3034_v29 = vpop.f32.mrf.mxu0  ;;  %v3493_v17 = vadd.f32 %v3475_v47, %v3459_v12 }
 0x1db   : > { %v3085_v5 = vpop.f32.mrf.mxu1  ;;  %3413 = vst [vmem:[#allocation2 + $0x28] sm:$0x3f] %v3401_v15  ;;  %v3402_v20 = vadd.f32 %v3083_v28, %v354_v14  ;;  %3552 = vst [vmem:[%s5770_s29] sm:$0xff] %v4163_v16  ;;  %v3444_v15 = vsub.s32 2, %v5728_v19 }
 0x1dc   : > { %v3505_v24 = vmax.f32 %v3493_v17, 0.0  ;;  %v3448_v5 = vsub.s32 3, %v5728_v19 }
 0x1dd   : > { %3414 = vst [vmem:[#allocation2 + $0x48] sm:$0x3f] %v3402_v20 }
 0x1de   : > { %v4165_v30 = vpack.c.bf16 %v3505_v24, %v3504_v21 }
 0x1e0   : > { %3554 = vst [vmem:[%s5770_s29 + $0x10] sm:$0xff] %v4165_v30 }
 0x1e2   : > { %v3428_v31 = vld [vmem:[#allocation2 + $0x28] sm:$0x3f] }
 0x1e3   : > { %v3462_v25 = vmul.f32 %v3437_v37, %v3428_v31 }
 0x1e4   : > { %v3429_v2 = vld [vmem:[#allocation2 + $0x48] sm:$0x3f] }
 0x1e5   : > { %v3496_v9 = vadd.f32 %v3471_v61, %v3462_v25  ;;  %v3463_v42 = vmul.f32 %v3441_v38, %v3429_v2  ;;  %v3445_v25 = vrot.slane %v5737_v26, %v3444_v15 }
 0x1e7   : > { %v3497_v13 = vadd.f32 %v3475_v47, %v3463_v42  ;;  %v3508_v43 = vmax.f32 %v3496_v9, 0.0  ;;  %v3479_v42 = vrot.slane %v5751_v57, %v3444_v15 }
 0x1e9   : > { %v3509_v53 = vmax.f32 %v3497_v13, 0.0  ;;  %v3449_v13 = vrot.slane %v5737_v26, %v3448_v5 }
 0x1eb   : > { %v4167_v27 = vpack.c.bf16 %v3509_v53, %v3508_v43 }
 0x1ed   : > { %3556 = vst [vmem:[%s5770_s29 + $0x20] sm:$0x77] %v4167_v27 }
 0x20c   : > { %v3121_v33 = vpop.f32.mrf.mxu0 }
 0x20d   : > { %v3172_v34 = vpop.f32.mrf.mxu1 }
 0x20e   : > { %v3173_v36 = vadd.f32 %v3172_v34, %v3121_v33  ;;  %v3123_v54 = vpop.f32.mrf.mxu0 }
 0x20f   : > { %v3174_v18 = vpop.f32.mrf.mxu1 }
 0x210   : > { %v3175_v39 = vadd.f32 %v3174_v18, %v3123_v54  ;;  %v3125_v40 = vpop.f32.mrf.mxu0 }
 0x211   : > { %v3176_v44 = vpop.f32.mrf.mxu1 }
 0x212   : > { %v3177_v45 = vadd.f32 %v3176_v44, %v3125_v40  ;;  %v3127_v46 = vpop.f32.mrf.mxu0 }
 0x213   : > { %v3178_v58 = vpop.f32.mrf.mxu1 }
 0x214   : > { %v3179_v37 = vadd.f32 %v3178_v58, %v3127_v46  ;;  %v3131_v48 = vpop.f32.mrf.mxu0 }
 0x215   : > { %v3182_v61 = vpop.f32.mrf.mxu1 }
 0x216   : > { %v3183_v38 = vadd.f32 %v3182_v61, %v3131_v48  ;;  %v3133_v47 = vpop.f32.mrf.mxu0 }
 0x217   : > { %v3184_v49 = vpop.f32.mrf.mxu1 }
 0x218   : > { %v3185_v55 = vadd.f32 %v3184_v49, %v3133_v47  ;;  %v3135_v41 = vpop.f32.mrf.mxu0 }
 0x219   : > { %v3186_v63 = vpop.f32.mrf.mxu1 }
 0x21a   : > { %v3136_v56 = vpop.f32.mrf.mxu0 }
 0x21b   : > { %v3187_v59 = vpop.f32.mrf.mxu1 }
 0x24c   : > { %v3223_v62 = vpop.f32.mrf.mxu0 }
 0x24d   : > { %v3274_v60 = vpop.f32.mrf.mxu1  ;;  %v3224_v11 = vadd.f32 %v3223_v62, %v3173_v36  ;;  %v3483_v36 = vrot.slane %v5751_v57, %v3448_v5 }
 0x24e   : > { %v3225_v22 = vpop.f32.mrf.mxu0 }
 0x24f   : > { %v3276_v23 = vpop.f32.mrf.mxu1  ;;  %v3226_v51 = vadd.f32 %v3225_v22, %v3175_v39  ;;  %v3275_v12 = vadd.f32 %v3274_v60, %v3224_v11 }
 0x250   : > { %v3227_v52 = vpop.f32.mrf.mxu0 }
 0x251   : > { %v3278_v4 = vpop.f32.mrf.mxu1  ;;  %v3228_v14 = vadd.f32 %v3227_v52, %v3177_v45  ;;  %v3277_v16 = vadd.f32 %v3276_v23, %v3226_v51 }
 0x252   : > { %v3229_v1 = vpop.f32.mrf.mxu0 }
 0x253   : > { %v3280_v3 = vpop.f32.mrf.mxu1  ;;  %v3230_v17 = vadd.f32 %v3229_v1, %v3179_v37  ;;  %v3279_v30 = vadd.f32 %v3278_v4, %v3228_v14  ;;  %v356_v4 = vld [vmem:[#allocation2 + $0x40] sm:$0x3f] }
 0x254   : > { %v3233_v6 = vpop.f32.mrf.mxu0 }
 0x255   : > { %v3284_v32 = vpop.f32.mrf.mxu1  ;;  %v3234_v9 = vadd.f32 %v3233_v6, %v3183_v38  ;;  %v3281_v27 = vadd.f32 %v3280_v3, %v3230_v17  ;;  %v3580_v17 = vld [vmem:[%s5770_s29] sm:$0xff] (%p5086_p9) }
 0x256   : > { %v3235_v35 = vpop.f32.mrf.mxu0  ;;  %3581 = vst [vmem:[%s3567_s1] sm:$0xff] (%p5086_p9), %v3580_v17 }
 0x257   : > { %v3286_v7 = vpop.f32.mrf.mxu1  ;;  %v3236_v34 = vadd.f32 %v3235_v35, %v3185_v55  ;;  %v3285_v45 = vadd.f32 %v3284_v32, %v3234_v9  ;;  %v355_v55 = vld [vmem:[#allocation2 + $0x10] sm:$0x3f] }
 0x258   : > { %v3237_v0 = vpop.f32.mrf.mxu0 }
 0x259   : > { %v3288_v8 = vpop.f32.mrf.mxu1  ;;  %v3287_v26 = vadd.f32 %v3286_v7, %v3236_v34 }
 0x25a   : > { %v3238_v10 = vpop.f32.mrf.mxu0 }
 0x25b   : > { %v3289_v50 = vpop.f32.mrf.mxu1 }
 0x28c   : > { %v3325_v28 = vpop.f32.mrf.mxu0 }
 0x28d   : > { %v3376_v29 = vpop.f32.mrf.mxu1  ;;  %v3326_v20 = vadd.f32 %v3325_v28, %v3275_v12 }
 0x28e   : > { %v3327_v21 = vpop.f32.mrf.mxu0 }
 0x28f   : > { %v3378_v24 = vpop.f32.mrf.mxu1  ;;  %v3377_v31 = vadd.f32 %v3376_v29, %v3326_v20  ;;  %v3328_v2 = vadd.f32 %v3327_v21, %v3277_v16  ;;  %v3584_v21 = vld [vmem:[%s5770_s29 + $0x10] sm:$0xff] (%p5086_p9) }
 0x290   : > { %v3329_v43 = vpop.f32.mrf.mxu0  ;;  %3585 = vst [vmem:[%s3567_s1 + $0x20] sm:$0xff] (%p5086_p9), %v3584_v21 }
 0x291   : > { %v3380_v53 = vpop.f32.mrf.mxu1  ;;  %v3379_v33 = vadd.f32 %v3378_v24, %v3328_v2  ;;  %v3330_v19 = vadd.f32 %v3329_v43, %v3279_v30  ;;  %v3456_v39 = vmul.f32 %v3445_v25, %v3377_v31  ;;  %v3588_v30 = vld [vmem:[%s5770_s29 + $0x20] sm:$0xff] (%p5086_p9) }
 0x292   : > { %v3331_v54 = vpop.f32.mrf.mxu0  ;;  %3589 = vst [vmem:[%s3567_s1 + $0x40] sm:$0xff] (%p5086_p9), %v3588_v30 }
 0x293   : > { %v3382_v18 = vpop.f32.mrf.mxu1  ;;  %v3381_v40 = vadd.f32 %v3380_v53, %v3330_v19  ;;  %v3332_v44 = vadd.f32 %v3331_v54, %v3281_v27  ;;  %v3490_v37 = vadd.f32 %v3479_v42, %v3456_v39  ;;  %v3457_v48 = vmul.f32 %v3449_v13, %v3379_v33 }
 0x294   : > { %v3335_v46 = vpop.f32.mrf.mxu0 }
 0x295   : > { %v3386_v58 = vpop.f32.mrf.mxu1  ;;  %v3383_v61 = vadd.f32 %v3382_v18, %v3332_v44  ;;  %v3336_v38 = vadd.f32 %v3335_v46, %v3285_v45  ;;  %v3491_v41 = vadd.f32 %v3483_v36, %v3457_v48  ;;  %v3460_v63 = vmul.f32 %v3445_v25, %v3381_v40 }
 0x296   : > { %v3337_v47 = vpop.f32.mrf.mxu0  ;;  %v3502_v60 = vmax.f32 %v3490_v37, 0.0 }
 0x297   : > { %v3388_v49 = vpop.f32.mrf.mxu1  ;;  %v3387_v56 = vadd.f32 %v3386_v58, %v3336_v38  ;;  %v3338_v57 = vadd.f32 %v3337_v47, %v3287_v26  ;;  %v3503_v22 = vmax.f32 %v3491_v41, 0.0  ;;  %v3494_v23 = vadd.f32 %v3479_v42, %v3460_v63 }
 0x298   : > { %v3339_v59 = vpop.f32.mrf.mxu0  ;;  %v3461_v52 = vmul.f32 %v3449_v13, %v3383_v61 }
 0x299   : > { %v3390_v62 = vpop.f32.mrf.mxu1  ;;  %v3403_v1 = vadd.f32 %v3387_v56, %v355_v55  ;;  %v3389_v3 = vadd.f32 %v3388_v49, %v3338_v57  ;;  %v4164_v35 = vpack.c.bf16 %v3503_v22, %v3502_v60  ;;  %v3506_v8 = vmax.f32 %v3494_v23, 0.0 }
 0x29a   : > { %v3340_v6 = vpop.f32.mrf.mxu0  ;;  %v3495_v7 = vadd.f32 %v3483_v36, %v3461_v52 }
 0x29b   : > { %v3391_v32 = vpop.f32.mrf.mxu1  ;;  %3415 = vst [vmem:[#allocation2 + $0x10] sm:$0x3f] %v3403_v1  ;;  %v3404_v0 = vadd.f32 %v3389_v3, %v356_v4  ;;  %3553 = vst [vmem:[%s5770_s29 + $0x8] sm:$0xff] %v4164_v35 }
 0x29c   : > { %v3507_v10 = vmax.f32 %v3495_v7, 0.0 }
 0x29d   : > { %3416 = vst [vmem:[#allocation2 + $0x40] sm:$0x3f] %v3404_v0 }
 0x29e   : > { %v4166_v50 = vpack.c.bf16 %v3507_v10, %v3506_v8 }
 0x2a0   : > { %3555 = vst [vmem:[%s5770_s29 + $0x18] sm:$0xff] %v4166_v50 }
 0x2a2   : > { %v3430_v11 = vld [vmem:[#allocation2 + $0x10] sm:$0x3f]  ;;  %v3582_v20 = vld [vmem:[%s5770_s29 + $0x8] sm:$0xff] (%p5086_p9) }
 0x2a3   : > { %v3464_v51 = vmul.f32 %v3445_v25, %v3430_v11  ;;  %3583 = vst [vmem:[%s3567_s1 + $0x8] sm:$0xff] (%p5086_p9), %v3582_v20 }
 0x2a4   : > { %v3431_v12 = vld [vmem:[#allocation2 + $0x40] sm:$0x3f] }
 0x2a5   : > { %v3498_v14 = vadd.f32 %v3479_v42, %v3464_v51  ;;  %v3465_v15 = vmul.f32 %v3449_v13, %v3431_v12 }
 0x2a7   : > { %v3499_v28 = vadd.f32 %v3483_v36, %v3465_v15  ;;  %v3510_v29 = vmax.f32 %v3498_v14, 0.0  ;;  %v3586_v24 = vld [vmem:[%s5770_s29 + $0x18] sm:$0xff] (%p5086_p9) }
 0x2a8   : > { %3587 = vst [vmem:[%s3567_s1 + $0x28] sm:$0xff] (%p5086_p9), %v3586_v24 }
 0x2a9   : > { %v3511_v5 = vmax.f32 %v3499_v28, 0.0  ;;  %3564 = sbr.rel (!%p5086_p9) target bundleno = 694 (0x2b6), region = 60 }
 0x2ab   : > { %v4168_v16 = vpack.c.bf16 %v3511_v5, %v3510_v29 }
 0x2ad   : > { %3557 = vst [vmem:[%s5770_s29 + $0x28] sm:$0x77] %v4168_v16 }
 0x2b4   : > { %v3590_v31 = vld [vmem:[%s5770_s29 + $0x28] sm:$0xff] }
 0x2b5   : > { %3591 = vst [vmem:[%s3567_s1 + $0x48] sm:$0xff] %v3590_v31 }
 0x2b6 PF: > { %s20_s20 = sadd.s32 1, %s4998_s20   ;;  %s5830_s15 = smov %s4982_s16 }
 0x2b7   : > { %p17_p8 = scmp.ge.s32.totalorder %s20_s20, 4   ;;  %s5831_s16 = smov %s4986_s17 }
 0x2b8   : > { %s5832_s17 = smov %s5084_s27  ;;  %s5833_s18 = smov %s4994_s19 }
 0x2b9   : > { %s5834_s19 = smov %s5836_s22  ;;  %19 = sbr.rel (!%p17_p8) target bundleno = 9 (0x9), region = 134 }
 0x2be   :  { %3607 = vsyncpa [#allocation4], 1 }
 0x2bf   :  { %3609 = vsyncpa [#allocation4 + $0x1], 1 }
 0x2c0   :  { %3610 = vsyncpa [#allocation6], 1 }
 0x2c1   :  { %3612 = vsyncpa [#allocation6 + $0x1], 1 }

// kernel: classifier_forward.9
= control target key start
LH: loop header
LB: loop body
LE: loop exit
PB: predicated region body
PF: predicated region fallthrough
CT: control target
= control target key end

     0   :  { %v3320_v36 = vmov 1966171168   ;;  %v296_v38 = vlaneseq  ;;  %s4342_s0 = inlined_call_operand.vmem [shape: bf16[2,1024], index: 0, kind: input, shape index: {}]   ;;  %s4343_s1 = inlined_call_operand.vmem [shape: bf16[1024,512], index: 1, kind: input, shape index: {}]   ;;  %s4344_s2 = inlined_call_operand.vmem [shape: f32[1,512], index: 2, kind: input, shape index: {}]   ;;  %s4345_s3 = inlined_call_operand.vmem [shape: f32[1,512], index: 3, kind: input, shape index: {}]   ;;  %s4346_s4 = inlined_call_operand.vmem [shape: bf16[512,128], index: 4, kind: input, shape index: {}]   ;;  %s4347_s5 = inlined_call_operand.vmem [shape: f32[1,128], index: 5, kind: input, shape index: {}]   ;;  %s4348_s6 = inlined_call_operand.vmem [shape: f32[1,128], index: 6, kind: input, shape index: {}]   ;;  %s4349_s7 = inlined_call_operand.vmem [shape: bf16[128,128], index: 7, kind: input, shape index: {}]   ;;  %s4350_s8 = inlined_call_operand.vmem [shape: f32[1,128], index: 8, kind: input, shape index: {}]   ;;  %s4351_s9 = inlined_call_operand.hbm [shape: f32[2,128], index: 9, kind: output, shape index: {}]  }
   0x1   :  { %v2873_v0 = vld [vmem:[%s4343_s1 + $0xe4] ss:$16 sps:$4 sm:$0xff]   ;;  %v2877_v2 = vld [vmem:[%s4343_s1 + $0xe0] ss:$16 sps:$4 sm:$0xff]   ;;  %v294_v37 = vunpack.c.l.s4 %v3320_v36 }
   0x2   :  { %v2875_v1 = vld [vmem:[%s4343_s1 + $0x2e4] ss:$16 sps:$4 sm:$0xff]   ;;  %1629 = vmatprep.subr.bf16.mxu0 %v2873_v0  ;;  %v2878_v3 = vld [vmem:[%s4343_s1 + $0x2e0] ss:$16 sps:$4 sm:$0xff]   ;;  %v3491_v43 = vshrl.u32 %v296_v38, 7 }
   0x3   :  { %1670 = vmatprep.subr.bf16.mxu1 %v2875_v1  ;;  %v2879_v4 = vld [vmem:[%s4343_s1 + $0xc4] ss:$16 sps:$4 sm:$0xff]   ;;  %1630 = vmatpush1.bf16.msra.mxu0 %v2877_v2  ;;  %v2883_v6 = vld [vmem:[%s4343_s1 + $0xc0] ss:$16 sps:$4 sm:$0xff]   ;;  %v295_v42 = vunpack.c.0.s8 %v294_v37 }
   0x4   :  { %1671 = vmatpush1.bf16.msra.mxu1 %v2878_v3  ;;  %v2881_v5 = vld [vmem:[%s4343_s1 + $0x2c4] ss:$16 sps:$4 sm:$0xff]   ;;  %1631 = vmatprep.subr.bf16.mxu0 %v2879_v4  ;;  %v2884_v7 = vld [vmem:[%s4343_s1 + $0x2c0] ss:$16 sps:$4 sm:$0xff]  }
   0x5   :  { %1672 = vmatprep.subr.bf16.mxu1 %v2881_v5  ;;  %v2885_v8 = vld [vmem:[%s4343_s1 + $0xa4] ss:$16 sps:$4 sm:$0xff]   ;;  %v2889_v10 = vld [vmem:[%s4343_s1 + $0xa0] ss:$16 sps:$4 sm:$0xff]   ;;  %v298_v49 = vsub.s32 %v295_v42, %v3491_v43 }
   0x6   :  { %v2887_v9 = vld [vmem:[%s4343_s1 + $0x2a4] ss:$16 sps:$4 sm:$0xff]   ;;  %v2890_v11 = vld [vmem:[%s4343_s1 + $0x2a0] ss:$16 sps:$4 sm:$0xff]  }
   0x7   :  { %1632 = vmatpush1.bf16.msra.mxu0 %v2883_v6  ;;  %v2891_v12 = vld [vmem:[%s4343_s1 + $0x84] ss:$16 sps:$4 sm:$0xff]   ;;  %v2895_v14 = vld [vmem:[%s4343_s1 + $0x80] ss:$16 sps:$4 sm:$0xff]  }
   0x8   :  { %1673 = vmatpush1.bf16.msra.mxu1 %v2884_v7  ;;  %1633 = vmatprep.subr.bf16.mxu0 %v2885_v8  ;;  %v2893_v13 = vld [vmem:[%s4343_s1 + $0x284] ss:$16 sps:$4 sm:$0xff]   ;;  %v2896_v15 = vld [vmem:[%s4343_s1 + $0x280] ss:$16 sps:$4 sm:$0xff]  }
   0x9   :  { %1674 = vmatprep.subr.bf16.mxu1 %v2887_v9  ;;  %v2897_v16 = vld [vmem:[%s4343_s1 + $0x64] ss:$16 sps:$4 sm:$0xff]   ;;  %v2901_v18 = vld [vmem:[%s4343_s1 + $0x60] ss:$16 sps:$4 sm:$0xff]  }
   0xa   :  { %v2899_v17 = vld [vmem:[%s4343_s1 + $0x264] ss:$16 sps:$4 sm:$0xff]   ;;  %v2902_v19 = vld [vmem:[%s4343_s1 + $0x260] ss:$16 sps:$4 sm:$0xff]  }
   0xb   :  { %1634 = vmatpush1.bf16.msra.mxu0 %v2889_v10  ;;  %v2903_v20 = vld [vmem:[%s4343_s1 + $0x44] ss:$16 sps:$4 sm:$0xff]   ;;  %v2907_v22 = vld [vmem:[%s4343_s1 + $0x40] ss:$16 sps:$4 sm:$0xff]  }
   0xc   :  { %1675 = vmatpush1.bf16.msra.mxu1 %v2890_v11  ;;  %1635 = vmatprep.subr.bf16.mxu0 %v2891_v12  ;;  %v2905_v21 = vld [vmem:[%s4343_s1 + $0x244] ss:$16 sps:$4 sm:$0xff]   ;;  %v2908_v23 = vld [vmem:[%s4343_s1 + $0x240] ss:$16 sps:$4 sm:$0xff]  }
   0xd   :  { %1676 = vmatprep.subr.bf16.mxu1 %v2893_v13  ;;  %v2909_v24 = vld [vmem:[%s4343_s1 + $0x24] ss:$16 sps:$4 sm:$0xff]   ;;  %v2913_v26 = vld [vmem:[%s4343_s1 + $0x20] ss:$16 sps:$4 sm:$0xff]  }
   0xe   :  { %v2911_v25 = vld [vmem:[%s4343_s1 + $0x224] ss:$16 sps:$4 sm:$0xff]   ;;  %v2914_v27 = vld [vmem:[%s4343_s1 + $0x220] ss:$16 sps:$4 sm:$0xff]  }
   0xf   :  { %1636 = vmatpush1.bf16.msra.mxu0 %v2895_v14  ;;  %v2915_v28 = vld [vmem:[%s4343_s1 + $0x4] ss:$16 sps:$4 sm:$0xff]   ;;  %v2919_v30 = vld [vmem:[%s4343_s1] ss:$16 sps:$4 sm:$0xff]  }
  0x10   :  { %1677 = vmatpush1.bf16.msra.mxu1 %v2896_v15  ;;  %1637 = vmatprep.subr.bf16.mxu0 %v2897_v16  ;;  %v2917_v29 = vld [vmem:[%s4343_s1 + $0x204] ss:$16 sps:$4 sm:$0xff]   ;;  %v2920_v31 = vld [vmem:[%s4343_s1 + $0x200] ss:$16 sps:$4 sm:$0xff]  }
  0x11   :  { %1678 = vmatprep.subr.bf16.mxu1 %v2899_v17  ;;  %v2921_v32 = vld [vmem:[%s4343_s1 + $0x1e4] ss:$16 sps:$4 sm:$0xff]   ;;  %v2925_v34 = vld [vmem:[%s4343_s1 + $0x1e0] ss:$16 sps:$4 sm:$0xff]  }
  0x12   :  { %v2923_v33 = vld [vmem:[%s4343_s1 + $0x3e4] ss:$16 sps:$4 sm:$0xff]   ;;  %v2926_v35 = vld [vmem:[%s4343_s1 + $0x3e0] ss:$16 sps:$4 sm:$0xff]  }
  0x13   :  { %1638 = vmatpush1.bf16.msra.mxu0 %v2901_v18  ;;  %v2927_v39 = vld [vmem:[%s4343_s1 + $0x1c4] ss:$16 sps:$4 sm:$0xff]   ;;  %v2931_v41 = vld [vmem:[%s4343_s1 + $0x1c0] ss:$16 sps:$4 sm:$0xff]  }
  0x14   :  { %1679 = vmatpush1.bf16.msra.mxu1 %v2902_v19  ;;  %1639 = vmatprep.subr.bf16.mxu0 %v2903_v20  ;;  %v2929_v40 = vld [vmem:[%s4343_s1 + $0x3c4] ss:$16 sps:$4 sm:$0xff]   ;;  %v2932_v44 = vld [vmem:[%s4343_s1 + $0x3c0] ss:$16 sps:$4 sm:$0xff]  }
  0x15   :  { %1680 = vmatprep.subr.bf16.mxu1 %v2905_v21  ;;  %v2933_v45 = vld [vmem:[%s4343_s1 + $0x1a4] ss:$16 sps:$4 sm:$0xff]   ;;  %v2937_v47 = vld [vmem:[%s4343_s1 + $0x1a0] ss:$16 sps:$4 sm:$0xff]  }
  0x16   :  { %v2935_v46 = vld [vmem:[%s4343_s1 + $0x3a4] ss:$16 sps:$4 sm:$0xff]   ;;  %v2938_v48 = vld [vmem:[%s4343_s1 + $0x3a0] ss:$16 sps:$4 sm:$0xff]  }
  0x17   :  { %1640 = vmatpush1.bf16.msra.mxu0 %v2907_v22  ;;  %v2939_v50 = vld [vmem:[%s4343_s1 + $0x184] ss:$16 sps:$4 sm:$0xff]   ;;  %v2943_v53 = vld [vmem:[%s4343_s1 + $0x180] ss:$16 sps:$4 sm:$0xff]  }
  0x18   :  { %1681 = vmatpush1.bf16.msra.mxu1 %v2908_v23  ;;  %1641 = vmatprep.subr.bf16.mxu0 %v2909_v24  ;;  %v2941_v51 = vld [vmem:[%s4343_s1 + $0x384] ss:$16 sps:$4 sm:$0xff]   ;;  %v2944_v56 = vld [vmem:[%s4343_s1 + $0x380] ss:$16 sps:$4 sm:$0xff]  }
  0x19   :  { %1682 = vmatprep.subr.bf16.mxu1 %v2911_v25  ;;  %v34_v52 = vld [vmem:[%s4342_s0] sm:$0xff] }
  0x1a   :  { %v299_v54 = vrot.slane %v34_v52, %v298_v49  ;;  %v292_v55 = vcombine.high %v34_v52, %v34_v52  ;;  %v2945_v57 = vld [vmem:[%s4343_s1 + $0x164] ss:$16 sps:$4 sm:$0xff]   ;;  %v2949_v61 = vld [vmem:[%s4343_s1 + $0x160] ss:$16 sps:$4 sm:$0xff]  }
  0x1b   :  { %1642 = vmatpush1.bf16.msra.mxu0 %v2913_v26  ;;  %v2947_v58 = vld [vmem:[%s4343_s1 + $0x364] ss:$16 sps:$4 sm:$0xff]   ;;  %v2950_v0 = vld [vmem:[%s4343_s1 + $0x360] ss:$16 sps:$4 sm:$0xff]  }
  0x1c   :  { %1683 = vmatpush1.bf16.msra.mxu1 %v2914_v27  ;;  %1643 = vmatprep.subr.bf16.mxu0 %v2915_v28  ;;  %v307_v59 = vcombine.high %v299_v54, %v299_v54  ;;  %v306_v60 = vrot.slane %v292_v55, %v298_v49  ;;  %v2951_v1 = vld [vmem:[%s4343_s1 + $0x144] ss:$16 sps:$4 sm:$0xff]   ;;  %v2955_v4 = vld [vmem:[%s4343_s1 + $0x140] ss:$16 sps:$4 sm:$0xff]   ;;  %v3579_v14 = vrot.slane %v299_v54, %v298_v49 }
  0x1d   :  { %1684 = vmatprep.subr.bf16.mxu1 %v2917_v29  ;;  %v2953_v2 = vld [vmem:[%s4343_s1 + $0x344] ss:$16 sps:$4 sm:$0xff]   ;;  %v2956_v5 = vld [vmem:[%s4343_s1 + $0x340] ss:$16 sps:$4 sm:$0xff]  }
  0x1e   :  { %v3533_v62 = vrot.slane %v307_v59, %v298_v49  ;;  %v3535_v63 = vrot.slane %v306_v60, %v298_v49  ;;  %v2957_v6 = vld [vmem:[%s4343_s1 + $0x124] ss:$16 sps:$4 sm:$0xff]   ;;  %v2961_v8 = vld [vmem:[%s4343_s1 + $0x120] ss:$16 sps:$4 sm:$0xff]   ;;  %v308_v12 = vcombine.high %v306_v60, %v306_v60  ;;  %v3594_v19 = vcombine.high %v3579_v14, %v3579_v14 }
  0x1f   :  { %1644 = vmatpush1.bf16.msra.mxu0 %v2919_v30  ;;  %v2959_v7 = vld [vmem:[%s4343_s1 + $0x324] ss:$16 sps:$4 sm:$0xff]   ;;  %v2962_v9 = vld [vmem:[%s4343_s1 + $0x320] ss:$16 sps:$4 sm:$0xff]  }
  0x20   :  { %1685 = vmatpush1.bf16.msra.mxu1 %v2920_v31  ;;  %1645 = vmatprep.subr.bf16.mxu0 %v2921_v32  ;;  %v3548_v3 = vcombine.high %v3533_v62, %v3533_v62  ;;  %v2963_v10 = vld [vmem:[%s4343_s1 + $0x104] ss:$16 sps:$4 sm:$0xff]   ;;  %v2967_v13 = vld [vmem:[%s4343_s1 + $0x100] ss:$16 sps:$4 sm:$0xff]   ;;  %v3590_v18 = vrot.slane %v308_v12, %v298_v49 }
  0x21   :  { %1686 = vmatprep.subr.bf16.mxu1 %v2923_v33  ;;  %1661 = vmatprep.mubr.bf16.mxu0 %v3533_v62  ;;  %v2965_v11 = vld [vmem:[%s4343_s1 + $0x304] ss:$16 sps:$4 sm:$0xff]   ;;  %v2968_v15 = vld [vmem:[%s4343_s1 + $0x300] ss:$16 sps:$4 sm:$0xff]  }
  0x22   :  { %1702 = vmatprep.mubr.bf16.mxu1 %v3548_v3  ;;  %v2971_v16 = vld [vmem:[%s4343_s1 + $0x4e4] ss:$16 sps:$4 sm:$0xff]   ;;  %v2969_v20 = vld [vmem:[%s4343_s1 + $0x4e0] ss:$16 sps:$4 sm:$0xff]   ;;  %v3610_v24 = vcombine.high %v3590_v18, %v3590_v18 }
  0x23   :  { %1646 = vmatpush2.bf16.msra.mxu0 %v2925_v34  ;;  %v2974_v17 = vld [vmem:[%s4343_s1 + $0x6e4] ss:$16 sps:$4 sm:$0xff]   ;;  %v2972_v21 = vld [vmem:[%s4343_s1 + $0x6e0] ss:$16 sps:$4 sm:$0xff]  }
  0x24   :  { %1687 = vmatpush2.bf16.msra.mxu1 %v2926_v35  ;;  %1647 = vmatprep.subr.bf16.mxu0 %v2927_v39  ;;  %v2977_v22 = vld [vmem:[%s4343_s1 + $0x4c4] ss:$16 sps:$4 sm:$0xff]   ;;  %v2975_v25 = vld [vmem:[%s4343_s1 + $0x4c0] ss:$16 sps:$4 sm:$0xff]  }
  0x25   :  { %1688 = vmatprep.subr.bf16.mxu1 %v2929_v40  ;;  %v2980_v23 = vld [vmem:[%s4343_s1 + $0x6c4] ss:$16 sps:$4 sm:$0xff]   ;;  %v2978_v26 = vld [vmem:[%s4343_s1 + $0x6c0] ss:$16 sps:$4 sm:$0xff]  }
  0x26   :  { %v2983_v27 = vld [vmem:[%s4343_s1 + $0x4a4] ss:$16 sps:$4 sm:$0xff]   ;;  %v2981_v29 = vld [vmem:[%s4343_s1 + $0x4a0] ss:$16 sps:$4 sm:$0xff]  }
  0x27   :  { %1648 = vmatpush2.bf16.msra.mxu0 %v2931_v41  ;;  %v2986_v28 = vld [vmem:[%s4343_s1 + $0x6a4] ss:$16 sps:$4 sm:$0xff]   ;;  %v2984_v30 = vld [vmem:[%s4343_s1 + $0x6a0] ss:$16 sps:$4 sm:$0xff]  }
  0x28   :  { %1689 = vmatpush2.bf16.msra.mxu1 %v2932_v44  ;;  %1649 = vmatprep.subr.bf16.mxu0 %v2933_v45  ;;  %v2989_v31 = vld [vmem:[%s4343_s1 + $0x484] ss:$16 sps:$4 sm:$0xff]   ;;  %v2987_v33 = vld [vmem:[%s4343_s1 + $0x480] ss:$16 sps:$4 sm:$0xff]  }
  0x29   :  { %1690 = vmatprep.subr.bf16.mxu1 %v2935_v46  ;;  %v2992_v32 = vld [vmem:[%s4343_s1 + $0x684] ss:$16 sps:$4 sm:$0xff]   ;;  %v2990_v34 = vld [vmem:[%s4343_s1 + $0x680] ss:$16 sps:$4 sm:$0xff]  }
  0x2a   :  { %v2995_v35 = vld [vmem:[%s4343_s1 + $0x464] ss:$16 sps:$4 sm:$0xff]   ;;  %v2993_v37 = vld [vmem:[%s4343_s1 + $0x460] ss:$16 sps:$4 sm:$0xff]  }
  0x2b   :  { %1650 = vmatpush2.bf16.msra.mxu0 %v2937_v47  ;;  %v2998_v36 = vld [vmem:[%s4343_s1 + $0x664] ss:$16 sps:$4 sm:$0xff]   ;;  %v2996_v38 = vld [vmem:[%s4343_s1 + $0x660] ss:$16 sps:$4 sm:$0xff]  }
  0x2c   :  { %1691 = vmatpush2.bf16.msra.mxu1 %v2938_v48  ;;  %1651 = vmatprep.subr.bf16.mxu0 %v2939_v50  ;;  %v3001_v39 = vld [vmem:[%s4343_s1 + $0x444] ss:$16 sps:$4 sm:$0xff]   ;;  %v2999_v41 = vld [vmem:[%s4343_s1 + $0x440] ss:$16 sps:$4 sm:$0xff]  }
  0x2d   :  { %1692 = vmatprep.subr.bf16.mxu1 %v2941_v51  ;;  %v3004_v40 = vld [vmem:[%s4343_s1 + $0x644] ss:$16 sps:$4 sm:$0xff]   ;;  %v3002_v42 = vld [vmem:[%s4343_s1 + $0x640] ss:$16 sps:$4 sm:$0xff]  }
  0x2e   :  { %v3007_v44 = vld [vmem:[%s4343_s1 + $0x424] ss:$16 sps:$4 sm:$0xff]   ;;  %v3005_v46 = vld [vmem:[%s4343_s1 + $0x420] ss:$16 sps:$4 sm:$0xff]  }
  0x2f   :  { %1652 = vmatpush2.bf16.msra.mxu0 %v2943_v53  ;;  %v3010_v45 = vld [vmem:[%s4343_s1 + $0x624] ss:$16 sps:$4 sm:$0xff]   ;;  %v3008_v47 = vld [vmem:[%s4343_s1 + $0x620] ss:$16 sps:$4 sm:$0xff]  }
  0x30   :  { %1693 = vmatpush2.bf16.msra.mxu1 %v2944_v56  ;;  %1653 = vmatprep.subr.bf16.mxu0 %v2945_v57  ;;  %v3013_v48 = vld [vmem:[%s4343_s1 + $0x404] ss:$16 sps:$4 sm:$0xff]   ;;  %v3011_v50 = vld [vmem:[%s4343_s1 + $0x400] ss:$16 sps:$4 sm:$0xff]  }
  0x31   :  { %1694 = vmatprep.subr.bf16.mxu1 %v2947_v58  ;;  %v3016_v49 = vld [vmem:[%s4343_s1 + $0x604] ss:$16 sps:$4 sm:$0xff]   ;;  %v3014_v51 = vld [vmem:[%s4343_s1 + $0x600] ss:$16 sps:$4 sm:$0xff]  }
  0x32   :  { %v3019_v52 = vld [vmem:[%s4343_s1 + $0x5e4] ss:$16 sps:$4 sm:$0xff]   ;;  %v3017_v54 = vld [vmem:[%s4343_s1 + $0x5e0] ss:$16 sps:$4 sm:$0xff]  }
  0x33   :  { %1654 = vmatpush2.bf16.msra.mxu0 %v2949_v61  ;;  %v3022_v53 = vld [vmem:[%s4343_s1 + $0x7e4] ss:$16 sps:$4 sm:$0xff]   ;;  %v3020_v55 = vld [vmem:[%s4343_s1 + $0x7e0] ss:$16 sps:$4 sm:$0xff]  }
  0x34   :  { %1695 = vmatpush2.bf16.msra.mxu1 %v2950_v0  ;;  %1655 = vmatprep.subr.bf16.mxu0 %v2951_v1  ;;  %v3025_v56 = vld [vmem:[%s4343_s1 + $0x5c4] ss:$16 sps:$4 sm:$0xff]   ;;  %v3023_v58 = vld [vmem:[%s4343_s1 + $0x5c0] ss:$16 sps:$4 sm:$0xff]  }
  0x35   :  { %1696 = vmatprep.subr.bf16.mxu1 %v2953_v2  ;;  %v3028_v57 = vld [vmem:[%s4343_s1 + $0x7c4] ss:$16 sps:$4 sm:$0xff]   ;;  %v3026_v59 = vld [vmem:[%s4343_s1 + $0x7c0] ss:$16 sps:$4 sm:$0xff]  }
  0x36   :  { %v3031_v60 = vld [vmem:[%s4343_s1 + $0x5a4] ss:$16 sps:$4 sm:$0xff]   ;;  %v3029_v0 = vld [vmem:[%s4343_s1 + $0x5a0] ss:$16 sps:$4 sm:$0xff]  }
  0x37   :  { %1656 = vmatpush2.bf16.msra.mxu0 %v2955_v4  ;;  %v3034_v61 = vld [vmem:[%s4343_s1 + $0x7a4] ss:$16 sps:$4 sm:$0xff]   ;;  %v3032_v1 = vld [vmem:[%s4343_s1 + $0x7a0] ss:$16 sps:$4 sm:$0xff]  }
  0x38   :  { %1697 = vmatpush2.bf16.msra.mxu1 %v2956_v5  ;;  %1657 = vmatprep.subr.bf16.mxu0 %v2957_v6  ;;  %v3037_v2 = vld [vmem:[%s4343_s1 + $0x584] ss:$16 sps:$4 sm:$0xff]   ;;  %v3035_v5 = vld [vmem:[%s4343_s1 + $0x580] ss:$16 sps:$4 sm:$0xff]  }
  0x39   :  { %1698 = vmatprep.subr.bf16.mxu1 %v2959_v7  ;;  %v3040_v4 = vld [vmem:[%s4343_s1 + $0x784] ss:$16 sps:$4 sm:$0xff]   ;;  %v3038_v6 = vld [vmem:[%s4343_s1 + $0x780] ss:$16 sps:$4 sm:$0xff]  }
  0x3a   :  { %v3043_v7 = vld [vmem:[%s4343_s1 + $0x564] ss:$16 sps:$4 sm:$0xff]  }
  0x3b   :  { %1658 = vmatpush2.bf16.msra.mxu0 %v2961_v8  ;;  %v3046_v8 = vld [vmem:[%s4343_s1 + $0x764] ss:$16 sps:$4 sm:$0xff]  }
  0x3c   :  { %1699 = vmatpush2.bf16.msra.mxu1 %v2962_v9  ;;  %1659 = vmatprep.subr.bf16.mxu0 %v2963_v10  ;;  %v3041_v9 = vld [vmem:[%s4343_s1 + $0x560] ss:$16 sps:$4 sm:$0xff]   ;;  %v3052_v12 = vld [vmem:[%s4343_s1 + $0x744] ss:$16 sps:$4 sm:$0xff]  }
  0x3d   :  { %1700 = vmatprep.subr.bf16.mxu1 %v2965_v11  ;;  %v3044_v10 = vld [vmem:[%s4343_s1 + $0x760] ss:$16 sps:$4 sm:$0xff]   ;;  %v3049_v11 = vld [vmem:[%s4343_s1 + $0x544] ss:$16 sps:$4 sm:$0xff]  }
  0x3f   :  { %1660 = vmatpush2.bf16.msra.mxu0 %v2967_v13  ;;  %v3047_v13 = vld [vmem:[%s4343_s1 + $0x540] ss:$16 sps:$4 sm:$0xff]  }
  0x40   :  { %1701 = vmatpush2.bf16.msra.mxu1 %v2968_v15  ;;  %1711 = vmatprep.subr.bf16.mxu0 %v2971_v16  ;;  %v3050_v15 = vld [vmem:[%s4343_s1 + $0x740] ss:$16 sps:$4 sm:$0xff]   ;;  %v3055_v16 = vld [vmem:[%s4343_s1 + $0x524] ss:$16 sps:$4 sm:$0xff]  }
  0x41   :  { %1752 = vmatprep.subr.bf16.mxu1 %v2974_v17  ;;  %v3058_v17 = vld [vmem:[%s4343_s1 + $0x724] ss:$16 sps:$4 sm:$0xff]  }
  0x42   :  { %1662 = vmatmul.mubr.bf16.vlgmr.msra.gmra.mxu0 %v3579_v14 }
  0x43   :  { %1703 = vmatmul.mubr.bf16.vlgmr.msra.gmra.mxu1 %v3594_v19  ;;  %1712 = vmatpush1.bf16.msra.mxu0 %v2969_v20  ;;  %v3053_v20 = vld [vmem:[%s4343_s1 + $0x520] ss:$16 sps:$4 sm:$0xff]  }
  0x44   :  { %1753 = vmatpush1.bf16.msra.mxu1 %v2972_v21  ;;  %1713 = vmatprep.subr.bf16.mxu0 %v2977_v22  ;;  %v3056_v21 = vld [vmem:[%s4343_s1 + $0x720] ss:$16 sps:$4 sm:$0xff]   ;;  %v3061_v22 = vld [vmem:[%s4343_s1 + $0x504] ss:$16 sps:$4 sm:$0xff]  }
  0x45   :  { %1754 = vmatprep.subr.bf16.mxu1 %v2980_v23  ;;  %1743 = vmatprep.mubr.bf16.mxu0 %v3590_v18  ;;  %v3064_v23 = vld [vmem:[%s4343_s1 + $0x704] ss:$16 sps:$4 sm:$0xff]  }
  0x46   :  { %1784 = vmatprep.mubr.bf16.mxu1 %v3610_v24 }
  0x47   :  { %1714 = vmatpush1.bf16.msra.mxu0 %v2975_v25  ;;  %v3059_v25 = vld [vmem:[%s4343_s1 + $0x500] ss:$16 sps:$4 sm:$0xff]  }
  0x48   :  { %1755 = vmatpush1.bf16.msra.mxu1 %v2978_v26  ;;  %1715 = vmatprep.subr.bf16.mxu0 %v2983_v27  ;;  %v3062_v26 = vld [vmem:[%s4343_s1 + $0x700] ss:$16 sps:$4 sm:$0xff]   ;;  %v3068_v27 = vld [vmem:[%s4343_s1 + $0xec] ss:$16 sps:$4 sm:$0xff]  }
  0x49   :  { %1756 = vmatprep.subr.bf16.mxu1 %v2986_v28  ;;  %v3071_v28 = vld [vmem:[%s4343_s1 + $0x2ec] ss:$16 sps:$4 sm:$0xff]  }
  0x4b   :  { %1716 = vmatpush1.bf16.msra.mxu0 %v2981_v29  ;;  %v3798_v29 = vcombine.high %v3535_v63, %v3535_v63 }
  0x4c   :  { %1757 = vmatpush1.bf16.msra.mxu1 %v2984_v30  ;;  %1717 = vmatprep.subr.bf16.mxu0 %v2989_v31  ;;  %v3066_v30 = vld [vmem:[%s4343_s1 + $0xe8] ss:$16 sps:$4 sm:$0xff]  }
  0x4d   :  { %1758 = vmatprep.subr.bf16.mxu1 %v2992_v32  ;;  %v3069_v31 = vld [vmem:[%s4343_s1 + $0x2e8] ss:$16 sps:$4 sm:$0xff]   ;;  %v3074_v32 = vld [vmem:[%s4343_s1 + $0xcc] ss:$16 sps:$4 sm:$0xff]  }
  0x4f   :  { %1718 = vmatpush1.bf16.msra.mxu0 %v2987_v33  ;;  %v3077_v33 = vld [vmem:[%s4343_s1 + $0x2cc] ss:$16 sps:$4 sm:$0xff]  }
  0x50   :  { %1759 = vmatpush1.bf16.msra.mxu1 %v2990_v34  ;;  %1719 = vmatprep.subr.bf16.mxu0 %v2995_v35  ;;  %v3072_v34 = vld [vmem:[%s4343_s1 + $0xc8] ss:$16 sps:$4 sm:$0xff]  }
  0x51   :  { %1760 = vmatprep.subr.bf16.mxu1 %v2998_v36  ;;  %v3075_v35 = vld [vmem:[%s4343_s1 + $0x2c8] ss:$16 sps:$4 sm:$0xff]   ;;  %v3080_v36 = vld [vmem:[%s4343_s1 + $0xac] ss:$16 sps:$4 sm:$0xff]  }
  0x53   :  { %1720 = vmatpush1.bf16.msra.mxu0 %v2993_v37  ;;  %v3083_v37 = vld [vmem:[%s4343_s1 + $0x2ac] ss:$16 sps:$4 sm:$0xff]  }
  0x54   :  { %1761 = vmatpush1.bf16.msra.mxu1 %v2996_v38  ;;  %1721 = vmatprep.subr.bf16.mxu0 %v3001_v39  ;;  %v3078_v38 = vld [vmem:[%s4343_s1 + $0xa8] ss:$16 sps:$4 sm:$0xff]  }
  0x55   :  { %1762 = vmatprep.subr.bf16.mxu1 %v3004_v40  ;;  %v3081_v39 = vld [vmem:[%s4343_s1 + $0x2a8] ss:$16 sps:$4 sm:$0xff]   ;;  %v3086_v40 = vld [vmem:[%s4343_s1 + $0x8c] ss:$16 sps:$4 sm:$0xff]  }
  0x57   :  { %1722 = vmatpush1.bf16.msra.mxu0 %v2999_v41  ;;  %v3087_v41 = vld [vmem:[%s4343_s1 + $0x288] ss:$16 sps:$4 sm:$0xff]  }
  0x58   :  { %1763 = vmatpush1.bf16.msra.mxu1 %v3002_v42  ;;  %1723 = vmatprep.subr.bf16.mxu0 %v3007_v44  ;;  %v3092_v42 = vld [vmem:[%s4343_s1 + $0x6c] ss:$16 sps:$4 sm:$0xff]  }
  0x59   :  { %1764 = vmatprep.subr.bf16.mxu1 %v3010_v45  ;;  %v3095_v44 = vld [vmem:[%s4343_s1 + $0x26c] ss:$16 sps:$4 sm:$0xff]   ;;  %v3090_v45 = vld [vmem:[%s4343_s1 + $0x68] ss:$16 sps:$4 sm:$0xff]  }
  0x5b   :  { %1724 = vmatpush1.bf16.msra.mxu0 %v3005_v46  ;;  %v3093_v46 = vld [vmem:[%s4343_s1 + $0x268] ss:$16 sps:$4 sm:$0xff]  }
  0x5c   :  { %1765 = vmatpush1.bf16.msra.mxu1 %v3008_v47  ;;  %1725 = vmatprep.subr.bf16.mxu0 %v3013_v48  ;;  %v3098_v47 = vld [vmem:[%s4343_s1 + $0x4c] ss:$16 sps:$4 sm:$0xff]  }
  0x5d   :  { %1766 = vmatprep.subr.bf16.mxu1 %v3016_v49  ;;  %v3101_v48 = vld [vmem:[%s4343_s1 + $0x24c] ss:$16 sps:$4 sm:$0xff]   ;;  %v3096_v49 = vld [vmem:[%s4343_s1 + $0x48] ss:$16 sps:$4 sm:$0xff]  }
  0x5f   :  { %1726 = vmatpush1.bf16.msra.mxu0 %v3011_v50  ;;  %v3099_v50 = vld [vmem:[%s4343_s1 + $0x248] ss:$16 sps:$4 sm:$0xff]  }
  0x60   :  { %1767 = vmatpush1.bf16.msra.mxu1 %v3014_v51  ;;  %1727 = vmatprep.subr.bf16.mxu0 %v3019_v52  ;;  %v3104_v51 = vld [vmem:[%s4343_s1 + $0x2c] ss:$16 sps:$4 sm:$0xff]  }
  0x61   :  { %1768 = vmatprep.subr.bf16.mxu1 %v3022_v53  ;;  %v3107_v52 = vld [vmem:[%s4343_s1 + $0x22c] ss:$16 sps:$4 sm:$0xff]   ;;  %v3102_v53 = vld [vmem:[%s4343_s1 + $0x28] ss:$16 sps:$4 sm:$0xff]  }
  0x63   :  { %1728 = vmatpush2.bf16.msra.mxu0 %v3017_v54  ;;  %v3105_v54 = vld [vmem:[%s4343_s1 + $0x228] ss:$16 sps:$4 sm:$0xff]  }
  0x64   :  { %1769 = vmatpush2.bf16.msra.mxu1 %v3020_v55  ;;  %1729 = vmatprep.subr.bf16.mxu0 %v3025_v56  ;;  %v3110_v55 = vld [vmem:[%s4343_s1 + $0xc] ss:$16 sps:$4 sm:$0xff]  }
  0x65   :  { %1770 = vmatprep.subr.bf16.mxu1 %v3028_v57  ;;  %v3113_v56 = vld [vmem:[%s4343_s1 + $0x20c] ss:$16 sps:$4 sm:$0xff]   ;;  %v3108_v57 = vld [vmem:[%s4343_s1 + $0x8] ss:$16 sps:$4 sm:$0xff]  }
  0x67   :  { %1730 = vmatpush2.bf16.msra.mxu0 %v3023_v58  ;;  %v3111_v58 = vld [vmem:[%s4343_s1 + $0x208] ss:$16 sps:$4 sm:$0xff]  }
  0x68   :  { %1771 = vmatpush2.bf16.msra.mxu1 %v3026_v59  ;;  %1731 = vmatprep.subr.bf16.mxu0 %v3031_v60  ;;  %v3116_v59 = vld [vmem:[%s4343_s1 + $0x1ec] ss:$16 sps:$4 sm:$0xff]  }
  0x69   :  { %1772 = vmatprep.subr.bf16.mxu1 %v3034_v61  ;;  %v3119_v60 = vld [vmem:[%s4343_s1 + $0x3ec] ss:$16 sps:$4 sm:$0xff]   ;;  %v3114_v61 = vld [vmem:[%s4343_s1 + $0x1e8] ss:$16 sps:$4 sm:$0xff]  }
  0x6b   :  { %1732 = vmatpush2.bf16.msra.mxu0 %v3029_v0  ;;  %v3117_v0 = vld [vmem:[%s4343_s1 + $0x3e8] ss:$16 sps:$4 sm:$0xff]  }
  0x6c   :  { %1773 = vmatpush2.bf16.msra.mxu1 %v3032_v1  ;;  %1733 = vmatprep.subr.bf16.mxu0 %v3037_v2  ;;  %v3122_v1 = vld [vmem:[%s4343_s1 + $0x1cc] ss:$16 sps:$4 sm:$0xff]  }
  0x6d   :  { %1774 = vmatprep.subr.bf16.mxu1 %v3040_v4  ;;  %v3125_v2 = vld [vmem:[%s4343_s1 + $0x3cc] ss:$16 sps:$4 sm:$0xff]   ;;  %v3120_v4 = vld [vmem:[%s4343_s1 + $0x1c8] ss:$16 sps:$4 sm:$0xff]  }
  0x6f   :  { %1734 = vmatpush2.bf16.msra.mxu0 %v3035_v5  ;;  %v3123_v5 = vld [vmem:[%s4343_s1 + $0x3c8] ss:$16 sps:$4 sm:$0xff]  }
  0x70   :  { %1775 = vmatpush2.bf16.msra.mxu1 %v3038_v6  ;;  %1735 = vmatprep.subr.bf16.mxu0 %v3043_v7  ;;  %v3128_v6 = vld [vmem:[%s4343_s1 + $0x1ac] ss:$16 sps:$4 sm:$0xff]  }
  0x71   :  { %1776 = vmatprep.subr.bf16.mxu1 %v3046_v8  ;;  %v3131_v7 = vld [vmem:[%s4343_s1 + $0x3ac] ss:$16 sps:$4 sm:$0xff]   ;;  %v3126_v8 = vld [vmem:[%s4343_s1 + $0x1a8] ss:$16 sps:$4 sm:$0xff]  }
  0x73   :  { %1736 = vmatpush2.bf16.msra.mxu0 %v3041_v9  ;;  %v3129_v9 = vld [vmem:[%s4343_s1 + $0x3a8] ss:$16 sps:$4 sm:$0xff]  }
  0x74   :  { %1777 = vmatpush2.bf16.msra.mxu1 %v3044_v10  ;;  %1737 = vmatprep.subr.bf16.mxu0 %v3049_v11  ;;  %v3134_v10 = vld [vmem:[%s4343_s1 + $0x18c] ss:$16 sps:$4 sm:$0xff]  }
  0x75   :  { %1778 = vmatprep.subr.bf16.mxu1 %v3052_v12  ;;  %v3137_v11 = vld [vmem:[%s4343_s1 + $0x38c] ss:$16 sps:$4 sm:$0xff]   ;;  %v3132_v12 = vld [vmem:[%s4343_s1 + $0x188] ss:$16 sps:$4 sm:$0xff]  }
  0x77   :  { %1738 = vmatpush2.bf16.msra.mxu0 %v3047_v13  ;;  %v3135_v13 = vld [vmem:[%s4343_s1 + $0x388] ss:$16 sps:$4 sm:$0xff]  }
  0x78   :  { %1779 = vmatpush2.bf16.msra.mxu1 %v3050_v15  ;;  %1739 = vmatprep.subr.bf16.mxu0 %v3055_v16  ;;  %v3140_v15 = vld [vmem:[%s4343_s1 + $0x16c] ss:$16 sps:$4 sm:$0xff]  }
  0x79   :  { %1780 = vmatprep.subr.bf16.mxu1 %v3058_v17  ;;  %v3143_v16 = vld [vmem:[%s4343_s1 + $0x36c] ss:$16 sps:$4 sm:$0xff]   ;;  %v3138_v17 = vld [vmem:[%s4343_s1 + $0x168] ss:$16 sps:$4 sm:$0xff]  }
  0x7b   :  { %1740 = vmatpush2.bf16.msra.mxu0 %v3053_v20  ;;  %v3141_v20 = vld [vmem:[%s4343_s1 + $0x368] ss:$16 sps:$4 sm:$0xff]  }
  0x7c   :  { %1781 = vmatpush2.bf16.msra.mxu1 %v3056_v21  ;;  %1741 = vmatprep.subr.bf16.mxu0 %v3061_v22  ;;  %v3146_v21 = vld [vmem:[%s4343_s1 + $0x14c] ss:$16 sps:$4 sm:$0xff]  }
  0x7d   :  { %1782 = vmatprep.subr.bf16.mxu1 %v3064_v23  ;;  %v3149_v22 = vld [vmem:[%s4343_s1 + $0x34c] ss:$16 sps:$4 sm:$0xff]   ;;  %v3144_v23 = vld [vmem:[%s4343_s1 + $0x148] ss:$16 sps:$4 sm:$0xff]  }
  0x7f   :  { %1742 = vmatpush2.bf16.msra.mxu0 %v3059_v25  ;;  %v3147_v25 = vld [vmem:[%s4343_s1 + $0x348] ss:$16 sps:$4 sm:$0xff]  }
  0x80   :  { %1783 = vmatpush2.bf16.msra.mxu1 %v3062_v26  ;;  %1793 = vmatprep.subr.bf16.mxu0 %v3068_v27  ;;  %v3152_v26 = vld [vmem:[%s4343_s1 + $0x12c] ss:$16 sps:$4 sm:$0xff]  }
  0x81   :  { %1834 = vmatprep.subr.bf16.mxu1 %v3071_v28  ;;  %v3155_v27 = vld [vmem:[%s4343_s1 + $0x32c] ss:$16 sps:$4 sm:$0xff]   ;;  %v3150_v28 = vld [vmem:[%s4343_s1 + $0x128] ss:$16 sps:$4 sm:$0xff]  }
  0x82   :  { %1744 = vmatmul.mubr.bf16.vlgmr.msra.gmra.mxu0 %v3535_v63 }
  0x83   :  { %1785 = vmatmul.mubr.bf16.vlgmr.msra.gmra.mxu1 %v3798_v29  ;;  %1794 = vmatpush1.bf16.msra.mxu0 %v3066_v30  ;;  %v3153_v30 = vld [vmem:[%s4343_s1 + $0x328] ss:$16 sps:$4 sm:$0xff]  }
  0x84   :  { %1835 = vmatpush1.bf16.msra.mxu1 %v3069_v31  ;;  %1795 = vmatprep.subr.bf16.mxu0 %v3074_v32  ;;  %v3158_v31 = vld [vmem:[%s4343_s1 + $0x10c] ss:$16 sps:$4 sm:$0xff]  }
  0x85   :  { %1836 = vmatprep.subr.bf16.mxu1 %v3077_v33  ;;  %1825 = vmatprep.mubr.bf16.mxu0 %v3533_v62  ;;  %v3089_v62 = vld [vmem:[%s4343_s1 + $0x28c] ss:$16 sps:$4 sm:$0xff]   ;;  %v3156_v33 = vld [vmem:[%s4343_s1 + $0x108] ss:$16 sps:$4 sm:$0xff]  }
  0x86   :  { %1866 = vmatprep.mubr.bf16.mxu1 %v3548_v3  ;;  %v3084_v3 = vld [vmem:[%s4343_s1 + $0x88] ss:$16 sps:$4 sm:$0xff]   ;;  %v3161_v32 = vld [vmem:[%s4343_s1 + $0x30c] ss:$16 sps:$4 sm:$0xff]  }
  0x87   :  { %1796 = vmatpush1.bf16.msra.mxu0 %v3072_v34  ;;  %v3159_v34 = vld [vmem:[%s4343_s1 + $0x308] ss:$16 sps:$4 sm:$0xff]  }
  0x88   :  { %1837 = vmatpush1.bf16.msra.mxu1 %v3075_v35  ;;  %1797 = vmatprep.subr.bf16.mxu0 %v3080_v36  ;;  %v3164_v35 = vld [vmem:[%s4343_s1 + $0x4ec] ss:$16 sps:$4 sm:$0xff]  }
  0x89   :  { %1838 = vmatprep.subr.bf16.mxu1 %v3083_v37  ;;  %v3167_v36 = vld [vmem:[%s4343_s1 + $0x6ec] ss:$16 sps:$4 sm:$0xff]   ;;  %v3162_v37 = vld [vmem:[%s4343_s1 + $0x4e8] ss:$16 sps:$4 sm:$0xff]  }
  0x8b   :  { %1798 = vmatpush1.bf16.msra.mxu0 %v3078_v38  ;;  %v3165_v38 = vld [vmem:[%s4343_s1 + $0x6e8] ss:$16 sps:$4 sm:$0xff]  }
  0x8c   :  { %1839 = vmatpush1.bf16.msra.mxu1 %v3081_v39  ;;  %1799 = vmatprep.subr.bf16.mxu0 %v3086_v40  ;;  %v3170_v39 = vld [vmem:[%s4343_s1 + $0x4cc] ss:$16 sps:$4 sm:$0xff]  }
  0x8d   :  { %1840 = vmatprep.subr.bf16.mxu1 %v3089_v62  ;;  %v3173_v40 = vld [vmem:[%s4343_s1 + $0x6cc] ss:$16 sps:$4 sm:$0xff]   ;;  %v3168_v62 = vld [vmem:[%s4343_s1 + $0x4c8] ss:$16 sps:$4 sm:$0xff]  }
  0x8f   :  { %1800 = vmatpush1.bf16.msra.mxu0 %v3084_v3  ;;  %v3171_v3 = vld [vmem:[%s4343_s1 + $0x6c8] ss:$16 sps:$4 sm:$0xff]  }
  0x90   :  { %1841 = vmatpush1.bf16.msra.mxu1 %v3087_v41  ;;  %1801 = vmatprep.subr.bf16.mxu0 %v3092_v42  ;;  %v3176_v41 = vld [vmem:[%s4343_s1 + $0x4ac] ss:$16 sps:$4 sm:$0xff]  }
  0x91   :  { %1842 = vmatprep.subr.bf16.mxu1 %v3095_v44  ;;  %v3179_v42 = vld [vmem:[%s4343_s1 + $0x6ac] ss:$16 sps:$4 sm:$0xff]  }
  0x92   :  { %v3182_v44 = vld [vmem:[%s4343_s1 + $0x48c] ss:$16 sps:$4 sm:$0xff]  }
  0x93   :  { %1802 = vmatpush1.bf16.msra.mxu0 %v3090_v45  ;;  %v3185_v45 = vld [vmem:[%s4343_s1 + $0x68c] ss:$16 sps:$4 sm:$0xff]  }
  0x94   :  { %1843 = vmatpush1.bf16.msra.mxu1 %v3093_v46  ;;  %1803 = vmatprep.subr.bf16.mxu0 %v3098_v47 }
  0x95   :  { %1844 = vmatprep.subr.bf16.mxu1 %v3101_v48 }
  0x97   :  { %1804 = vmatpush1.bf16.msra.mxu0 %v3096_v49 }
  0x98   :  { %1845 = vmatpush1.bf16.msra.mxu1 %v3099_v50  ;;  %1805 = vmatprep.subr.bf16.mxu0 %v3104_v51 }
  0x99   :  { %1846 = vmatprep.subr.bf16.mxu1 %v3107_v52 }
  0x9b   :  { %1806 = vmatpush1.bf16.msra.mxu0 %v3102_v53 }
  0x9c   :  { %1847 = vmatpush1.bf16.msra.mxu1 %v3105_v54  ;;  %1807 = vmatprep.subr.bf16.mxu0 %v3110_v55 }
  0x9d   :  { %1848 = vmatprep.subr.bf16.mxu1 %v3113_v56 }
  0x9f   :  { %1808 = vmatpush1.bf16.msra.mxu0 %v3108_v57 }
  0xa0   :  { %1849 = vmatpush1.bf16.msra.mxu1 %v3111_v58  ;;  %1809 = vmatprep.subr.bf16.mxu0 %v3116_v59 }
  0xa1   :  { %1850 = vmatprep.subr.bf16.mxu1 %v3119_v60 }
  0xa3   :  { %1810 = vmatpush2.bf16.msra.mxu0 %v3114_v61 }
  0xa4   :  { %1851 = vmatpush2.bf16.msra.mxu1 %v3117_v0  ;;  %1811 = vmatprep.subr.bf16.mxu0 %v3122_v1 }
  0xa5   :  { %1852 = vmatprep.subr.bf16.mxu1 %v3125_v2 }
  0xa7   :  { %1812 = vmatpush2.bf16.msra.mxu0 %v3120_v4 }
  0xa8   :  { %1853 = vmatpush2.bf16.msra.mxu1 %v3123_v5  ;;  %1813 = vmatprep.subr.bf16.mxu0 %v3128_v6 }
  0xa9   :  { %1854 = vmatprep.subr.bf16.mxu1 %v3131_v7 }
  0xab   :  { %1814 = vmatpush2.bf16.msra.mxu0 %v3126_v8 }
  0xac   :  { %1855 = vmatpush2.bf16.msra.mxu1 %v3129_v9  ;;  %1815 = vmatprep.subr.bf16.mxu0 %v3134_v10 }
  0xad   :  { %1856 = vmatprep.subr.bf16.mxu1 %v3137_v11 }
  0xaf   :  { %1816 = vmatpush2.bf16.msra.mxu0 %v3132_v12 }
  0xb0   :  { %1857 = vmatpush2.bf16.msra.mxu1 %v3135_v13  ;;  %1817 = vmatprep.subr.bf16.mxu0 %v3140_v15 }
  0xb1   :  { %1858 = vmatprep.subr.bf16.mxu1 %v3143_v16 }
  0xb3   :  { %1818 = vmatpush2.bf16.msra.mxu0 %v3138_v17 }
  0xb4   :  { %1859 = vmatpush2.bf16.msra.mxu1 %v3141_v20  ;;  %1819 = vmatprep.subr.bf16.mxu0 %v3146_v21 }
  0xb5   :  { %1860 = vmatprep.subr.bf16.mxu1 %v3149_v22 }
  0xb7   :  { %1820 = vmatpush2.bf16.msra.mxu0 %v3144_v23 }
  0xb8   :  { %1861 = vmatpush2.bf16.msra.mxu1 %v3147_v25  ;;  %1821 = vmatprep.subr.bf16.mxu0 %v3152_v26 }
  0xb9   :  { %1862 = vmatprep.subr.bf16.mxu1 %v3155_v27 }
  0xbb   :  { %1822 = vmatpush2.bf16.msra.mxu0 %v3150_v28 }
  0xbc   :  { %1863 = vmatpush2.bf16.msra.mxu1 %v3153_v30  ;;  %1823 = vmatprep.subr.bf16.mxu0 %v3158_v31 }
  0xbd   :  { %1864 = vmatprep.subr.bf16.mxu1 %v3161_v32 }
  0xbf   :  { %1824 = vmatpush2.bf16.msra.mxu0 %v3156_v33 }
  0xc0   :  { %1865 = vmatpush2.bf16.msra.mxu1 %v3159_v34  ;;  %1875 = vmatprep.subr.bf16.mxu0 %v3164_v35 }
  0xc1   :  { %1916 = vmatprep.subr.bf16.mxu1 %v3167_v36 }
  0xc2   :  { %1826 = vmatmul.mubr.bf16.vlgmr.msra.gmra.mxu0 %v3579_v14  ;;  %v3174_v14 = vld [vmem:[%s4343_s1 + $0x4a8] ss:$16 sps:$4 sm:$0xff]  }
  0xc3   :  { %1867 = vmatmul.mubr.bf16.vlgmr.msra.gmra.mxu1 %v3594_v19  ;;  %1876 = vmatpush1.bf16.msra.mxu0 %v3162_v37  ;;  %v3177_v19 = vld [vmem:[%s4343_s1 + $0x6a8] ss:$16 sps:$4 sm:$0xff]  }
  0xc4   :  { %1917 = vmatpush1.bf16.msra.mxu1 %v3165_v38  ;;  %1877 = vmatprep.subr.bf16.mxu0 %v3170_v39 }
  0xc5   :  { %1918 = vmatprep.subr.bf16.mxu1 %v3173_v40  ;;  %1907 = vmatprep.mubr.bf16.mxu0 %v3590_v18 }
  0xc6   :  { %1948 = vmatprep.mubr.bf16.mxu1 %v3610_v24 }
  0xc7   :  { %1878 = vmatpush1.bf16.msra.mxu0 %v3168_v62 }
  0xc8   :  { %1919 = vmatpush1.bf16.msra.mxu1 %v3171_v3  ;;  %1879 = vmatprep.subr.bf16.mxu0 %v3176_v41 }
  0xc9   :  { %1920 = vmatprep.subr.bf16.mxu1 %v3179_v42 }
  0xca   :  { %14 = vsyncpa [#allocation3], 0  ;;  %v3180_v18 = vld [vmem:[%s4343_s1 + $0x488] ss:$16 sps:$4 sm:$0xff]   ;;  %v3188_v46 = vld [vmem:[%s4343_s1 + $0x46c] ss:$16 sps:$4 sm:$0xff]  }
  0xcb   :  { %1880 = vmatpush1.bf16.msra.mxu0 %v3174_v14  ;;  %v3183_v24 = vld [vmem:[%s4343_s1 + $0x688] ss:$16 sps:$4 sm:$0xff]   ;;  %v3191_v47 = vld [vmem:[%s4343_s1 + $0x66c] ss:$16 sps:$4 sm:$0xff]   ;;  %v3260_v40 = vld [vmem:[%s4346_s4 + $0x70] sm:$0xff]   ;;  %vm3322_vm0 = vmmov 0  }
  0xcc   :  { %1921 = vmatpush1.bf16.msra.mxu1 %v3177_v19  ;;  %1881 = vmatprep.subr.bf16.mxu0 %v3182_v44  ;;  %v3186_v48 = vld [vmem:[%s4343_s1 + $0x468] ss:$16 sps:$4 sm:$0xff]   ;;  %v3194_v50 = vld [vmem:[%s4343_s1 + $0x44c] ss:$16 sps:$4 sm:$0xff]   ;;  %v3261_v42 = vld [vmem:[%s4346_s4 + $0x30] sm:$0xff]   ;;  %s3323_s13 = smov [#allocation2]  }
  0xcd   :  { %1922 = vmatprep.subr.bf16.mxu1 %v3185_v45  ;;  %v3189_v49 = vld [vmem:[%s4343_s1 + $0x668] ss:$16 sps:$4 sm:$0xff]   ;;  %v3197_v51 = vld [vmem:[%s4343_s1 + $0x64c] ss:$16 sps:$4 sm:$0xff]   ;;  %s2489_s14 = sshll.u32 %s3323_s13, 4  ;;  %s2490_s14 = int_to_ptr.vmem [resolvable:$true] %s2489_s14 }
  0xce   :  { %v3192_v52 = vld [vmem:[%s4343_s1 + $0x448] ss:$16 sps:$4 sm:$0xff]   ;;  %v3200_v54 = vld [vmem:[%s4343_s1 + $0x42c] ss:$16 sps:$4 sm:$0xff]   ;;  %p3303_p1 = scmp.lt.s32.totalorder %s2490_s14, %s2490_s14 }
  0xcf   :  { %1882 = vmatpush1.bf16.msra.mxu0 %v3180_v18  ;;  %v3195_v53 = vld [vmem:[%s4343_s1 + $0x648] ss:$16 sps:$4 sm:$0xff]   ;;  %v3203_v55 = vld [vmem:[%s4343_s1 + $0x62c] ss:$16 sps:$4 sm:$0xff]  }
  0xd0   :  { %1923 = vmatpush1.bf16.msra.mxu1 %v3183_v24  ;;  %1883 = vmatprep.subr.bf16.mxu0 %v3188_v46  ;;  %v3198_v56 = vld [vmem:[%s4343_s1 + $0x428] ss:$16 sps:$4 sm:$0xff]   ;;  %v3206_v58 = vld [vmem:[%s4343_s1 + $0x40c] ss:$16 sps:$4 sm:$0xff]  }
  0xd1   :  { %1924 = vmatprep.subr.bf16.mxu1 %v3191_v47  ;;  %v3201_v57 = vld [vmem:[%s4343_s1 + $0x628] ss:$16 sps:$4 sm:$0xff]   ;;  %v3209_v59 = vld [vmem:[%s4343_s1 + $0x60c] ss:$16 sps:$4 sm:$0xff]  }
  0xd2   :  { %v3204_v60 = vld [vmem:[%s4343_s1 + $0x408] ss:$16 sps:$4 sm:$0xff]   ;;  %v3212_v0 = vld [vmem:[%s4343_s1 + $0x5ec] ss:$16 sps:$4 sm:$0xff]  }
  0xd3   :  { %1884 = vmatpush1.bf16.msra.mxu0 %v3186_v48  ;;  %v3207_v61 = vld [vmem:[%s4343_s1 + $0x608] ss:$16 sps:$4 sm:$0xff]   ;;  %v3215_v1 = vld [vmem:[%s4343_s1 + $0x7ec] ss:$16 sps:$4 sm:$0xff]  }
  0xd4   :  { %1925 = vmatpush1.bf16.msra.mxu1 %v3189_v49  ;;  %1885 = vmatprep.subr.bf16.mxu0 %v3194_v50  ;;  %v3210_v2 = vld [vmem:[%s4343_s1 + $0x5e8] ss:$16 sps:$4 sm:$0xff]   ;;  %v3218_v5 = vld [vmem:[%s4343_s1 + $0x5cc] ss:$16 sps:$4 sm:$0xff]   ;;  %v3276_v49 = vld [vmem:[%s4346_s4 + $0xf0] sm:$0xff]  }
  0xd5   :  { %1926 = vmatprep.subr.bf16.mxu1 %v3197_v51  ;;  %v3213_v4 = vld [vmem:[%s4343_s1 + $0x7e8] ss:$16 sps:$4 sm:$0xff]   ;;  %v3221_v6 = vld [vmem:[%s4343_s1 + $0x7cc] ss:$16 sps:$4 sm:$0xff]   ;;  %v3265_v50 = vld [vmem:[%s4346_s4 + $0x20] sm:$0xff]  }
  0xd6   :  { %v3216_v7 = vld [vmem:[%s4343_s1 + $0x5c8] ss:$16 sps:$4 sm:$0xff]   ;;  %v3224_v9 = vld [vmem:[%s4343_s1 + $0x5ac] ss:$16 sps:$4 sm:$0xff]   ;;  %v3277_v51 = vld [vmem:[%s4346_s4 + $0xb0] sm:$0xff]  }
  0xd7   :  { %1886 = vmatpush1.bf16.msra.mxu0 %v3192_v52  ;;  %v3219_v8 = vld [vmem:[%s4343_s1 + $0x7c8] ss:$16 sps:$4 sm:$0xff]   ;;  %v3227_v10 = vld [vmem:[%s4343_s1 + $0x7ac] ss:$16 sps:$4 sm:$0xff]  }
  0xd8   :  { %1927 = vmatpush1.bf16.msra.mxu1 %v3195_v53  ;;  %1887 = vmatprep.subr.bf16.mxu0 %v3200_v54  ;;  %v3222_v11 = vld [vmem:[%s4343_s1 + $0x5a8] ss:$16 sps:$4 sm:$0xff]   ;;  %v3230_v13 = vld [vmem:[%s4343_s1 + $0x58c] ss:$16 sps:$4 sm:$0xff]  }
  0xd9   :  { %1928 = vmatprep.subr.bf16.mxu1 %v3203_v55  ;;  %v3225_v12 = vld [vmem:[%s4343_s1 + $0x7a8] ss:$16 sps:$4 sm:$0xff]   ;;  %v3233_v15 = vld [vmem:[%s4343_s1 + $0x78c] ss:$16 sps:$4 sm:$0xff]  }
  0xda   :  { %v3228_v16 = vld [vmem:[%s4343_s1 + $0x588] ss:$16 sps:$4 sm:$0xff]   ;;  %v3236_v20 = vld [vmem:[%s4343_s1 + $0x56c] ss:$16 sps:$4 sm:$0xff]  }
  0xdb   :  { %1888 = vmatpush1.bf16.msra.mxu0 %v3198_v56  ;;  %v3231_v17 = vld [vmem:[%s4343_s1 + $0x788] ss:$16 sps:$4 sm:$0xff]   ;;  %v3239_v21 = vld [vmem:[%s4343_s1 + $0x76c] ss:$16 sps:$4 sm:$0xff]   ;;  %v3268_v56 = vld [vmem:[%s4346_s4 + $0x50] sm:$0xff]  }
  0xdc   :  { %1929 = vmatpush1.bf16.msra.mxu1 %v3201_v57  ;;  %1889 = vmatprep.subr.bf16.mxu0 %v3206_v58  ;;  %v3234_v22 = vld [vmem:[%s4343_s1 + $0x568] ss:$16 sps:$4 sm:$0xff]   ;;  %v3242_v25 = vld [vmem:[%s4343_s1 + $0x54c] ss:$16 sps:$4 sm:$0xff]   ;;  %v3280_v57 = vld [vmem:[%s4346_s4 + $0xe0] sm:$0xff]  }
  0xdd   :  { %1930 = vmatprep.subr.bf16.mxu1 %v3209_v59  ;;  %v3237_v23 = vld [vmem:[%s4343_s1 + $0x768] ss:$16 sps:$4 sm:$0xff]   ;;  %v3245_v26 = vld [vmem:[%s4343_s1 + $0x74c] ss:$16 sps:$4 sm:$0xff]   ;;  %v3269_v58 = vld [vmem:[%s4346_s4 + $0x10] sm:$0xff]  }
  0xde   :  { %v3240_v27 = vld [vmem:[%s4343_s1 + $0x548] ss:$16 sps:$4 sm:$0xff]   ;;  %v3248_v30 = vld [vmem:[%s4343_s1 + $0x52c] ss:$16 sps:$4 sm:$0xff]   ;;  %v3281_v59 = vld [vmem:[%s4346_s4 + $0xa0] sm:$0xff]  }
  0xdf   :  { %1890 = vmatpush1.bf16.msra.mxu0 %v3204_v60  ;;  %v3243_v28 = vld [vmem:[%s4343_s1 + $0x748] ss:$16 sps:$4 sm:$0xff]   ;;  %v3251_v31 = vld [vmem:[%s4343_s1 + $0x72c] ss:$16 sps:$4 sm:$0xff]  }
  0xe0   :  { %1931 = vmatpush1.bf16.msra.mxu1 %v3207_v61  ;;  %1891 = vmatprep.subr.bf16.mxu0 %v3212_v0  ;;  %v3246_v32 = vld [vmem:[%s4343_s1 + $0x528] ss:$16 sps:$4 sm:$0xff]   ;;  %v3254_v34 = vld [vmem:[%s4343_s1 + $0x50c] ss:$16 sps:$4 sm:$0xff]   ;;  %v3272_v0 = vld [vmem:[%s4346_s4 + $0x40] sm:$0xff]  }
  0xe1   :  { %1932 = vmatprep.subr.bf16.mxu1 %v3215_v1  ;;  %v3249_v33 = vld [vmem:[%s4343_s1 + $0x728] ss:$16 sps:$4 sm:$0xff]   ;;  %v3257_v35 = vld [vmem:[%s4343_s1 + $0x70c] ss:$16 sps:$4 sm:$0xff]   ;;  %v3273_v1 = vld [vmem:[%s4346_s4] sm:$0xff]  }
  0xe2   :  { %v3252_v36 = vld [vmem:[%s4343_s1 + $0x508] ss:$16 sps:$4 sm:$0xff]  }
  0xe3   :  { %1892 = vmatpush2.bf16.msra.mxu0 %v3210_v2  ;;  %v3255_v37 = vld [vmem:[%s4343_s1 + $0x708] ss:$16 sps:$4 sm:$0xff]   ;;  %v1961_v2 = vsub.s32 0, %v3491_v43 }
  0xe4   :  { %1933 = vmatpush2.bf16.msra.mxu1 %v3213_v4  ;;  %1893 = vmatprep.subr.bf16.mxu0 %v3218_v5  ;;  %v3258_v38 = vld [vmem:[%s4346_s4 + $0x78] sm:$0xff]   ;;  %v3262_v44 = vld [vmem:[%s4346_s4 + $0x68] sm:$0xff]   ;;  %v4264_v4 = vld [vmem:[%s4344_s2] sm:$0xf] }
  0xe5   :  { %1934 = vmatprep.subr.bf16.mxu1 %v3221_v6  ;;  %v3259_v39 = vld [vmem:[%s4346_s4 + $0x38] sm:$0xff]   ;;  %v3278_v53 = vld [vmem:[%s4346_s4 + $0xe8] sm:$0xff]   ;;  %v1965_v6 = vsub.s32 1, %v3491_v43 }
  0xe6   :  { %v3274_v47 = vld [vmem:[%s4346_s4 + $0xf8] sm:$0xff]   ;;  %v3279_v55 = vld [vmem:[%s4346_s4 + $0xa8] sm:$0xff]  }
  0xe7   :  { %1894 = vmatpush2.bf16.msra.mxu0 %v3216_v7  ;;  %v3275_v48 = vld [vmem:[%s4346_s4 + $0xb8] sm:$0xff]   ;;  %v3270_v60 = vld [vmem:[%s4346_s4 + $0x48] sm:$0xff]  }
  0xe8   :  { %1935 = vmatpush2.bf16.msra.mxu1 %v3219_v8  ;;  %1895 = vmatprep.subr.bf16.mxu0 %v3224_v9  ;;  %v3266_v52 = vld [vmem:[%s4346_s4 + $0x58] sm:$0xff]   ;;  %v3271_v61 = vld [vmem:[%s4346_s4 + $0x8] sm:$0xff]  }
  0xe9   :  { %1936 = vmatprep.subr.bf16.mxu1 %v3227_v10  ;;  %v3267_v54 = vld [vmem:[%s4346_s4 + $0x18] sm:$0xff]   ;;  %v4276_v10 = vld [vmem:[%s4345_s3] sm:$0xf] }
  0xea   :  { %v3282_v5 = vld [vmem:[%s4346_s4 + $0xd8] sm:$0xff]  }
  0xeb   :  { %1896 = vmatpush2.bf16.msra.mxu0 %v3222_v11  ;;  %v3283_v7 = vld [vmem:[%s4346_s4 + $0x98] sm:$0xff]  }
  0xec   :  { %1937 = vmatpush2.bf16.msra.mxu1 %v3225_v12  ;;  %1897 = vmatprep.subr.bf16.mxu0 %v3230_v13  ;;  %v1962_v13 = vrot.slane %v4264_v4, %v1961_v2 }
  0xed   :  { %1938 = vmatprep.subr.bf16.mxu1 %v3233_v15 }
  0xef   :  { %1898 = vmatpush2.bf16.msra.mxu0 %v3228_v16 }
  0xf0   :  { %1939 = vmatpush2.bf16.msra.mxu1 %v3231_v17  ;;  %1899 = vmatprep.subr.bf16.mxu0 %v3236_v20  ;;  %v3284_v17 = vld [vmem:[%s4346_s4 + $0xd0] sm:$0xff]  }
  0xf1   :  { %1940 = vmatprep.subr.bf16.mxu1 %v3239_v21  ;;  %v1988_v21 = vrot.slane %v4276_v10, %v1961_v2 }
  0xf3   :  { %1900 = vmatpush2.bf16.msra.mxu0 %v3234_v22 }
  0xf4   :  { %1941 = vmatpush2.bf16.msra.mxu1 %v3237_v23  ;;  %1901 = vmatprep.subr.bf16.mxu0 %v3242_v25  ;;  %v1966_v23 = vrot.slane %v4264_v4, %v1965_v6  ;;  %v3285_v25 = vld [vmem:[%s4346_s4 + $0x90] sm:$0xff]  }
  0xf5   :  { %1942 = vmatprep.subr.bf16.mxu1 %v3245_v26 }
  0xf7   :  { %1902 = vmatpush2.bf16.msra.mxu0 %v3240_v27 }
  0xf8   :  { %1943 = vmatpush2.bf16.msra.mxu1 %v3243_v28  ;;  %1903 = vmatprep.subr.bf16.mxu0 %v3248_v30 }
  0xf9   :  { %1944 = vmatprep.subr.bf16.mxu1 %v3251_v31  ;;  %v1992_v31 = vrot.slane %v4276_v10, %v1965_v6 }
  0xfb   :  { %1904 = vmatpush2.bf16.msra.mxu0 %v3246_v32 }
  0xfc   :  { %1945 = vmatpush2.bf16.msra.mxu1 %v3249_v33  ;;  %1905 = vmatprep.subr.bf16.mxu0 %v3254_v34  ;;  %v3286_v34 = vld [vmem:[%s4346_s4 + $0xc8] sm:$0xff]  }
  0xfd   :  { %1946 = vmatprep.subr.bf16.mxu1 %v3257_v35 }
  0xff   :  { %1906 = vmatpush2.bf16.msra.mxu0 %v3252_v36 }
 0x100   :  { %1947 = vmatpush2.bf16.msra.mxu1 %v3255_v37  ;;  %2796 = vmatprep.subr.bf16.mxu0 %v3258_v38  ;;  %v3287_v37 = vld [vmem:[%s4346_s4 + $0x88] sm:$0xff]  }
 0x101   :  { %2818 = vmatprep.subr.bf16.mxu1 %v3274_v47  ;;  %v3290_v47 = vld [vmem:[%s4349_s7 + $0x38] sm:$0xff]  }
 0x102   :  { %v1663_v62 = vpop.f32.mrf.mxu0  ;;  %1908 = vmatmul.mubr.bf16.vlgmr.msra.gmra.mxu0 %v3535_v63  ;;  %v3263_v63 = vld [vmem:[%s4346_s4 + $0x28] sm:$0xff]  }
 0x103   :  { %v1704_v3 = vpop.f32.mrf.mxu1  ;;  %1949 = vmatmul.mubr.bf16.vlgmr.msra.gmra.mxu1 %v3798_v29  ;;  %2797 = vmatpush3.bf16.msra.mxu0 %v3259_v39  ;;  %v3264_v29 = vld [vmem:[%s4346_s4 + $0x60] sm:$0xff]  }
 0x104   :  { %v1705_v41 = vadd.f32 %v1704_v3, %v1663_v62  ;;  %v1665_v14 = vpop.f32.mrf.mxu0  ;;  %2798 = vmatprep.subr.bf16.mxu0 %v3260_v40  ;;  %2819 = vmatpush3.bf16.msra.mxu1 %v3275_v48  ;;  %v3288_v40 = vld [vmem:[%s4346_s4 + $0xc0] sm:$0xff]   ;;  %v3321_v48 = vmov 0.0  }
 0x105   :  { %v1706_v19 = vpop.f32.mrf.mxu1  ;;  %2820 = vmatprep.subr.bf16.mxu1 %v3276_v49  ;;  %v3289_v3 = vld [vmem:[%s4346_s4 + $0x80] sm:$0xff]   ;;  %v3291_v49 = vld [vmem:[%s4349_s7 + $0x30] sm:$0xff]  }
 0x106   :  { %v1667_v45 = vpop.f32.mrf.mxu0  ;;  %v1707_v11 = vadd.f32 %v1706_v19, %v1665_v14 }
 0x107   :  { %v1708_v18 = vpop.f32.mrf.mxu1  ;;  %2799 = vmatpush3.bf16.msra.mxu0 %v3261_v42 }
 0x108   :  { %v1668_v24 = vpop.f32.mrf.mxu0  ;;  %2800 = vmatprep.subr.bf16.mxu0 %v3262_v44  ;;  %2821 = vmatpush3.bf16.msra.mxu1 %v3277_v51  ;;  %v3293_v51 = vld [vmem:[%s4349_s7 + $0x20] sm:$0xff]  }
 0x109   :  { %v1709_v46 = vpop.f32.mrf.mxu1  ;;  %2822 = vmatprep.subr.bf16.mxu1 %v3278_v53  ;;  %v1973_v53 = vsub.s32 3, %v3491_v43 }
 0x10b   :  { %2801 = vmatpush3.bf16.msra.mxu0 %v3263_v63  ;;  %v1974_v2 = vrot.slane %v4264_v4, %v1973_v53 }
 0x10c   :  { %2802 = vmatprep.subr.bf16.mxu0 %v3264_v29  ;;  %2823 = vmatpush3.bf16.msra.mxu1 %v3279_v55 }
 0x10d   :  { %2824 = vmatprep.subr.bf16.mxu1 %v3280_v57 }
 0x10f   :  { %2803 = vmatpush3.bf16.msra.mxu0 %v3265_v50  ;;  %v3292_v50 = vld [vmem:[%s4349_s7 + $0x28] sm:$0xff]  }
 0x110   :  { %2804 = vmatprep.subr.bf16.mxu0 %v3266_v52  ;;  %2825 = vmatpush3.bf16.msra.mxu1 %v3281_v59  ;;  %v1969_v52 = vsub.s32 2, %v3491_v43  ;;  %v2000_v43 = vrot.slane %v4276_v10, %v1973_v53 }
 0x111   :  { %2826 = vmatprep.subr.bf16.mxu1 %v3282_v5 }
 0x113   :  { %2805 = vmatpush3.bf16.msra.mxu0 %v3267_v54 }
 0x114   :  { %2806 = vmatprep.subr.bf16.mxu0 %v3268_v56  ;;  %2827 = vmatpush3.bf16.msra.mxu1 %v3283_v7 }
 0x115   :  { %2828 = vmatprep.subr.bf16.mxu1 %v3284_v17 }
 0x117   :  { %2807 = vmatpush3.bf16.msra.mxu0 %v3269_v58  ;;  %v1970_v58 = vrot.slane %v4264_v4, %v1969_v52  ;;  %v3294_v4 = vld [vmem:[%s4349_s7 + $0x18] sm:$0xff]  }
 0x118   :  { %2808 = vmatprep.subr.bf16.mxu0 %v3270_v60  ;;  %2829 = vmatpush3.bf16.msra.mxu1 %v3285_v25 }
 0x119   :  { %2830 = vmatprep.subr.bf16.mxu1 %v3286_v34  ;;  %v2785_v34 = vld [vmem:[%s4347_s5] ss:$0 sm:$0xff]  ;;  %s3298_s5 = scalar_lea.vmem %s2490_s14, 32 }
 0x11a   :  { %p3299_p0 = scmp.ne.s32.totalorder %s2490_s14, %s3298_s5  ;;  %p3304_p2 = scmp.lt.s32.totalorder %s3298_s5, %s3298_s5 }
 0x11b   :  { %2809 = vmatpush3.bf16.msra.mxu0 %v3271_v61 }
 0x11c   :  { %2810 = vmatprep.subr.bf16.mxu0 %v3272_v0  ;;  %2831 = vmatpush3.bf16.msra.mxu1 %v3287_v37  ;;  %v1996_v0 = vrot.slane %v4276_v10, %v1969_v52  ;;  %v3295_v10 = vld [vmem:[%s4349_s7 + $0x10] sm:$0xff]   ;;  %v2786_v37 = vld [vmem:[%s4348_s6] ss:$0 sm:$0xff]  ;;  %p3305_p3 = por %p3304_p2, %p3303_p1 }
 0x11d   :  { %2832 = vmatprep.subr.bf16.mxu1 %v3288_v40 }
 0x11e   :  { %p3306_p4 = pnand %p3305_p3, %p3299_p0 }
 0x11f   :  { %2811 = vmatpush3.bf16.msra.mxu0 %v3273_v1 }
 0x120   :  { %2833 = vmatpush3.bf16.msra.mxu1 %v3289_v3  ;;  %2849 = vmatprep.subr.bf16.mxu0 %v3321_v48 }
 0x142   :  { %v1745_v8 = vpop.f32.mrf.mxu0 }
 0x143   :  { %v1786_v9 = vpop.f32.mrf.mxu1  ;;  %v1746_v12 = vadd.f32 %v1745_v8, %v1705_v41 }
 0x144   :  { %v1747_v15 = vpop.f32.mrf.mxu0 }
 0x145   :  { %v1788_v16 = vpop.f32.mrf.mxu1  ;;  %v1787_v20 = vadd.f32 %v1786_v9, %v1746_v12  ;;  %v1748_v22 = vadd.f32 %v1747_v15, %v1707_v11 }
 0x146   :  { %v1749_v26 = vpop.f32.mrf.mxu0 }
 0x147   :  { %v1790_v27 = vpop.f32.mrf.mxu1  ;;  %v1979_v28 = vmul.f32 %v1962_v13, %v1787_v20  ;;  %v1789_v30 = vadd.f32 %v1788_v16, %v1748_v22 }
 0x148   :  { %v1750_v32 = vpop.f32.mrf.mxu0 }
 0x149   :  { %v1791_v33 = vpop.f32.mrf.mxu1  ;;  %v2005_v35 = vadd.f32 %v1988_v21, %v1979_v28  ;;  %v1980_v36 = vmul.f32 %v1966_v23, %v1789_v30  ;;  %v3296_v28 = vld [vmem:[%s4349_s7 + $0x8] sm:$0xff]   ;;  %v3297_v30 = vld [vmem:[%s4349_s7] sm:$0xff]  }
 0x14b   :  { %v2006_v38 = vadd.f32 %v1992_v31, %v1980_v36  ;;  %v2009_v39 = vmax.f32 %v2005_v35, 0.0 }
 0x14d   :  { %v2010_v62 = vmax.f32 %v2006_v38, 0.0  ;;  %v2013_v42 = vpack.c.bf16 %v2009_v39, %v2009_v39 }
 0x14f   :  { %v2014_v41 = vpack.c.bf16 %v2010_v62, %v2010_v62 }
 0x151   :  { %2305 = vmatprep.mubr.bf16.mxu0 %v2014_v41  ;;  %v2787_v41 = vld [vmem:[%s4350_s8] ss:$0 sm:$0xff] }
 0x152   :  { %2306 = vmatmul.mubr.bf16.vlgmr.msra.gmra.mxu0 %v2013_v42 }
 0x153   :  { %2850 = vmatpush3.bf16.msra.mxu0 %v3290_v47  ;;  %2865 = vmatprep.mubr.msk.bf16.mxu0 %vm3322_vm0, %v3321_v48 }
 0x154   :  { %2851 = vmatprep.subr.bf16.mxu0 %v3321_v48 }
 0x157   :  { %2852 = vmatpush3.bf16.msra.mxu0 %v3291_v49 }
 0x158   :  { %2853 = vmatprep.subr.bf16.mxu0 %v3321_v48 }
 0x15b   :  { %2854 = vmatpush3.bf16.msra.mxu0 %v3292_v50 }
 0x15c   :  { %2855 = vmatprep.subr.bf16.mxu0 %v3321_v48 }
 0x15f   :  { %2856 = vmatpush3.bf16.msra.mxu0 %v3293_v51 }
 0x160   :  { %2857 = vmatprep.subr.bf16.mxu0 %v3321_v48 }
 0x163   :  { %2858 = vmatpush3.bf16.msra.mxu0 %v3294_v4 }
 0x164   :  { %2859 = vmatprep.subr.bf16.mxu0 %v3321_v48 }
 0x167   :  { %2860 = vmatpush3.bf16.msra.mxu0 %v3295_v10 }
 0x168   :  { %2861 = vmatprep.subr.bf16.mxu0 %v3321_v48 }
 0x16b   :  { %2862 = vmatpush3.bf16.msra.mxu0 %v3296_v28 }
 0x16c   :  { %2863 = vmatprep.subr.bf16.mxu0 %v3321_v48 }
 0x16f   :  { %2864 = vmatpush3.bf16.msra.mxu0 %v3297_v30 }
 0x182   :  { %v1827_v14 = vpop.f32.mrf.mxu0 }
 0x183   :  { %v1868_v19 = vpop.f32.mrf.mxu1 }
 0x184   :  { %v1869_v44 = vadd.f32 %v1868_v19, %v1827_v14  ;;  %v1829_v45 = vpop.f32.mrf.mxu0 }
 0x185   :  { %v1870_v18 = vpop.f32.mrf.mxu1 }
 0x186   :  { %v1831_v63 = vpop.f32.mrf.mxu0  ;;  %v1871_v56 = vadd.f32 %v1870_v18, %v1829_v45 }
 0x187   :  { %v1872_v29 = vpop.f32.mrf.mxu1 }
 0x188   :  { %v1832_v24 = vpop.f32.mrf.mxu0 }
 0x189   :  { %v1873_v46 = vpop.f32.mrf.mxu1 }
 0x1c2   :  { %v1909_v54 = vpop.f32.mrf.mxu0 }
 0x1c3   :  { %v1950_v55 = vpop.f32.mrf.mxu1  ;;  %v1910_v57 = vadd.f32 %v1909_v54, %v1869_v44 }
 0x1c4   :  { %v1911_v59 = vpop.f32.mrf.mxu0 }
 0x1c5   :  { %v1952_v60 = vpop.f32.mrf.mxu1  ;;  %v1951_v61 = vadd.f32 %v1950_v55, %v1910_v57  ;;  %v1912_v1 = vadd.f32 %v1911_v59, %v1871_v56 }
 0x1c6   :  { %v1913_v5 = vpop.f32.mrf.mxu0 }
 0x1c7   :  { %v1954_v6 = vpop.f32.mrf.mxu1  ;;  %v1981_v7 = vmul.f32 %v1970_v58, %v1951_v61  ;;  %v1953_v8 = vadd.f32 %v1952_v60, %v1912_v1 }
 0x1c8   :  { %v1914_v9 = vpop.f32.mrf.mxu0 }
 0x1c9   :  { %v1955_v11 = vpop.f32.mrf.mxu1  ;;  %v2007_v12 = vadd.f32 %v1996_v0, %v1981_v7  ;;  %v1982_v13 = vmul.f32 %v1974_v2, %v1953_v8 }
 0x1cb   :  { %v2008_v15 = vadd.f32 %v2000_v43, %v1982_v13  ;;  %v2011_v16 = vmax.f32 %v2007_v12, 0.0 }
 0x1cd   :  { %v2012_v17 = vmax.f32 %v2008_v15, 0.0  ;;  %v2015_v21 = vpack.c.bf16 %v2011_v16, %v2011_v16 }
 0x1cf   :  { %v2016_v20 = vpack.c.bf16 %v2012_v17, %v2012_v17 }
 0x1d1   :  { %2345 = vmatprep.mubr.bf16.mxu1 %v2016_v20 }
 0x1d2   :  { %2346 = vmatmul.mubr.bf16.vlgmr.msra.gmra.mxu1 %v2015_v21 }
 0x212   :  { %v2812_v22 = vpop.f32.mrf.mxu0 }
 0x214   :  { %v2813_v23 = vpop.f32.mrf.mxu0 }
 0x215   :  { %v2814_v25 = vadd.f32 %v2813_v23, %v2812_v22 }
 0x216   :  { %v2815_v26 = vpop.f32.mrf.mxu0 }
 0x218   :  { %v2816_v27 = vpop.f32.mrf.mxu0 }
 0x292   :  { %v2834_v31 = vpop.f32.mrf.mxu1 }
 0x294   :  { %v2835_v32 = vpop.f32.mrf.mxu1 }
 0x295   :  { %v2836_v33 = vadd.f32 %v2835_v32, %v2834_v31 }
 0x296   :  { %v2837_v35 = vpop.f32.mrf.mxu1 }
 0x297   :  { %v2348_v36 = vadd.f32 %v2836_v33, %v2814_v25 }
 0x298   :  { %v2838_v38 = vpop.f32.mrf.mxu1 }
 0x299   :  { %v2360_v39 = vmul.f32 %v2785_v34, %v2348_v36 }
 0x29b   :  { %v2368_v40 = vadd.f32 %v2786_v37, %v2360_v39 }
 0x29d   :  { %v2369_v62 = vmax.f32 %v2368_v40, 0.0 }
 0x29f   :  { %v2370_v3 = vpack.c.bf16 %v2369_v62, %v2369_v62 }
 0x2a1   :  { %2866 = vmatmul.mubr.bf16.vlgmr.msra.gmra.mxu0 %v2370_v3 }
 0x361   :  { %v2476_v42 = vpop.f32.mrf.mxu0 }
 0x362   :  { %v2477_v14 = vadd.f32 %v2787_v41, %v2476_v42 }
 0x363   :  { %v2867_v19 = vpop.f32.mrf.mxu0 }
 0x364   :  { %2482 = vst [vmem:[#allocation2] sm:$0x3] %v2477_v14 }
 0x365   :  { %v2479_v44 = vpop.f32.mrf.mxu0 }
 0x366   :  { %3309 = shalt.err (!%p3306_p4)
}
 0x367   :  { %2492 = dma.vmem_to_hbm [thread:$0]  %s2490_s14, 32, %s4351_s9, [#allocation3]   ;;  %v2868_v45 = vpop.f32.mrf.mxu0 }
 0x368   :  { %3318 = dma.done.wait [#allocation3], 32  }
 0x369   :  { %3319 = vsyncadd [#allocation3], 4294967264 }
 0x36a   :  { %2496 = vsyncpa [#allocation3], 1 }

// kernel: classifier_forward.8
= control target key start
LH: loop header
LB: loop body
LE: loop exit
PB: predicated region body
PF: predicated region fallthrough
CT: control target
= control target key end

     0   :  { %s9222_s0 = inlined_call_operand.vmem [shape: bf16[2,11264], index: 0, kind: input, shape index: {}]   ;;  %s9223_s1 = inlined_call_operand.hbm [shape: bf16[11264,1024], index: 1, kind: input, shape index: {}]   ;;  %s9224_s2 = inlined_call_operand.hbm [shape: f32[1,1024], index: 2, kind: input, shape index: {}]   ;;  %s9225_s3 = inlined_call_operand.hbm [shape: f32[1,1024], index: 3, kind: input, shape index: {}]   ;;  %s9226_s4 = inlined_call_operand.vmem [shape: bf16[2,1024], index: 4, kind: output, shape index: {}]  }
   0x1   :  { %9234 = sst [smem:[#allocation18_spill]] %s9224_s2 }
   0x2   :  { %9235 = sst [smem:[#allocation19_spill]] %s9225_s3 }
   0x3   :  { %9236 = sst [smem:[#allocation20_spill]] %s9226_s4 }
   0x4   :  { %9 = vsyncpa [#allocation4], 0 }
   0x5   :  { %11 = vsyncpa [#allocation4 + $0x1], 0 }
   0x6   :  { %12 = vsyncpa [#allocation6], 0 }
   0x7   :  { %14 = vsyncpa [#allocation6 + $0x1], 0  ;;  %s8040_s15 = smov 0   ;;  %s8042_s16 = smov 0  }
   0x8   :  { %s8044_s17 = smov 0   ;;  %s8046_s18 = smov 0  }
   0x9   :  { %s8048_s19 = smov 0   ;;  %s8050_s20 = smov 0  }
   0xa   :  { %s8052_s21 = smov 0   ;;  %s8054_s22 = smov 0  }
   0xb   :  { %s8056_s23 = smov 0   ;;  %s8058_s24 = smov 0  }
   0xc   :  { %s8060_s25 = smov 0  }
   0xd LB: > { %9237 = sst [smem:[#allocation10_spill]] %s7972_s17  ;;  %s9227_s26 = sadd.s32 4294967295, %s8004_s25   ;;  %s8004_s25 = sphi %s8060_s25, %s20_s25   ;;  %s8000_s24 = sphi %s8058_s24, %s9272_s24   ;;  %s7996_s23 = sphi %s8056_s23, %s9271_s23   ;;  %s7992_s22 = sphi %s8054_s22, %s9263_s22   ;;  %s7988_s21 = sphi %s8052_s21, %s9262_s21   ;;  %s7984_s20 = sphi %s8050_s20, %s9270_s20   ;;  %s7980_s19 = sphi %s8048_s19, %s9269_s19   ;;  %s7976_s18 = sphi %s8046_s18, %s9268_s18   ;;  %s7972_s17 = sphi %s8044_s17, %s9259_s17   ;;  %s7968_s16 = sphi %s8042_s16, %s9267_s16   ;;  %s7964_s15 = sphi %s8040_s15, %s9266_s15  }
   0xe   : > { %9238 = sst [smem:[#allocation11_spill]] %s7984_s20  ;;  %s29_s27 = sadd.s32 1, %s7996_s23 }
   0xf   : > { %9239 = sst [smem:[#allocation12_spill]] %s7996_s23  ;;  %p30_p0 = scmp.ge.s32.totalorder %s29_s27, 4 }
  0x10   : > { %9240 = sst [smem:[#allocation13_spill]] %s8000_s24  ;;  %s32_s28 = sadd.s32 1, %s8000_s24 }
  0x11   : > { %s67_s29 = sadd.s32 1, %s7984_s20  ;;  %p74_p1 = scmp.ne.s32.totalorder %s7984_s20, %s7980_s19 }
  0x12   : > { %s9274_s27 = smov (%p30_p0, %s29_s27), 0  ;;  %s9276_s28 = smov (!%p30_p0, %s32_s28), %s8000_s24 }
  0x13   : > { %9241 = sst [smem:[#allocation14_spill]] %s9274_s27  ;;  %s62_s30 = ssub.s32 %s7996_s23, %s9274_s27 }
  0x14   : > { %p75_p2 = scmp.eq.s32.totalorder %s8004_s25, 0  ;;  %p34_p3 = scmp.ge.s32.totalorder %s9276_s28, 2 }
  0x15   : > { %p80_p4 = scmp.ne.s32.totalorder %s7980_s19, %s7976_s18  ;;  %p8114_p6 = scmp.eq.s32.totalorder %s9227_s26, 0 }
  0x16   : > { %p8108_p5 = por %p75_p2, %p74_p1  ;;  %s9278_s28 = smov (%p34_p3, %s9276_s28), 0 }
  0x17   : > { %9244 = sst [smem:[#allocation15_spill]] %s9278_s28  ;;  %p8122_p7 = por %p8114_p6, %p80_p4 }
  0x18   : > { %s93_s8 = sadd.s32 1, %s7972_s17  ;;  %s63_s9 = ssub.s32 %s8000_s24, %s9278_s28 }
  0x19   : > { %p100_p8 = scmp.ne.s32.totalorder %s7972_s17, %s7968_s16  ;;  %s64_s10 = sor.u32 %s63_s9, %s62_s30 }
  0x1a   : > { %p91_p9 = scmp.eq.s32.totalorder %s63_s9, 0  ;;  %p65_p10 = scmp.eq.s32.totalorder %s64_s10, 0 }
  0x1b   : > { %p8133_p11 = por %p100_p8, %p75_p2  ;;  %p106_p12 = scmp.ne.s32.totalorder %s7968_s16, %s7964_s15 }
  0x1c   : > { %s8138_s12 = scalar_select %p91_p9, %s7972_s17, %s93_s8  }
  0x1d   : > { %s8141_s13 = scalar_select %p65_p10, %s7984_s20, %s67_s29  }
  0x1e   : > { %9247 = sst [smem:[#allocation16_spill]] %s8138_s12  ;;  %p6672_p13 = scmp.lt.s32.totalorder %s8004_s25, 8 }
  0x1f   : > { %9248 = sst [smem:[#allocation17_spill]] %s8141_s13  ;;  %s214_s14 = sand.u32 1, %s8004_s25  }
  0x20   : > { %p8149_p0 = por %p106_p12, %p8114_p6  ;;  %p8155_p1 = pnand %p6672_p13, %p8108_p5 }
  0x21   : > { %s216_s9 = sand.u32 1, %s7972_s17   ;;  %s6652_s8 = sshll.u32 %s8000_s24, 6 }
  0x22   : > { %s8160_s10 = sshll.u32 %s216_s9, 2  ;;  %s9251_s2 = sld [smem:[#allocation18_spill]] }
  0x23   : > { %s218_s28 = scalar_lea.vmem [#allocation5], %s8160_s10  ;;  %p8169_p2 = pnand %p6672_p13, %p8133_p11 }
  0x24   : > { %s226_s6 = sshll.u32 %s218_s28, 4  ;;  %s9253_s3 = sld [smem:[#allocation19_spill]]  ;;  %s227_s6 = int_to_ptr.vmem [resolvable:$true] %s226_s6 }
  0x25   : > { %p5936_p3 = scmp.ge.s32.totalorder %s8004_s25, 1  ;;  %s8179_s12 = scalar_lea.sflag [#allocation6], %s214_s14 }
  0x26   : > { %p7828_p4 = pneg %p8169_p2  ;;  %s7839_s26 = scalar_lea.vmem %s227_s6, 64 }
  0x27   : > { %p7840_p5 = scmp.ne.s32.totalorder %s227_s6, %s7839_s26  ;;  %s8006_s28 = smov [#allocation5]  }
  0x28   : > { %s224_s15 = scalar_lea.hbm %s9251_s2, %s6652_s8  ;;  %s7844_s11 = sshll.u32 %s8006_s28, 4  ;;  %s7845_s11 = int_to_ptr.vmem [resolvable:$false] %s7844_s11 }
  0x29   : > { %p7842_p6 = pnand %p7840_p5, %p7828_p4  ;;  %s7846_s29 = scalar_lea.vmem %s7845_s11, 128 }
  0x2a   : > { %s8176_s9 = scalar_lea.hbm %s9253_s3, %s6652_s8  ;;  %p7847_p9 = scmp.lt.s32.totalorder %s227_s6, %s7845_s11 }
  0x2b   : > { %p7843_p8 = pneg %p7842_p6  ;;  %p7848_p10 = scmp.lt.s32.totalorder %s7846_s29, %s7839_s26 }
  0x2d   : > { %p7849_p11 = por %p7848_p10, %p7847_p9 }
  0x2f   : > { %p7850_p12 = pnand %p7849_p11, %p7843_p8 }
  0x31   : > { %7853 = shalt.err (!%p7850_p12)
}
  0x32   : > { %6668 = dma.hbm_to_vmem [thread:$0]  (!%p8169_p2), %s224_s15, 64, %s227_s6, %s8179_s12  }
  0x33   : > { %p250_p13 = scmp.lt.s32.totalorder %s8004_s25, 9  ;;  %s190_s14 = sand.u32 1, %s7984_s20  }
  0x34   : > { %s5927_s8 = sshll.u32 %s8000_s24, 2  ;;  %s6654_s5 = smul.u32 5632, %s190_s14 }
  0x35   : > { %p8192_p5 = pnand %p5936_p3, %p250_p13  ;;  %s6651_s26 = smul.u32 2816, %s7996_s23 }
  0x36   : > { %s194_s11 = scalar_lea.vmem [#allocation3], %s6654_s5  ;;  %s191_s15 = scalar_lea.sflag [#allocation4], %s190_s14 }
  0x37   : > { %s201_s28 = sadd.s32 %s6651_s26, %s5927_s8  ;;  %s204_s29 = sshll.u32 %s194_s11, 4  ;;  %s205_s29 = int_to_ptr.vmem [resolvable:$true] %s204_s29 }
  0x38   : > { %s5929_s2 = sshll.u32 %s201_s28, 6  ;;  %p7856_p6 = pneg %p8155_p1 }
  0x39   : > { %s203_s4 = scalar_lea.hbm %s9223_s1, %s5929_s2  ;;  %s7867_s6 = scalar_lea.vmem %s205_s29, 90112 }
  0x3a   : > { %p7868_p3 = scmp.ne.s32.totalorder %s205_s29, %s7867_s6  ;;  %s8007_s20 = smov [#allocation3]  }
  0x3b   : > { %s7872_s24 = sshll.u32 %s8007_s20, 4  ;;  %s7873_s24 = int_to_ptr.vmem [resolvable:$false] %s7872_s24 }
  0x3c   : > { %p7870_p8 = pnand %p7868_p3, %p7856_p6  ;;  %s7874_s23 = scalar_lea.vmem %s7873_s24, 180224 }
  0x3d   : > { %p7875_p10 = scmp.lt.s32.totalorder %s205_s29, %s7873_s24  ;;  %p7876_p11 = scmp.lt.s32.totalorder %s7874_s23, %s7867_s6 }
  0x3e   : > { %p7871_p9 = pneg %p7870_p8 }
  0x3f   : > { %p7877_p12 = por %p7876_p11, %p7875_p10 }
  0x41   : > { %p7878_p13 = pnand %p7877_p12, %p7871_p9 }
  0x43   : > { %7881 = shalt.err (!%p7878_p13)
}
  0x44   : > { %s8008_s8 = smov 512   ;;  %s8009_s2 = smov 256  }
  0x45   : > { %s8010_s3 = smov 16   ;;  %s237_s17 = scalar_lea.vmem [#allocation7], %s8160_s10 }
  0x46   : > { %6665 = dma.hbm_to_vmem [thread:$0]  (!%p8155_p1), %s203_s4, 90112, %s205_s29, %s191_s15, %s8008_s8, %s8009_s2, %s8010_s3  }
  0x47   : > { %s245_s14 = sshll.u32 %s237_s17, 4  ;;  %s8011_s20 = smov [#allocation7]   ;;  %s246_s14 = int_to_ptr.vmem [resolvable:$true] %s245_s14 }
  0x48   : > { %s7895_s5 = scalar_lea.vmem %s246_s14, 64  ;;  %s7900_s23 = sshll.u32 %s8011_s20, 4  ;;  %s7901_s23 = int_to_ptr.vmem [resolvable:$false] %s7900_s23 }
  0x49   : > { %p7896_p6 = scmp.ne.s32.totalorder %s246_s14, %s7895_s5  ;;  %s7902_s24 = scalar_lea.vmem %s7901_s23, 128 }
  0x4a   : > { %p7903_p9 = scmp.lt.s32.totalorder %s246_s14, %s7901_s23  ;;  %p7904_p10 = scmp.lt.s32.totalorder %s7902_s24, %s7895_s5 }
  0x4b   : > { %p7898_p3 = pnand %p7896_p6, %p7828_p4 }
  0x4c   : > { %p7905_p11 = por %p7904_p10, %p7903_p9 }
  0x4d   : > { %p7899_p8 = pneg %p7898_p3 }
  0x4f   : > { %p7906_p12 = pnand %p7905_p11, %p7899_p8 }
  0x51   : > { %7909 = shalt.err (!%p7906_p12)
}
  0x52   : > { %6671 = dma.hbm_to_vmem [thread:$0]  (!%p8169_p2), %s8176_s9, 64, %s246_s14, %s8179_s12  }
  0x53   : > { %254 = sbr.rel (%p8192_p5) target bundleno = 1048 (0x418), region = 36  ;;  %s256_s4 = sand.u32 (!%p8192_p5), 1, %s7980_s19  }
  0x54   : > { %s6655_s30 = smul.u32 (!%p8192_p5), 5632, %s256_s4  ;;  %s257_s10 = scalar_lea.sflag (!%p8192_p5), [#allocation4], %s256_s4 }
  0x56   : > { %s8217_s26 = scalar_lea.vmem (!%p8192_p5), [#allocation3], %s6655_s30 }
  0x58   : > { %7955 = dma.done.wait (%p8122_p7), %s257_s10, 90112  }
  0x59   : > { %7957 = vsyncadd (%p8122_p7), %s257_s10, 4294877184  ;;  %s9255_s27 = sadd.s32 4294967295, %s8004_s25   ;;  %s267_s9 = sand.u32 1, %s7968_s16  }
  0x5a   : > { %s265_s12 = sand.u32 1, %s9255_s27   ;;  %s8226_s13 = sshll.u32 %s267_s9, 2 }
  0x5b   : > { %s266_s28 = scalar_lea.sflag [#allocation6], %s265_s12  ;;  %s269_s11 = scalar_lea.vmem [#allocation5], %s8226_s13 }
  0x5c   : > { %7959 = dma.done.wait (%p8149_p0), %s266_s28, 128  }
  0x5d   : > { %7961 = vsyncadd (%p8149_p0), %s266_s28, 4294967168  ;;  %s316_s7 = smul.u32 22, %s7988_s21  ;;  %s5939_s29 = sshll.u32 %s7992_s22, 2 }
  0x5e   : > { %p326_p1 = scmp.lt.s32.totalorder %s5939_s29, 7  ;;  %s9256_s18 = sld [smem:[#allocation20_spill]] }
  0x5f   : > { %p317_p7 = scmp.lt.s32.totalorder %s316_s7, 87  ;;  %s278_s14 = scalar_lea.vmem [#allocation7], %s8226_s13 }
  0x60   : > { %s9282_s29 = smov (!%p326_p1, %s5939_s29), 7  ;;  %p5940_p0 = scmp.ne.s32.totalorder %s7988_s21, 0 }
  0x61   : > { %s9280_s7 = smov (!%p317_p7, %s316_s7), 87 }
  0x62   : > { %s8240_s8 = scalar_lea.vmem %s9222_s0, %s9280_s7  ;;  %333 = sbr.rel (%p5940_p0) target bundleno = 105 (0x69), region = 52 }
  0x64   : > { %s328_s17 = scalar_lea.vmem %s9256_s18, %s9282_s29 }
  0x67   : > { %v8012_v0 = vmov 0.0  }
  0x68   : > { %334 = vst [vmem:[#allocation2] sm:$0xff] %v8012_v0 }
  0x69 PF: > { %v6767_v1 = vld [vmem:[%s8217_s26 + $0xe4] ss:$16 sps:$4 sm:$0xff]   ;;  %v6771_v3 = vld [vmem:[%s8217_s26 + $0xe0] ss:$16 sps:$4 sm:$0xff]   ;;  %v8013_v37 = vmov 1966171168   ;;  %v1050_v39 = vlaneseq }
  0x6a   : > { %v6769_v2 = vld [vmem:[%s8217_s26 + $0x2e4] ss:$16 sps:$4 sm:$0xff]   ;;  %4733 = vmatprep.subr.bf16.mxu0 %v6767_v1  ;;  %v6772_v4 = vld [vmem:[%s8217_s26 + $0x2e0] ss:$16 sps:$4 sm:$0xff]   ;;  %v1048_v38 = vunpack.c.l.s4 %v8013_v37  ;;  %v336_v53 = vld [vmem:[%s8240_s8] sm:$0xff]  ;;  %p6645_p2 = scmp.ne.s32.totalorder %s7988_s21, 3 }
  0x6b   : > { %4774 = vmatprep.subr.bf16.mxu1 %v6769_v2  ;;  %v6773_v5 = vld [vmem:[%s8217_s26 + $0xc4] ss:$16 sps:$4 sm:$0xff]   ;;  %4734 = vmatpush1.bf16.msra.mxu0 %v6771_v3  ;;  %v6777_v7 = vld [vmem:[%s8217_s26 + $0xc0] ss:$16 sps:$4 sm:$0xff]   ;;  %v8287_v44 = vshrl.u32 %v1050_v39, 7  ;;  %v1046_v2 = vcombine.high %v336_v53, %v336_v53 }
  0x6c   : > { %4775 = vmatpush1.bf16.msra.mxu1 %v6772_v4  ;;  %v6775_v6 = vld [vmem:[%s8217_s26 + $0x2c4] ss:$16 sps:$4 sm:$0xff]   ;;  %4735 = vmatprep.subr.bf16.mxu0 %v6773_v5  ;;  %v6778_v8 = vld [vmem:[%s8217_s26 + $0x2c0] ss:$16 sps:$4 sm:$0xff]   ;;  %v1049_v43 = vunpack.c.0.s8 %v1048_v38 }
  0x6d   : > { %4776 = vmatprep.subr.bf16.mxu1 %v6775_v6  ;;  %v6779_v9 = vld [vmem:[%s8217_s26 + $0xa4] ss:$16 sps:$4 sm:$0xff]   ;;  %v6783_v11 = vld [vmem:[%s8217_s26 + $0xa0] ss:$16 sps:$4 sm:$0xff]  }
  0x6e   : > { %v6781_v10 = vld [vmem:[%s8217_s26 + $0x2a4] ss:$16 sps:$4 sm:$0xff]   ;;  %v6784_v12 = vld [vmem:[%s8217_s26 + $0x2a0] ss:$16 sps:$4 sm:$0xff]   ;;  %v8295_v50 = vsub.s32 %v1049_v43, %v8287_v44 }
  0x6f   : > { %4736 = vmatpush1.bf16.msra.mxu0 %v6777_v7  ;;  %v6785_v13 = vld [vmem:[%s8217_s26 + $0x84] ss:$16 sps:$4 sm:$0xff]   ;;  %v6789_v15 = vld [vmem:[%s8217_s26 + $0x80] ss:$16 sps:$4 sm:$0xff]  }
  0x70   : > { %4777 = vmatpush1.bf16.msra.mxu1 %v6778_v8  ;;  %4737 = vmatprep.subr.bf16.mxu0 %v6779_v9  ;;  %v6787_v14 = vld [vmem:[%s8217_s26 + $0x284] ss:$16 sps:$4 sm:$0xff]   ;;  %v6790_v16 = vld [vmem:[%s8217_s26 + $0x280] ss:$16 sps:$4 sm:$0xff]   ;;  %v1053_v55 = vrot.slane %v336_v53, %v8295_v50  ;;  %v8323_v7 = vrot.slane %v1046_v2, %v8295_v50 }
  0x71   : > { %4778 = vmatprep.subr.bf16.mxu1 %v6781_v10  ;;  %v6791_v17 = vld [vmem:[%s8217_s26 + $0x64] ss:$16 sps:$4 sm:$0xff]   ;;  %v6795_v19 = vld [vmem:[%s8217_s26 + $0x60] ss:$16 sps:$4 sm:$0xff]  }
  0x72   : > { %v6793_v18 = vld [vmem:[%s8217_s26 + $0x264] ss:$16 sps:$4 sm:$0xff]   ;;  %v6796_v20 = vld [vmem:[%s8217_s26 + $0x260] ss:$16 sps:$4 sm:$0xff]   ;;  %v1061_v59 = vcombine.high %v1053_v55, %v1053_v55 }
  0x73   : > { %4738 = vmatpush1.bf16.msra.mxu0 %v6783_v11  ;;  %v6797_v21 = vld [vmem:[%s8217_s26 + $0x44] ss:$16 sps:$4 sm:$0xff]   ;;  %v6801_v23 = vld [vmem:[%s8217_s26 + $0x40] ss:$16 sps:$4 sm:$0xff]  }
  0x74   : > { %4779 = vmatpush1.bf16.msra.mxu1 %v6784_v12  ;;  %4739 = vmatprep.subr.bf16.mxu0 %v6785_v13  ;;  %v6799_v22 = vld [vmem:[%s8217_s26 + $0x244] ss:$16 sps:$4 sm:$0xff]   ;;  %v6802_v24 = vld [vmem:[%s8217_s26 + $0x240] ss:$16 sps:$4 sm:$0xff]   ;;  %v8307_v61 = vrot.slane %v1061_v59, %v8295_v50  ;;  %v1062_v12 = vcombine.high %v8323_v7, %v8323_v7 }
  0x75   : > { %4780 = vmatprep.subr.bf16.mxu1 %v6787_v14  ;;  %v6803_v25 = vld [vmem:[%s8217_s26 + $0x24] ss:$16 sps:$4 sm:$0xff]   ;;  %v6807_v27 = vld [vmem:[%s8217_s26 + $0x20] ss:$16 sps:$4 sm:$0xff]   ;;  %v8333_v14 = vrot.slane %v1053_v55, %v8295_v50 }
  0x76   : > { %v6805_v26 = vld [vmem:[%s8217_s26 + $0x224] ss:$16 sps:$4 sm:$0xff]   ;;  %v6808_v28 = vld [vmem:[%s8217_s26 + $0x220] ss:$16 sps:$4 sm:$0xff]   ;;  %v8314_v1 = vcombine.high %v8307_v61, %v8307_v61  ;;  %4765 = vmatprep.mubr.bf16.mxu0 %v8307_v61 }
  0x77   : > { %4740 = vmatpush1.bf16.msra.mxu0 %v6789_v15  ;;  %v6809_v29 = vld [vmem:[%s8217_s26 + $0x4] ss:$16 sps:$4 sm:$0xff]   ;;  %v6813_v31 = vld [vmem:[%s8217_s26] ss:$16 sps:$4 sm:$0xff]  }
  0x78   : > { %4781 = vmatpush1.bf16.msra.mxu1 %v6790_v16  ;;  %4741 = vmatprep.subr.bf16.mxu0 %v6791_v17  ;;  %v6811_v30 = vld [vmem:[%s8217_s26 + $0x204] ss:$16 sps:$4 sm:$0xff]   ;;  %v6814_v32 = vld [vmem:[%s8217_s26 + $0x200] ss:$16 sps:$4 sm:$0xff]  }
  0x79   : > { %4782 = vmatprep.subr.bf16.mxu1 %v6793_v18  ;;  %v6815_v33 = vld [vmem:[%s8217_s26 + $0x1e4] ss:$16 sps:$4 sm:$0xff]   ;;  %v6819_v35 = vld [vmem:[%s8217_s26 + $0x1e0] ss:$16 sps:$4 sm:$0xff]   ;;  %4806 = vmatprep.mubr.bf16.mxu1 %v8314_v1  ;;  %v8339_v18 = vrot.slane %v1062_v12, %v8295_v50 }
  0x7a   : > { %v6817_v34 = vld [vmem:[%s8217_s26 + $0x3e4] ss:$16 sps:$4 sm:$0xff]   ;;  %v6820_v36 = vld [vmem:[%s8217_s26 + $0x3e0] ss:$16 sps:$4 sm:$0xff]  }
  0x7b   : > { %4742 = vmatpush1.bf16.msra.mxu0 %v6795_v19  ;;  %v6821_v40 = vld [vmem:[%s8217_s26 + $0x1c4] ss:$16 sps:$4 sm:$0xff]   ;;  %v6825_v42 = vld [vmem:[%s8217_s26 + $0x1c0] ss:$16 sps:$4 sm:$0xff]   ;;  %v8343_v19 = vcombine.high %v8333_v14, %v8333_v14 }
  0x7c   : > { %4783 = vmatpush1.bf16.msra.mxu1 %v6796_v20  ;;  %4743 = vmatprep.subr.bf16.mxu0 %v6797_v21  ;;  %v6823_v41 = vld [vmem:[%s8217_s26 + $0x3c4] ss:$16 sps:$4 sm:$0xff]   ;;  %v6826_v45 = vld [vmem:[%s8217_s26 + $0x3c0] ss:$16 sps:$4 sm:$0xff]  }
  0x7d   : > { %4784 = vmatprep.subr.bf16.mxu1 %v6799_v22  ;;  %v6827_v46 = vld [vmem:[%s8217_s26 + $0x1a4] ss:$16 sps:$4 sm:$0xff]   ;;  %v6831_v48 = vld [vmem:[%s8217_s26 + $0x1a0] ss:$16 sps:$4 sm:$0xff]  }
  0x7e   : > { %v6829_v47 = vld [vmem:[%s8217_s26 + $0x3a4] ss:$16 sps:$4 sm:$0xff]   ;;  %v6832_v49 = vld [vmem:[%s8217_s26 + $0x3a0] ss:$16 sps:$4 sm:$0xff]  }
  0x7f   : > { %4744 = vmatpush1.bf16.msra.mxu0 %v6801_v23  ;;  %v6833_v51 = vld [vmem:[%s8217_s26 + $0x184] ss:$16 sps:$4 sm:$0xff]   ;;  %v6837_v54 = vld [vmem:[%s8217_s26 + $0x180] ss:$16 sps:$4 sm:$0xff]  }
  0x80   : > { %4785 = vmatpush1.bf16.msra.mxu1 %v6802_v24  ;;  %4745 = vmatprep.subr.bf16.mxu0 %v6803_v25  ;;  %v6835_v52 = vld [vmem:[%s8217_s26 + $0x384] ss:$16 sps:$4 sm:$0xff]   ;;  %v6838_v56 = vld [vmem:[%s8217_s26 + $0x380] ss:$16 sps:$4 sm:$0xff]   ;;  %v8351_v24 = vcombine.high %v8339_v18, %v8339_v18 }
  0x81   : > { %4786 = vmatprep.subr.bf16.mxu1 %v6805_v26  ;;  %v6839_v57 = vld [vmem:[%s8217_s26 + $0x164] ss:$16 sps:$4 sm:$0xff]   ;;  %v6843_v60 = vld [vmem:[%s8217_s26 + $0x160] ss:$16 sps:$4 sm:$0xff]  }
  0x82   : > { %v6841_v58 = vld [vmem:[%s8217_s26 + $0x364] ss:$16 sps:$4 sm:$0xff]   ;;  %v6844_v62 = vld [vmem:[%s8217_s26 + $0x360] ss:$16 sps:$4 sm:$0xff]  }
  0x83   : > { %4746 = vmatpush1.bf16.msra.mxu0 %v6807_v27  ;;  %v6845_v63 = vld [vmem:[%s8217_s26 + $0x144] ss:$16 sps:$4 sm:$0xff]   ;;  %v6849_v3 = vld [vmem:[%s8217_s26 + $0x140] ss:$16 sps:$4 sm:$0xff]  }
  0x84   : > { %4787 = vmatpush1.bf16.msra.mxu1 %v6808_v28  ;;  %4747 = vmatprep.subr.bf16.mxu0 %v6809_v29  ;;  %v6847_v0 = vld [vmem:[%s8217_s26 + $0x344] ss:$16 sps:$4 sm:$0xff]   ;;  %v6850_v4 = vld [vmem:[%s8217_s26 + $0x340] ss:$16 sps:$4 sm:$0xff]  }
  0x85   : > { %4788 = vmatprep.subr.bf16.mxu1 %v6811_v30  ;;  %v6851_v5 = vld [vmem:[%s8217_s26 + $0x124] ss:$16 sps:$4 sm:$0xff]   ;;  %v6855_v8 = vld [vmem:[%s8217_s26 + $0x120] ss:$16 sps:$4 sm:$0xff]  }
  0x86   : > { %v6853_v6 = vld [vmem:[%s8217_s26 + $0x324] ss:$16 sps:$4 sm:$0xff]   ;;  %v6856_v9 = vld [vmem:[%s8217_s26 + $0x320] ss:$16 sps:$4 sm:$0xff]  }
  0x87   : > { %4748 = vmatpush1.bf16.msra.mxu0 %v6813_v31  ;;  %v6857_v10 = vld [vmem:[%s8217_s26 + $0x104] ss:$16 sps:$4 sm:$0xff]   ;;  %v6861_v13 = vld [vmem:[%s8217_s26 + $0x100] ss:$16 sps:$4 sm:$0xff]  }
  0x88   : > { %4789 = vmatpush1.bf16.msra.mxu1 %v6814_v32  ;;  %4749 = vmatprep.subr.bf16.mxu0 %v6815_v33  ;;  %v6859_v11 = vld [vmem:[%s8217_s26 + $0x304] ss:$16 sps:$4 sm:$0xff]   ;;  %v6862_v15 = vld [vmem:[%s8217_s26 + $0x300] ss:$16 sps:$4 sm:$0xff]  }
  0x89   : > { %4790 = vmatprep.subr.bf16.mxu1 %v6817_v34  ;;  %v6865_v16 = vld [vmem:[%s8217_s26 + $0x4e4] ss:$16 sps:$4 sm:$0xff]   ;;  %v6863_v20 = vld [vmem:[%s8217_s26 + $0x4e0] ss:$16 sps:$4 sm:$0xff]  }
  0x8a   : > { %v6868_v17 = vld [vmem:[%s8217_s26 + $0x6e4] ss:$16 sps:$4 sm:$0xff]   ;;  %v6866_v21 = vld [vmem:[%s8217_s26 + $0x6e0] ss:$16 sps:$4 sm:$0xff]  }
  0x8b   : > { %4750 = vmatpush2.bf16.msra.mxu0 %v6819_v35  ;;  %v6871_v22 = vld [vmem:[%s8217_s26 + $0x4c4] ss:$16 sps:$4 sm:$0xff]   ;;  %v6869_v25 = vld [vmem:[%s8217_s26 + $0x4c0] ss:$16 sps:$4 sm:$0xff]  }
  0x8c   : > { %4791 = vmatpush2.bf16.msra.mxu1 %v6820_v36  ;;  %4751 = vmatprep.subr.bf16.mxu0 %v6821_v40  ;;  %v6874_v23 = vld [vmem:[%s8217_s26 + $0x6c4] ss:$16 sps:$4 sm:$0xff]   ;;  %v6872_v26 = vld [vmem:[%s8217_s26 + $0x6c0] ss:$16 sps:$4 sm:$0xff]  }
  0x8d   : > { %4792 = vmatprep.subr.bf16.mxu1 %v6823_v41  ;;  %v6877_v27 = vld [vmem:[%s8217_s26 + $0x4a4] ss:$16 sps:$4 sm:$0xff]   ;;  %v6875_v29 = vld [vmem:[%s8217_s26 + $0x4a0] ss:$16 sps:$4 sm:$0xff]  }
  0x8e   : > { %v6880_v28 = vld [vmem:[%s8217_s26 + $0x6a4] ss:$16 sps:$4 sm:$0xff]   ;;  %v6878_v30 = vld [vmem:[%s8217_s26 + $0x6a0] ss:$16 sps:$4 sm:$0xff]  }
  0x8f   : > { %4752 = vmatpush2.bf16.msra.mxu0 %v6825_v42  ;;  %v6883_v31 = vld [vmem:[%s8217_s26 + $0x484] ss:$16 sps:$4 sm:$0xff]   ;;  %v6881_v33 = vld [vmem:[%s8217_s26 + $0x480] ss:$16 sps:$4 sm:$0xff]  }
  0x90   : > { %4793 = vmatpush2.bf16.msra.mxu1 %v6826_v45  ;;  %4753 = vmatprep.subr.bf16.mxu0 %v6827_v46  ;;  %v6886_v32 = vld [vmem:[%s8217_s26 + $0x684] ss:$16 sps:$4 sm:$0xff]   ;;  %v6884_v34 = vld [vmem:[%s8217_s26 + $0x680] ss:$16 sps:$4 sm:$0xff]  }
  0x91   : > { %4794 = vmatprep.subr.bf16.mxu1 %v6829_v47  ;;  %v6889_v35 = vld [vmem:[%s8217_s26 + $0x464] ss:$16 sps:$4 sm:$0xff]   ;;  %v6887_v37 = vld [vmem:[%s8217_s26 + $0x460] ss:$16 sps:$4 sm:$0xff]  }
  0x92   : > { %v6892_v36 = vld [vmem:[%s8217_s26 + $0x664] ss:$16 sps:$4 sm:$0xff]   ;;  %v6890_v38 = vld [vmem:[%s8217_s26 + $0x660] ss:$16 sps:$4 sm:$0xff]  }
  0x93   : > { %4754 = vmatpush2.bf16.msra.mxu0 %v6831_v48  ;;  %v6895_v39 = vld [vmem:[%s8217_s26 + $0x444] ss:$16 sps:$4 sm:$0xff]   ;;  %v6893_v41 = vld [vmem:[%s8217_s26 + $0x440] ss:$16 sps:$4 sm:$0xff]  }
  0x94   : > { %4795 = vmatpush2.bf16.msra.mxu1 %v6832_v49  ;;  %4755 = vmatprep.subr.bf16.mxu0 %v6833_v51  ;;  %v6898_v40 = vld [vmem:[%s8217_s26 + $0x644] ss:$16 sps:$4 sm:$0xff]   ;;  %v6896_v42 = vld [vmem:[%s8217_s26 + $0x640] ss:$16 sps:$4 sm:$0xff]  }
  0x95   : > { %4796 = vmatprep.subr.bf16.mxu1 %v6835_v52  ;;  %v6901_v43 = vld [vmem:[%s8217_s26 + $0x424] ss:$16 sps:$4 sm:$0xff]   ;;  %v6899_v46 = vld [vmem:[%s8217_s26 + $0x420] ss:$16 sps:$4 sm:$0xff]  }
  0x96   : > { %v6904_v45 = vld [vmem:[%s8217_s26 + $0x624] ss:$16 sps:$4 sm:$0xff]   ;;  %v6902_v47 = vld [vmem:[%s8217_s26 + $0x620] ss:$16 sps:$4 sm:$0xff]  }
  0x97   : > { %4756 = vmatpush2.bf16.msra.mxu0 %v6837_v54  ;;  %v6907_v48 = vld [vmem:[%s8217_s26 + $0x404] ss:$16 sps:$4 sm:$0xff]   ;;  %v6905_v51 = vld [vmem:[%s8217_s26 + $0x400] ss:$16 sps:$4 sm:$0xff]  }
  0x98   : > { %4797 = vmatpush2.bf16.msra.mxu1 %v6838_v56  ;;  %4757 = vmatprep.subr.bf16.mxu0 %v6839_v57  ;;  %v6910_v49 = vld [vmem:[%s8217_s26 + $0x604] ss:$16 sps:$4 sm:$0xff]   ;;  %v6908_v52 = vld [vmem:[%s8217_s26 + $0x600] ss:$16 sps:$4 sm:$0xff]  }
  0x99   : > { %4798 = vmatprep.subr.bf16.mxu1 %v6841_v58  ;;  %v6913_v53 = vld [vmem:[%s8217_s26 + $0x5e4] ss:$16 sps:$4 sm:$0xff]   ;;  %v6911_v55 = vld [vmem:[%s8217_s26 + $0x5e0] ss:$16 sps:$4 sm:$0xff]  }
  0x9a   : > { %v6916_v54 = vld [vmem:[%s8217_s26 + $0x7e4] ss:$16 sps:$4 sm:$0xff]   ;;  %v6914_v56 = vld [vmem:[%s8217_s26 + $0x7e0] ss:$16 sps:$4 sm:$0xff]  }
  0x9b   : > { %4758 = vmatpush2.bf16.msra.mxu0 %v6843_v60  ;;  %v6919_v57 = vld [vmem:[%s8217_s26 + $0x5c4] ss:$16 sps:$4 sm:$0xff]   ;;  %v6917_v59 = vld [vmem:[%s8217_s26 + $0x5c0] ss:$16 sps:$4 sm:$0xff]  }
  0x9c   : > { %4799 = vmatpush2.bf16.msra.mxu1 %v6844_v62  ;;  %4759 = vmatprep.subr.bf16.mxu0 %v6845_v63  ;;  %v6922_v58 = vld [vmem:[%s8217_s26 + $0x7c4] ss:$16 sps:$4 sm:$0xff]   ;;  %v6920_v60 = vld [vmem:[%s8217_s26 + $0x7c0] ss:$16 sps:$4 sm:$0xff]  }
  0x9d   : > { %4800 = vmatprep.subr.bf16.mxu1 %v6847_v0  ;;  %v6925_v62 = vld [vmem:[%s8217_s26 + $0x5a4] ss:$16 sps:$4 sm:$0xff]   ;;  %v6923_v0 = vld [vmem:[%s8217_s26 + $0x5a0] ss:$16 sps:$4 sm:$0xff]  }
  0x9e   : > { %v6928_v63 = vld [vmem:[%s8217_s26 + $0x7a4] ss:$16 sps:$4 sm:$0xff]   ;;  %v6926_v2 = vld [vmem:[%s8217_s26 + $0x7a0] ss:$16 sps:$4 sm:$0xff]  }
  0x9f   : > { %4760 = vmatpush2.bf16.msra.mxu0 %v6849_v3  ;;  %v6931_v3 = vld [vmem:[%s8217_s26 + $0x584] ss:$16 sps:$4 sm:$0xff]  }
  0xa0   : > { %4801 = vmatpush2.bf16.msra.mxu1 %v6850_v4  ;;  %4761 = vmatprep.subr.bf16.mxu0 %v6851_v5  ;;  %v6934_v4 = vld [vmem:[%s8217_s26 + $0x784] ss:$16 sps:$4 sm:$0xff]   ;;  %v6929_v5 = vld [vmem:[%s8217_s26 + $0x580] ss:$16 sps:$4 sm:$0xff]  }
  0xa1   : > { %4802 = vmatprep.subr.bf16.mxu1 %v6853_v6  ;;  %v6932_v6 = vld [vmem:[%s8217_s26 + $0x780] ss:$16 sps:$4 sm:$0xff]   ;;  %v6943_v12 = vld [vmem:[%s8217_s26 + $0x544] ss:$16 sps:$4 sm:$0xff]  }
  0xa3   : > { %4762 = vmatpush2.bf16.msra.mxu0 %v6855_v8  ;;  %v6937_v8 = vld [vmem:[%s8217_s26 + $0x564] ss:$16 sps:$4 sm:$0xff]  }
  0xa4   : > { %4803 = vmatpush2.bf16.msra.mxu1 %v6856_v9  ;;  %4763 = vmatprep.subr.bf16.mxu0 %v6857_v10  ;;  %v6940_v9 = vld [vmem:[%s8217_s26 + $0x764] ss:$16 sps:$4 sm:$0xff]   ;;  %v6935_v10 = vld [vmem:[%s8217_s26 + $0x560] ss:$16 sps:$4 sm:$0xff]  }
  0xa5   : > { %4804 = vmatprep.subr.bf16.mxu1 %v6859_v11  ;;  %v6938_v11 = vld [vmem:[%s8217_s26 + $0x760] ss:$16 sps:$4 sm:$0xff]  }
  0xa7   : > { %4764 = vmatpush2.bf16.msra.mxu0 %v6861_v13  ;;  %v6946_v13 = vld [vmem:[%s8217_s26 + $0x744] ss:$16 sps:$4 sm:$0xff]  }
  0xa8   : > { %4805 = vmatpush2.bf16.msra.mxu1 %v6862_v15  ;;  %4815 = vmatprep.subr.bf16.mxu0 %v6865_v16  ;;  %v6941_v15 = vld [vmem:[%s8217_s26 + $0x540] ss:$16 sps:$4 sm:$0xff]  }
  0xa9   : > { %4856 = vmatprep.subr.bf16.mxu1 %v6868_v17  ;;  %v6944_v16 = vld [vmem:[%s8217_s26 + $0x740] ss:$16 sps:$4 sm:$0xff]   ;;  %v6949_v17 = vld [vmem:[%s8217_s26 + $0x524] ss:$16 sps:$4 sm:$0xff]  }
  0xaa   : > { %4766 = vmatmul.mubr.bf16.vlgmr.msra.gmra.mxu0 %v8333_v14 }
  0xab   : > { %4807 = vmatmul.mubr.bf16.vlgmr.msra.gmra.mxu1 %v8343_v19  ;;  %4816 = vmatpush1.bf16.msra.mxu0 %v6863_v20  ;;  %v6952_v20 = vld [vmem:[%s8217_s26 + $0x724] ss:$16 sps:$4 sm:$0xff]  }
  0xac   : > { %4857 = vmatpush1.bf16.msra.mxu1 %v6866_v21  ;;  %4817 = vmatprep.subr.bf16.mxu0 %v6871_v22  ;;  %v6947_v21 = vld [vmem:[%s8217_s26 + $0x520] ss:$16 sps:$4 sm:$0xff]  }
  0xad   : > { %4858 = vmatprep.subr.bf16.mxu1 %v6874_v23  ;;  %4847 = vmatprep.mubr.bf16.mxu0 %v8339_v18  ;;  %v6950_v22 = vld [vmem:[%s8217_s26 + $0x720] ss:$16 sps:$4 sm:$0xff]   ;;  %v6955_v23 = vld [vmem:[%s8217_s26 + $0x504] ss:$16 sps:$4 sm:$0xff]  }
  0xae   : > { %4888 = vmatprep.mubr.bf16.mxu1 %v8351_v24 }
  0xaf   : > { %4818 = vmatpush1.bf16.msra.mxu0 %v6869_v25  ;;  %v6958_v25 = vld [vmem:[%s8217_s26 + $0x704] ss:$16 sps:$4 sm:$0xff]  }
  0xb0   : > { %4859 = vmatpush1.bf16.msra.mxu1 %v6872_v26  ;;  %4819 = vmatprep.subr.bf16.mxu0 %v6877_v27  ;;  %v6953_v26 = vld [vmem:[%s8217_s26 + $0x500] ss:$16 sps:$4 sm:$0xff]   ;;  %v8416_v27 = vrot.slane %v8323_v7, %v8295_v50 }
  0xb1   : > { %4860 = vmatprep.subr.bf16.mxu1 %v6880_v28  ;;  %v6956_v28 = vld [vmem:[%s8217_s26 + $0x700] ss:$16 sps:$4 sm:$0xff]  }
  0xb2   : > { %v6963_v7 = vld [vmem:[%s8217_s26 + $0xae0] ss:$16 sps:$4 sm:$0xff]  }
  0xb3   : > { %4820 = vmatpush1.bf16.msra.mxu0 %v6875_v29  ;;  %v6962_v29 = vld [vmem:[%s8217_s26 + $0x8e4] ss:$16 sps:$4 sm:$0xff]  }
  0xb4   : > { %4861 = vmatpush1.bf16.msra.mxu1 %v6878_v30  ;;  %4821 = vmatprep.subr.bf16.mxu0 %v6883_v31  ;;  %v6965_v30 = vld [vmem:[%s8217_s26 + $0xae4] ss:$16 sps:$4 sm:$0xff]   ;;  %v8423_v31 = vcombine.high %v8416_v27, %v8416_v27 }
  0xb5   : > { %4862 = vmatprep.subr.bf16.mxu1 %v6886_v32  ;;  %v6960_v32 = vld [vmem:[%s8217_s26 + $0x8e0] ss:$16 sps:$4 sm:$0xff]  }
  0xb7   : > { %4822 = vmatpush1.bf16.msra.mxu0 %v6881_v33  ;;  %v8428_v33 = vld [vmem:[%s8240_s8 + $0x8] sm:$0xff] }
  0xb8   : > { %4863 = vmatpush1.bf16.msra.mxu1 %v6884_v34  ;;  %4823 = vmatprep.subr.bf16.mxu0 %v6889_v35  ;;  %v6968_v34 = vld [vmem:[%s8217_s26 + $0x8c4] ss:$16 sps:$4 sm:$0xff]  }
  0xb9   : > { %4864 = vmatprep.subr.bf16.mxu1 %v6892_v36  ;;  %v6971_v35 = vld [vmem:[%s8217_s26 + $0xac4] ss:$16 sps:$4 sm:$0xff]   ;;  %v8434_v36 = vrot.slane %v8428_v33, %v8295_v50 }
  0xbb   : > { %4824 = vmatpush1.bf16.msra.mxu0 %v6887_v37  ;;  %v1110_v37 = vcombine.high %v8434_v36, %v8434_v36 }
  0xbc   : > { %4865 = vmatpush1.bf16.msra.mxu1 %v6890_v38  ;;  %4825 = vmatprep.subr.bf16.mxu0 %v6895_v39  ;;  %v6966_v38 = vld [vmem:[%s8217_s26 + $0x8c0] ss:$16 sps:$4 sm:$0xff]  }
  0xbd   : > { %4866 = vmatprep.subr.bf16.mxu1 %v6898_v40  ;;  %v6969_v39 = vld [vmem:[%s8217_s26 + $0xac0] ss:$16 sps:$4 sm:$0xff]   ;;  %v6974_v40 = vld [vmem:[%s8217_s26 + $0x8a4] ss:$16 sps:$4 sm:$0xff]  }
  0xbf   : > { %4826 = vmatpush1.bf16.msra.mxu0 %v6893_v41  ;;  %v6977_v41 = vld [vmem:[%s8217_s26 + $0xaa4] ss:$16 sps:$4 sm:$0xff]  }
  0xc0   : > { %4867 = vmatpush1.bf16.msra.mxu1 %v6896_v42  ;;  %4827 = vmatprep.subr.bf16.mxu0 %v6901_v43  ;;  %v8445_v42 = vrot.slane %v1110_v37, %v8295_v50  ;;  %v7038_v37 = vld [vmem:[%s8217_s26 + $0x940] ss:$16 sps:$4 sm:$0xff]  }
  0xc1   : > { %4868 = vmatprep.subr.bf16.mxu1 %v6904_v45  ;;  %v6972_v45 = vld [vmem:[%s8217_s26 + $0x8a0] ss:$16 sps:$4 sm:$0xff]  }
  0xc2   : > { %v8450_v43 = vcombine.high %v8445_v42, %v8445_v42 }
  0xc3   : > { %4828 = vmatpush1.bf16.msra.mxu0 %v6899_v46  ;;  %v6975_v46 = vld [vmem:[%s8217_s26 + $0xaa0] ss:$16 sps:$4 sm:$0xff]  }
  0xc4   : > { %4869 = vmatpush1.bf16.msra.mxu1 %v6902_v47  ;;  %4829 = vmatprep.subr.bf16.mxu0 %v6907_v48  ;;  %v6980_v47 = vld [vmem:[%s8217_s26 + $0x884] ss:$16 sps:$4 sm:$0xff]  }
  0xc5   : > { %4870 = vmatprep.subr.bf16.mxu1 %v6910_v49  ;;  %v6983_v48 = vld [vmem:[%s8217_s26 + $0xa84] ss:$16 sps:$4 sm:$0xff]   ;;  %v6978_v49 = vld [vmem:[%s8217_s26 + $0x880] ss:$16 sps:$4 sm:$0xff]  }
  0xc7   : > { %4830 = vmatpush1.bf16.msra.mxu0 %v6905_v51  ;;  %v6981_v51 = vld [vmem:[%s8217_s26 + $0xa80] ss:$16 sps:$4 sm:$0xff]  }
  0xc8   : > { %4871 = vmatpush1.bf16.msra.mxu1 %v6908_v52  ;;  %4831 = vmatprep.subr.bf16.mxu0 %v6913_v53  ;;  %v6986_v52 = vld [vmem:[%s8217_s26 + $0x864] ss:$16 sps:$4 sm:$0xff]  }
  0xc9   : > { %4872 = vmatprep.subr.bf16.mxu1 %v6916_v54  ;;  %v6989_v53 = vld [vmem:[%s8217_s26 + $0xa64] ss:$16 sps:$4 sm:$0xff]   ;;  %v6984_v54 = vld [vmem:[%s8217_s26 + $0x860] ss:$16 sps:$4 sm:$0xff]  }
  0xcb   : > { %4832 = vmatpush2.bf16.msra.mxu0 %v6911_v55  ;;  %v6987_v55 = vld [vmem:[%s8217_s26 + $0xa60] ss:$16 sps:$4 sm:$0xff]  }
  0xcc   : > { %4873 = vmatpush2.bf16.msra.mxu1 %v6914_v56  ;;  %4833 = vmatprep.subr.bf16.mxu0 %v6919_v57  ;;  %v6992_v56 = vld [vmem:[%s8217_s26 + $0x844] ss:$16 sps:$4 sm:$0xff]  }
  0xcd   : > { %4874 = vmatprep.subr.bf16.mxu1 %v6922_v58  ;;  %v6995_v57 = vld [vmem:[%s8217_s26 + $0xa44] ss:$16 sps:$4 sm:$0xff]   ;;  %v6990_v58 = vld [vmem:[%s8217_s26 + $0x840] ss:$16 sps:$4 sm:$0xff]  }
  0xcf   : > { %4834 = vmatpush2.bf16.msra.mxu0 %v6917_v59  ;;  %v6993_v59 = vld [vmem:[%s8217_s26 + $0xa40] ss:$16 sps:$4 sm:$0xff]  }
  0xd0   : > { %4875 = vmatpush2.bf16.msra.mxu1 %v6920_v60  ;;  %4835 = vmatprep.subr.bf16.mxu0 %v6925_v62  ;;  %v6998_v60 = vld [vmem:[%s8217_s26 + $0x824] ss:$16 sps:$4 sm:$0xff]  }
  0xd1   : > { %4876 = vmatprep.subr.bf16.mxu1 %v6928_v63  ;;  %v7001_v62 = vld [vmem:[%s8217_s26 + $0xa24] ss:$16 sps:$4 sm:$0xff]   ;;  %v6996_v63 = vld [vmem:[%s8217_s26 + $0x820] ss:$16 sps:$4 sm:$0xff]  }
  0xd3   : > { %4836 = vmatpush2.bf16.msra.mxu0 %v6923_v0  ;;  %v6999_v0 = vld [vmem:[%s8217_s26 + $0xa20] ss:$16 sps:$4 sm:$0xff]  }
  0xd4   : > { %4877 = vmatpush2.bf16.msra.mxu1 %v6926_v2  ;;  %4837 = vmatprep.subr.bf16.mxu0 %v6931_v3  ;;  %v7004_v2 = vld [vmem:[%s8217_s26 + $0x804] ss:$16 sps:$4 sm:$0xff]  }
  0xd5   : > { %4878 = vmatprep.subr.bf16.mxu1 %v6934_v4  ;;  %v7007_v3 = vld [vmem:[%s8217_s26 + $0xa04] ss:$16 sps:$4 sm:$0xff]   ;;  %v7002_v4 = vld [vmem:[%s8217_s26 + $0x800] ss:$16 sps:$4 sm:$0xff]  }
  0xd7   : > { %4838 = vmatpush2.bf16.msra.mxu0 %v6929_v5  ;;  %v7005_v5 = vld [vmem:[%s8217_s26 + $0xa00] ss:$16 sps:$4 sm:$0xff]  }
  0xd8   : > { %4879 = vmatpush2.bf16.msra.mxu1 %v6932_v6  ;;  %4839 = vmatprep.subr.bf16.mxu0 %v6937_v8  ;;  %v7010_v6 = vld [vmem:[%s8217_s26 + $0x9e4] ss:$16 sps:$4 sm:$0xff]  }
  0xd9   : > { %4880 = vmatprep.subr.bf16.mxu1 %v6940_v9  ;;  %v7013_v8 = vld [vmem:[%s8217_s26 + $0xbe4] ss:$16 sps:$4 sm:$0xff]   ;;  %v7008_v9 = vld [vmem:[%s8217_s26 + $0x9e0] ss:$16 sps:$4 sm:$0xff]  }
  0xdb   : > { %4840 = vmatpush2.bf16.msra.mxu0 %v6935_v10  ;;  %v7011_v10 = vld [vmem:[%s8217_s26 + $0xbe0] ss:$16 sps:$4 sm:$0xff]  }
  0xdc   : > { %4881 = vmatpush2.bf16.msra.mxu1 %v6938_v11  ;;  %4841 = vmatprep.subr.bf16.mxu0 %v6943_v12  ;;  %v7016_v11 = vld [vmem:[%s8217_s26 + $0x9c4] ss:$16 sps:$4 sm:$0xff]  }
  0xdd   : > { %4882 = vmatprep.subr.bf16.mxu1 %v6946_v13  ;;  %v7019_v12 = vld [vmem:[%s8217_s26 + $0xbc4] ss:$16 sps:$4 sm:$0xff]   ;;  %v7014_v13 = vld [vmem:[%s8217_s26 + $0x9c0] ss:$16 sps:$4 sm:$0xff]  }
  0xdf   : > { %4842 = vmatpush2.bf16.msra.mxu0 %v6941_v15  ;;  %v7017_v15 = vld [vmem:[%s8217_s26 + $0xbc0] ss:$16 sps:$4 sm:$0xff]  }
  0xe0   : > { %4883 = vmatpush2.bf16.msra.mxu1 %v6944_v16  ;;  %4843 = vmatprep.subr.bf16.mxu0 %v6949_v17  ;;  %v7022_v16 = vld [vmem:[%s8217_s26 + $0x9a4] ss:$16 sps:$4 sm:$0xff]  }
  0xe1   : > { %4884 = vmatprep.subr.bf16.mxu1 %v6952_v20  ;;  %v7025_v17 = vld [vmem:[%s8217_s26 + $0xba4] ss:$16 sps:$4 sm:$0xff]   ;;  %v7020_v20 = vld [vmem:[%s8217_s26 + $0x9a0] ss:$16 sps:$4 sm:$0xff]  }
  0xe3   : > { %4844 = vmatpush2.bf16.msra.mxu0 %v6947_v21  ;;  %v7023_v21 = vld [vmem:[%s8217_s26 + $0xba0] ss:$16 sps:$4 sm:$0xff]  }
  0xe4   : > { %4885 = vmatpush2.bf16.msra.mxu1 %v6950_v22  ;;  %4845 = vmatprep.subr.bf16.mxu0 %v6955_v23  ;;  %v7028_v22 = vld [vmem:[%s8217_s26 + $0x984] ss:$16 sps:$4 sm:$0xff]  }
  0xe5   : > { %4886 = vmatprep.subr.bf16.mxu1 %v6958_v25  ;;  %v7031_v23 = vld [vmem:[%s8217_s26 + $0xb84] ss:$16 sps:$4 sm:$0xff]   ;;  %v7026_v25 = vld [vmem:[%s8217_s26 + $0x980] ss:$16 sps:$4 sm:$0xff]  }
  0xe7   : > { %4846 = vmatpush2.bf16.msra.mxu0 %v6953_v26  ;;  %v7029_v26 = vld [vmem:[%s8217_s26 + $0xb80] ss:$16 sps:$4 sm:$0xff]  }
  0xe8   : > { %4887 = vmatpush2.bf16.msra.mxu1 %v6956_v28  ;;  %4897 = vmatprep.subr.bf16.mxu0 %v6962_v29  ;;  %v7034_v28 = vld [vmem:[%s8217_s26 + $0x964] ss:$16 sps:$4 sm:$0xff]  }
  0xe9   : > { %4938 = vmatprep.subr.bf16.mxu1 %v6965_v30  ;;  %v7037_v29 = vld [vmem:[%s8217_s26 + $0xb64] ss:$16 sps:$4 sm:$0xff]   ;;  %v7032_v30 = vld [vmem:[%s8217_s26 + $0x960] ss:$16 sps:$4 sm:$0xff]  }
  0xea   : > { %4848 = vmatmul.mubr.bf16.vlgmr.msra.gmra.mxu0 %v8416_v27 }
  0xeb   : > { %4889 = vmatmul.mubr.bf16.vlgmr.msra.gmra.mxu1 %v8423_v31  ;;  %4898 = vmatpush1.bf16.msra.mxu0 %v6960_v32  ;;  %v7035_v32 = vld [vmem:[%s8217_s26 + $0xb60] ss:$16 sps:$4 sm:$0xff]  }
  0xec   : > { %4939 = vmatpush1.bf16.msra.mxu1 %v6963_v7  ;;  %4899 = vmatprep.subr.bf16.mxu0 %v6968_v34  ;;  %v7040_v7 = vld [vmem:[%s8217_s26 + $0x944] ss:$16 sps:$4 sm:$0xff]  }
  0xed   : > { %4940 = vmatprep.subr.bf16.mxu1 %v6971_v35  ;;  %4929 = vmatprep.mubr.bf16.mxu0 %v8445_v42  ;;  %v7043_v34 = vld [vmem:[%s8217_s26 + $0xb44] ss:$16 sps:$4 sm:$0xff]   ;;  %v1095_v35 = vcombine.high %v8428_v33, %v8428_v33  ;;  %v7044_v33 = vld [vmem:[%s8217_s26 + $0x920] ss:$16 sps:$4 sm:$0xff]  }
  0xee   : > { %4970 = vmatprep.mubr.bf16.mxu1 %v8450_v43 }
  0xef   : > { %4900 = vmatpush1.bf16.msra.mxu0 %v6966_v38  ;;  %v7041_v38 = vld [vmem:[%s8217_s26 + $0xb40] ss:$16 sps:$4 sm:$0xff]  }
  0xf0   : > { %4941 = vmatpush1.bf16.msra.mxu1 %v6969_v39  ;;  %4901 = vmatprep.subr.bf16.mxu0 %v6974_v40  ;;  %v7046_v39 = vld [vmem:[%s8217_s26 + $0x924] ss:$16 sps:$4 sm:$0xff]  }
  0xf1   : > { %4942 = vmatprep.subr.bf16.mxu1 %v6977_v41  ;;  %v7049_v40 = vld [vmem:[%s8217_s26 + $0xb24] ss:$16 sps:$4 sm:$0xff]   ;;  %v8504_v41 = vrot.slane %v1095_v35, %v8295_v50  ;;  %v7107_v35 = vld [vmem:[%s8217_s26 + $0xfe0] ss:$16 sps:$4 sm:$0xff]  }
  0xf3   : > { %4902 = vmatpush1.bf16.msra.mxu0 %v6972_v45  ;;  %v7047_v45 = vld [vmem:[%s8217_s26 + $0xb20] ss:$16 sps:$4 sm:$0xff]  }
  0xf4   : > { %4943 = vmatpush1.bf16.msra.mxu1 %v6975_v46  ;;  %4903 = vmatprep.subr.bf16.mxu0 %v6980_v47  ;;  %v7052_v46 = vld [vmem:[%s8217_s26 + $0x904] ss:$16 sps:$4 sm:$0xff]  }
  0xf5   : > { %4944 = vmatprep.subr.bf16.mxu1 %v6983_v48  ;;  %v7055_v47 = vld [vmem:[%s8217_s26 + $0xb04] ss:$16 sps:$4 sm:$0xff]   ;;  %v1111_v48 = vcombine.high %v8504_v41, %v8504_v41 }
  0xf7   : > { %4904 = vmatpush1.bf16.msra.mxu0 %v6978_v49  ;;  %v8514_v49 = vrot.slane %v8434_v36, %v8295_v50  ;;  %v7056_v36 = vld [vmem:[%s8217_s26 + $0xce0] ss:$16 sps:$4 sm:$0xff]  }
  0xf8   : > { %4945 = vmatpush1.bf16.msra.mxu1 %v6981_v51  ;;  %4905 = vmatprep.subr.bf16.mxu0 %v6986_v52  ;;  %v7050_v51 = vld [vmem:[%s8217_s26 + $0x900] ss:$16 sps:$4 sm:$0xff]  }
  0xf9   : > { %4946 = vmatprep.subr.bf16.mxu1 %v6989_v53  ;;  %v7053_v52 = vld [vmem:[%s8217_s26 + $0xb00] ss:$16 sps:$4 sm:$0xff]   ;;  %v7058_v53 = vld [vmem:[%s8217_s26 + $0xce4] ss:$16 sps:$4 sm:$0xff]  }
  0xfb   : > { %4906 = vmatpush1.bf16.msra.mxu0 %v6984_v54  ;;  %v7061_v54 = vld [vmem:[%s8217_s26 + $0xee4] ss:$16 sps:$4 sm:$0xff]  }
  0xfc   : > { %4947 = vmatpush1.bf16.msra.mxu1 %v6987_v55  ;;  %4907 = vmatprep.subr.bf16.mxu0 %v6992_v56  ;;  %v8521_v55 = vrot.slane %v1111_v48, %v8295_v50  ;;  %v8525_v56 = vcombine.high %v8514_v49, %v8514_v49  ;;  %v7124_v48 = vld [vmem:[%s8217_s26 + $0xd84] ss:$16 sps:$4 sm:$0xff]  }
  0xfd   : > { %4948 = vmatprep.subr.bf16.mxu1 %v6995_v57  ;;  %v7059_v57 = vld [vmem:[%s8217_s26 + $0xee0] ss:$16 sps:$4 sm:$0xff]  }
  0xff   : > { %4908 = vmatpush1.bf16.msra.mxu0 %v6990_v58  ;;  %v7064_v58 = vld [vmem:[%s8217_s26 + $0xcc4] ss:$16 sps:$4 sm:$0xff]  }
 0x100   : > { %4949 = vmatpush1.bf16.msra.mxu1 %v6993_v59  ;;  %4909 = vmatprep.subr.bf16.mxu0 %v6998_v60  ;;  %v7067_v59 = vld [vmem:[%s8217_s26 + $0xec4] ss:$16 sps:$4 sm:$0xff]   ;;  %v8533_v60 = vcombine.high %v8521_v55, %v8521_v55 }
 0x101   : > { %4950 = vmatprep.subr.bf16.mxu1 %v7001_v62  ;;  %v7062_v62 = vld [vmem:[%s8217_s26 + $0xcc0] ss:$16 sps:$4 sm:$0xff]  }
 0x103   : > { %4910 = vmatpush1.bf16.msra.mxu0 %v6996_v63  ;;  %v7065_v63 = vld [vmem:[%s8217_s26 + $0xec0] ss:$16 sps:$4 sm:$0xff]  }
 0x104   : > { %4951 = vmatpush1.bf16.msra.mxu1 %v6999_v0  ;;  %4911 = vmatprep.subr.bf16.mxu0 %v7004_v2  ;;  %v7070_v0 = vld [vmem:[%s8217_s26 + $0xca4] ss:$16 sps:$4 sm:$0xff]  }
 0x105   : > { %4952 = vmatprep.subr.bf16.mxu1 %v7007_v3  ;;  %v7073_v2 = vld [vmem:[%s8217_s26 + $0xea4] ss:$16 sps:$4 sm:$0xff]   ;;  %v7068_v3 = vld [vmem:[%s8217_s26 + $0xca0] ss:$16 sps:$4 sm:$0xff]  }
 0x107   : > { %4912 = vmatpush1.bf16.msra.mxu0 %v7002_v4  ;;  %v7071_v4 = vld [vmem:[%s8217_s26 + $0xea0] ss:$16 sps:$4 sm:$0xff]  }
 0x108   : > { %4953 = vmatpush1.bf16.msra.mxu1 %v7005_v5  ;;  %4913 = vmatprep.subr.bf16.mxu0 %v7010_v6  ;;  %v7076_v5 = vld [vmem:[%s8217_s26 + $0xc84] ss:$16 sps:$4 sm:$0xff]  }
 0x109   : > { %4954 = vmatprep.subr.bf16.mxu1 %v7013_v8  ;;  %v7079_v6 = vld [vmem:[%s8217_s26 + $0xe84] ss:$16 sps:$4 sm:$0xff]   ;;  %v7074_v8 = vld [vmem:[%s8217_s26 + $0xc80] ss:$16 sps:$4 sm:$0xff]  }
 0x10b   : > { %4914 = vmatpush2.bf16.msra.mxu0 %v7008_v9  ;;  %v7077_v9 = vld [vmem:[%s8217_s26 + $0xe80] ss:$16 sps:$4 sm:$0xff]  }
 0x10c   : > { %4955 = vmatpush2.bf16.msra.mxu1 %v7011_v10  ;;  %4915 = vmatprep.subr.bf16.mxu0 %v7016_v11  ;;  %v7082_v10 = vld [vmem:[%s8217_s26 + $0xc64] ss:$16 sps:$4 sm:$0xff]  }
 0x10d   : > { %4956 = vmatprep.subr.bf16.mxu1 %v7019_v12  ;;  %v7085_v11 = vld [vmem:[%s8217_s26 + $0xe64] ss:$16 sps:$4 sm:$0xff]   ;;  %v7080_v12 = vld [vmem:[%s8217_s26 + $0xc60] ss:$16 sps:$4 sm:$0xff]  }
 0x10f   : > { %4916 = vmatpush2.bf16.msra.mxu0 %v7014_v13  ;;  %v7083_v13 = vld [vmem:[%s8217_s26 + $0xe60] ss:$16 sps:$4 sm:$0xff]  }
 0x110   : > { %4957 = vmatpush2.bf16.msra.mxu1 %v7017_v15  ;;  %4917 = vmatprep.subr.bf16.mxu0 %v7022_v16  ;;  %v7088_v15 = vld [vmem:[%s8217_s26 + $0xc44] ss:$16 sps:$4 sm:$0xff]  }
 0x111   : > { %4958 = vmatprep.subr.bf16.mxu1 %v7025_v17  ;;  %v7091_v16 = vld [vmem:[%s8217_s26 + $0xe44] ss:$16 sps:$4 sm:$0xff]   ;;  %v7086_v17 = vld [vmem:[%s8217_s26 + $0xc40] ss:$16 sps:$4 sm:$0xff]  }
 0x113   : > { %4918 = vmatpush2.bf16.msra.mxu0 %v7020_v20  ;;  %v7089_v20 = vld [vmem:[%s8217_s26 + $0xe40] ss:$16 sps:$4 sm:$0xff]  }
 0x114   : > { %4959 = vmatpush2.bf16.msra.mxu1 %v7023_v21  ;;  %4919 = vmatprep.subr.bf16.mxu0 %v7028_v22  ;;  %v7094_v21 = vld [vmem:[%s8217_s26 + $0xc24] ss:$16 sps:$4 sm:$0xff]  }
 0x115   : > { %4960 = vmatprep.subr.bf16.mxu1 %v7031_v23  ;;  %v7097_v22 = vld [vmem:[%s8217_s26 + $0xe24] ss:$16 sps:$4 sm:$0xff]   ;;  %v7092_v23 = vld [vmem:[%s8217_s26 + $0xc20] ss:$16 sps:$4 sm:$0xff]  }
 0x117   : > { %4920 = vmatpush2.bf16.msra.mxu0 %v7026_v25  ;;  %v7095_v25 = vld [vmem:[%s8217_s26 + $0xe20] ss:$16 sps:$4 sm:$0xff]  }
 0x118   : > { %4961 = vmatpush2.bf16.msra.mxu1 %v7029_v26  ;;  %4921 = vmatprep.subr.bf16.mxu0 %v7034_v28  ;;  %v7100_v26 = vld [vmem:[%s8217_s26 + $0xc04] ss:$16 sps:$4 sm:$0xff]  }
 0x119   : > { %4962 = vmatprep.subr.bf16.mxu1 %v7037_v29  ;;  %v7103_v28 = vld [vmem:[%s8217_s26 + $0xe04] ss:$16 sps:$4 sm:$0xff]   ;;  %v7098_v29 = vld [vmem:[%s8217_s26 + $0xc00] ss:$16 sps:$4 sm:$0xff]  }
 0x11b   : > { %4922 = vmatpush2.bf16.msra.mxu0 %v7032_v30  ;;  %v7101_v30 = vld [vmem:[%s8217_s26 + $0xe00] ss:$16 sps:$4 sm:$0xff]  }
 0x11c   : > { %4963 = vmatpush2.bf16.msra.mxu1 %v7035_v32  ;;  %4923 = vmatprep.subr.bf16.mxu0 %v7040_v7  ;;  %v7106_v32 = vld [vmem:[%s8217_s26 + $0xde4] ss:$16 sps:$4 sm:$0xff]  }
 0x11d   : > { %4964 = vmatprep.subr.bf16.mxu1 %v7043_v34  ;;  %v7109_v7 = vld [vmem:[%s8217_s26 + $0xfe4] ss:$16 sps:$4 sm:$0xff]   ;;  %v7104_v34 = vld [vmem:[%s8217_s26 + $0xde0] ss:$16 sps:$4 sm:$0xff]  }
 0x11f   : > { %4924 = vmatpush2.bf16.msra.mxu0 %v7038_v37  ;;  %v7112_v37 = vld [vmem:[%s8217_s26 + $0xdc4] ss:$16 sps:$4 sm:$0xff]  }
 0x120   : > { %4965 = vmatpush2.bf16.msra.mxu1 %v7041_v38  ;;  %4925 = vmatprep.subr.bf16.mxu0 %v7046_v39  ;;  %v7115_v38 = vld [vmem:[%s8217_s26 + $0xfc4] ss:$16 sps:$4 sm:$0xff]   ;;  %v7110_v39 = vld [vmem:[%s8217_s26 + $0xdc0] ss:$16 sps:$4 sm:$0xff]  }
 0x121   : > { %4966 = vmatprep.subr.bf16.mxu1 %v7049_v40  ;;  %v7113_v40 = vld [vmem:[%s8217_s26 + $0xfc0] ss:$16 sps:$4 sm:$0xff]  }
 0x123   : > { %4926 = vmatpush2.bf16.msra.mxu0 %v7044_v33  ;;  %v7118_v33 = vld [vmem:[%s8217_s26 + $0xda4] ss:$16 sps:$4 sm:$0xff]  }
 0x124   : > { %4967 = vmatpush2.bf16.msra.mxu1 %v7047_v45  ;;  %4927 = vmatprep.subr.bf16.mxu0 %v7052_v46  ;;  %v7121_v45 = vld [vmem:[%s8217_s26 + $0xfa4] ss:$16 sps:$4 sm:$0xff]   ;;  %v7116_v46 = vld [vmem:[%s8217_s26 + $0xda0] ss:$16 sps:$4 sm:$0xff]  }
 0x125   : > { %4968 = vmatprep.subr.bf16.mxu1 %v7055_v47  ;;  %v7119_v47 = vld [vmem:[%s8217_s26 + $0xfa0] ss:$16 sps:$4 sm:$0xff]  }
 0x127   : > { %4928 = vmatpush2.bf16.msra.mxu0 %v7050_v51  ;;  %v7127_v51 = vld [vmem:[%s8217_s26 + $0xf84] ss:$16 sps:$4 sm:$0xff]  }
 0x128   : > { %4969 = vmatpush2.bf16.msra.mxu1 %v7053_v52  ;;  %4979 = vmatprep.subr.bf16.mxu0 %v7058_v53  ;;  %v7122_v52 = vld [vmem:[%s8217_s26 + $0xd80] ss:$16 sps:$4 sm:$0xff]  }
 0x129   : > { %5020 = vmatprep.subr.bf16.mxu1 %v7061_v54  ;;  %v7125_v53 = vld [vmem:[%s8217_s26 + $0xf80] ss:$16 sps:$4 sm:$0xff]   ;;  %v7130_v54 = vld [vmem:[%s8217_s26 + $0xd64] ss:$16 sps:$4 sm:$0xff]  }
 0x12a   : > { %4930 = vmatmul.mubr.bf16.vlgmr.msra.gmra.mxu0 %v8514_v49 }
 0x12b   : > { %4971 = vmatmul.mubr.bf16.vlgmr.msra.gmra.mxu1 %v8525_v56  ;;  %4980 = vmatpush1.bf16.msra.mxu0 %v7056_v36  ;;  %v7133_v36 = vld [vmem:[%s8217_s26 + $0xf64] ss:$16 sps:$4 sm:$0xff]  }
 0x12c   : > { %5021 = vmatpush1.bf16.msra.mxu1 %v7059_v57  ;;  %4981 = vmatprep.subr.bf16.mxu0 %v7064_v58  ;;  %v7128_v57 = vld [vmem:[%s8217_s26 + $0xd60] ss:$16 sps:$4 sm:$0xff]  }
 0x12d   : > { %5022 = vmatprep.subr.bf16.mxu1 %v7067_v59  ;;  %5011 = vmatprep.mubr.bf16.mxu0 %v8521_v55  ;;  %v7131_v58 = vld [vmem:[%s8217_s26 + $0xf60] ss:$16 sps:$4 sm:$0xff]   ;;  %v7136_v59 = vld [vmem:[%s8217_s26 + $0xd44] ss:$16 sps:$4 sm:$0xff]  }
 0x12e   : > { %5052 = vmatprep.mubr.bf16.mxu1 %v8533_v60 }
 0x12f   : > { %4982 = vmatpush1.bf16.msra.mxu0 %v7062_v62  ;;  %v7139_v62 = vld [vmem:[%s8217_s26 + $0xf44] ss:$16 sps:$4 sm:$0xff]  }
 0x130   : > { %5023 = vmatpush1.bf16.msra.mxu1 %v7065_v63  ;;  %4983 = vmatprep.subr.bf16.mxu0 %v7070_v0  ;;  %v7134_v63 = vld [vmem:[%s8217_s26 + $0xd40] ss:$16 sps:$4 sm:$0xff]   ;;  %v8589_v0 = vld [vmem:[%s8240_s8 + $0x10] sm:$0x3f] }
 0x131   : > { %5024 = vmatprep.subr.bf16.mxu1 %v7073_v2  ;;  %v7137_v2 = vld [vmem:[%s8217_s26 + $0xf40] ss:$16 sps:$4 sm:$0xff]  }
 0x133   : > { %4984 = vmatpush1.bf16.msra.mxu0 %v7068_v3  ;;  %v7142_v3 = vld [vmem:[%s8217_s26 + $0xd24] ss:$16 sps:$4 sm:$0xff]  }
 0x134   : > { %5025 = vmatpush1.bf16.msra.mxu1 %v7071_v4  ;;  %4985 = vmatprep.subr.bf16.mxu0 %v7076_v5  ;;  %v7145_v4 = vld [vmem:[%s8217_s26 + $0xf24] ss:$16 sps:$4 sm:$0xff]   ;;  %v8596_v5 = vrot.slane %v8589_v0, %v8295_v50 }
 0x135   : > { %5026 = vmatprep.subr.bf16.mxu1 %v7079_v6  ;;  %v7140_v6 = vld [vmem:[%s8217_s26 + $0xd20] ss:$16 sps:$4 sm:$0xff]  }
 0x137   : > { %4986 = vmatpush1.bf16.msra.mxu0 %v7074_v8  ;;  %v7143_v8 = vld [vmem:[%s8217_s26 + $0xf20] ss:$16 sps:$4 sm:$0xff]  }
 0x138   : > { %5027 = vmatpush1.bf16.msra.mxu1 %v7077_v9  ;;  %4987 = vmatprep.subr.bf16.mxu0 %v7082_v10  ;;  %v7148_v9 = vld [vmem:[%s8217_s26 + $0xd04] ss:$16 sps:$4 sm:$0xff]  }
 0x139   : > { %5028 = vmatprep.subr.bf16.mxu1 %v7085_v11  ;;  %v7151_v10 = vld [vmem:[%s8217_s26 + $0xf04] ss:$16 sps:$4 sm:$0xff]   ;;  %v1159_v11 = vcombine.high %v8596_v5, %v8596_v5 }
 0x13b   : > { %4988 = vmatpush1.bf16.msra.mxu0 %v7080_v12  ;;  %v7146_v12 = vld [vmem:[%s8217_s26 + $0xd00] ss:$16 sps:$4 sm:$0xff]  }
 0x13c   : > { %5029 = vmatpush1.bf16.msra.mxu1 %v7083_v13  ;;  %4989 = vmatprep.subr.bf16.mxu0 %v7088_v15  ;;  %v8607_v13 = vrot.slane %v8504_v41, %v8295_v50  ;;  %v7149_v15 = vld [vmem:[%s8217_s26 + $0xf00] ss:$16 sps:$4 sm:$0xff]  }
 0x13d   : > { %5030 = vmatprep.subr.bf16.mxu1 %v7091_v16  ;;  %v7155_v16 = vld [vmem:[%s8217_s26 + $0x10e4] ss:$16 sps:$4 sm:$0xff]   ;;  %v7156_v41 = vld [vmem:[%s8217_s26 + $0x12e0] ss:$16 sps:$4 sm:$0xff]  }
 0x13f   : > { %4990 = vmatpush1.bf16.msra.mxu0 %v7086_v17  ;;  %v7158_v17 = vld [vmem:[%s8217_s26 + $0x12e4] ss:$16 sps:$4 sm:$0xff]  }
 0x140   : > { %5031 = vmatpush1.bf16.msra.mxu1 %v7089_v20  ;;  %4991 = vmatprep.subr.bf16.mxu0 %v7094_v21  ;;  %v8613_v20 = vrot.slane %v1159_v11, %v8295_v50  ;;  %v8617_v21 = vcombine.high %v8607_v13, %v8607_v13  ;;  %v7200_v11 = vld [vmem:[%s8217_s26 + $0x1204] ss:$16 sps:$4 sm:$0xff]  }
 0x141   : > { %5032 = vmatprep.subr.bf16.mxu1 %v7097_v22  ;;  %v7153_v22 = vld [vmem:[%s8217_s26 + $0x10e0] ss:$16 sps:$4 sm:$0xff]  }
 0x143   : > { %4992 = vmatpush1.bf16.msra.mxu0 %v7092_v23  ;;  %v7161_v23 = vld [vmem:[%s8217_s26 + $0x10c4] ss:$16 sps:$4 sm:$0xff]  }
 0x144   : > { %5033 = vmatpush1.bf16.msra.mxu1 %v7095_v25  ;;  %4993 = vmatprep.subr.bf16.mxu0 %v7100_v26  ;;  %v7164_v25 = vld [vmem:[%s8217_s26 + $0x12c4] ss:$16 sps:$4 sm:$0xff]   ;;  %v8625_v26 = vcombine.high %v8613_v20, %v8613_v20 }
 0x145   : > { %5034 = vmatprep.subr.bf16.mxu1 %v7103_v28 }
 0x147   : > { %4994 = vmatpush1.bf16.msra.mxu0 %v7098_v29 }
 0x148   : > { %5035 = vmatpush1.bf16.msra.mxu1 %v7101_v30  ;;  %4995 = vmatprep.subr.bf16.mxu0 %v7106_v32  ;;  %v7159_v30 = vld [vmem:[%s8217_s26 + $0x10c0] ss:$16 sps:$4 sm:$0xff]  }
 0x149   : > { %5036 = vmatprep.subr.bf16.mxu1 %v7109_v7  ;;  %v7162_v32 = vld [vmem:[%s8217_s26 + $0x12c0] ss:$16 sps:$4 sm:$0xff]  }
 0x14b   : > { %4996 = vmatpush2.bf16.msra.mxu0 %v7104_v34 }
 0x14c   : > { %5037 = vmatpush2.bf16.msra.mxu1 %v7107_v35  ;;  %4997 = vmatprep.subr.bf16.mxu0 %v7112_v37  ;;  %v7167_v37 = vld [vmem:[%s8217_s26 + $0x10a4] ss:$16 sps:$4 sm:$0xff]  }
 0x14d   : > { %5038 = vmatprep.subr.bf16.mxu1 %v7115_v38  ;;  %v7170_v38 = vld [vmem:[%s8217_s26 + $0x12a4] ss:$16 sps:$4 sm:$0xff]  }
 0x14f   : > { %4998 = vmatpush2.bf16.msra.mxu0 %v7110_v39 }
 0x150   : > { %5039 = vmatpush2.bf16.msra.mxu1 %v7113_v40  ;;  %4999 = vmatprep.subr.bf16.mxu0 %v7118_v33  ;;  %v7165_v40 = vld [vmem:[%s8217_s26 + $0x10a0] ss:$16 sps:$4 sm:$0xff]  }
 0x151   : > { %5040 = vmatprep.subr.bf16.mxu1 %v7121_v45  ;;  %v7168_v33 = vld [vmem:[%s8217_s26 + $0x12a0] ss:$16 sps:$4 sm:$0xff]  }
 0x153   : > { %5000 = vmatpush2.bf16.msra.mxu0 %v7116_v46 }
 0x154   : > { %5041 = vmatpush2.bf16.msra.mxu1 %v7119_v47  ;;  %5001 = vmatprep.subr.bf16.mxu0 %v7124_v48 }
 0x155   : > { %5042 = vmatprep.subr.bf16.mxu1 %v7127_v51  ;;  %v7173_v51 = vld [vmem:[%s8217_s26 + $0x1084] ss:$16 sps:$4 sm:$0xff]  }
 0x157   : > { %5002 = vmatpush2.bf16.msra.mxu0 %v7122_v52  ;;  %v7176_v52 = vld [vmem:[%s8217_s26 + $0x1284] ss:$16 sps:$4 sm:$0xff]  }
 0x158   : > { %5043 = vmatpush2.bf16.msra.mxu1 %v7125_v53  ;;  %5003 = vmatprep.subr.bf16.mxu0 %v7130_v54  ;;  %v7171_v53 = vld [vmem:[%s8217_s26 + $0x1080] ss:$16 sps:$4 sm:$0xff]  }
 0x159   : > { %5044 = vmatprep.subr.bf16.mxu1 %v7133_v36  ;;  %v7174_v54 = vld [vmem:[%s8217_s26 + $0x1280] ss:$16 sps:$4 sm:$0xff]   ;;  %v7179_v36 = vld [vmem:[%s8217_s26 + $0x1064] ss:$16 sps:$4 sm:$0xff]  }
 0x15b   : > { %5004 = vmatpush2.bf16.msra.mxu0 %v7128_v57  ;;  %v7182_v57 = vld [vmem:[%s8217_s26 + $0x1264] ss:$16 sps:$4 sm:$0xff]  }
 0x15c   : > { %5045 = vmatpush2.bf16.msra.mxu1 %v7131_v58  ;;  %5005 = vmatprep.subr.bf16.mxu0 %v7136_v59  ;;  %v7177_v58 = vld [vmem:[%s8217_s26 + $0x1060] ss:$16 sps:$4 sm:$0xff]  }
 0x15d   : > { %5046 = vmatprep.subr.bf16.mxu1 %v7139_v62  ;;  %v7180_v59 = vld [vmem:[%s8217_s26 + $0x1260] ss:$16 sps:$4 sm:$0xff]   ;;  %v7185_v62 = vld [vmem:[%s8217_s26 + $0x1044] ss:$16 sps:$4 sm:$0xff]  }
 0x15f   : > { %5006 = vmatpush2.bf16.msra.mxu0 %v7134_v63  ;;  %v7188_v63 = vld [vmem:[%s8217_s26 + $0x1244] ss:$16 sps:$4 sm:$0xff]  }
 0x160   : > { %5047 = vmatpush2.bf16.msra.mxu1 %v7137_v2  ;;  %5007 = vmatprep.subr.bf16.mxu0 %v7142_v3  ;;  %v7183_v2 = vld [vmem:[%s8217_s26 + $0x1040] ss:$16 sps:$4 sm:$0xff]  }
 0x161   : > { %5048 = vmatprep.subr.bf16.mxu1 %v7145_v4  ;;  %v7186_v3 = vld [vmem:[%s8217_s26 + $0x1240] ss:$16 sps:$4 sm:$0xff]   ;;  %v7191_v4 = vld [vmem:[%s8217_s26 + $0x1024] ss:$16 sps:$4 sm:$0xff]  }
 0x163   : > { %5008 = vmatpush2.bf16.msra.mxu0 %v7140_v6  ;;  %v7194_v6 = vld [vmem:[%s8217_s26 + $0x1224] ss:$16 sps:$4 sm:$0xff]  }
 0x164   : > { %5049 = vmatpush2.bf16.msra.mxu1 %v7143_v8  ;;  %5009 = vmatprep.subr.bf16.mxu0 %v7148_v9  ;;  %v7189_v8 = vld [vmem:[%s8217_s26 + $0x1020] ss:$16 sps:$4 sm:$0xff]  }
 0x165   : > { %5050 = vmatprep.subr.bf16.mxu1 %v7151_v10  ;;  %v7192_v9 = vld [vmem:[%s8217_s26 + $0x1220] ss:$16 sps:$4 sm:$0xff]   ;;  %v7197_v10 = vld [vmem:[%s8217_s26 + $0x1004] ss:$16 sps:$4 sm:$0xff]  }
 0x167   : > { %5010 = vmatpush2.bf16.msra.mxu0 %v7146_v12  ;;  %v7195_v12 = vld [vmem:[%s8217_s26 + $0x1000] ss:$16 sps:$4 sm:$0xff]  }
 0x168   : > { %5051 = vmatpush2.bf16.msra.mxu1 %v7149_v15  ;;  %5061 = vmatprep.subr.bf16.mxu0 %v7155_v16  ;;  %v7198_v15 = vld [vmem:[%s8217_s26 + $0x1200] ss:$16 sps:$4 sm:$0xff]   ;;  %v7203_v16 = vld [vmem:[%s8217_s26 + $0x11e4] ss:$16 sps:$4 sm:$0xff]  }
 0x169   : > { %5102 = vmatprep.subr.bf16.mxu1 %v7158_v17  ;;  %v7206_v17 = vld [vmem:[%s8217_s26 + $0x13e4] ss:$16 sps:$4 sm:$0xff]  }
 0x16a   : > { %v4767_v28 = vpop.f32.mrf.mxu0  ;;  %5012 = vmatmul.mubr.bf16.vlgmr.msra.gmra.mxu0 %v8607_v13 }
 0x16b   : > { %v4808_v29 = vpop.f32.mrf.mxu1  ;;  %5053 = vmatmul.mubr.bf16.vlgmr.msra.gmra.mxu1 %v8617_v21  ;;  %5062 = vmatpush1.bf16.msra.mxu0 %v7153_v22  ;;  %v7201_v22 = vld [vmem:[%s8217_s26 + $0x11e0] ss:$16 sps:$4 sm:$0xff]  }
 0x16c   : > { %v8631_v7 = vadd.f32 %v4808_v29, %v4767_v28  ;;  %5103 = vmatpush1.bf16.msra.mxu1 %v7156_v41  ;;  %v4769_v34 = vpop.f32.mrf.mxu0  ;;  %5063 = vmatprep.subr.bf16.mxu0 %v7161_v23  ;;  %v7204_v41 = vld [vmem:[%s8217_s26 + $0x13e0] ss:$16 sps:$4 sm:$0xff]   ;;  %v7209_v23 = vld [vmem:[%s8217_s26 + $0x11c4] ss:$16 sps:$4 sm:$0xff]  }
 0x16d   : > { %v4810_v35 = vpop.f32.mrf.mxu1  ;;  %5104 = vmatprep.subr.bf16.mxu1 %v7164_v25  ;;  %5093 = vmatprep.mubr.bf16.mxu0 %v8613_v20  ;;  %v7212_v25 = vld [vmem:[%s8217_s26 + $0x13c4] ss:$16 sps:$4 sm:$0xff]   ;;  %v7207_v28 = vld [vmem:[%s8217_s26 + $0x11c0] ss:$16 sps:$4 sm:$0xff]  }
 0x16e   : > { %v8635_v39 = vadd.f32 %v4810_v35, %v4769_v34  ;;  %5134 = vmatprep.mubr.bf16.mxu1 %v8625_v26  ;;  %v4771_v45 = vpop.f32.mrf.mxu0  ;;  %v7210_v29 = vld [vmem:[%s8217_s26 + $0x13c0] ss:$16 sps:$4 sm:$0xff]  }
 0x16f   : > { %v4812_v46 = vpop.f32.mrf.mxu1  ;;  %5064 = vmatpush1.bf16.msra.mxu0 %v7159_v30  ;;  %v7215_v30 = vld [vmem:[%s8217_s26 + $0x11a4] ss:$16 sps:$4 sm:$0xff]   ;;  %v7213_v34 = vld [vmem:[%s8217_s26 + $0x11a0] ss:$16 sps:$4 sm:$0xff]  }
 0x170   : > { %5105 = vmatpush1.bf16.msra.mxu1 %v7162_v32  ;;  %v4772_v47 = vpop.f32.mrf.mxu0  ;;  %5065 = vmatprep.subr.bf16.mxu0 %v7167_v37  ;;  %v7218_v32 = vld [vmem:[%s8217_s26 + $0x13a4] ss:$16 sps:$4 sm:$0xff]   ;;  %v7216_v35 = vld [vmem:[%s8217_s26 + $0x13a0] ss:$16 sps:$4 sm:$0xff]  }
 0x171   : > { %v4813_v48 = vpop.f32.mrf.mxu1  ;;  %5106 = vmatprep.subr.bf16.mxu1 %v7170_v38  ;;  %v7221_v37 = vld [vmem:[%s8217_s26 + $0x1184] ss:$16 sps:$4 sm:$0xff]   ;;  %v7225_v47 = vld [vmem:[%s8217_s26 + $0x1160] ss:$16 sps:$4 sm:$0xff]  }
 0x172   : > { %v7224_v38 = vld [vmem:[%s8217_s26 + $0x1384] ss:$16 sps:$4 sm:$0xff]   ;;  %v7228_v48 = vld [vmem:[%s8217_s26 + $0x1360] ss:$16 sps:$4 sm:$0xff]  }
 0x173   : > { %5066 = vmatpush1.bf16.msra.mxu0 %v7165_v40  ;;  %v7219_v40 = vld [vmem:[%s8217_s26 + $0x1180] ss:$16 sps:$4 sm:$0xff]   ;;  %v7227_v45 = vld [vmem:[%s8217_s26 + $0x1164] ss:$16 sps:$4 sm:$0xff]  }
 0x174   : > { %5107 = vmatpush1.bf16.msra.mxu1 %v7168_v33  ;;  %5067 = vmatprep.subr.bf16.mxu0 %v7173_v51  ;;  %v7222_v33 = vld [vmem:[%s8217_s26 + $0x1380] ss:$16 sps:$4 sm:$0xff]   ;;  %v7230_v46 = vld [vmem:[%s8217_s26 + $0x1364] ss:$16 sps:$4 sm:$0xff]  }
 0x175   : > { %5108 = vmatprep.subr.bf16.mxu1 %v7176_v52  ;;  %v7233_v51 = vld [vmem:[%s8217_s26 + $0x1144] ss:$16 sps:$4 sm:$0xff]  }
 0x176   : > { %v7236_v52 = vld [vmem:[%s8217_s26 + $0x1344] ss:$16 sps:$4 sm:$0xff]  }
 0x177   : > { %5068 = vmatpush1.bf16.msra.mxu0 %v7171_v53  ;;  %v7231_v53 = vld [vmem:[%s8217_s26 + $0x1140] ss:$16 sps:$4 sm:$0xff]  }
 0x178   : > { %5109 = vmatpush1.bf16.msra.mxu1 %v7174_v54  ;;  %5069 = vmatprep.subr.bf16.mxu0 %v7179_v36  ;;  %v7234_v54 = vld [vmem:[%s8217_s26 + $0x1340] ss:$16 sps:$4 sm:$0xff]   ;;  %v7239_v36 = vld [vmem:[%s8217_s26 + $0x1124] ss:$16 sps:$4 sm:$0xff]  }
 0x179   : > { %5110 = vmatprep.subr.bf16.mxu1 %v7182_v57  ;;  %v7242_v57 = vld [vmem:[%s8217_s26 + $0x1324] ss:$16 sps:$4 sm:$0xff]  }
 0x17b   : > { %5070 = vmatpush1.bf16.msra.mxu0 %v7177_v58  ;;  %v1144_v58 = vcombine.high %v8589_v0, %v8589_v0  ;;  %v7243_v0 = vld [vmem:[%s8217_s26 + $0x1100] ss:$16 sps:$4 sm:$0xff]  }
 0x17c   : > { %5111 = vmatpush1.bf16.msra.mxu1 %v7180_v59  ;;  %5071 = vmatprep.subr.bf16.mxu0 %v7185_v62  ;;  %v7237_v59 = vld [vmem:[%s8217_s26 + $0x1120] ss:$16 sps:$4 sm:$0xff]  }
 0x17d   : > { %5112 = vmatprep.subr.bf16.mxu1 %v7188_v63  ;;  %v7240_v62 = vld [vmem:[%s8217_s26 + $0x1320] ss:$16 sps:$4 sm:$0xff]   ;;  %v7245_v63 = vld [vmem:[%s8217_s26 + $0x1104] ss:$16 sps:$4 sm:$0xff]  }
 0x17f   : > { %5072 = vmatpush1.bf16.msra.mxu0 %v7183_v2  ;;  %v7248_v2 = vld [vmem:[%s8217_s26 + $0x1304] ss:$16 sps:$4 sm:$0xff]  }
 0x180   : > { %5113 = vmatpush1.bf16.msra.mxu1 %v7186_v3  ;;  %5073 = vmatprep.subr.bf16.mxu0 %v7191_v4  ;;  %v8694_v3 = vrot.slane %v1144_v58, %v8295_v50  ;;  %v8698_v4 = vrot.slane %v8596_v5, %v8295_v50  ;;  %v7284_v58 = vld [vmem:[%s8217_s26 + $0x4c] ss:$16 sps:$4 sm:$0xff]  }
 0x181   : > { %5114 = vmatprep.subr.bf16.mxu1 %v7194_v6  ;;  %v7246_v6 = vld [vmem:[%s8217_s26 + $0x1300] ss:$16 sps:$4 sm:$0xff]  }
 0x182   : > { %v8710_v5 = vcombine.high %v8698_v4, %v8698_v4 }
 0x183   : > { %5074 = vmatpush1.bf16.msra.mxu0 %v7189_v8  ;;  %v7251_v8 = vld [vmem:[%s8217_s26 + $0x14e4] ss:$16 sps:$4 sm:$0xff]  }
 0x184   : > { %5115 = vmatpush1.bf16.msra.mxu1 %v7192_v9  ;;  %5075 = vmatprep.subr.bf16.mxu0 %v7197_v10  ;;  %v7254_v9 = vld [vmem:[%s8217_s26 + $0xec] ss:$16 sps:$4 sm:$0xff]   ;;  %v7249_v10 = vld [vmem:[%s8217_s26 + $0x14e0] ss:$16 sps:$4 sm:$0xff]  }
 0x185   : > { %5116 = vmatprep.subr.bf16.mxu1 %v7200_v11  ;;  %v7252_v11 = vld [vmem:[%s8217_s26 + $0xe8] ss:$16 sps:$4 sm:$0xff]  }
 0x187   : > { %5076 = vmatpush1.bf16.msra.mxu0 %v7195_v12  ;;  %v1160_v12 = vcombine.high %v8694_v3, %v8694_v3 }
 0x188   : > { %5117 = vmatpush1.bf16.msra.mxu1 %v7198_v15  ;;  %5077 = vmatprep.subr.bf16.mxu0 %v7203_v16  ;;  %v7257_v15 = vld [vmem:[%s8217_s26 + $0x14c4] ss:$16 sps:$4 sm:$0xff]   ;;  %v7260_v16 = vld [vmem:[%s8217_s26 + $0xcc] ss:$16 sps:$4 sm:$0xff]  }
 0x189   : > { %5118 = vmatprep.subr.bf16.mxu1 %v7206_v17  ;;  %v7255_v17 = vld [vmem:[%s8217_s26 + $0x14c0] ss:$16 sps:$4 sm:$0xff]  }
 0x18b   : > { %5078 = vmatpush2.bf16.msra.mxu0 %v7201_v22  ;;  %v7258_v22 = vld [vmem:[%s8217_s26 + $0xc8] ss:$16 sps:$4 sm:$0xff]  }
 0x18c   : > { %5119 = vmatpush2.bf16.msra.mxu1 %v7204_v41  ;;  %5079 = vmatprep.subr.bf16.mxu0 %v7209_v23  ;;  %v8717_v41 = vrot.slane %v1160_v12, %v8295_v50  ;;  %v7299_v12 = vld [vmem:[%s8217_s26 + $0x15e4] ss:$16 sps:$4 sm:$0xff]  }
 0x18d   : > { %5120 = vmatprep.subr.bf16.mxu1 %v7212_v25 }
 0x18f   : > { %5080 = vmatpush2.bf16.msra.mxu0 %v7207_v28 }
 0x190   : > { %5121 = vmatpush2.bf16.msra.mxu1 %v7210_v29  ;;  %5081 = vmatprep.subr.bf16.mxu0 %v7215_v30 }
 0x191   : > { %5122 = vmatprep.subr.bf16.mxu1 %v7218_v32  ;;  %v7263_v32 = vld [vmem:[%s8217_s26 + $0x14a4] ss:$16 sps:$4 sm:$0xff]  }
 0x193   : > { %5082 = vmatpush2.bf16.msra.mxu0 %v7213_v34  ;;  %v7266_v34 = vld [vmem:[%s8217_s26 + $0xac] ss:$16 sps:$4 sm:$0xff]  }
 0x194   : > { %5123 = vmatpush2.bf16.msra.mxu1 %v7216_v35  ;;  %5083 = vmatprep.subr.bf16.mxu0 %v7221_v37 }
 0x195   : > { %5124 = vmatprep.subr.bf16.mxu1 %v7224_v38  ;;  %v7261_v38 = vld [vmem:[%s8217_s26 + $0x14a0] ss:$16 sps:$4 sm:$0xff]  }
 0x197   : > { %5084 = vmatpush2.bf16.msra.mxu0 %v7219_v40  ;;  %v7264_v40 = vld [vmem:[%s8217_s26 + $0xa8] ss:$16 sps:$4 sm:$0xff]  }
 0x198   : > { %5125 = vmatpush2.bf16.msra.mxu1 %v7222_v33  ;;  %5085 = vmatprep.subr.bf16.mxu0 %v7227_v45 }
 0x199   : > { %5126 = vmatprep.subr.bf16.mxu1 %v7230_v46 }
 0x19b   : > { %5086 = vmatpush2.bf16.msra.mxu0 %v7225_v47 }
 0x19c   : > { %5127 = vmatpush2.bf16.msra.mxu1 %v7228_v48  ;;  %5087 = vmatprep.subr.bf16.mxu0 %v7233_v51  ;;  %v7272_v48 = vld [vmem:[%s8217_s26 + $0x8c] ss:$16 sps:$4 sm:$0xff]   ;;  %v7270_v51 = vld [vmem:[%s8217_s26 + $0x88] ss:$16 sps:$4 sm:$0xff]  }
 0x19d   : > { %5128 = vmatprep.subr.bf16.mxu1 %v7236_v52  ;;  %v7275_v52 = vld [vmem:[%s8217_s26 + $0x1464] ss:$16 sps:$4 sm:$0xff]  }
 0x19f   : > { %5088 = vmatpush2.bf16.msra.mxu0 %v7231_v53  ;;  %v7278_v53 = vld [vmem:[%s8217_s26 + $0x6c] ss:$16 sps:$4 sm:$0xff]  }
 0x1a0   : > { %5129 = vmatpush2.bf16.msra.mxu1 %v7234_v54  ;;  %5089 = vmatprep.subr.bf16.mxu0 %v7239_v36  ;;  %v7273_v54 = vld [vmem:[%s8217_s26 + $0x1460] ss:$16 sps:$4 sm:$0xff]   ;;  %v7276_v36 = vld [vmem:[%s8217_s26 + $0x68] ss:$16 sps:$4 sm:$0xff]  }
 0x1a1   : > { %5130 = vmatprep.subr.bf16.mxu1 %v7242_v57  ;;  %v7281_v57 = vld [vmem:[%s8217_s26 + $0x1444] ss:$16 sps:$4 sm:$0xff]  }
 0x1a3   : > { %5090 = vmatpush2.bf16.msra.mxu0 %v7237_v59  ;;  %v7279_v59 = vld [vmem:[%s8217_s26 + $0x1440] ss:$16 sps:$4 sm:$0xff]  }
 0x1a4   : > { %5131 = vmatpush2.bf16.msra.mxu1 %v7240_v62  ;;  %5091 = vmatprep.subr.bf16.mxu0 %v7245_v63  ;;  %v7282_v62 = vld [vmem:[%s8217_s26 + $0x48] ss:$16 sps:$4 sm:$0xff]   ;;  %v7287_v63 = vld [vmem:[%s8217_s26 + $0x1424] ss:$16 sps:$4 sm:$0xff]  }
 0x1a5   : > { %5132 = vmatprep.subr.bf16.mxu1 %v7248_v2  ;;  %v7290_v2 = vld [vmem:[%s8217_s26 + $0x2c] ss:$16 sps:$4 sm:$0xff]  }
 0x1a7   : > { %5092 = vmatpush2.bf16.msra.mxu0 %v7243_v0  ;;  %v7285_v0 = vld [vmem:[%s8217_s26 + $0x1420] ss:$16 sps:$4 sm:$0xff]  }
 0x1a8   : > { %5133 = vmatpush2.bf16.msra.mxu1 %v7246_v6  ;;  %5143 = vmatprep.subr.bf16.mxu0 %v7251_v8  ;;  %v7288_v6 = vld [vmem:[%s8217_s26 + $0x28] ss:$16 sps:$4 sm:$0xff]   ;;  %v7293_v8 = vld [vmem:[%s8217_s26 + $0x1404] ss:$16 sps:$4 sm:$0xff]  }
 0x1a9   : > { %5184 = vmatprep.subr.bf16.mxu1 %v7254_v9  ;;  %v7296_v9 = vld [vmem:[%s8217_s26 + $0xc] ss:$16 sps:$4 sm:$0xff]  }
 0x1aa   : > { %v4849_v23 = vpop.f32.mrf.mxu0  ;;  %5094 = vmatmul.mubr.bf16.vlgmr.msra.gmra.mxu0 %v8698_v4 }
 0x1ab   : > { %v4890_v25 = vpop.f32.mrf.mxu1  ;;  %5135 = vmatmul.mubr.bf16.vlgmr.msra.gmra.mxu1 %v8710_v5  ;;  %v4850_v28 = vadd.f32 %v4849_v23, %v8631_v7  ;;  %5144 = vmatpush1.bf16.msra.mxu0 %v7249_v10  ;;  %v7291_v10 = vld [vmem:[%s8217_s26 + $0x1400] ss:$16 sps:$4 sm:$0xff]   ;;  %v7308_v23 = vld [vmem:[%s8217_s26 + $0x1cc] ss:$16 sps:$4 sm:$0xff]  }
 0x1ac   : > { %5185 = vmatpush1.bf16.msra.mxu1 %v7252_v11  ;;  %v4851_v29 = vpop.f32.mrf.mxu0  ;;  %5145 = vmatprep.subr.bf16.mxu0 %v7257_v15  ;;  %v7294_v11 = vld [vmem:[%s8217_s26 + $0x8] ss:$16 sps:$4 sm:$0xff]   ;;  %v7302_v15 = vld [vmem:[%s8217_s26 + $0x1ec] ss:$16 sps:$4 sm:$0xff]  }
 0x1ad   : > { %v4892_v30 = vpop.f32.mrf.mxu1  ;;  %5186 = vmatprep.subr.bf16.mxu1 %v7260_v16  ;;  %v8724_v35 = vadd.f32 %v4890_v25, %v4850_v28  ;;  %v4852_v37 = vadd.f32 %v4851_v29, %v8635_v39  ;;  %5175 = vmatprep.mubr.bf16.mxu0 %v8717_v41  ;;  %v7269_v39 = vld [vmem:[%s8217_s26 + $0x1484] ss:$16 sps:$4 sm:$0xff]   ;;  %v7297_v16 = vld [vmem:[%s8217_s26 + $0x15e0] ss:$16 sps:$4 sm:$0xff]   ;;  %v7306_v28 = vld [vmem:[%s8217_s26 + $0x1c8] ss:$16 sps:$4 sm:$0xff]  }
 0x1ae   : > { %5216 = vmatprep.mubr.bf16.mxu1 %v8307_v61  ;;  %v4853_v7 = vpop.f32.mrf.mxu0  ;;  %v7267_v61 = vld [vmem:[%s8217_s26 + $0x1480] ss:$16 sps:$4 sm:$0xff]   ;;  %v7311_v29 = vld [vmem:[%s8217_s26 + $0x15a4] ss:$16 sps:$4 sm:$0xff]  }
 0x1af   : > { %v4894_v33 = vpop.f32.mrf.mxu1  ;;  %v8731_v45 = vadd.f32 %v4892_v30, %v4852_v37  ;;  %5146 = vmatpush1.bf16.msra.mxu0 %v7255_v17  ;;  %v7300_v17 = vld [vmem:[%s8217_s26 + $0x1e8] ss:$16 sps:$4 sm:$0xff]   ;;  %v7303_v25 = vld [vmem:[%s8217_s26 + $0x15c0] ss:$16 sps:$4 sm:$0xff]   ;;  %v7314_v30 = vld [vmem:[%s8217_s26 + $0x1ac] ss:$16 sps:$4 sm:$0xff]  }
 0x1b0   : > { %5187 = vmatpush1.bf16.msra.mxu1 %v7258_v22  ;;  %v4854_v46 = vpop.f32.mrf.mxu0  ;;  %5147 = vmatprep.subr.bf16.mxu0 %v7263_v32  ;;  %v7305_v22 = vld [vmem:[%s8217_s26 + $0x15c4] ss:$16 sps:$4 sm:$0xff]   ;;  %v7309_v32 = vld [vmem:[%s8217_s26 + $0x15a0] ss:$16 sps:$4 sm:$0xff]   ;;  %v7318_v7 = vld [vmem:[%s8217_s26 + $0x188] ss:$16 sps:$4 sm:$0xff]  }
 0x1b1   : > { %v4895_v47 = vpop.f32.mrf.mxu1  ;;  %5188 = vmatprep.subr.bf16.mxu1 %v7266_v34  ;;  %v7312_v34 = vld [vmem:[%s8217_s26 + $0x1a8] ss:$16 sps:$4 sm:$0xff]   ;;  %v7317_v37 = vld [vmem:[%s8217_s26 + $0x1584] ss:$16 sps:$4 sm:$0xff]   ;;  %v7326_v46 = vld [vmem:[%s8217_s26 + $0x16c] ss:$16 sps:$4 sm:$0xff]  }
 0x1b2   : > { %v7323_v33 = vld [vmem:[%s8217_s26 + $0x1564] ss:$16 sps:$4 sm:$0xff]   ;;  %v7321_v47 = vld [vmem:[%s8217_s26 + $0x1560] ss:$16 sps:$4 sm:$0xff]  }
 0x1b3   : > { %5148 = vmatpush1.bf16.msra.mxu0 %v7261_v38  ;;  %v7320_v38 = vld [vmem:[%s8217_s26 + $0x18c] ss:$16 sps:$4 sm:$0xff]  }
 0x1b4   : > { %5189 = vmatpush1.bf16.msra.mxu1 %v7264_v40  ;;  %5149 = vmatprep.subr.bf16.mxu0 %v7269_v39  ;;  %v7315_v40 = vld [vmem:[%s8217_s26 + $0x1580] ss:$16 sps:$4 sm:$0xff]   ;;  %v7324_v39 = vld [vmem:[%s8217_s26 + $0x168] ss:$16 sps:$4 sm:$0xff]  }
 0x1b5   : > { %5190 = vmatprep.subr.bf16.mxu1 %v7272_v48  ;;  %v7329_v48 = vld [vmem:[%s8217_s26 + $0x1544] ss:$16 sps:$4 sm:$0xff]  }
 0x1b7   : > { %5150 = vmatpush1.bf16.msra.mxu0 %v7267_v61  ;;  %v7332_v61 = vld [vmem:[%s8217_s26 + $0x14c] ss:$16 sps:$4 sm:$0xff]  }
 0x1b8   : > { %5191 = vmatpush1.bf16.msra.mxu1 %v7270_v51  ;;  %5151 = vmatprep.subr.bf16.mxu0 %v7275_v52  ;;  %v7327_v51 = vld [vmem:[%s8217_s26 + $0x1540] ss:$16 sps:$4 sm:$0xff]   ;;  %v7330_v52 = vld [vmem:[%s8217_s26 + $0x148] ss:$16 sps:$4 sm:$0xff]  }
 0x1b9   : > { %5192 = vmatprep.subr.bf16.mxu1 %v7278_v53  ;;  %v7335_v53 = vld [vmem:[%s8217_s26 + $0x1524] ss:$16 sps:$4 sm:$0xff]  }
 0x1bb   : > { %5152 = vmatpush1.bf16.msra.mxu0 %v7273_v54  ;;  %v7338_v54 = vld [vmem:[%s8217_s26 + $0x12c] ss:$16 sps:$4 sm:$0xff]  }
 0x1bc   : > { %5193 = vmatpush1.bf16.msra.mxu1 %v7276_v36  ;;  %5153 = vmatprep.subr.bf16.mxu0 %v7281_v57  ;;  %v7333_v36 = vld [vmem:[%s8217_s26 + $0x1520] ss:$16 sps:$4 sm:$0xff]   ;;  %v7336_v57 = vld [vmem:[%s8217_s26 + $0x128] ss:$16 sps:$4 sm:$0xff]  }
 0x1bd   : > { %5194 = vmatprep.subr.bf16.mxu1 %v7284_v58  ;;  %v7341_v58 = vld [vmem:[%s8217_s26 + $0x1504] ss:$16 sps:$4 sm:$0xff]  }
 0x1bf   : > { %5154 = vmatpush1.bf16.msra.mxu0 %v7279_v59  ;;  %v7344_v59 = vld [vmem:[%s8217_s26 + $0x10c] ss:$16 sps:$4 sm:$0xff]  }
 0x1c0   : > { %5195 = vmatpush1.bf16.msra.mxu1 %v7282_v62  ;;  %5155 = vmatprep.subr.bf16.mxu0 %v7287_v63  ;;  %v7339_v62 = vld [vmem:[%s8217_s26 + $0x1500] ss:$16 sps:$4 sm:$0xff]   ;;  %v7342_v63 = vld [vmem:[%s8217_s26 + $0x108] ss:$16 sps:$4 sm:$0xff]  }
 0x1c1   : > { %5196 = vmatprep.subr.bf16.mxu1 %v7290_v2  ;;  %v7348_v2 = vld [vmem:[%s8217_s26 + $0x2ec] ss:$16 sps:$4 sm:$0xff]  }
 0x1c3   : > { %5156 = vmatpush1.bf16.msra.mxu0 %v7285_v0  ;;  %v7351_v0 = vld [vmem:[%s8217_s26 + $0x4ec] ss:$16 sps:$4 sm:$0xff]  }
 0x1c4   : > { %5197 = vmatpush1.bf16.msra.mxu1 %v7288_v6  ;;  %5157 = vmatprep.subr.bf16.mxu0 %v7293_v8  ;;  %v7346_v6 = vld [vmem:[%s8217_s26 + $0x2e8] ss:$16 sps:$4 sm:$0xff]  }
 0x1c5   : > { %5198 = vmatprep.subr.bf16.mxu1 %v7296_v9  ;;  %v7349_v8 = vld [vmem:[%s8217_s26 + $0x4e8] ss:$16 sps:$4 sm:$0xff]   ;;  %v8791_v9 = vrot.slane %v8694_v3, %v8295_v50 }
 0x1c7   : > { %5158 = vmatpush1.bf16.msra.mxu0 %v7291_v10  ;;  %v7354_v10 = vld [vmem:[%s8217_s26 + $0x2cc] ss:$16 sps:$4 sm:$0xff]  }
 0x1c8   : > { %5199 = vmatpush1.bf16.msra.mxu1 %v7294_v11  ;;  %5159 = vmatprep.subr.bf16.mxu0 %v7299_v12  ;;  %v7357_v11 = vld [vmem:[%s8217_s26 + $0x4cc] ss:$16 sps:$4 sm:$0xff]   ;;  %v7352_v12 = vld [vmem:[%s8217_s26 + $0x2c8] ss:$16 sps:$4 sm:$0xff]  }
 0x1c9   : > { %5200 = vmatprep.subr.bf16.mxu1 %v7302_v15  ;;  %v7355_v15 = vld [vmem:[%s8217_s26 + $0x4c8] ss:$16 sps:$4 sm:$0xff]  }
 0x1cb   : > { %5160 = vmatpush2.bf16.msra.mxu0 %v7297_v16 }
 0x1cc   : > { %5201 = vmatpush2.bf16.msra.mxu1 %v7300_v17  ;;  %5161 = vmatprep.subr.bf16.mxu0 %v7305_v22 }
 0x1cd   : > { %5202 = vmatprep.subr.bf16.mxu1 %v7308_v23 }
 0x1cf   : > { %5162 = vmatpush2.bf16.msra.mxu0 %v7303_v25  ;;  %v7360_v25 = vld [vmem:[%s8217_s26 + $0x2ac] ss:$16 sps:$4 sm:$0xff]  }
 0x1d0   : > { %5203 = vmatpush2.bf16.msra.mxu1 %v7306_v28  ;;  %5163 = vmatprep.subr.bf16.mxu0 %v7311_v29  ;;  %v7363_v28 = vld [vmem:[%s8217_s26 + $0x4ac] ss:$16 sps:$4 sm:$0xff]  }
 0x1d1   : > { %5204 = vmatprep.subr.bf16.mxu1 %v7314_v30 }
 0x1d3   : > { %5164 = vmatpush2.bf16.msra.mxu0 %v7309_v32  ;;  %v7358_v32 = vld [vmem:[%s8217_s26 + $0x2a8] ss:$16 sps:$4 sm:$0xff]  }
 0x1d4   : > { %5205 = vmatpush2.bf16.msra.mxu1 %v7312_v34  ;;  %5165 = vmatprep.subr.bf16.mxu0 %v7317_v37  ;;  %v7361_v34 = vld [vmem:[%s8217_s26 + $0x4a8] ss:$16 sps:$4 sm:$0xff]  }
 0x1d5   : > { %5206 = vmatprep.subr.bf16.mxu1 %v7320_v38 }
 0x1d7   : > { %5166 = vmatpush2.bf16.msra.mxu0 %v7315_v40 }
 0x1d8   : > { %5207 = vmatpush2.bf16.msra.mxu1 %v7318_v7  ;;  %5167 = vmatprep.subr.bf16.mxu0 %v7323_v33  ;;  %v7367_v7 = vld [vmem:[%s8217_s26 + $0x488] ss:$16 sps:$4 sm:$0xff]   ;;  %v7372_v33 = vld [vmem:[%s8217_s26 + $0x26c] ss:$16 sps:$4 sm:$0xff]  }
 0x1d9   : > { %5208 = vmatprep.subr.bf16.mxu1 %v7326_v46  ;;  %v7375_v46 = vld [vmem:[%s8217_s26 + $0x46c] ss:$16 sps:$4 sm:$0xff]  }
 0x1db   : > { %5168 = vmatpush2.bf16.msra.mxu0 %v7321_v47  ;;  %v7370_v47 = vld [vmem:[%s8217_s26 + $0x268] ss:$16 sps:$4 sm:$0xff]  }
 0x1dc   : > { %5209 = vmatpush2.bf16.msra.mxu1 %v7324_v39  ;;  %5169 = vmatprep.subr.bf16.mxu0 %v7329_v48  ;;  %v7373_v39 = vld [vmem:[%s8217_s26 + $0x468] ss:$16 sps:$4 sm:$0xff]   ;;  %v7378_v48 = vld [vmem:[%s8217_s26 + $0x24c] ss:$16 sps:$4 sm:$0xff]  }
 0x1dd   : > { %5210 = vmatprep.subr.bf16.mxu1 %v7332_v61  ;;  %v7381_v61 = vld [vmem:[%s8217_s26 + $0x44c] ss:$16 sps:$4 sm:$0xff]  }
 0x1df   : > { %5170 = vmatpush2.bf16.msra.mxu0 %v7327_v51  ;;  %v7376_v51 = vld [vmem:[%s8217_s26 + $0x248] ss:$16 sps:$4 sm:$0xff]  }
 0x1e0   : > { %5211 = vmatpush2.bf16.msra.mxu1 %v7330_v52  ;;  %5171 = vmatprep.subr.bf16.mxu0 %v7335_v53  ;;  %v7379_v52 = vld [vmem:[%s8217_s26 + $0x448] ss:$16 sps:$4 sm:$0xff]   ;;  %v7384_v53 = vld [vmem:[%s8217_s26 + $0x22c] ss:$16 sps:$4 sm:$0xff]  }
 0x1e1   : > { %5212 = vmatprep.subr.bf16.mxu1 %v7338_v54  ;;  %v7387_v54 = vld [vmem:[%s8217_s26 + $0x42c] ss:$16 sps:$4 sm:$0xff]  }
 0x1e3   : > { %5172 = vmatpush2.bf16.msra.mxu0 %v7333_v36  ;;  %v7382_v36 = vld [vmem:[%s8217_s26 + $0x228] ss:$16 sps:$4 sm:$0xff]  }
 0x1e4   : > { %5213 = vmatpush2.bf16.msra.mxu1 %v7336_v57  ;;  %5173 = vmatprep.subr.bf16.mxu0 %v7341_v58  ;;  %v7385_v57 = vld [vmem:[%s8217_s26 + $0x428] ss:$16 sps:$4 sm:$0xff]   ;;  %v7390_v58 = vld [vmem:[%s8217_s26 + $0x20c] ss:$16 sps:$4 sm:$0xff]  }
 0x1e5   : > { %5214 = vmatprep.subr.bf16.mxu1 %v7344_v59  ;;  %v7393_v59 = vld [vmem:[%s8217_s26 + $0x40c] ss:$16 sps:$4 sm:$0xff]  }
 0x1e7   : > { %5174 = vmatpush2.bf16.msra.mxu0 %v7339_v62  ;;  %v7388_v62 = vld [vmem:[%s8217_s26 + $0x208] ss:$16 sps:$4 sm:$0xff]  }
 0x1e8   : > { %5215 = vmatpush2.bf16.msra.mxu1 %v7342_v63  ;;  %5225 = vmatprep.subr.bf16.mxu0 %v7348_v2  ;;  %v7391_v63 = vld [vmem:[%s8217_s26 + $0x408] ss:$16 sps:$4 sm:$0xff]   ;;  %v7396_v2 = vld [vmem:[%s8217_s26 + $0x3ec] ss:$16 sps:$4 sm:$0xff]  }
 0x1e9   : > { %5266 = vmatprep.subr.bf16.mxu1 %v7351_v0  ;;  %v7399_v0 = vld [vmem:[%s8217_s26 + $0x5ec] ss:$16 sps:$4 sm:$0xff]  }
 0x1ea   : > { %v4931_v16 = vpop.f32.mrf.mxu0  ;;  %5176 = vmatmul.mubr.bf16.vlgmr.msra.gmra.mxu0 %v8791_v9 }
 0x1eb   : > { %v4972_v17 = vpop.f32.mrf.mxu1  ;;  %5217 = vmatmul.mubr.bf16.vlgmr.msra.gmra.mxu1 %v8333_v14  ;;  %v4932_v3 = vadd.f32 %v4931_v16, %v8724_v35  ;;  %5226 = vmatpush1.bf16.msra.mxu0 %v7346_v6  ;;  %v7394_v6 = vld [vmem:[%s8217_s26 + $0x3e8] ss:$16 sps:$4 sm:$0xff]   ;;  %v7408_v16 = vld [vmem:[%s8217_s26 + $0x3ac] ss:$16 sps:$4 sm:$0xff]  }
 0x1ec   : > { %5267 = vmatpush1.bf16.msra.mxu1 %v7349_v8  ;;  %v4933_v22 = vpop.f32.mrf.mxu0  ;;  %5227 = vmatprep.subr.bf16.mxu0 %v7354_v10  ;;  %v7397_v8 = vld [vmem:[%s8217_s26 + $0x5e8] ss:$16 sps:$4 sm:$0xff]   ;;  %v7402_v10 = vld [vmem:[%s8217_s26 + $0x3cc] ss:$16 sps:$4 sm:$0xff]  }
 0x1ed   : > { %v4974_v23 = vpop.f32.mrf.mxu1  ;;  %5268 = vmatprep.subr.bf16.mxu1 %v7357_v11  ;;  %v8802_v29 = vadd.f32 %v4972_v17, %v4932_v3  ;;  %v4934_v30 = vadd.f32 %v4933_v22, %v8731_v45  ;;  %5257 = vmatprep.mubr.bf16.mxu0 %v8314_v1  ;;  %v7366_v45 = vld [vmem:[%s8217_s26 + $0x28c] ss:$16 sps:$4 sm:$0xff]   ;;  %v7406_v3 = vld [vmem:[%s8217_s26 + $0x3a8] ss:$16 sps:$4 sm:$0xff]  }
 0x1ee   : > { %5298 = vmatprep.mubr.bf16.mxu1 %v8339_v18  ;;  %v4935_v14 = vpop.f32.mrf.mxu0  ;;  %v7369_v1 = vld [vmem:[%s8217_s26 + $0x48c] ss:$16 sps:$4 sm:$0xff]   ;;  %v7364_v18 = vld [vmem:[%s8217_s26 + $0x288] ss:$16 sps:$4 sm:$0xff]  }
 0x1ef   : > { %v4976_v35 = vpop.f32.mrf.mxu1  ;;  %v8809_v37 = vadd.f32 %v4974_v23, %v4934_v30  ;;  %5228 = vmatpush1.bf16.msra.mxu0 %v7352_v12  ;;  %v7405_v11 = vld [vmem:[%s8217_s26 + $0x5cc] ss:$16 sps:$4 sm:$0xff]   ;;  %v7400_v12 = vld [vmem:[%s8217_s26 + $0x3c8] ss:$16 sps:$4 sm:$0xff]  }
 0x1f0   : > { %5269 = vmatpush1.bf16.msra.mxu1 %v7355_v15  ;;  %v4936_v38 = vpop.f32.mrf.mxu0  ;;  %5229 = vmatprep.subr.bf16.mxu0 %v7360_v25  ;;  %v7403_v15 = vld [vmem:[%s8217_s26 + $0x5c8] ss:$16 sps:$4 sm:$0xff]   ;;  %v7411_v17 = vld [vmem:[%s8217_s26 + $0x5ac] ss:$16 sps:$4 sm:$0xff]  }
 0x1f1   : > { %v4977_v40 = vpop.f32.mrf.mxu1  ;;  %5270 = vmatprep.subr.bf16.mxu1 %v7363_v28  ;;  %v7409_v22 = vld [vmem:[%s8217_s26 + $0x5a8] ss:$16 sps:$4 sm:$0xff]   ;;  %v7414_v23 = vld [vmem:[%s8217_s26 + $0x38c] ss:$16 sps:$4 sm:$0xff]  }
 0x1f2   : > { %v7417_v25 = vld [vmem:[%s8217_s26 + $0x58c] ss:$16 sps:$4 sm:$0xff]   ;;  %v7412_v28 = vld [vmem:[%s8217_s26 + $0x388] ss:$16 sps:$4 sm:$0xff]  }
 0x1f3   : > { %5230 = vmatpush1.bf16.msra.mxu0 %v7358_v32  ;;  %v7415_v30 = vld [vmem:[%s8217_s26 + $0x588] ss:$16 sps:$4 sm:$0xff]   ;;  %v7420_v32 = vld [vmem:[%s8217_s26 + $0x36c] ss:$16 sps:$4 sm:$0xff]  }
 0x1f4   : > { %5271 = vmatpush1.bf16.msra.mxu1 %v7361_v34  ;;  %5231 = vmatprep.subr.bf16.mxu0 %v7366_v45  ;;  %v7423_v34 = vld [vmem:[%s8217_s26 + $0x56c] ss:$16 sps:$4 sm:$0xff]   ;;  %v7418_v14 = vld [vmem:[%s8217_s26 + $0x368] ss:$16 sps:$4 sm:$0xff]  }
 0x1f5   : > { %5272 = vmatprep.subr.bf16.mxu1 %v7369_v1  ;;  %v7421_v35 = vld [vmem:[%s8217_s26 + $0x568] ss:$16 sps:$4 sm:$0xff]   ;;  %v7426_v38 = vld [vmem:[%s8217_s26 + $0x34c] ss:$16 sps:$4 sm:$0xff]  }
 0x1f6   : > { %v7429_v40 = vld [vmem:[%s8217_s26 + $0x54c] ss:$16 sps:$4 sm:$0xff]   ;;  %v7424_v45 = vld [vmem:[%s8217_s26 + $0x348] ss:$16 sps:$4 sm:$0xff]  }
 0x1f7   : > { %5232 = vmatpush1.bf16.msra.mxu0 %v7364_v18  ;;  %v7427_v1 = vld [vmem:[%s8217_s26 + $0x548] ss:$16 sps:$4 sm:$0xff]   ;;  %v7432_v18 = vld [vmem:[%s8217_s26 + $0x32c] ss:$16 sps:$4 sm:$0xff]  }
 0x1f8   : > { %5273 = vmatpush1.bf16.msra.mxu1 %v7367_v7  ;;  %5233 = vmatprep.subr.bf16.mxu0 %v7372_v33  ;;  %v7435_v7 = vld [vmem:[%s8217_s26 + $0x52c] ss:$16 sps:$4 sm:$0xff]   ;;  %v7430_v33 = vld [vmem:[%s8217_s26 + $0x328] ss:$16 sps:$4 sm:$0xff]  }
 0x1f9   : > { %5274 = vmatprep.subr.bf16.mxu1 %v7375_v46  ;;  %v7433_v46 = vld [vmem:[%s8217_s26 + $0x528] ss:$16 sps:$4 sm:$0xff]  }
 0x1fb   : > { %5234 = vmatpush1.bf16.msra.mxu0 %v7370_v47  ;;  %v7438_v47 = vld [vmem:[%s8217_s26 + $0x30c] ss:$16 sps:$4 sm:$0xff]  }
 0x1fc   : > { %5275 = vmatpush1.bf16.msra.mxu1 %v7373_v39  ;;  %5235 = vmatprep.subr.bf16.mxu0 %v7378_v48  ;;  %v7441_v39 = vld [vmem:[%s8217_s26 + $0x50c] ss:$16 sps:$4 sm:$0xff]   ;;  %v7436_v48 = vld [vmem:[%s8217_s26 + $0x308] ss:$16 sps:$4 sm:$0xff]  }
 0x1fd   : > { %5276 = vmatprep.subr.bf16.mxu1 %v7381_v61  ;;  %v7439_v61 = vld [vmem:[%s8217_s26 + $0x508] ss:$16 sps:$4 sm:$0xff]  }
 0x1ff   : > { %5236 = vmatpush1.bf16.msra.mxu0 %v7376_v51  ;;  %v7444_v51 = vld [vmem:[%s8217_s26 + $0x6ec] ss:$16 sps:$4 sm:$0xff]  }
 0x200   : > { %5277 = vmatpush1.bf16.msra.mxu1 %v7379_v52  ;;  %5237 = vmatprep.subr.bf16.mxu0 %v7384_v53  ;;  %v7447_v52 = vld [vmem:[%s8217_s26 + $0x8ec] ss:$16 sps:$4 sm:$0xff]   ;;  %v7442_v53 = vld [vmem:[%s8217_s26 + $0x6e8] ss:$16 sps:$4 sm:$0xff]  }
 0x201   : > { %5278 = vmatprep.subr.bf16.mxu1 %v7387_v54  ;;  %v7445_v54 = vld [vmem:[%s8217_s26 + $0x8e8] ss:$16 sps:$4 sm:$0xff]  }
 0x203   : > { %5238 = vmatpush1.bf16.msra.mxu0 %v7382_v36  ;;  %v7450_v36 = vld [vmem:[%s8217_s26 + $0x6cc] ss:$16 sps:$4 sm:$0xff]  }
 0x204   : > { %5279 = vmatpush1.bf16.msra.mxu1 %v7385_v57  ;;  %5239 = vmatprep.subr.bf16.mxu0 %v7390_v58  ;;  %v7453_v57 = vld [vmem:[%s8217_s26 + $0x8cc] ss:$16 sps:$4 sm:$0xff]  }
 0x205   : > { %5280 = vmatprep.subr.bf16.mxu1 %v7393_v59 }
 0x207   : > { %5240 = vmatpush1.bf16.msra.mxu0 %v7388_v62 }
 0x208   : > { %5281 = vmatpush1.bf16.msra.mxu1 %v7391_v63  ;;  %5241 = vmatprep.subr.bf16.mxu0 %v7396_v2  ;;  %v7448_v63 = vld [vmem:[%s8217_s26 + $0x6c8] ss:$16 sps:$4 sm:$0xff]  }
 0x209   : > { %5282 = vmatprep.subr.bf16.mxu1 %v7399_v0  ;;  %v7451_v2 = vld [vmem:[%s8217_s26 + $0x8c8] ss:$16 sps:$4 sm:$0xff]  }
 0x20b   : > { %5242 = vmatpush2.bf16.msra.mxu0 %v7394_v6 }
 0x20c   : > { %5283 = vmatpush2.bf16.msra.mxu1 %v7397_v8  ;;  %5243 = vmatprep.subr.bf16.mxu0 %v7402_v10  ;;  %v7456_v8 = vld [vmem:[%s8217_s26 + $0x6ac] ss:$16 sps:$4 sm:$0xff]  }
 0x20d   : > { %5284 = vmatprep.subr.bf16.mxu1 %v7405_v11  ;;  %v7459_v10 = vld [vmem:[%s8217_s26 + $0x8ac] ss:$16 sps:$4 sm:$0xff]  }
 0x20f   : > { %5244 = vmatpush2.bf16.msra.mxu0 %v7400_v12 }
 0x210   : > { %5285 = vmatpush2.bf16.msra.mxu1 %v7403_v15  ;;  %5245 = vmatprep.subr.bf16.mxu0 %v7408_v16  ;;  %v7454_v15 = vld [vmem:[%s8217_s26 + $0x6a8] ss:$16 sps:$4 sm:$0xff]  }
 0x211   : > { %5286 = vmatprep.subr.bf16.mxu1 %v7411_v17  ;;  %v7457_v16 = vld [vmem:[%s8217_s26 + $0x8a8] ss:$16 sps:$4 sm:$0xff]  }
 0x213   : > { %5246 = vmatpush2.bf16.msra.mxu0 %v7406_v3 }
 0x214   : > { %5287 = vmatpush2.bf16.msra.mxu1 %v7409_v22  ;;  %5247 = vmatprep.subr.bf16.mxu0 %v7414_v23  ;;  %v7463_v22 = vld [vmem:[%s8217_s26 + $0x888] ss:$16 sps:$4 sm:$0xff]   ;;  %v7468_v23 = vld [vmem:[%s8217_s26 + $0x66c] ss:$16 sps:$4 sm:$0xff]  }
 0x215   : > { %5288 = vmatprep.subr.bf16.mxu1 %v7417_v25  ;;  %v7471_v25 = vld [vmem:[%s8217_s26 + $0x86c] ss:$16 sps:$4 sm:$0xff]  }
 0x217   : > { %5248 = vmatpush2.bf16.msra.mxu0 %v7412_v28  ;;  %v7466_v28 = vld [vmem:[%s8217_s26 + $0x668] ss:$16 sps:$4 sm:$0xff]  }
 0x218   : > { %5289 = vmatpush2.bf16.msra.mxu1 %v7415_v30  ;;  %5249 = vmatprep.subr.bf16.mxu0 %v7420_v32  ;;  %v7469_v30 = vld [vmem:[%s8217_s26 + $0x868] ss:$16 sps:$4 sm:$0xff]   ;;  %v7474_v32 = vld [vmem:[%s8217_s26 + $0x64c] ss:$16 sps:$4 sm:$0xff]  }
 0x219   : > { %5290 = vmatprep.subr.bf16.mxu1 %v7423_v34  ;;  %v7477_v34 = vld [vmem:[%s8217_s26 + $0x84c] ss:$16 sps:$4 sm:$0xff]  }
 0x21b   : > { %5250 = vmatpush2.bf16.msra.mxu0 %v7418_v14  ;;  %v7472_v14 = vld [vmem:[%s8217_s26 + $0x648] ss:$16 sps:$4 sm:$0xff]  }
 0x21c   : > { %5291 = vmatpush2.bf16.msra.mxu1 %v7421_v35  ;;  %5251 = vmatprep.subr.bf16.mxu0 %v7426_v38  ;;  %v7475_v35 = vld [vmem:[%s8217_s26 + $0x848] ss:$16 sps:$4 sm:$0xff]   ;;  %v7480_v38 = vld [vmem:[%s8217_s26 + $0x62c] ss:$16 sps:$4 sm:$0xff]  }
 0x21d   : > { %5292 = vmatprep.subr.bf16.mxu1 %v7429_v40  ;;  %v7483_v40 = vld [vmem:[%s8217_s26 + $0x82c] ss:$16 sps:$4 sm:$0xff]  }
 0x21f   : > { %5252 = vmatpush2.bf16.msra.mxu0 %v7424_v45  ;;  %v7478_v45 = vld [vmem:[%s8217_s26 + $0x628] ss:$16 sps:$4 sm:$0xff]  }
 0x220   : > { %5293 = vmatpush2.bf16.msra.mxu1 %v7427_v1  ;;  %5253 = vmatprep.subr.bf16.mxu0 %v7432_v18  ;;  %v7481_v1 = vld [vmem:[%s8217_s26 + $0x828] ss:$16 sps:$4 sm:$0xff]   ;;  %v7486_v18 = vld [vmem:[%s8217_s26 + $0x60c] ss:$16 sps:$4 sm:$0xff]  }
 0x221   : > { %5294 = vmatprep.subr.bf16.mxu1 %v7435_v7  ;;  %v7489_v7 = vld [vmem:[%s8217_s26 + $0x80c] ss:$16 sps:$4 sm:$0xff]  }
 0x223   : > { %5254 = vmatpush2.bf16.msra.mxu0 %v7430_v33  ;;  %v7484_v33 = vld [vmem:[%s8217_s26 + $0x608] ss:$16 sps:$4 sm:$0xff]  }
 0x224   : > { %5295 = vmatpush2.bf16.msra.mxu1 %v7433_v46  ;;  %5255 = vmatprep.subr.bf16.mxu0 %v7438_v47  ;;  %v7487_v46 = vld [vmem:[%s8217_s26 + $0x808] ss:$16 sps:$4 sm:$0xff]   ;;  %v7492_v47 = vld [vmem:[%s8217_s26 + $0x7ec] ss:$16 sps:$4 sm:$0xff]  }
 0x225   : > { %5296 = vmatprep.subr.bf16.mxu1 %v7441_v39  ;;  %v7495_v39 = vld [vmem:[%s8217_s26 + $0x9ec] ss:$16 sps:$4 sm:$0xff]  }
 0x227   : > { %5256 = vmatpush2.bf16.msra.mxu0 %v7436_v48  ;;  %v7490_v48 = vld [vmem:[%s8217_s26 + $0x7e8] ss:$16 sps:$4 sm:$0xff]  }
 0x228   : > { %5297 = vmatpush2.bf16.msra.mxu1 %v7439_v61  ;;  %5307 = vmatprep.subr.bf16.mxu0 %v7444_v51  ;;  %v7493_v61 = vld [vmem:[%s8217_s26 + $0x9e8] ss:$16 sps:$4 sm:$0xff]   ;;  %v7498_v51 = vld [vmem:[%s8217_s26 + $0x7cc] ss:$16 sps:$4 sm:$0xff]  }
 0x229   : > { %5348 = vmatprep.subr.bf16.mxu1 %v7447_v52  ;;  %v7501_v52 = vld [vmem:[%s8217_s26 + $0x9cc] ss:$16 sps:$4 sm:$0xff]  }
 0x22a   : > { %v5013_v58 = vpop.f32.mrf.mxu0  ;;  %5258 = vmatmul.mubr.bf16.vlgmr.msra.gmra.mxu0 %v8343_v19 }
 0x22b   : > { %v5054_v59 = vpop.f32.mrf.mxu1  ;;  %5299 = vmatmul.mubr.bf16.vlgmr.msra.gmra.mxu1 %v8416_v27  ;;  %v5014_v62 = vadd.f32 %v5013_v58, %v8802_v29  ;;  %5308 = vmatpush1.bf16.msra.mxu0 %v7442_v53  ;;  %v7496_v53 = vld [vmem:[%s8217_s26 + $0x7c8] ss:$16 sps:$4 sm:$0xff]  }
 0x22c   : > { %5349 = vmatpush1.bf16.msra.mxu1 %v7445_v54  ;;  %v5015_v0 = vpop.f32.mrf.mxu0  ;;  %5309 = vmatprep.subr.bf16.mxu0 %v7450_v36  ;;  %v7499_v54 = vld [vmem:[%s8217_s26 + $0x9c8] ss:$16 sps:$4 sm:$0xff]   ;;  %v7504_v36 = vld [vmem:[%s8217_s26 + $0x7ac] ss:$16 sps:$4 sm:$0xff]  }
 0x22d   : > { %v5056_v6 = vpop.f32.mrf.mxu1  ;;  %5350 = vmatprep.subr.bf16.mxu1 %v7453_v57  ;;  %v8876_v11 = vadd.f32 %v5054_v59, %v5014_v62  ;;  %v5016_v19 = vadd.f32 %v5015_v0, %v8809_v37  ;;  %5339 = vmatprep.mubr.bf16.mxu0 %v8351_v24  ;;  %v7462_v24 = vld [vmem:[%s8217_s26 + $0x68c] ss:$16 sps:$4 sm:$0xff]   ;;  %v7460_v37 = vld [vmem:[%s8217_s26 + $0x688] ss:$16 sps:$4 sm:$0xff]  }
 0x22e   : > { %5380 = vmatprep.mubr.bf16.mxu1 %v8445_v42  ;;  %v5017_v27 = vpop.f32.mrf.mxu0  ;;  %v7465_v42 = vld [vmem:[%s8217_s26 + $0x88c] ss:$16 sps:$4 sm:$0xff]   ;;  %v7502_v58 = vld [vmem:[%s8217_s26 + $0x7a8] ss:$16 sps:$4 sm:$0xff]  }
 0x22f   : > { %v5058_v29 = vpop.f32.mrf.mxu1  ;;  %v8881_v12 = vadd.f32 %v5056_v6, %v5016_v19  ;;  %5310 = vmatpush1.bf16.msra.mxu0 %v7448_v63  ;;  %v7507_v57 = vld [vmem:[%s8217_s26 + $0x9ac] ss:$16 sps:$4 sm:$0xff]   ;;  %v7505_v59 = vld [vmem:[%s8217_s26 + $0x9a8] ss:$16 sps:$4 sm:$0xff]  }
 0x230   : > { %5351 = vmatpush1.bf16.msra.mxu1 %v7451_v2  ;;  %v5018_v17 = vpop.f32.mrf.mxu0  ;;  %5311 = vmatprep.subr.bf16.mxu0 %v7456_v8  ;;  %v7510_v62 = vld [vmem:[%s8217_s26 + $0x78c] ss:$16 sps:$4 sm:$0xff]   ;;  %v7508_v2 = vld [vmem:[%s8217_s26 + $0x788] ss:$16 sps:$4 sm:$0xff]  }
 0x231   : > { %v5059_v3 = vpop.f32.mrf.mxu1  ;;  %5352 = vmatprep.subr.bf16.mxu1 %v7459_v10  ;;  %v7513_v63 = vld [vmem:[%s8217_s26 + $0x98c] ss:$16 sps:$4 sm:$0xff]   ;;  %v7511_v0 = vld [vmem:[%s8217_s26 + $0x988] ss:$16 sps:$4 sm:$0xff]  }
 0x232   : > { %v7516_v6 = vld [vmem:[%s8217_s26 + $0x76c] ss:$16 sps:$4 sm:$0xff]   ;;  %v7514_v10 = vld [vmem:[%s8217_s26 + $0x768] ss:$16 sps:$4 sm:$0xff]  }
 0x233   : > { %5312 = vmatpush1.bf16.msra.mxu0 %v7454_v15  ;;  %v7519_v8 = vld [vmem:[%s8217_s26 + $0x96c] ss:$16 sps:$4 sm:$0xff]   ;;  %v7517_v19 = vld [vmem:[%s8217_s26 + $0x968] ss:$16 sps:$4 sm:$0xff]  }
 0x234   : > { %5353 = vmatpush1.bf16.msra.mxu1 %v7457_v16  ;;  %5313 = vmatprep.subr.bf16.mxu0 %v7462_v24  ;;  %v7522_v27 = vld [vmem:[%s8217_s26 + $0x74c] ss:$16 sps:$4 sm:$0xff]   ;;  %v7520_v15 = vld [vmem:[%s8217_s26 + $0x748] ss:$16 sps:$4 sm:$0xff]  }
 0x235   : > { %5354 = vmatprep.subr.bf16.mxu1 %v7465_v42  ;;  %v7525_v29 = vld [vmem:[%s8217_s26 + $0x94c] ss:$16 sps:$4 sm:$0xff]   ;;  %v7523_v16 = vld [vmem:[%s8217_s26 + $0x948] ss:$16 sps:$4 sm:$0xff]  }
 0x236   : > { %v7528_v17 = vld [vmem:[%s8217_s26 + $0x72c] ss:$16 sps:$4 sm:$0xff]   ;;  %v7526_v24 = vld [vmem:[%s8217_s26 + $0x728] ss:$16 sps:$4 sm:$0xff]  }
 0x237   : > { %5314 = vmatpush1.bf16.msra.mxu0 %v7460_v37  ;;  %v7531_v3 = vld [vmem:[%s8217_s26 + $0x92c] ss:$16 sps:$4 sm:$0xff]   ;;  %v7529_v42 = vld [vmem:[%s8217_s26 + $0x928] ss:$16 sps:$4 sm:$0xff]  }
 0x238   : > { %5355 = vmatpush1.bf16.msra.mxu1 %v7463_v22  ;;  %5315 = vmatprep.subr.bf16.mxu0 %v7468_v23  ;;  %v7534_v37 = vld [vmem:[%s8217_s26 + $0x70c] ss:$16 sps:$4 sm:$0xff]   ;;  %v7532_v23 = vld [vmem:[%s8217_s26 + $0x708] ss:$16 sps:$4 sm:$0xff]  }
 0x239   : > { %5356 = vmatprep.subr.bf16.mxu1 %v7471_v25  ;;  %v7537_v22 = vld [vmem:[%s8217_s26 + $0x90c] ss:$16 sps:$4 sm:$0xff]   ;;  %v7535_v25 = vld [vmem:[%s8217_s26 + $0x908] ss:$16 sps:$4 sm:$0xff]  }
 0x23b   : > { %5316 = vmatpush1.bf16.msra.mxu0 %v7466_v28  ;;  %v7540_v28 = vld [vmem:[%s8217_s26 + $0xaec] ss:$16 sps:$4 sm:$0xff]  }
 0x23c   : > { %5357 = vmatpush1.bf16.msra.mxu1 %v7469_v30  ;;  %5317 = vmatprep.subr.bf16.mxu0 %v7474_v32  ;;  %v7543_v30 = vld [vmem:[%s8217_s26 + $0xcec] ss:$16 sps:$4 sm:$0xff]   ;;  %v7538_v32 = vld [vmem:[%s8217_s26 + $0xae8] ss:$16 sps:$4 sm:$0xff]  }
 0x23d   : > { %5358 = vmatprep.subr.bf16.mxu1 %v7477_v34  ;;  %v7541_v34 = vld [vmem:[%s8217_s26 + $0xce8] ss:$16 sps:$4 sm:$0xff]  }
 0x23f   : > { %5318 = vmatpush1.bf16.msra.mxu0 %v7472_v14  ;;  %v7546_v14 = vld [vmem:[%s8217_s26 + $0xacc] ss:$16 sps:$4 sm:$0xff]  }
 0x240   : > { %5359 = vmatpush1.bf16.msra.mxu1 %v7475_v35  ;;  %5319 = vmatprep.subr.bf16.mxu0 %v7480_v38  ;;  %v7549_v35 = vld [vmem:[%s8217_s26 + $0xccc] ss:$16 sps:$4 sm:$0xff]  }
 0x241   : > { %5360 = vmatprep.subr.bf16.mxu1 %v7483_v40 }
 0x243   : > { %5320 = vmatpush1.bf16.msra.mxu0 %v7478_v45 }
 0x244   : > { %5361 = vmatpush1.bf16.msra.mxu1 %v7481_v1  ;;  %5321 = vmatprep.subr.bf16.mxu0 %v7486_v18  ;;  %v7544_v1 = vld [vmem:[%s8217_s26 + $0xac8] ss:$16 sps:$4 sm:$0xff]  }
 0x245   : > { %5362 = vmatprep.subr.bf16.mxu1 %v7489_v7  ;;  %v7547_v18 = vld [vmem:[%s8217_s26 + $0xcc8] ss:$16 sps:$4 sm:$0xff]  }
 0x247   : > { %5322 = vmatpush1.bf16.msra.mxu0 %v7484_v33 }
 0x248   : > { %5363 = vmatpush1.bf16.msra.mxu1 %v7487_v46  ;;  %5323 = vmatprep.subr.bf16.mxu0 %v7492_v47  ;;  %v7552_v46 = vld [vmem:[%s8217_s26 + $0xaac] ss:$16 sps:$4 sm:$0xff]  }
 0x249   : > { %5364 = vmatprep.subr.bf16.mxu1 %v7495_v39  ;;  %v7555_v47 = vld [vmem:[%s8217_s26 + $0xcac] ss:$16 sps:$4 sm:$0xff]  }
 0x24b   : > { %5324 = vmatpush2.bf16.msra.mxu0 %v7490_v48 }
 0x24c   : > { %5365 = vmatpush2.bf16.msra.mxu1 %v7493_v61  ;;  %5325 = vmatprep.subr.bf16.mxu0 %v7498_v51  ;;  %v7550_v61 = vld [vmem:[%s8217_s26 + $0xaa8] ss:$16 sps:$4 sm:$0xff]  }
 0x24d   : > { %5366 = vmatprep.subr.bf16.mxu1 %v7501_v52  ;;  %v7553_v51 = vld [vmem:[%s8217_s26 + $0xca8] ss:$16 sps:$4 sm:$0xff]  }
 0x24f   : > { %5326 = vmatpush2.bf16.msra.mxu0 %v7496_v53 }
 0x250   : > { %5367 = vmatpush2.bf16.msra.mxu1 %v7499_v54  ;;  %5327 = vmatprep.subr.bf16.mxu0 %v7504_v36  ;;  %v7559_v54 = vld [vmem:[%s8217_s26 + $0xc88] ss:$16 sps:$4 sm:$0xff]   ;;  %v7564_v36 = vld [vmem:[%s8217_s26 + $0xa6c] ss:$16 sps:$4 sm:$0xff]  }
 0x251   : > { %5368 = vmatprep.subr.bf16.mxu1 %v7507_v57  ;;  %v7567_v57 = vld [vmem:[%s8217_s26 + $0xc6c] ss:$16 sps:$4 sm:$0xff]  }
 0x253   : > { %5328 = vmatpush2.bf16.msra.mxu0 %v7502_v58  ;;  %v7562_v58 = vld [vmem:[%s8217_s26 + $0xa68] ss:$16 sps:$4 sm:$0xff]  }
 0x254   : > { %5369 = vmatpush2.bf16.msra.mxu1 %v7505_v59  ;;  %5329 = vmatprep.subr.bf16.mxu0 %v7510_v62  ;;  %v7565_v59 = vld [vmem:[%s8217_s26 + $0xc68] ss:$16 sps:$4 sm:$0xff]   ;;  %v7570_v62 = vld [vmem:[%s8217_s26 + $0xa4c] ss:$16 sps:$4 sm:$0xff]  }
 0x255   : > { %5370 = vmatprep.subr.bf16.mxu1 %v7513_v63  ;;  %v7573_v63 = vld [vmem:[%s8217_s26 + $0xc4c] ss:$16 sps:$4 sm:$0xff]  }
 0x257   : > { %5330 = vmatpush2.bf16.msra.mxu0 %v7508_v2  ;;  %v7568_v2 = vld [vmem:[%s8217_s26 + $0xa48] ss:$16 sps:$4 sm:$0xff]  }
 0x258   : > { %5371 = vmatpush2.bf16.msra.mxu1 %v7511_v0  ;;  %5331 = vmatprep.subr.bf16.mxu0 %v7516_v6  ;;  %v7571_v0 = vld [vmem:[%s8217_s26 + $0xc48] ss:$16 sps:$4 sm:$0xff]   ;;  %v7576_v6 = vld [vmem:[%s8217_s26 + $0xa2c] ss:$16 sps:$4 sm:$0xff]  }
 0x259   : > { %5372 = vmatprep.subr.bf16.mxu1 %v7519_v8  ;;  %v7579_v8 = vld [vmem:[%s8217_s26 + $0xc2c] ss:$16 sps:$4 sm:$0xff]  }
 0x25b   : > { %5332 = vmatpush2.bf16.msra.mxu0 %v7514_v10  ;;  %v7574_v10 = vld [vmem:[%s8217_s26 + $0xa28] ss:$16 sps:$4 sm:$0xff]  }
 0x25c   : > { %5373 = vmatpush2.bf16.msra.mxu1 %v7517_v19  ;;  %5333 = vmatprep.subr.bf16.mxu0 %v7522_v27  ;;  %v7577_v19 = vld [vmem:[%s8217_s26 + $0xc28] ss:$16 sps:$4 sm:$0xff]   ;;  %v7582_v27 = vld [vmem:[%s8217_s26 + $0xa0c] ss:$16 sps:$4 sm:$0xff]  }
 0x25d   : > { %5374 = vmatprep.subr.bf16.mxu1 %v7525_v29  ;;  %v7585_v29 = vld [vmem:[%s8217_s26 + $0xc0c] ss:$16 sps:$4 sm:$0xff]  }
 0x25f   : > { %5334 = vmatpush2.bf16.msra.mxu0 %v7520_v15  ;;  %v7580_v15 = vld [vmem:[%s8217_s26 + $0xa08] ss:$16 sps:$4 sm:$0xff]  }
 0x260   : > { %5375 = vmatpush2.bf16.msra.mxu1 %v7523_v16  ;;  %5335 = vmatprep.subr.bf16.mxu0 %v7528_v17  ;;  %v7583_v16 = vld [vmem:[%s8217_s26 + $0xc08] ss:$16 sps:$4 sm:$0xff]   ;;  %v7588_v17 = vld [vmem:[%s8217_s26 + $0xbec] ss:$16 sps:$4 sm:$0xff]  }
 0x261   : > { %5376 = vmatprep.subr.bf16.mxu1 %v7531_v3  ;;  %v7591_v3 = vld [vmem:[%s8217_s26 + $0xdec] ss:$16 sps:$4 sm:$0xff]  }
 0x263   : > { %5336 = vmatpush2.bf16.msra.mxu0 %v7526_v24  ;;  %v7586_v24 = vld [vmem:[%s8217_s26 + $0xbe8] ss:$16 sps:$4 sm:$0xff]  }
 0x264   : > { %5377 = vmatpush2.bf16.msra.mxu1 %v7529_v42  ;;  %5337 = vmatprep.subr.bf16.mxu0 %v7534_v37  ;;  %v7589_v42 = vld [vmem:[%s8217_s26 + $0xde8] ss:$16 sps:$4 sm:$0xff]   ;;  %v7594_v37 = vld [vmem:[%s8217_s26 + $0xbcc] ss:$16 sps:$4 sm:$0xff]  }
 0x265   : > { %5378 = vmatprep.subr.bf16.mxu1 %v7537_v22  ;;  %v7597_v22 = vld [vmem:[%s8217_s26 + $0xdcc] ss:$16 sps:$4 sm:$0xff]  }
 0x267   : > { %5338 = vmatpush2.bf16.msra.mxu0 %v7532_v23  ;;  %v7592_v23 = vld [vmem:[%s8217_s26 + $0xbc8] ss:$16 sps:$4 sm:$0xff]  }
 0x268   : > { %5379 = vmatpush2.bf16.msra.mxu1 %v7535_v25  ;;  %5389 = vmatprep.subr.bf16.mxu0 %v7540_v28  ;;  %v7595_v25 = vld [vmem:[%s8217_s26 + $0xdc8] ss:$16 sps:$4 sm:$0xff]   ;;  %v7600_v28 = vld [vmem:[%s8217_s26 + $0xbac] ss:$16 sps:$4 sm:$0xff]  }
 0x269   : > { %5430 = vmatprep.subr.bf16.mxu1 %v7543_v30  ;;  %v7603_v30 = vld [vmem:[%s8217_s26 + $0xdac] ss:$16 sps:$4 sm:$0xff]  }
 0x26a   : > { %v5095_v38 = vpop.f32.mrf.mxu0  ;;  %5340 = vmatmul.mubr.bf16.vlgmr.msra.gmra.mxu0 %v8423_v31 }
 0x26b   : > { %v5136_v40 = vpop.f32.mrf.mxu1  ;;  %5381 = vmatmul.mubr.bf16.vlgmr.msra.gmra.mxu1 %v8514_v49  ;;  %v5096_v45 = vadd.f32 %v5095_v38, %v8876_v11  ;;  %5390 = vmatpush1.bf16.msra.mxu0 %v7538_v32  ;;  %v7598_v32 = vld [vmem:[%s8217_s26 + $0xba8] ss:$16 sps:$4 sm:$0xff]  }
 0x26c   : > { %5431 = vmatpush1.bf16.msra.mxu1 %v7541_v34  ;;  %v5097_v7 = vpop.f32.mrf.mxu0  ;;  %5391 = vmatprep.subr.bf16.mxu0 %v7546_v14  ;;  %v7601_v34 = vld [vmem:[%s8217_s26 + $0xda8] ss:$16 sps:$4 sm:$0xff]   ;;  %v7606_v14 = vld [vmem:[%s8217_s26 + $0xb8c] ss:$16 sps:$4 sm:$0xff]  }
 0x26d   : > { %v5138_v33 = vpop.f32.mrf.mxu1  ;;  %5432 = vmatprep.subr.bf16.mxu1 %v7549_v35  ;;  %v8950_v39 = vadd.f32 %v5136_v40, %v5096_v45  ;;  %v5098_v31 = vadd.f32 %v5097_v7, %v8881_v12  ;;  %5421 = vmatprep.mubr.bf16.mxu0 %v8450_v43  ;;  %v7558_v43 = vld [vmem:[%s8217_s26 + $0xa8c] ss:$16 sps:$4 sm:$0xff]   ;;  %v7556_v12 = vld [vmem:[%s8217_s26 + $0xa88] ss:$16 sps:$4 sm:$0xff]  }
 0x26e   : > { %5462 = vmatprep.mubr.bf16.mxu1 %v8521_v55  ;;  %v5099_v49 = vpop.f32.mrf.mxu0  ;;  %v7561_v55 = vld [vmem:[%s8217_s26 + $0xc8c] ss:$16 sps:$4 sm:$0xff]   ;;  %v7604_v38 = vld [vmem:[%s8217_s26 + $0xb88] ss:$16 sps:$4 sm:$0xff]  }
 0x26f   : > { %v5140_v11 = vpop.f32.mrf.mxu1  ;;  %v8955_v48 = vadd.f32 %v5138_v33, %v5098_v31  ;;  %5392 = vmatpush1.bf16.msra.mxu0 %v7544_v1  ;;  %v7609_v35 = vld [vmem:[%s8217_s26 + $0xd8c] ss:$16 sps:$4 sm:$0xff]   ;;  %v7607_v40 = vld [vmem:[%s8217_s26 + $0xd88] ss:$16 sps:$4 sm:$0xff]  }
 0x270   : > { %5433 = vmatpush1.bf16.msra.mxu1 %v7547_v18  ;;  %v5100_v52 = vpop.f32.mrf.mxu0  ;;  %5393 = vmatprep.subr.bf16.mxu0 %v7552_v46  ;;  %v7612_v45 = vld [vmem:[%s8217_s26 + $0xb6c] ss:$16 sps:$4 sm:$0xff]   ;;  %v7610_v18 = vld [vmem:[%s8217_s26 + $0xb68] ss:$16 sps:$4 sm:$0xff]  }
 0x271   : > { %v5141_v53 = vpop.f32.mrf.mxu1  ;;  %5434 = vmatprep.subr.bf16.mxu1 %v7555_v47  ;;  %v7615_v1 = vld [vmem:[%s8217_s26 + $0xd6c] ss:$16 sps:$4 sm:$0xff]   ;;  %v7613_v7 = vld [vmem:[%s8217_s26 + $0xd68] ss:$16 sps:$4 sm:$0xff]  }
 0x272   : > { %v7618_v33 = vld [vmem:[%s8217_s26 + $0xb4c] ss:$16 sps:$4 sm:$0xff]   ;;  %v7616_v47 = vld [vmem:[%s8217_s26 + $0xb48] ss:$16 sps:$4 sm:$0xff]  }
 0x273   : > { %5394 = vmatpush1.bf16.msra.mxu0 %v7550_v61  ;;  %v7621_v46 = vld [vmem:[%s8217_s26 + $0xd4c] ss:$16 sps:$4 sm:$0xff]   ;;  %v7619_v31 = vld [vmem:[%s8217_s26 + $0xd48] ss:$16 sps:$4 sm:$0xff]  }
 0x274   : > { %5435 = vmatpush1.bf16.msra.mxu1 %v7553_v51  ;;  %5395 = vmatprep.subr.bf16.mxu0 %v7558_v43  ;;  %v7624_v49 = vld [vmem:[%s8217_s26 + $0xb2c] ss:$16 sps:$4 sm:$0xff]   ;;  %v7622_v61 = vld [vmem:[%s8217_s26 + $0xb28] ss:$16 sps:$4 sm:$0xff]  }
 0x275   : > { %5436 = vmatprep.subr.bf16.mxu1 %v7561_v55  ;;  %v7627_v11 = vld [vmem:[%s8217_s26 + $0xd2c] ss:$16 sps:$4 sm:$0xff]   ;;  %v7625_v51 = vld [vmem:[%s8217_s26 + $0xd28] ss:$16 sps:$4 sm:$0xff]  }
 0x276   : > { %v7630_v52 = vld [vmem:[%s8217_s26 + $0xb0c] ss:$16 sps:$4 sm:$0xff]   ;;  %v7628_v43 = vld [vmem:[%s8217_s26 + $0xb08] ss:$16 sps:$4 sm:$0xff]  }
 0x277   : > { %5396 = vmatpush1.bf16.msra.mxu0 %v7556_v12  ;;  %v7633_v53 = vld [vmem:[%s8217_s26 + $0xd0c] ss:$16 sps:$4 sm:$0xff]   ;;  %v7631_v55 = vld [vmem:[%s8217_s26 + $0xd08] ss:$16 sps:$4 sm:$0xff]  }
 0x278   : > { %5437 = vmatpush1.bf16.msra.mxu1 %v7559_v54  ;;  %5397 = vmatprep.subr.bf16.mxu0 %v7564_v36  ;;  %v7636_v12 = vld [vmem:[%s8217_s26 + $0xeec] ss:$16 sps:$4 sm:$0xff]   ;;  %v7634_v36 = vld [vmem:[%s8217_s26 + $0xee8] ss:$16 sps:$4 sm:$0xff]  }
 0x279   : > { %5438 = vmatprep.subr.bf16.mxu1 %v7567_v57  ;;  %v7639_v54 = vld [vmem:[%s8217_s26 + $0x10ec] ss:$16 sps:$4 sm:$0xff]   ;;  %v7637_v57 = vld [vmem:[%s8217_s26 + $0x10e8] ss:$16 sps:$4 sm:$0xff]  }
 0x27b   : > { %5398 = vmatpush1.bf16.msra.mxu0 %v7562_v58  ;;  %v7642_v58 = vld [vmem:[%s8217_s26 + $0xecc] ss:$16 sps:$4 sm:$0xff]  }
 0x27c   : > { %5439 = vmatpush1.bf16.msra.mxu1 %v7565_v59  ;;  %5399 = vmatprep.subr.bf16.mxu0 %v7570_v62  ;;  %v7645_v59 = vld [vmem:[%s8217_s26 + $0x10cc] ss:$16 sps:$4 sm:$0xff]  }
 0x27d   : > { %5440 = vmatprep.subr.bf16.mxu1 %v7573_v63 }
 0x27f   : > { %5400 = vmatpush1.bf16.msra.mxu0 %v7568_v2 }
 0x280   : > { %5441 = vmatpush1.bf16.msra.mxu1 %v7571_v0  ;;  %5401 = vmatprep.subr.bf16.mxu0 %v7576_v6  ;;  %v7640_v0 = vld [vmem:[%s8217_s26 + $0xec8] ss:$16 sps:$4 sm:$0xff]  }
 0x281   : > { %5442 = vmatprep.subr.bf16.mxu1 %v7579_v8  ;;  %v7643_v6 = vld [vmem:[%s8217_s26 + $0x10c8] ss:$16 sps:$4 sm:$0xff]  }
 0x283   : > { %5402 = vmatpush1.bf16.msra.mxu0 %v7574_v10 }
 0x284   : > { %5443 = vmatpush1.bf16.msra.mxu1 %v7577_v19  ;;  %5403 = vmatprep.subr.bf16.mxu0 %v7582_v27  ;;  %v7648_v19 = vld [vmem:[%s8217_s26 + $0xeac] ss:$16 sps:$4 sm:$0xff]  }
 0x285   : > { %5444 = vmatprep.subr.bf16.mxu1 %v7585_v29  ;;  %v7651_v27 = vld [vmem:[%s8217_s26 + $0x10ac] ss:$16 sps:$4 sm:$0xff]  }
 0x287   : > { %5404 = vmatpush1.bf16.msra.mxu0 %v7580_v15  ;;  %v7646_v15 = vld [vmem:[%s8217_s26 + $0xea8] ss:$16 sps:$4 sm:$0xff]  }
 0x288   : > { %5445 = vmatpush1.bf16.msra.mxu1 %v7583_v16  ;;  %5405 = vmatprep.subr.bf16.mxu0 %v7588_v17  ;;  %v7649_v16 = vld [vmem:[%s8217_s26 + $0x10a8] ss:$16 sps:$4 sm:$0xff]  }
 0x289   : > { %5446 = vmatprep.subr.bf16.mxu1 %v7591_v3  ;;  %v7652_v3 = vld [vmem:[%s8217_s26 + $0xe88] ss:$16 sps:$4 sm:$0xff]  }
 0x28b   : > { %5406 = vmatpush2.bf16.msra.mxu0 %v7586_v24  ;;  %v7655_v24 = vld [vmem:[%s8217_s26 + $0x1088] ss:$16 sps:$4 sm:$0xff]  }
 0x28c   : > { %5447 = vmatpush2.bf16.msra.mxu1 %v7589_v42  ;;  %5407 = vmatprep.subr.bf16.mxu0 %v7594_v37  ;;  %v7660_v42 = vld [vmem:[%s8217_s26 + $0xe6c] ss:$16 sps:$4 sm:$0xff]  }
 0x28d   : > { %5448 = vmatprep.subr.bf16.mxu1 %v7597_v22  ;;  %v7663_v37 = vld [vmem:[%s8217_s26 + $0x106c] ss:$16 sps:$4 sm:$0xff]   ;;  %v7658_v22 = vld [vmem:[%s8217_s26 + $0xe68] ss:$16 sps:$4 sm:$0xff]  }
 0x28f   : > { %5408 = vmatpush2.bf16.msra.mxu0 %v7592_v23  ;;  %v7661_v23 = vld [vmem:[%s8217_s26 + $0x1068] ss:$16 sps:$4 sm:$0xff]  }
 0x290   : > { %5449 = vmatpush2.bf16.msra.mxu1 %v7595_v25  ;;  %5409 = vmatprep.subr.bf16.mxu0 %v7600_v28  ;;  %v7666_v25 = vld [vmem:[%s8217_s26 + $0xe4c] ss:$16 sps:$4 sm:$0xff]  }
 0x291   : > { %5450 = vmatprep.subr.bf16.mxu1 %v7603_v30  ;;  %v7669_v28 = vld [vmem:[%s8217_s26 + $0x104c] ss:$16 sps:$4 sm:$0xff]   ;;  %v7664_v30 = vld [vmem:[%s8217_s26 + $0xe48] ss:$16 sps:$4 sm:$0xff]  }
 0x293   : > { %5410 = vmatpush2.bf16.msra.mxu0 %v7598_v32  ;;  %v7667_v32 = vld [vmem:[%s8217_s26 + $0x1048] ss:$16 sps:$4 sm:$0xff]  }
 0x294   : > { %5451 = vmatpush2.bf16.msra.mxu1 %v7601_v34  ;;  %5411 = vmatprep.subr.bf16.mxu0 %v7606_v14  ;;  %v7672_v34 = vld [vmem:[%s8217_s26 + $0xe2c] ss:$16 sps:$4 sm:$0xff]  }
 0x295   : > { %5452 = vmatprep.subr.bf16.mxu1 %v7609_v35  ;;  %v7675_v14 = vld [vmem:[%s8217_s26 + $0x102c] ss:$16 sps:$4 sm:$0xff]   ;;  %v7670_v35 = vld [vmem:[%s8217_s26 + $0xe28] ss:$16 sps:$4 sm:$0xff]  }
 0x297   : > { %5412 = vmatpush2.bf16.msra.mxu0 %v7604_v38  ;;  %v7673_v38 = vld [vmem:[%s8217_s26 + $0x1028] ss:$16 sps:$4 sm:$0xff]  }
 0x298   : > { %5453 = vmatpush2.bf16.msra.mxu1 %v7607_v40  ;;  %5413 = vmatprep.subr.bf16.mxu0 %v7612_v45  ;;  %v7678_v40 = vld [vmem:[%s8217_s26 + $0xe0c] ss:$16 sps:$4 sm:$0xff]  }
 0x299   : > { %5454 = vmatprep.subr.bf16.mxu1 %v7615_v1  ;;  %v7681_v45 = vld [vmem:[%s8217_s26 + $0x100c] ss:$16 sps:$4 sm:$0xff]   ;;  %v7676_v1 = vld [vmem:[%s8217_s26 + $0xe08] ss:$16 sps:$4 sm:$0xff]  }
 0x29b   : > { %5414 = vmatpush2.bf16.msra.mxu0 %v7610_v18  ;;  %v7679_v18 = vld [vmem:[%s8217_s26 + $0x1008] ss:$16 sps:$4 sm:$0xff]  }
 0x29c   : > { %5455 = vmatpush2.bf16.msra.mxu1 %v7613_v7  ;;  %5415 = vmatprep.subr.bf16.mxu0 %v7618_v33  ;;  %v7684_v7 = vld [vmem:[%s8217_s26 + $0xfec] ss:$16 sps:$4 sm:$0xff]  }
 0x29d   : > { %5456 = vmatprep.subr.bf16.mxu1 %v7621_v46  ;;  %v7687_v33 = vld [vmem:[%s8217_s26 + $0x11ec] ss:$16 sps:$4 sm:$0xff]   ;;  %v7682_v46 = vld [vmem:[%s8217_s26 + $0xfe8] ss:$16 sps:$4 sm:$0xff]  }
 0x29f   : > { %5416 = vmatpush2.bf16.msra.mxu0 %v7616_v47  ;;  %v7685_v47 = vld [vmem:[%s8217_s26 + $0x11e8] ss:$16 sps:$4 sm:$0xff]  }
 0x2a0   : > { %5457 = vmatpush2.bf16.msra.mxu1 %v7619_v31  ;;  %5417 = vmatprep.subr.bf16.mxu0 %v7624_v49  ;;  %v7690_v31 = vld [vmem:[%s8217_s26 + $0xfcc] ss:$16 sps:$4 sm:$0xff]  }
 0x2a1   : > { %5458 = vmatprep.subr.bf16.mxu1 %v7627_v11  ;;  %v7693_v49 = vld [vmem:[%s8217_s26 + $0x11cc] ss:$16 sps:$4 sm:$0xff]   ;;  %v7688_v11 = vld [vmem:[%s8217_s26 + $0xfc8] ss:$16 sps:$4 sm:$0xff]  }
 0x2a3   : > { %5418 = vmatpush2.bf16.msra.mxu0 %v7622_v61  ;;  %v7691_v61 = vld [vmem:[%s8217_s26 + $0x11c8] ss:$16 sps:$4 sm:$0xff]  }
 0x2a4   : > { %5459 = vmatpush2.bf16.msra.mxu1 %v7625_v51  ;;  %5419 = vmatprep.subr.bf16.mxu0 %v7630_v52  ;;  %v7696_v51 = vld [vmem:[%s8217_s26 + $0xfac] ss:$16 sps:$4 sm:$0xff]  }
 0x2a5   : > { %5460 = vmatprep.subr.bf16.mxu1 %v7633_v53  ;;  %v7699_v52 = vld [vmem:[%s8217_s26 + $0x11ac] ss:$16 sps:$4 sm:$0xff]   ;;  %v7694_v53 = vld [vmem:[%s8217_s26 + $0xfa8] ss:$16 sps:$4 sm:$0xff]  }
 0x2a7   : > { %5420 = vmatpush2.bf16.msra.mxu0 %v7628_v43  ;;  %v7697_v43 = vld [vmem:[%s8217_s26 + $0x11a8] ss:$16 sps:$4 sm:$0xff]  }
 0x2a8   : > { %5461 = vmatpush2.bf16.msra.mxu1 %v7631_v55  ;;  %5471 = vmatprep.subr.bf16.mxu0 %v7636_v12  ;;  %v7702_v55 = vld [vmem:[%s8217_s26 + $0xf8c] ss:$16 sps:$4 sm:$0xff]  }
 0x2a9   : > { %5512 = vmatprep.subr.bf16.mxu1 %v7639_v54  ;;  %v7705_v12 = vld [vmem:[%s8217_s26 + $0x118c] ss:$16 sps:$4 sm:$0xff]   ;;  %v7700_v54 = vld [vmem:[%s8217_s26 + $0xf88] ss:$16 sps:$4 sm:$0xff]  }
 0x2aa   : > { %v5177_v62 = vpop.f32.mrf.mxu0  ;;  %5422 = vmatmul.mubr.bf16.vlgmr.msra.gmra.mxu0 %v8525_v56 }
 0x2ab   : > { %v9017_v63 = vpop.f32.mrf.mxu1  ;;  %5463 = vmatmul.mubr.bf16.vlgmr.msra.gmra.mxu1 %v8607_v13  ;;  %v9022_v2 = vadd.f32 %v5177_v62, %v8950_v39  ;;  %5472 = vmatpush1.bf16.msra.mxu0 %v7634_v36  ;;  %v7703_v36 = vld [vmem:[%s8217_s26 + $0x1188] ss:$16 sps:$4 sm:$0xff]  }
 0x2ac   : > { %5513 = vmatpush1.bf16.msra.mxu1 %v7637_v57  ;;  %v5179_v8 = vpop.f32.mrf.mxu0  ;;  %5473 = vmatprep.subr.bf16.mxu0 %v7642_v58  ;;  %v7708_v57 = vld [vmem:[%s8217_s26 + $0xf6c] ss:$16 sps:$4 sm:$0xff]   ;;  %v7709_v62 = vld [vmem:[%s8217_s26 + $0x1168] ss:$16 sps:$4 sm:$0xff]  }
 0x2ad   : > { %v9026_v10 = vpop.f32.mrf.mxu1  ;;  %5514 = vmatprep.subr.bf16.mxu1 %v7645_v59  ;;  %v9031_v56 = vadd.f32 %v5179_v8, %v8955_v48  ;;  %5503 = vmatprep.mubr.bf16.mxu0 %v8533_v60  ;;  %v7654_v60 = vld [vmem:[%s8217_s26 + $0xe8c] ss:$16 sps:$4 sm:$0xff]   ;;  %v7706_v59 = vld [vmem:[%s8217_s26 + $0xf68] ss:$16 sps:$4 sm:$0xff]  }
 0x2ae   : > { %5544 = vmatprep.mubr.bf16.mxu1 %v8613_v20  ;;  %v5181_v13 = vpop.f32.mrf.mxu0  ;;  %v7657_v20 = vld [vmem:[%s8217_s26 + $0x108c] ss:$16 sps:$4 sm:$0xff]   ;;  %v7712_v8 = vld [vmem:[%s8217_s26 + $0xf48] ss:$16 sps:$4 sm:$0xff]  }
 0x2af   : > { %v5222_v39 = vpop.f32.mrf.mxu1  ;;  %v5639_v29 = vcombine.low %v9022_v2, %v9031_v56  ;;  %5474 = vmatpush1.bf16.msra.mxu0 %v7640_v0  ;;  %v7711_v58 = vld [vmem:[%s8217_s26 + $0x116c] ss:$16 sps:$4 sm:$0xff]  }
 0x2b0   : > { %5515 = vmatpush1.bf16.msra.mxu1 %v7643_v6  ;;  %v5182_v17 = vpop.f32.mrf.mxu0  ;;  %5475 = vmatprep.subr.bf16.mxu0 %v7648_v19  ;;  %v7714_v0 = vld [vmem:[%s8217_s26 + $0xf4c] ss:$16 sps:$4 sm:$0xff]   ;;  %v7715_v19 = vld [vmem:[%s8217_s26 + $0x1148] ss:$16 sps:$4 sm:$0xff]  }
 0x2b1   : > { %v5223_v48 = vpop.f32.mrf.mxu1  ;;  %5516 = vmatprep.subr.bf16.mxu1 %v7651_v27  ;;  %v7717_v6 = vld [vmem:[%s8217_s26 + $0x114c] ss:$16 sps:$4 sm:$0xff]   ;;  %v7718_v39 = vld [vmem:[%s8217_s26 + $0xf28] ss:$16 sps:$4 sm:$0xff]  }
 0x2b2   : > { %v7720_v27 = vld [vmem:[%s8217_s26 + $0xf2c] ss:$16 sps:$4 sm:$0xff]   ;;  %v7724_v48 = vld [vmem:[%s8217_s26 + $0xf08] ss:$16 sps:$4 sm:$0xff]  }
 0x2b3   : > { %5476 = vmatpush1.bf16.msra.mxu0 %v7646_v15  ;;  %v7723_v13 = vld [vmem:[%s8217_s26 + $0x112c] ss:$16 sps:$4 sm:$0xff]   ;;  %v7721_v15 = vld [vmem:[%s8217_s26 + $0x1128] ss:$16 sps:$4 sm:$0xff]  }
 0x2b4   : > { %5517 = vmatpush1.bf16.msra.mxu1 %v7649_v16  ;;  %5477 = vmatprep.subr.bf16.mxu0 %v7654_v60  ;;  %v7726_v16 = vld [vmem:[%s8217_s26 + $0xf0c] ss:$16 sps:$4 sm:$0xff]   ;;  %v7727_v60 = vld [vmem:[%s8217_s26 + $0x1108] ss:$16 sps:$4 sm:$0xff]  }
 0x2b5   : > { %5518 = vmatprep.subr.bf16.mxu1 %v7657_v20  ;;  %v7729_v17 = vld [vmem:[%s8217_s26 + $0x110c] ss:$16 sps:$4 sm:$0xff]  }
 0x2b6   : > { %v7732_v20 = vld [vmem:[%s8217_s26 + $0x12ec] ss:$16 sps:$4 sm:$0xff]  }
 0x2b7   : > { %5478 = vmatpush1.bf16.msra.mxu0 %v7652_v3  ;;  %v7735_v3 = vld [vmem:[%s8217_s26 + $0x14ec] ss:$16 sps:$4 sm:$0xff]  }
 0x2b8   : > { %5519 = vmatpush1.bf16.msra.mxu1 %v7655_v24  ;;  %5479 = vmatprep.subr.bf16.mxu0 %v7660_v42  ;;  %v7730_v24 = vld [vmem:[%s8217_s26 + $0x12e8] ss:$16 sps:$4 sm:$0xff]  }
 0x2b9   : > { %5520 = vmatprep.subr.bf16.mxu1 %v7663_v37  ;;  %v7733_v42 = vld [vmem:[%s8217_s26 + $0x14e8] ss:$16 sps:$4 sm:$0xff]   ;;  %v7738_v37 = vld [vmem:[%s8217_s26 + $0x12cc] ss:$16 sps:$4 sm:$0xff]  }
 0x2bb   : > { %5480 = vmatpush1.bf16.msra.mxu0 %v7658_v22  ;;  %v7741_v22 = vld [vmem:[%s8217_s26 + $0x14cc] ss:$16 sps:$4 sm:$0xff]  }
 0x2bc   : > { %5521 = vmatpush1.bf16.msra.mxu1 %v7661_v23  ;;  %5481 = vmatprep.subr.bf16.mxu0 %v7666_v25 }
 0x2bd   : > { %5522 = vmatprep.subr.bf16.mxu1 %v7669_v28 }
 0x2bf   : > { %5482 = vmatpush1.bf16.msra.mxu0 %v7664_v30  ;;  %v7736_v30 = vld [vmem:[%s8217_s26 + $0x12c8] ss:$16 sps:$4 sm:$0xff]  }
 0x2c0   : > { %5523 = vmatpush1.bf16.msra.mxu1 %v7667_v32  ;;  %5483 = vmatprep.subr.bf16.mxu0 %v7672_v34  ;;  %v7739_v32 = vld [vmem:[%s8217_s26 + $0x14c8] ss:$16 sps:$4 sm:$0xff]  }
 0x2c1   : > { %5524 = vmatprep.subr.bf16.mxu1 %v7675_v14 }
 0x2c3   : > { %5484 = vmatpush1.bf16.msra.mxu0 %v7670_v35  ;;  %v7744_v35 = vld [vmem:[%s8217_s26 + $0x12ac] ss:$16 sps:$4 sm:$0xff]  }
 0x2c4   : > { %5525 = vmatpush1.bf16.msra.mxu1 %v7673_v38  ;;  %5485 = vmatprep.subr.bf16.mxu0 %v7678_v40  ;;  %v7747_v38 = vld [vmem:[%s8217_s26 + $0x14ac] ss:$16 sps:$4 sm:$0xff]  }
 0x2c5   : > { %5526 = vmatprep.subr.bf16.mxu1 %v7681_v45 }
 0x2c7   : > { %5486 = vmatpush1.bf16.msra.mxu0 %v7676_v1  ;;  %v7742_v1 = vld [vmem:[%s8217_s26 + $0x12a8] ss:$16 sps:$4 sm:$0xff]  }
 0x2c8   : > { %5527 = vmatpush1.bf16.msra.mxu1 %v7679_v18  ;;  %5487 = vmatprep.subr.bf16.mxu0 %v7684_v7  ;;  %v7745_v18 = vld [vmem:[%s8217_s26 + $0x14a8] ss:$16 sps:$4 sm:$0xff]  }
 0x2c9   : > { %5528 = vmatprep.subr.bf16.mxu1 %v7687_v33 }
 0x2cb   : > { %5488 = vmatpush2.bf16.msra.mxu0 %v7682_v46  ;;  %v7751_v46 = vld [vmem:[%s8217_s26 + $0x1488] ss:$16 sps:$4 sm:$0xff]  }
 0x2cc   : > { %5529 = vmatpush2.bf16.msra.mxu1 %v7685_v47  ;;  %5489 = vmatprep.subr.bf16.mxu0 %v7690_v31  ;;  %v7756_v47 = vld [vmem:[%s8217_s26 + $0x126c] ss:$16 sps:$4 sm:$0xff]  }
 0x2cd   : > { %5530 = vmatprep.subr.bf16.mxu1 %v7693_v49  ;;  %v7759_v31 = vld [vmem:[%s8217_s26 + $0x146c] ss:$16 sps:$4 sm:$0xff]   ;;  %v7754_v49 = vld [vmem:[%s8217_s26 + $0x1268] ss:$16 sps:$4 sm:$0xff]  }
 0x2cf   : > { %5490 = vmatpush2.bf16.msra.mxu0 %v7688_v11  ;;  %v7757_v11 = vld [vmem:[%s8217_s26 + $0x1468] ss:$16 sps:$4 sm:$0xff]  }
 0x2d0   : > { %5531 = vmatpush2.bf16.msra.mxu1 %v7691_v61  ;;  %5491 = vmatprep.subr.bf16.mxu0 %v7696_v51  ;;  %v7762_v61 = vld [vmem:[%s8217_s26 + $0x124c] ss:$16 sps:$4 sm:$0xff]  }
 0x2d1   : > { %5532 = vmatprep.subr.bf16.mxu1 %v7699_v52  ;;  %v7765_v51 = vld [vmem:[%s8217_s26 + $0x144c] ss:$16 sps:$4 sm:$0xff]   ;;  %v7760_v52 = vld [vmem:[%s8217_s26 + $0x1248] ss:$16 sps:$4 sm:$0xff]  }
 0x2d3   : > { %5492 = vmatpush2.bf16.msra.mxu0 %v7694_v53  ;;  %v7763_v53 = vld [vmem:[%s8217_s26 + $0x1448] ss:$16 sps:$4 sm:$0xff]  }
 0x2d4   : > { %5533 = vmatpush2.bf16.msra.mxu1 %v7697_v43  ;;  %5493 = vmatprep.subr.bf16.mxu0 %v7702_v55  ;;  %v7768_v43 = vld [vmem:[%s8217_s26 + $0x122c] ss:$16 sps:$4 sm:$0xff]  }
 0x2d5   : > { %5534 = vmatprep.subr.bf16.mxu1 %v7705_v12  ;;  %v7771_v55 = vld [vmem:[%s8217_s26 + $0x142c] ss:$16 sps:$4 sm:$0xff]   ;;  %v7766_v12 = vld [vmem:[%s8217_s26 + $0x1228] ss:$16 sps:$4 sm:$0xff]  }
 0x2d7   : > { %5494 = vmatpush2.bf16.msra.mxu0 %v7700_v54  ;;  %v7769_v54 = vld [vmem:[%s8217_s26 + $0x1428] ss:$16 sps:$4 sm:$0xff]  }
 0x2d8   : > { %5535 = vmatpush2.bf16.msra.mxu1 %v7703_v36  ;;  %5495 = vmatprep.subr.bf16.mxu0 %v7708_v57  ;;  %v7774_v36 = vld [vmem:[%s8217_s26 + $0x120c] ss:$16 sps:$4 sm:$0xff]  }
 0x2d9   : > { %5536 = vmatprep.subr.bf16.mxu1 %v7711_v58  ;;  %v7777_v57 = vld [vmem:[%s8217_s26 + $0x140c] ss:$16 sps:$4 sm:$0xff]   ;;  %v7772_v58 = vld [vmem:[%s8217_s26 + $0x1208] ss:$16 sps:$4 sm:$0xff]  }
 0x2db   : > { %5496 = vmatpush2.bf16.msra.mxu0 %v7706_v59  ;;  %v7775_v59 = vld [vmem:[%s8217_s26 + $0x1408] ss:$16 sps:$4 sm:$0xff]  }
 0x2dc   : > { %5537 = vmatpush2.bf16.msra.mxu1 %v7709_v62  ;;  %5497 = vmatprep.subr.bf16.mxu0 %v7714_v0  ;;  %v7780_v62 = vld [vmem:[%s8217_s26 + $0x13ec] ss:$16 sps:$4 sm:$0xff]  }
 0x2dd   : > { %5538 = vmatprep.subr.bf16.mxu1 %v7717_v6  ;;  %v7783_v0 = vld [vmem:[%s8217_s26 + $0x15ec] ss:$16 sps:$4 sm:$0xff]   ;;  %v7778_v6 = vld [vmem:[%s8217_s26 + $0x13e8] ss:$16 sps:$4 sm:$0xff]  }
 0x2df   : > { %5498 = vmatpush2.bf16.msra.mxu0 %v7712_v8  ;;  %v7781_v8 = vld [vmem:[%s8217_s26 + $0x15e8] ss:$16 sps:$4 sm:$0xff]  }
 0x2e0   : > { %5539 = vmatpush2.bf16.msra.mxu1 %v7715_v19  ;;  %5499 = vmatprep.subr.bf16.mxu0 %v7720_v27  ;;  %v7786_v19 = vld [vmem:[%s8217_s26 + $0x13cc] ss:$16 sps:$4 sm:$0xff]  }
 0x2e1   : > { %5540 = vmatprep.subr.bf16.mxu1 %v7723_v13  ;;  %v7789_v27 = vld [vmem:[%s8217_s26 + $0x15cc] ss:$16 sps:$4 sm:$0xff]   ;;  %v7784_v13 = vld [vmem:[%s8217_s26 + $0x13c8] ss:$16 sps:$4 sm:$0xff]  }
 0x2e3   : > { %5500 = vmatpush2.bf16.msra.mxu0 %v7718_v39  ;;  %v7787_v39 = vld [vmem:[%s8217_s26 + $0x15c8] ss:$16 sps:$4 sm:$0xff]  }
 0x2e4   : > { %5541 = vmatpush2.bf16.msra.mxu1 %v7721_v15  ;;  %5501 = vmatprep.subr.bf16.mxu0 %v7726_v16  ;;  %v7792_v15 = vld [vmem:[%s8217_s26 + $0x13ac] ss:$16 sps:$4 sm:$0xff]  }
 0x2e5   : > { %5542 = vmatprep.subr.bf16.mxu1 %v7729_v17  ;;  %v7795_v16 = vld [vmem:[%s8217_s26 + $0x15ac] ss:$16 sps:$4 sm:$0xff]   ;;  %v7790_v17 = vld [vmem:[%s8217_s26 + $0x13a8] ss:$16 sps:$4 sm:$0xff]  }
 0x2e7   : > { %5502 = vmatpush2.bf16.msra.mxu0 %v7724_v48  ;;  %v7793_v48 = vld [vmem:[%s8217_s26 + $0x15a8] ss:$16 sps:$4 sm:$0xff]  }
 0x2e8   : > { %5543 = vmatpush2.bf16.msra.mxu1 %v7727_v60  ;;  %5553 = vmatprep.subr.bf16.mxu0 %v7732_v20  ;;  %v7798_v60 = vld [vmem:[%s8217_s26 + $0x138c] ss:$16 sps:$4 sm:$0xff]  }
 0x2e9   : > { %5594 = vmatprep.subr.bf16.mxu1 %v7735_v3  ;;  %v7801_v20 = vld [vmem:[%s8217_s26 + $0x158c] ss:$16 sps:$4 sm:$0xff]   ;;  %v7796_v3 = vld [vmem:[%s8217_s26 + $0x1388] ss:$16 sps:$4 sm:$0xff]  }
 0x2ea   : > { %v5259_v23 = vpop.f32.mrf.mxu0  ;;  %5504 = vmatmul.mubr.bf16.vlgmr.msra.gmra.mxu0 %v8617_v21 }
 0x2eb   : > { %v5300_v25 = vpop.f32.mrf.mxu1  ;;  %5545 = vmatmul.mubr.bf16.vlgmr.msra.gmra.mxu1 %v8698_v4  ;;  %v5260_v28 = vadd.f32 %v5259_v23, %v9017_v63  ;;  %5554 = vmatpush1.bf16.msra.mxu0 %v7730_v24  ;;  %v7799_v24 = vld [vmem:[%s8217_s26 + $0x1588] ss:$16 sps:$4 sm:$0xff]  }
 0x2ec   : > { %5595 = vmatpush1.bf16.msra.mxu1 %v7733_v42  ;;  %v5261_v34 = vpop.f32.mrf.mxu0  ;;  %5555 = vmatprep.subr.bf16.mxu0 %v7738_v37  ;;  %v7804_v42 = vld [vmem:[%s8217_s26 + $0x136c] ss:$16 sps:$4 sm:$0xff]   ;;  %v7805_v23 = vld [vmem:[%s8217_s26 + $0x1568] ss:$16 sps:$4 sm:$0xff]  }
 0x2ed   : > { %v5302_v14 = vpop.f32.mrf.mxu1  ;;  %5596 = vmatprep.subr.bf16.mxu1 %v7741_v22  ;;  %v9104_v40 = vadd.f32 %v5300_v25, %v5260_v28  ;;  %v5262_v21 = vadd.f32 %v5261_v34, %v9026_v10  ;;  %5585 = vmatprep.mubr.bf16.mxu0 %v8625_v26  ;;  %v7750_v26 = vld [vmem:[%s8217_s26 + $0x128c] ss:$16 sps:$4 sm:$0xff]   ;;  %v7748_v10 = vld [vmem:[%s8217_s26 + $0x1288] ss:$16 sps:$4 sm:$0xff]  }
 0x2ee   : > { %5626 = vmatprep.mubr.bf16.mxu1 %v8717_v41  ;;  %v5263_v4 = vpop.f32.mrf.mxu0  ;;  %v7753_v41 = vld [vmem:[%s8217_s26 + $0x148c] ss:$16 sps:$4 sm:$0xff]   ;;  %v7802_v22 = vld [vmem:[%s8217_s26 + $0x1368] ss:$16 sps:$4 sm:$0xff]  }
 0x2ef   : > { %v5304_v63 = vpop.f32.mrf.mxu1  ;;  %v9109_v45 = vadd.f32 %v5302_v14, %v5262_v21  ;;  %5556 = vmatpush1.bf16.msra.mxu0 %v7736_v30  ;;  %v7807_v37 = vld [vmem:[%s8217_s26 + $0x156c] ss:$16 sps:$4 sm:$0xff]   ;;  %v7808_v30 = vld [vmem:[%s8217_s26 + $0x1348] ss:$16 sps:$4 sm:$0xff]  }
 0x2f0   : > { %5597 = vmatpush1.bf16.msra.mxu1 %v7739_v32  ;;  %v5264_v7 = vpop.f32.mrf.mxu0  ;;  %5557 = vmatprep.subr.bf16.mxu0 %v7744_v35  ;;  %v7810_v25 = vld [vmem:[%s8217_s26 + $0x134c] ss:$16 sps:$4 sm:$0xff]   ;;  %v7811_v32 = vld [vmem:[%s8217_s26 + $0x1548] ss:$16 sps:$4 sm:$0xff]  }
 0x2f1   : > { %v5305_v33 = vpop.f32.mrf.mxu1  ;;  %5598 = vmatprep.subr.bf16.mxu1 %v7747_v38  ;;  %v7813_v28 = vld [vmem:[%s8217_s26 + $0x154c] ss:$16 sps:$4 sm:$0xff]   ;;  %v7814_v35 = vld [vmem:[%s8217_s26 + $0x1328] ss:$16 sps:$4 sm:$0xff]  }
 0x2f2   : > { %v7816_v34 = vld [vmem:[%s8217_s26 + $0x132c] ss:$16 sps:$4 sm:$0xff]   ;;  %v7817_v38 = vld [vmem:[%s8217_s26 + $0x1528] ss:$16 sps:$4 sm:$0xff]  }
 0x2f3   : > { %5558 = vmatpush1.bf16.msra.mxu0 %v7742_v1  ;;  %v7819_v14 = vld [vmem:[%s8217_s26 + $0x152c] ss:$16 sps:$4 sm:$0xff]   ;;  %v7820_v63 = vld [vmem:[%s8217_s26 + $0x1308] ss:$16 sps:$4 sm:$0xff]  }
 0x2f4   : > { %5599 = vmatpush1.bf16.msra.mxu1 %v7745_v18  ;;  %5559 = vmatprep.subr.bf16.mxu0 %v7750_v26  ;;  %v7822_v21 = vld [vmem:[%s8217_s26 + $0x130c] ss:$16 sps:$4 sm:$0xff]   ;;  %v7823_v1 = vld [vmem:[%s8217_s26 + $0x1508] ss:$16 sps:$4 sm:$0xff]  }
 0x2f5   : > { %5600 = vmatprep.subr.bf16.mxu1 %v7753_v41  ;;  %v7825_v4 = vld [vmem:[%s8217_s26 + $0x150c] ss:$16 sps:$4 sm:$0xff]  }
 0x2f7   : > { %5560 = vmatpush1.bf16.msra.mxu0 %v7748_v10 }
 0x2f8   : > { %5601 = vmatpush1.bf16.msra.mxu1 %v7751_v46  ;;  %5561 = vmatprep.subr.bf16.mxu0 %v7756_v47 }
 0x2f9   : > { %5602 = vmatprep.subr.bf16.mxu1 %v7759_v31 }
 0x2fb   : > { %5562 = vmatpush1.bf16.msra.mxu0 %v7754_v49 }
 0x2fc   : > { %5603 = vmatpush1.bf16.msra.mxu1 %v7757_v11  ;;  %5563 = vmatprep.subr.bf16.mxu0 %v7762_v61 }
 0x2fd   : > { %5604 = vmatprep.subr.bf16.mxu1 %v7765_v51 }
 0x2ff   : > { %5564 = vmatpush1.bf16.msra.mxu0 %v7760_v52 }
 0x300   : > { %5605 = vmatpush1.bf16.msra.mxu1 %v7763_v53  ;;  %5565 = vmatprep.subr.bf16.mxu0 %v7768_v43 }
 0x301   : > { %5606 = vmatprep.subr.bf16.mxu1 %v7771_v55 }
 0x303   : > { %5566 = vmatpush1.bf16.msra.mxu0 %v7766_v12 }
 0x304   : > { %5607 = vmatpush1.bf16.msra.mxu1 %v7769_v54  ;;  %5567 = vmatprep.subr.bf16.mxu0 %v7774_v36 }
 0x305   : > { %5608 = vmatprep.subr.bf16.mxu1 %v7777_v57 }
 0x307   : > { %5568 = vmatpush1.bf16.msra.mxu0 %v7772_v58 }
 0x308   : > { %5609 = vmatpush1.bf16.msra.mxu1 %v7775_v59  ;;  %5569 = vmatprep.subr.bf16.mxu0 %v7780_v62 }
 0x309   : > { %5610 = vmatprep.subr.bf16.mxu1 %v7783_v0 }
 0x30b   : > { %5570 = vmatpush2.bf16.msra.mxu0 %v7778_v6 }
 0x30c   : > { %5611 = vmatpush2.bf16.msra.mxu1 %v7781_v8  ;;  %5571 = vmatprep.subr.bf16.mxu0 %v7786_v19 }
 0x30d   : > { %5612 = vmatprep.subr.bf16.mxu1 %v7789_v27 }
 0x30f   : > { %5572 = vmatpush2.bf16.msra.mxu0 %v7784_v13 }
 0x310   : > { %5613 = vmatpush2.bf16.msra.mxu1 %v7787_v39  ;;  %5573 = vmatprep.subr.bf16.mxu0 %v7792_v15  ;;  %v8014_v39 = vmov 1983009808  }
 0x311   : > { %5614 = vmatprep.subr.bf16.mxu1 %v7795_v16  ;;  %v5642_v15 = vunpack.c.l.s4 %v8014_v39 }
 0x313   : > { %5574 = vmatpush2.bf16.msra.mxu0 %v7790_v17 }
 0x314   : > { %5615 = vmatpush2.bf16.msra.mxu1 %v7793_v48  ;;  %5575 = vmatprep.subr.bf16.mxu0 %v7798_v60  ;;  %v5643_v60 = vunpack.c.0.s8 %v5642_v15 }
 0x315   : > { %5616 = vmatprep.subr.bf16.mxu1 %v7801_v20 }
 0x317   : > { %5576 = vmatpush2.bf16.msra.mxu0 %v7796_v3 }
 0x318   : > { %5617 = vmatpush2.bf16.msra.mxu1 %v7799_v24  ;;  %5577 = vmatprep.subr.bf16.mxu0 %v7804_v42 }
 0x319   : > { %5618 = vmatprep.subr.bf16.mxu1 %v7807_v37 }
 0x31b   : > { %5578 = vmatpush2.bf16.msra.mxu0 %v7802_v22 }
 0x31c   : > { %5619 = vmatpush2.bf16.msra.mxu1 %v7805_v23  ;;  %5579 = vmatprep.subr.bf16.mxu0 %v7810_v25  ;;  %v5646_v25 = vsub.s32 %v5643_v60, %v8287_v44 }
 0x31d   : > { %5620 = vmatprep.subr.bf16.mxu1 %v7813_v28 }
 0x31f   : > { %5580 = vmatpush2.bf16.msra.mxu0 %v7808_v30 }
 0x320   : > { %5621 = vmatpush2.bf16.msra.mxu1 %v7811_v32  ;;  %5581 = vmatprep.subr.bf16.mxu0 %v7816_v34 }
 0x321   : > { %5622 = vmatprep.subr.bf16.mxu1 %v7819_v14 }
 0x323   : > { %5582 = vmatpush2.bf16.msra.mxu0 %v7814_v35  ;;  %v5647_v35 = vrot.slane %v5639_v29, %v5646_v25 }
 0x324   : > { %5623 = vmatpush2.bf16.msra.mxu1 %v7817_v38  ;;  %5583 = vmatprep.subr.bf16.mxu0 %v7822_v21  ;;  %v335_v21 = vld [vmem:[#allocation2] sm:$0xff] }
 0x325   : > { %5624 = vmatprep.subr.bf16.mxu1 %v7825_v4 }
 0x327   : > { %5584 = vmatpush2.bf16.msra.mxu0 %v7820_v63 }
 0x328   : > { %5625 = vmatpush2.bf16.msra.mxu1 %v7823_v1 }
 0x32a   : > { %v5341_v18 = vpop.f32.mrf.mxu0  ;;  %5586 = vmatmul.mubr.bf16.vlgmr.msra.gmra.mxu0 %v8710_v5 }
 0x32b   : > { %v5382_v7 = vpop.f32.mrf.mxu1  ;;  %5627 = vmatmul.mubr.bf16.vlgmr.msra.gmra.mxu1 %v8791_v9  ;;  %v5342_v33 = vadd.f32 %v5341_v18, %v9104_v40 }
 0x32c   : > { %v5343_v26 = vpop.f32.mrf.mxu0 }
 0x32d   : > { %v5384_v41 = vpop.f32.mrf.mxu1  ;;  %v5383_v10 = vadd.f32 %v5382_v7, %v5342_v33  ;;  %v5344_v46 = vadd.f32 %v5343_v26, %v9109_v45 }
 0x32e   : > { %v5345_v47 = vpop.f32.mrf.mxu0 }
 0x32f   : > { %v5386_v31 = vpop.f32.mrf.mxu1  ;;  %v5385_v49 = vadd.f32 %v5384_v41, %v5344_v46 }
 0x330   : > { %v5346_v11 = vpop.f32.mrf.mxu0 }
 0x331   : > { %v5387_v61 = vpop.f32.mrf.mxu1 }
 0x36a   : > { %v5423_v51 = vpop.f32.mrf.mxu0 }
 0x36b   : > { %v5464_v52 = vpop.f32.mrf.mxu1  ;;  %v5424_v53 = vadd.f32 %v5423_v51, %v5383_v10 }
 0x36c   : > { %v5425_v43 = vpop.f32.mrf.mxu0 }
 0x36d   : > { %v5466_v55 = vpop.f32.mrf.mxu1  ;;  %v5465_v5 = vadd.f32 %v5464_v52, %v5424_v53  ;;  %v5426_v12 = vadd.f32 %v5425_v43, %v5385_v49 }
 0x36e   : > { %v5427_v9 = vpop.f32.mrf.mxu0 }
 0x36f   : > { %v5468_v54 = vpop.f32.mrf.mxu1  ;;  %v5467_v40 = vadd.f32 %v5466_v55, %v5426_v12 }
 0x370   : > { %v5428_v36 = vpop.f32.mrf.mxu0 }
 0x371   : > { %v5469_v57 = vpop.f32.mrf.mxu1 }
 0x3aa   : > { %v5505_v58 = vpop.f32.mrf.mxu0 }
 0x3ab   : > { %v5546_v59 = vpop.f32.mrf.mxu1  ;;  %v5506_v45 = vadd.f32 %v5505_v58, %v5465_v5 }
 0x3ac   : > { %v5507_v62 = vpop.f32.mrf.mxu0 }
 0x3ad   : > { %v5548_v0 = vpop.f32.mrf.mxu1  ;;  %v5547_v6 = vadd.f32 %v5546_v59, %v5506_v45  ;;  %v5508_v16 = vadd.f32 %v5507_v62, %v5467_v40 }
 0x3ae   : > { %v5509_v8 = vpop.f32.mrf.mxu0 }
 0x3af   : > { %v5550_v19 = vpop.f32.mrf.mxu1  ;;  %v5549_v20 = vadd.f32 %v5548_v0, %v5508_v16 }
 0x3b0   : > { %v5510_v27 = vpop.f32.mrf.mxu0 }
 0x3b1   : > { %v5551_v13 = vpop.f32.mrf.mxu1 }
 0x3ea   : > { %v5587_v17 = vpop.f32.mrf.mxu0 }
 0x3eb   : > { %v5628_v48 = vpop.f32.mrf.mxu1  ;;  %v5588_v3 = vadd.f32 %v5587_v17, %v5547_v6 }
 0x3ec   : > { %v5589_v24 = vpop.f32.mrf.mxu0 }
 0x3ed   : > { %v5630_v42 = vpop.f32.mrf.mxu1  ;;  %v5590_v37 = vadd.f32 %v5589_v24, %v5549_v20  ;;  %v5629_v28 = vadd.f32 %v5628_v48, %v5588_v3 }
 0x3ee   : > { %v5591_v22 = vpop.f32.mrf.mxu0 }
 0x3ef   : > { %v5632_v23 = vpop.f32.mrf.mxu1  ;;  %v5631_v30 = vadd.f32 %v5630_v42, %v5590_v37 }
 0x3f0   : > { %v5592_v32 = vpop.f32.mrf.mxu0 }
 0x3f1   : > { %v5633_v34 = vpop.f32.mrf.mxu1  ;;  %v5640_v14 = vcombine.low %v5629_v28, %v5631_v30 }
 0x3f3   : > { %v5654_v38 = vrot.slane %v5640_v14, %v5646_v25 }
 0x3f5   : > { %v5655_v4 = vcombine.low %v5647_v35, %v5654_v38  ;;  %5662 = sbr.rel (%p6645_p2) target bundleno = 1048 (0x418), region = 56 }
 0x3f7   : > { %v5657_v63 = vadd.f32 %v5655_v4, %v335_v21 }
 0x3f9   : > { %5658 = vst [vmem:[#allocation2] sm:$0xff] %v5657_v63 }
 0x3fa   : > { %v5664_v1 = vld [vmem:[%s269_s11] sm:$0xf]  ;;  %v5668_v18 = vsub.s32 0, %v8287_v44  ;;  %v5672_v7 = vsub.s32 1, %v8287_v44  ;;  %v5676_v33 = vsub.s32 2, %v8287_v44  ;;  %v5680_v2 = vsub.s32 3, %v8287_v44 }
 0x3fb   : > { %v5701_v56 = vld [vmem:[%s278_s14] sm:$0xf] }
 0x3fc   : > { %v5669_v29 = vrot.slane %v5664_v1, %v5668_v18  ;;  %v5673_v26 = vrot.slane %v5664_v1, %v5672_v7  ;;  %v5677_v41 = vrot.slane %v5664_v1, %v5676_v33  ;;  %v5706_v10 = vrot.slane %v5701_v56, %v5668_v18 }
 0x3fd   : > { %v5681_v46 = vrot.slane %v5664_v1, %v5680_v2  ;;  %v5710_v47 = vrot.slane %v5701_v56, %v5672_v7  ;;  %v5714_v31 = vrot.slane %v5701_v56, %v5676_v33  ;;  %v5718_v49 = vrot.slane %v5701_v56, %v5680_v2 }
 0x3fe   : > { %v5682_v11 = vcombine.low %v5669_v29, %v5673_v26 }
 0x3ff   : > { %v5683_v61 = vcombine.low %v5677_v41, %v5681_v46  ;;  %v5719_v51 = vcombine.low %v5706_v10, %v5710_v47  ;;  %v5720_v52 = vcombine.low %v5714_v31, %v5718_v49 }
 0x400   : > { %v5690_v53 = vrot.slane %v5682_v11, %v5646_v25  ;;  %v5663_v12 = vld [vmem:[#allocation2] sm:$0xff] }
 0x401   : > { %v5697_v43 = vrot.slane %v5683_v61, %v5646_v25  ;;  %v5727_v55 = vrot.slane %v5719_v51, %v5646_v25  ;;  %v5734_v5 = vrot.slane %v5720_v52, %v5646_v25 }
 0x403   : > { %v5698_v44 = vcombine.low %v5690_v53, %v5697_v43  ;;  %v5735_v9 = vcombine.low %v5727_v55, %v5734_v5 }
 0x405   : > { %v5700_v54 = vmul.f32 %v5698_v44, %v5663_v12 }
 0x407   : > { %v5737_v40 = vadd.f32 %v5735_v9, %v5700_v54 }
 0x409   : > { %v5738_v36 = vmax.f32 %v5737_v40, 0.0 }
 0x40b   : > { %v5740_v57 = vcombine.high %v5738_v36, %v5738_v36  ;;  %v5747_v58 = vrot.slane %v5738_v36, %v5646_v25 }
 0x40d   : > { %v5754_v59 = vrot.slane %v5740_v57, %v5646_v25  ;;  %v5755_v45 = vcombine.high %v5747_v58, %v5747_v58 }
 0x40f   : > { %v5756_v62 = vcombine.high %v5754_v59, %v5754_v59  ;;  %v6646_v0 = vpack.c.bf16 %v5755_v45, %v5747_v58 }
 0x411   : > { %v6647_v6 = vpack.c.bf16 %v5756_v62, %v5754_v59  ;;  %v5777_v8 = vrot.slane %v6646_v0, %v8295_v50 }
 0x413   : > { %v5784_v19 = vrot.slane %v6647_v6, %v8295_v50 }
 0x415   : > { %v5785_v27 = vcombine.low %v5777_v8, %v5784_v19 }
 0x417   : > { %6648 = vst.sshfl [vmem:[%s328_s17] sm:$0x55 pattern:$0x73625140] %v5785_v27 }
 0x418 PF: > { %s20_s25 = sadd.s32 1, %s8004_s25   ;;  %s9258_s20 = sld [smem:[#allocation10_spill]] }
 0x419   : > { %p17_p4 = scmp.ge.s32.totalorder %s20_s25, 10   ;;  %s9259_s17 = sld [smem:[#allocation16_spill]] }
 0x41a   : > { %s9260_s23 = sld [smem:[#allocation11_spill]]  ;;  %s9266_s15 = smov %s7968_s16 }
 0x41b   : > { %s9261_s24 = sld [smem:[#allocation17_spill]]  ;;  %s9268_s18 = smov %s7980_s19 }
 0x41c   : > { %s9262_s21 = sld [smem:[#allocation12_spill]] }
 0x41d   : > { %s9263_s22 = sld [smem:[#allocation13_spill]] }
 0x41e   : > { %s9264_s4 = sld [smem:[#allocation14_spill]]  ;;  %s9267_s16 = smov %s9258_s20 }
 0x41f   : > { %s9265_s30 = sld [smem:[#allocation15_spill]] }
 0x420   : > { %s9269_s19 = smov %s9260_s23 }
 0x421   : > { %s9270_s20 = smov %s9261_s24  ;;  %19 = sbr.rel (!%p17_p4) target bundleno = 13 (0xd), region = 111 }
 0x424   : > { %s9271_s23 = smov %s9264_s4 }
 0x425   : > { %s9272_s24 = smov %s9265_s30 }
 0x426   :  { %5815 = vsyncpa [#allocation4], 1 }
 0x427   :  { %5817 = vsyncpa [#allocation4 + $0x1], 1 }
 0x428   :  { %5818 = vsyncpa [#allocation6], 1 }
 0x429   :  { %5820 = vsyncpa [#allocation6 + $0x1], 1 }

</bundles_post_ra>
